<compile_context>
chip_gen: v7x
topology: tpu7x:2x2x1
jax: 0.10.0
libtpu: 0.0.40
codegen_flags: <defaults>
</compile_context>

<pallas_src>
import jax
import jax.numpy as jnp
import numpy as np
from jax import lax
from jax.experimental import pallas as pl
from jax.experimental.pallas import tpu as pltpu

_SQRT_HALF = float(1.0 / np.sqrt(2.0))


def _erf(x):
    """erf via Abramowitz & Stegun 7.1.26 (max abs error ~1.5e-7).

    Built only from exp + polynomial + select so it lowers on all Pallas TPU
    generations; the exp lands on the EUP slot, the polynomial on the VPU.
    """
    p = 0.3275911
    a1, a2, a3, a4, a5 = (0.254829592, -0.284496736, 1.421413741,
                          -1.453152027, 1.061405429)
    ax = jnp.abs(x)
    t = 1.0 / (1.0 + p * ax)
    poly = ((((a5 * t + a4) * t + a3) * t + a2) * t + a1) * t
    y = 1.0 - poly * jnp.exp(-(ax * ax))
    return jnp.where(x < 0, -y, y)


def _gelu_erf(x):
    # Matches nn.GELU() default (exact erf form) to ~1e-7.
    return 0.5 * x * (1.0 + _erf(x * _SQRT_HALF))


def _im2col_3x3(col_ref, src_ref):
    """col[:, y, x, t*C:(t+1)*C] = src[:, y+ky-1, x+kx-1, :]  (zero when OOB).

    Taps are laid out tap-major along K so that w.reshape(9*C, Cout) (HWIO
    order) is the matching weight matrix.  Only the out-of-bounds border strips
    are written with zeros (O(perimeter) stores); everything else is a shifted
    copy of the source block.  Strips are re-zeroed every grid step because
    scratch starts uninitialized and with "parallel" megacore partitioning a
    core may never execute step 0.
    """
    Bblk, H, W, C = src_ref.shape
    mm = col_ref.dtype
    zrow = jnp.zeros((Bblk, 1, W, C), mm)
    zcol = jnp.zeros((Bblk, H, 1, C), mm)
    for ky in range(3):
        for kx in range(3):
            t = 3 * ky + kx
            dy, dx = ky - 1, kx - 1
            lo, hi = t * C, (t + 1) * C
            if dy < 0:
                col_ref[:, 0:1, :, lo:hi] = zrow
            if dy > 0:
                col_ref[:, H - 1:H, :, lo:hi] = zrow
            if dx < 0:
                col_ref[:, :, 0:1, lo:hi] = zcol
            if dx > 0:
                col_ref[:, :, W - 1:W, lo:hi] = zcol
            oy0, oy1 = max(0, -dy), H - max(0, dy)
            ox0, ox1 = max(0, -dx), W - max(0, dx)
            iy0, ix0 = oy0 + dy, ox0 + dx
            col_ref[:, oy0:oy1, ox0:ox1, lo:hi] = (
                src_ref[:, iy0:iy0 + (oy1 - oy0),
                        ix0:ix0 + (ox1 - ox0), :].astype(mm))


def _cab_kernel(x_ref,      # (Bblk, H, W, Cin)       f32 input block
                w1_ref,     # (9*Cin, Cmid)           mm dtype (im2col-K refold)
                b1_ref,     # (1, Cmid)               f32
                w2_ref,     # (9*Cmid, Cout)          mm dtype (im2col-K refold)
                b2_ref,     # (1, Cout)               f32
                caw1_ref,   # (Cout, Csq)             f32
                cab1_ref,   # (1, Csq)                f32
                caw2_ref,   # (Csq, Cout)             f32
                cab2_ref,   # (1, Cout)               f32
                o_ref,      # (Bblk, H, W, Cout)      f32 output block
                col1_ref,   # scratch (Bblk, H, W, 9*Cin)   mm dtype
                p1_ref,     # scratch (Bblk, H, W, Cmid)    mm dtype
                col2_ref):  # scratch (Bblk, H, W, 9*Cmid)  mm dtype
    Bblk, H, W, Cout = o_ref.shape
    Cin = x_ref.shape[-1]
    Cmid = p1_ref.shape[-1]
    M = Bblk * H * W
    mm = col1_ref.dtype

    # ---- conv1: im2col-on-K, one MXU matmul (M=Bblk*H*W, K=9*Cin, N=Cmid) ----
    _im2col_3x3(col1_ref, x_ref)
    y1 = jnp.dot(col1_ref[...].reshape(M, 9 * Cin), w1_ref[...],
                 preferred_element_type=jnp.float32)
    y1 = _gelu_erf(y1 + b1_ref[...])
    p1_ref[...] = y1.astype(mm).reshape(Bblk, H, W, Cmid)

    # ---- conv2: im2col-on-K, one MXU matmul (K=9*Cmid instead of Cmid) -------
    _im2col_3x3(col2_ref, p1_ref)
    y2 = jnp.dot(col2_ref[...].reshape(M, 9 * Cmid), w2_ref[...],
                 preferred_element_type=jnp.float32) + b2_ref[...]
    o_ref[...] = y2.reshape(Bblk, H, W, Cout)

    # ---- channel attention: GAP -> 1x1 -> ReLU -> 1x1 -> sigmoid -> scale ----
    pooled = jnp.mean(o_ref[...].reshape(Bblk, H * W, Cout), axis=1)  # (Bblk,Cout)
    z = jnp.maximum(
        jnp.dot(pooled, caw1_ref[...], preferred_element_type=jnp.float32)
        + cab1_ref[...], 0.0)
    s = jax.nn.sigmoid(
        jnp.dot(z, caw2_ref[...], preferred_element_type=jnp.float32)
        + cab2_ref[...])
    o_ref[...] = o_ref[...] * s.reshape(Bblk, 1, 1, Cout)


def _pick_bblk(B):
    # Largest block <= 4 that divides B while keeping >= 2 grid steps, so a
    # v7x megacore can still split the batch axis across both TensorCores while
    # amortizing the ~0.35us per-grid-step overhead for small H, W.
    for cand in (4, 3, 2, 1):
        if cand <= max(1, B // 2) and B % cand == 0:
            return cand
    return 1


def cab_pallas_nhwc(x_nhwc, params, *, bblk=None, mm_dtype=jnp.bfloat16):
    """CAB forward on NHWC input. Preferred (transpose-free) entry point."""
    w1, b1, w2, b2, caw1, cab1, caw2, cab2 = params
    B, H, W, Cin = x_nhwc.shape
    Cmid = w1.shape[-1]
    Cout = w2.shape[-1]
    Csq = caw1.shape[-1]
    if bblk is None:
        bblk = _pick_bblk(B)
    if B % bblk != 0:
        raise ValueError(f"batch {B} must be divisible by bblk={bblk}")

    # im2col-on-K weight refolds: (kh, kw, Ci, Co) -> (9*Ci, Co); row index is
    # (3*ky + kx)*Ci + ci, matching the tap-major column-slab layout in-kernel.
    w1r = w1.reshape(9 * Cin, Cmid).astype(mm_dtype)
    w2r = w2.reshape(9 * Cmid, Cout).astype(mm_dtype)

    b1_2d = b1.reshape(1, Cmid).astype(jnp.float32)
    b2_2d = b2.reshape(1, Cout).astype(jnp.float32)
    caw1_f = caw1.astype(jnp.float32)
    cab1_2d = cab1.reshape(1, Csq).astype(jnp.float32)
    caw2_f = caw2.astype(jnp.float32)
    cab2_2d = cab2.reshape(1, Cout).astype(jnp.float32)

    mm_bytes = np.dtype(mm_dtype).itemsize

    def _lanes(c):  # lane padding to 128 for VMEM sizing
        return -(-c // 128) * 128

    # Rough per-step VMEM footprint: double-buffered I/O blocks + weights
    # + the three im2col/activation scratches.  Clamp the explicit limit so it
    # stays below every generation's physical VMEM (v7x: 64 MiB per TC).
    est = (2 * bblk * H * W * (_lanes(Cin) + _lanes(Cout)) * 4
           + 2 * (9 * Cin * _lanes(Cmid) + 9 * Cmid * _lanes(Cout)) * mm_bytes
           + bblk * H * W * (_lanes(9 * Cin) + _lanes(Cmid) + _lanes(9 * Cmid))
           * mm_bytes)
    vmem_limit = int(min(96 * 1024 * 1024, max(32 * 1024 * 1024, 2 * est)))

    grid_spec = pltpu.PrefetchScalarGridSpec(
        num_scalar_prefetch=0,
        grid=(B // bblk,),
        in_specs=[
            pl.BlockSpec((bblk, H, W, Cin), lambda b: (b, 0, 0, 0)),
            pl.BlockSpec((9 * Cin, Cmid), lambda b: (0, 0)),
            pl.BlockSpec((1, Cmid), lambda b: (0, 0)),
            pl.BlockSpec((9 * Cmid, Cout), lambda b: (0, 0)),
            pl.BlockSpec((1, Cout), lambda b: (0, 0)),
            pl.BlockSpec((Cout, Csq), lambda b: (0, 0)),
            pl.BlockSpec((1, Csq), lambda b: (0, 0)),
            pl.BlockSpec((Csq, Cout), lambda b: (0, 0)),
            pl.BlockSpec((1, Cout), lambda b: (0, 0)),
        ],
        out_specs=pl.BlockSpec((bblk, H, W, Cout), lambda b: (b, 0, 0, 0)),
        scratch_shapes=[
            pltpu.VMEM((bblk, H, W, 9 * Cin), mm_dtype),   # conv1 im2col slab
            pltpu.VMEM((bblk, H, W, Cmid), mm_dtype),      # GELU output
            pltpu.VMEM((bblk, H, W, 9 * Cmid), mm_dtype),  # conv2 im2col slab
        ],
    )

    # TODO(synk): for SR-scale H,W add an H-strip grid axis (1-row halo fetched
    # via manual DMA from a pl.ANY-space input) so per-step VMEM fits v7x's
    # 64 MiB budget and both of its TensorCores get work even at B=1; at the
    # tested sizes a batch-only grid is sufficient.
    return pl.pallas_call(
        _cab_kernel,
        grid_spec=grid_spec,
        out_shape=jax.ShapeDtypeStruct((B, H, W, Cout), jnp.float32),
        compiler_params=pltpu.CompilerParams(
            dimension_semantics=("parallel",),
            vmem_limit_bytes=vmem_limit),
    )(x_nhwc, w1r, b1_2d, w2r, b2_2d, caw1_f, cab1_2d, caw2_f, cab2_2d)


def cab_pallas(x_nchw, params, *, bblk=None, mm_dtype=jnp.bfloat16):
    """Drop-in NCHW (PyTorch-layout) adapter.

    Prefer `cab_pallas_nhwc` and keep activations NHWC end-to-end in the
    surrounding model — each transpose here costs a full extra HBM round-trip.
    """
    out_nhwc = cab_pallas_nhwc(jnp.transpose(x_nchw, (0, 2, 3, 1)), params,
                               bblk=bblk, mm_dtype=mm_dtype)
    return jnp.transpose(out_nhwc, (0, 3, 1, 2))


def cab_reference_nhwc(x_nhwc, params, conv_dtype=jnp.float32):
    """Plain-JAX reference (NHWC). conv_dtype lets us match the kernel's
    bf16-operand / f32-accumulate conv precision for a tight comparison."""
    w1, b1, w2, b2, caw1, cab1, caw2, cab2 = params
    dn = ("NHWC", "HWIO", "NHWC")
    y1 = lax.conv_general_dilated(
        x_nhwc.astype(conv_dtype), w1.astype(conv_dtype), (1, 1), "SAME",
        dimension_numbers=dn, preferred_element_type=jnp.float32) + b1
    y1 = jax.nn.gelu(y1, approximate=False)
    y2 = lax.conv_general_dilated(
        y1.astype(conv_dtype), w2.astype(conv_dtype), (1, 1), "SAME",
        dimension_numbers=dn, preferred_element_type=jnp.float32) + b2
    pooled = jnp.mean(y2, axis=(1, 2))                       # (B, Cout)
    z = jnp.maximum(pooled @ caw1 + cab1, 0.0)               # (B, Csq)
    s = jax.nn.sigmoid(z @ caw2 + cab2)                      # (B, Cout)
    return y2 * s[:, None, None, :]


def make_params(key, num_feat, compress_ratio, squeeze_factor):
    Cin = num_feat
    Cmid = num_feat // compress_ratio
    Csq = num_feat // squeeze_factor
    ks = jax.random.split(key, 8)
    scale = 0.1
    w1 = scale * jax.random.normal(ks[0], (3, 3, Cin, Cmid), jnp.float32)
    b1 = scale * jax.random.normal(ks[1], (Cmid,), jnp.float32)
    w2 = scale * jax.random.normal(ks[2], (3, 3, Cmid, Cin), jnp.float32)
    b2 = scale * jax.random.normal(ks[3], (Cin,), jnp.float32)
    caw1 = scale * jax.random.normal(ks[4], (Cin, Csq), jnp.float32)
    cab1 = scale * jax.random.normal(ks[5], (Csq,), jnp.float32)
    caw2 = scale * jax.random.normal(ks[6], (Csq, Cin), jnp.float32)
    cab2 = scale * jax.random.normal(ks[7], (Cin,), jnp.float32)
    return (w1, b1, w2, b2, caw1, cab1, caw2, cab2)


if __name__ == "__main__":
    # CAB(num_feat=48, compress_ratio=3, squeeze_factor=16) -> Cmid=16, Csq=3.
    B, C, H, W = 2, 48, 16, 16
    key = jax.random.PRNGKey(0)
    kx_, kp = jax.random.split(key)
    x_nchw = jax.random.normal(kx_, (B, C, H, W), jnp.float32)
    params = make_params(kp, num_feat=C, compress_ratio=3, squeeze_factor=16)

    x_nhwc = jnp.transpose(x_nchw, (0, 2, 3, 1))

    # Preferred transpose-free NHWC path.
    out_nhwc = jax.block_until_ready(cab_pallas_nhwc(x_nhwc, params))
    ref_bf16 = jax.block_until_ready(
        cab_reference_nhwc(x_nhwc, params, conv_dtype=jnp.bfloat16))
    ref_f32 = jax.block_until_ready(cab_reference_nhwc(x_nhwc, params))

    # Tight check vs. a precision-matched (bf16-operand, f32-accumulate)
    # reference, loose sanity check vs. the pure-f32 reference.
    np.testing.assert_allclose(np.asarray(out_nhwc), np.asarray(ref_bf16),
                               rtol=2e-2, atol=2e-2)
    np.testing.assert_allclose(np.asarray(out_nhwc), np.asarray(ref_f32),
                               rtol=1e-1, atol=1e-1)

    # Drop-in NCHW (PyTorch-layout) adapter.
    out_nchw = jax.block_until_ready(cab_pallas(x_nchw, params))
    np.testing.assert_allclose(np.asarray(out_nchw),
                               np.asarray(jnp.transpose(ref_bf16, (0, 3, 1, 2))),
                               rtol=2e-2, atol=2e-2)

    print("KERNEL_OK")
</pallas_src>

<mosaic_0001>
module attributes {stable_mosaic.version = 11 : i64} {
  func.func @_cab_kernel(%arg0: i32, %arg1: memref<1x16x16x48xf32, #tpu.memory_space<vmem>>, %arg2: memref<432x16xbf16, #tpu.memory_space<vmem>>, %arg3: memref<1x16xf32, #tpu.memory_space<vmem>>, %arg4: memref<144x48xbf16, #tpu.memory_space<vmem>>, %arg5: memref<1x48xf32, #tpu.memory_space<vmem>>, %arg6: memref<48x3xf32, #tpu.memory_space<vmem>>, %arg7: memref<1x3xf32, #tpu.memory_space<vmem>>, %arg8: memref<3x48xf32, #tpu.memory_space<vmem>>, %arg9: memref<1x48xf32, #tpu.memory_space<vmem>>, %arg10: memref<1x16x16x48xf32, #tpu.memory_space<vmem>>, %arg11: memref<1x16x16x432xbf16, #tpu.memory_space<vmem>>, %arg12: memref<1x16x16x16xbf16, #tpu.memory_space<vmem>>, %arg13: memref<1x16x16x144xbf16, #tpu.memory_space<vmem>>) attributes {dimension_semantics = [#tpu.dimension_semantics<parallel>], iteration_bounds = array<i64: 2>, scalar_prefetch = 0 : i64, scratch_operands = 3 : i64, tpu.core_type = #tpu.core_type<tc>, window_params = [{transform_indices = @transform_0, window_bounds = array<i64: 1, 16, 16, 48>}, {pipeline_mode = #tpu.pipeline_mode<synchronous>, transform_indices = @transform_1, window_bounds = array<i64: 432, 16>}, {pipeline_mode = #tpu.pipeline_mode<synchronous>, transform_indices = @transform_2, window_bounds = array<i64: 1, 16>}, {pipeline_mode = #tpu.pipeline_mode<synchronous>, transform_indices = @transform_3, window_bounds = array<i64: 144, 48>}, {pipeline_mode = #tpu.pipeline_mode<synchronous>, transform_indices = @transform_4, window_bounds = array<i64: 1, 48>}, {pipeline_mode = #tpu.pipeline_mode<synchronous>, transform_indices = @transform_5, window_bounds = array<i64: 48, 3>}, {pipeline_mode = #tpu.pipeline_mode<synchronous>, transform_indices = @transform_6, window_bounds = array<i64: 1, 3>}, {pipeline_mode = #tpu.pipeline_mode<synchronous>, transform_indices = @transform_7, window_bounds = array<i64: 3, 48>}, {pipeline_mode = #tpu.pipeline_mode<synchronous>, transform_indices = @transform_8, window_bounds = array<i64: 1, 48>}, {transform_indices = @transform_9, window_bounds = array<i64: 1, 16, 16, 48>}]} {
    %cst = arith.constant 0.000000e+00 : bf16
    %0 = vector.broadcast %cst : bf16 to vector<1x1x16x48xbf16>
    %cst_0 = arith.constant 0.000000e+00 : bf16
    %1 = vector.broadcast %cst_0 : bf16 to vector<1x16x1x48xbf16>
    %c0 = arith.constant 0 : index
    %c0_1 = arith.constant 0 : index
    %c0_2 = arith.constant 0 : index
    %c0_3 = arith.constant 0 : index
    %2 = vector.load %arg11[%c0, %c0_1, %c0_2, %c0_3] : memref<1x16x16x432xbf16, #tpu.memory_space<vmem>>, vector<1x1x16x48xbf16>
    tpu.vector_store %arg11[%c0, %c0_1, %c0_2, %c0_3], %0 {strides = array<i32>} : memref<1x16x16x432xbf16, #tpu.memory_space<vmem>>, vector<1x1x16x48xbf16>,
    %c0_4 = arith.constant 0 : index
    %c0_5 = arith.constant 0 : index
    %c0_6 = arith.constant 0 : index
    %c0_7 = arith.constant 0 : index
    %3 = vector.load %arg11[%c0_4, %c0_5, %c0_6, %c0_7] : memref<1x16x16x432xbf16, #tpu.memory_space<vmem>>, vector<1x16x1x48xbf16>
    tpu.vector_store %arg11[%c0_4, %c0_5, %c0_6, %c0_7], %1 {strides = array<i32>} : memref<1x16x16x432xbf16, #tpu.memory_space<vmem>>, vector<1x16x1x48xbf16>,
    %c0_8 = arith.constant 0 : index
    %c0_9 = arith.constant 0 : index
    %c0_10 = arith.constant 0 : index
    %c0_11 = arith.constant 0 : index
    %4 = vector.load %arg1[%c0_8, %c0_9, %c0_10, %c0_11] : memref<1x16x16x48xf32, #tpu.memory_space<vmem>>, vector<1x15x15x48xf32>
    %5 = arith.truncf %4 : vector<1x15x15x48xf32> to vector<1x15x15x48xbf16>
    %c0_12 = arith.constant 0 : index
    %c1 = arith.constant 1 : index
    %c1_13 = arith.constant 1 : index
    %c0_14 = arith.constant 0 : index
    %6 = vector.load %arg11[%c0_12, %c1, %c1_13, %c0_14] : memref<1x16x16x432xbf16, #tpu.memory_space<vmem>>, vector<1x15x15x48xbf16>
    tpu.vector_store %arg11[%c0_12, %c1, %c1_13, %c0_14], %5 {strides = array<i32>} : memref<1x16x16x432xbf16, #tpu.memory_space<vmem>>, vector<1x15x15x48xbf16>,
    %c0_15 = arith.constant 0 : index
    %c0_16 = arith.constant 0 : index
    %c0_17 = arith.constant 0 : index
    %c48 = arith.constant 48 : index
    %7 = vector.load %arg11[%c0_15, %c0_16, %c0_17, %c48] : memref<1x16x16x432xbf16, #tpu.memory_space<vmem>>, vector<1x1x16x48xbf16>
    tpu.vector_store %arg11[%c0_15, %c0_16, %c0_17, %c48], %0 {strides = array<i32>} : memref<1x16x16x432xbf16, #tpu.memory_space<vmem>>, vector<1x1x16x48xbf16>,
    %c0_18 = arith.constant 0 : index
    %c0_19 = arith.constant 0 : index
    %c0_20 = arith.constant 0 : index
    %c0_21 = arith.constant 0 : index
    %8 = vector.load %arg1[%c0_18, %c0_19, %c0_20, %c0_21] : memref<1x16x16x48xf32, #tpu.memory_space<vmem>>, vector<1x15x16x48xf32>
    %9 = arith.truncf %8 : vector<1x15x16x48xf32> to vector<1x15x16x48xbf16>
    %c0_22 = arith.constant 0 : index
    %c1_23 = arith.constant 1 : index
    %c0_24 = arith.constant 0 : index
    %c48_25 = arith.constant 48 : index
    %10 = vector.load %arg11[%c0_22, %c1_23, %c0_24, %c48_25] : memref<1x16x16x432xbf16, #tpu.memory_space<vmem>>, vector<1x15x16x48xbf16>
    tpu.vector_store %arg11[%c0_22, %c1_23, %c0_24, %c48_25], %9 {strides = array<i32>} : memref<1x16x16x432xbf16, #tpu.memory_space<vmem>>, vector<1x15x16x48xbf16>,
    %c0_26 = arith.constant 0 : index
    %c0_27 = arith.constant 0 : index
    %c0_28 = arith.constant 0 : index
    %c96 = arith.constant 96 : index
    %11 = vector.load %arg11[%c0_26, %c0_27, %c0_28, %c96] : memref<1x16x16x432xbf16, #tpu.memory_space<vmem>>, vector<1x1x16x48xbf16>
    tpu.vector_store %arg11[%c0_26, %c0_27, %c0_28, %c96], %0 {strides = array<i32>} : memref<1x16x16x432xbf16, #tpu.memory_space<vmem>>, vector<1x1x16x48xbf16>,
    %c0_29 = arith.constant 0 : index
    %c0_30 = arith.constant 0 : index
    %c15 = arith.constant 15 : index
    %c96_31 = arith.constant 96 : index
    %12 = vector.load %arg11[%c0_29, %c0_30, %c15, %c96_31] : memref<1x16x16x432xbf16, #tpu.memory_space<vmem>>, vector<1x16x1x48xbf16>
    tpu.vector_store %arg11[%c0_29, %c0_30, %c15, %c96_31], %1 {strides = array<i32>} : memref<1x16x16x432xbf16, #tpu.memory_space<vmem>>, vector<1x16x1x48xbf16>,
    %c0_32 = arith.constant 0 : index
    %c0_33 = arith.constant 0 : index
    %c1_34 = arith.constant 1 : index
    %c0_35 = arith.constant 0 : index
    %13 = vector.load %arg1[%c0_32, %c0_33, %c1_34, %c0_35] : memref<1x16x16x48xf32, #tpu.memory_space<vmem>>, vector<1x15x15x48xf32>
    %14 = arith.truncf %13 : vector<1x15x15x48xf32> to vector<1x15x15x48xbf16>
    %c0_36 = arith.constant 0 : index
    %c1_37 = arith.constant 1 : index
    %c0_38 = arith.constant 0 : index
    %c96_39 = arith.constant 96 : index
    %15 = vector.load %arg11[%c0_36, %c1_37, %c0_38, %c96_39] : memref<1x16x16x432xbf16, #tpu.memory_space<vmem>>, vector<1x15x15x48xbf16>
    tpu.vector_store %arg11[%c0_36, %c1_37, %c0_38, %c96_39], %14 {strides = array<i32>} : memref<1x16x16x432xbf16, #tpu.memory_space<vmem>>, vector<1x15x15x48xbf16>,
    %c0_40 = arith.constant 0 : index
    %c0_41 = arith.constant 0 : index
    %c0_42 = arith.constant 0 : index
    %c144 = arith.constant 144 : index
    %16 = vector.load %arg11[%c0_40, %c0_41, %c0_42, %c144] : memref<1x16x16x432xbf16, #tpu.memory_space<vmem>>, vector<1x16x1x48xbf16>
    tpu.vector_store %arg11[%c0_40, %c0_41, %c0_42, %c144], %1 {strides = array<i32>} : memref<1x16x16x432xbf16, #tpu.memory_space<vmem>>, vector<1x16x1x48xbf16>,
    %c0_43 = arith.constant 0 : index
    %c0_44 = arith.constant 0 : index
    %c0_45 = arith.constant 0 : index
    %c0_46 = arith.constant 0 : index
    %17 = vector.load %arg1[%c0_43, %c0_44, %c0_45, %c0_46] : memref<1x16x16x48xf32, #tpu.memory_space<vmem>>, vector<1x16x15x48xf32>
    %18 = arith.truncf %17 : vector<1x16x15x48xf32> to vector<1x16x15x48xbf16>
    %c0_47 = arith.constant 0 : index
    %c0_48 = arith.constant 0 : index
    %c1_49 = arith.constant 1 : index
    %c144_50 = arith.constant 144 : index
    %19 = vector.load %arg11[%c0_47, %c0_48, %c1_49, %c144_50] : memref<1x16x16x432xbf16, #tpu.memory_space<vmem>>, vector<1x16x15x48xbf16>
    tpu.vector_store %arg11[%c0_47, %c0_48, %c1_49, %c144_50], %18 {strides = array<i32>} : memref<1x16x16x432xbf16, #tpu.memory_space<vmem>>, vector<1x16x15x48xbf16>,
    %c0_51 = arith.constant 0 : index
    %c0_52 = arith.constant 0 : index
    %c0_53 = arith.constant 0 : index
    %c0_54 = arith.constant 0 : index
    %20 = vector.load %arg1[%c0_51, %c0_52, %c0_53, %c0_54] : memref<1x16x16x48xf32, #tpu.memory_space<vmem>>, vector<1x16x16x48xf32>
    %21 = arith.truncf %20 : vector<1x16x16x48xf32> to vector<1x16x16x48xbf16>
    %c0_55 = arith.constant 0 : index
    %c0_56 = arith.constant 0 : index
    %c0_57 = arith.constant 0 : index
    %c192 = arith.constant 192 : index
    %22 = vector.load %arg11[%c0_55, %c0_56, %c0_57, %c192] : memref<1x16x16x432xbf16, #tpu.memory_space<vmem>>, vector<1x16x16x48xbf16>
    tpu.vector_store %arg11[%c0_55, %c0_56, %c0_57, %c192], %21 {strides = array<i32>} : memref<1x16x16x432xbf16, #tpu.memory_space<vmem>>, vector<1x16x16x48xbf16>,
    %c0_58 = arith.constant 0 : index
    %c0_59 = arith.constant 0 : index
    %c15_60 = arith.constant 15 : index
    %c240 = arith.constant 240 : index
    %23 = vector.load %arg11[%c0_58, %c0_59, %c15_60, %c240] : memref<1x16x16x432xbf16, #tpu.memory_space<vmem>>, vector<1x16x1x48xbf16>
    tpu.vector_store %arg11[%c0_58, %c0_59, %c15_60, %c240], %1 {strides = array<i32>} : memref<1x16x16x432xbf16, #tpu.memory_space<vmem>>, vector<1x16x1x48xbf16>,
    %c0_61 = arith.constant 0 : index
    %c0_62 = arith.constant 0 : index
    %c1_63 = arith.constant 1 : index
    %c0_64 = arith.constant 0 : index
    %24 = vector.load %arg1[%c0_61, %c0_62, %c1_63, %c0_64] : memref<1x16x16x48xf32, #tpu.memory_space<vmem>>, vector<1x16x15x48xf32>
    %25 = arith.truncf %24 : vector<1x16x15x48xf32> to vector<1x16x15x48xbf16>
    %c0_65 = arith.constant 0 : index
    %c0_66 = arith.constant 0 : index
    %c0_67 = arith.constant 0 : index
    %c240_68 = arith.constant 240 : index
    %26 = vector.load %arg11[%c0_65, %c0_66, %c0_67, %c240_68] : memref<1x16x16x432xbf16, #tpu.memory_space<vmem>>, vector<1x16x15x48xbf16>
    tpu.vector_store %arg11[%c0_65, %c0_66, %c0_67, %c240_68], %25 {strides = array<i32>} : memref<1x16x16x432xbf16, #tpu.memory_space<vmem>>, vector<1x16x15x48xbf16>,
    %c0_69 = arith.constant 0 : index
    %c15_70 = arith.constant 15 : index
    %c0_71 = arith.constant 0 : index
    %c288 = arith.constant 288 : index
    %27 = vector.load %arg11[%c0_69, %c15_70, %c0_71, %c288] : memref<1x16x16x432xbf16, #tpu.memory_space<vmem>>, vector<1x1x16x48xbf16>
    tpu.vector_store %arg11[%c0_69, %c15_70, %c0_71, %c288], %0 {strides = array<i32>} : memref<1x16x16x432xbf16, #tpu.memory_space<vmem>>, vector<1x1x16x48xbf16>,
    %c0_72 = arith.constant 0 : index
    %c0_73 = arith.constant 0 : index
    %c0_74 = arith.constant 0 : index
    %c288_75 = arith.constant 288 : index
    %28 = vector.load %arg11[%c0_72, %c0_73, %c0_74, %c288_75] : memref<1x16x16x432xbf16, #tpu.memory_space<vmem>>, vector<1x16x1x48xbf16>
    tpu.vector_store %arg11[%c0_72, %c0_73, %c0_74, %c288_75], %1 {strides = array<i32>} : memref<1x16x16x432xbf16, #tpu.memory_space<vmem>>, vector<1x16x1x48xbf16>,
    %c0_76 = arith.constant 0 : index
    %c1_77 = arith.constant 1 : index
    %c0_78 = arith.constant 0 : index
    %c0_79 = arith.constant 0 : index
    %29 = vector.load %arg1[%c0_76, %c1_77, %c0_78, %c0_79] : memref<1x16x16x48xf32, #tpu.memory_space<vmem>>, vector<1x15x15x48xf32>
    %30 = arith.truncf %29 : vector<1x15x15x48xf32> to vector<1x15x15x48xbf16>
    %c0_80 = arith.constant 0 : index
    %c0_81 = arith.constant 0 : index
    %c1_82 = arith.constant 1 : index
    %c288_83 = arith.constant 288 : index
    %31 = vector.load %arg11[%c0_80, %c0_81, %c1_82, %c288_83] : memref<1x16x16x432xbf16, #tpu.memory_space<vmem>>, vector<1x15x15x48xbf16>
    tpu.vector_store %arg11[%c0_80, %c0_81, %c1_82, %c288_83], %30 {strides = array<i32>} : memref<1x16x16x432xbf16, #tpu.memory_space<vmem>>, vector<1x15x15x48xbf16>,
    %c0_84 = arith.constant 0 : index
    %c15_85 = arith.constant 15 : index
    %c0_86 = arith.constant 0 : index
    %c336 = arith.constant 336 : index
    %32 = vector.load %arg11[%c0_84, %c15_85, %c0_86, %c336] : memref<1x16x16x432xbf16, #tpu.memory_space<vmem>>, vector<1x1x16x48xbf16>
    tpu.vector_store %arg11[%c0_84, %c15_85, %c0_86, %c336], %0 {strides = array<i32>} : memref<1x16x16x432xbf16, #tpu.memory_space<vmem>>, vector<1x1x16x48xbf16>,
    %c0_87 = arith.constant 0 : index
    %c1_88 = arith.constant 1 : index
    %c0_89 = arith.constant 0 : index
    %c0_90 = arith.constant 0 : index
    %33 = vector.load %arg1[%c0_87, %c1_88, %c0_89, %c0_90] : memref<1x16x16x48xf32, #tpu.memory_space<vmem>>, vector<1x15x16x48xf32>
    %34 = arith.truncf %33 : vector<1x15x16x48xf32> to vector<1x15x16x48xbf16>
    %c0_91 = arith.constant 0 : index
    %c0_92 = arith.constant 0 : index
    %c0_93 = arith.constant 0 : index
    %c336_94 = arith.constant 336 : index
    %35 = vector.load %arg11[%c0_91, %c0_92, %c0_93, %c336_94] : memref<1x16x16x432xbf16, #tpu.memory_space<vmem>>, vector<1x15x16x48xbf16>
    tpu.vector_store %arg11[%c0_91, %c0_92, %c0_93, %c336_94], %34 {strides = array<i32>} : memref<1x16x16x432xbf16, #tpu.memory_space<vmem>>, vector<1x15x16x48xbf16>,
    %c0_95 = arith.constant 0 : index
    %c15_96 = arith.constant 15 : index
    %c0_97 = arith.constant 0 : index
    %c384 = arith.constant 384 : index
    %36 = vector.load %arg11[%c0_95, %c15_96, %c0_97, %c384] : memref<1x16x16x432xbf16, #tpu.memory_space<vmem>>, vector<1x1x16x48xbf16>
    tpu.vector_store %arg11[%c0_95, %c15_96, %c0_97, %c384], %0 {strides = array<i32>} : memref<1x16x16x432xbf16, #tpu.memory_space<vmem>>, vector<1x1x16x48xbf16>,
    %c0_98 = arith.constant 0 : index
    %c0_99 = arith.constant 0 : index
    %c15_100 = arith.constant 15 : index
    %c384_101 = arith.constant 384 : index
    %37 = vector.load %arg11[%c0_98, %c0_99, %c15_100, %c384_101] : memref<1x16x16x432xbf16, #tpu.memory_space<vmem>>, vector<1x16x1x48xbf16>
    tpu.vector_store %arg11[%c0_98, %c0_99, %c15_100, %c384_101], %1 {strides = array<i32>} : memref<1x16x16x432xbf16, #tpu.memory_space<vmem>>, vector<1x16x1x48xbf16>,
    %c0_102 = arith.constant 0 : index
    %c1_103 = arith.constant 1 : index
    %c1_104 = arith.constant 1 : index
    %c0_105 = arith.constant 0 : index
    %38 = vector.load %arg1[%c0_102, %c1_103, %c1_104, %c0_105] : memref<1x16x16x48xf32, #tpu.memory_space<vmem>>, vector<1x15x15x48xf32>
    %39 = arith.truncf %38 : vector<1x15x15x48xf32> to vector<1x15x15x48xbf16>
    %c0_106 = arith.constant 0 : index
    %c0_107 = arith.constant 0 : index
    %c0_108 = arith.constant 0 : index
    %c384_109 = arith.constant 384 : index
    %40 = vector.load %arg11[%c0_106, %c0_107, %c0_108, %c384_109] : memref<1x16x16x432xbf16, #tpu.memory_space<vmem>>, vector<1x15x15x48xbf16>
    tpu.vector_store %arg11[%c0_106, %c0_107, %c0_108, %c384_109], %39 {strides = array<i32>} : memref<1x16x16x432xbf16, #tpu.memory_space<vmem>>, vector<1x15x15x48xbf16>,
    %c0_110 = arith.constant 0 : index
    %c0_111 = arith.constant 0 : index
    %c0_112 = arith.constant 0 : index
    %c0_113 = arith.constant 0 : index
    %41 = vector.load %arg11[%c0_110, %c0_111, %c0_112, %c0_113] : memref<1x16x16x432xbf16, #tpu.memory_space<vmem>>, vector<1x16x16x432xbf16>
    %42 = vector.shape_cast %41 : vector<1x16x16x432xbf16> to vector<256x432xbf16>
    %c0_114 = arith.constant 0 : index
    %c0_115 = arith.constant 0 : index
    %43 = vector.load %arg2[%c0_114, %c0_115] : memref<432x16xbf16, #tpu.memory_space<vmem>>, vector<432x16xbf16>
    %cst_116 = arith.constant dense<0.000000e+00> : vector<256x16xf32>
    %44 = tpu.matmul %42, %43, %cst_116 {dimension_numbers = #tpu.dot_dimension_numbers<[1], [0], [0], [1], [0, 0, 1, 1], [], []>} : vector<256x432xbf16>, vector<432x16xbf16>, vector<256x16xf32> -> vector<256x16xf32>
    %c0_117 = arith.constant 0 : index
    %c0_118 = arith.constant 0 : index
    %45 = vector.load %arg3[%c0_117, %c0_118] : memref<1x16xf32, #tpu.memory_space<vmem>>, vector<1x16xf32>
    %46 = vector.broadcast %45 : vector<1x16xf32> to vector<256x16xf32>
    %47 = arith.addf %44, %46 : vector<256x16xf32>
    %cst_119 = arith.constant 5.000000e-01 : f32
    %48 = vector.broadcast %cst_119 : f32 to vector<256x16xf32>
    %49 = arith.mulf %48, %47 : vector<256x16xf32>
    %cst_120 = arith.constant 0.707106769 : f32
    %50 = vector.broadcast %cst_120 : f32 to vector<256x16xf32>
    %51 = arith.mulf %47, %50 : vector<256x16xf32>
    %52 = math.absf %51 : vector<256x16xf32>
    %cst_121 = arith.constant 0.327591091 : f32
    %53 = vector.broadcast %cst_121 : f32 to vector<256x16xf32>
    %54 = arith.mulf %53, %52 : vector<256x16xf32>
    %cst_122 = arith.constant 1.000000e+00 : f32
    %55 = vector.broadcast %cst_122 : f32 to vector<256x16xf32>
    %56 = arith.addf %55, %54 : vector<256x16xf32>
    %cst_123 = arith.constant 1.000000e+00 : f32
    %57 = vector.broadcast %cst_123 : f32 to vector<256x16xf32>
    %58 = arith.divf %57, %56 : vector<256x16xf32>
    %cst_124 = arith.constant 1.06140542 : f32
    %59 = vector.broadcast %cst_124 : f32 to vector<256x16xf32>
    %60 = arith.mulf %59, %58 : vector<256x16xf32>
    %cst_125 = arith.constant -1.45315206 : f32
    %61 = vector.broadcast %cst_125 : f32 to vector<256x16xf32>
    %62 = arith.addf %60, %61 : vector<256x16xf32>
    %63 = arith.mulf %62, %58 : vector<256x16xf32>
    %cst_126 = arith.constant 1.42141378 : f32
    %64 = vector.broadcast %cst_126 : f32 to vector<256x16xf32>
    %65 = arith.addf %63, %64 : vector<256x16xf32>
    %66 = arith.mulf %65, %58 : vector<256x16xf32>
    %cst_127 = arith.constant -0.284496725 : f32
    %67 = vector.broadcast %cst_127 : f32 to vector<256x16xf32>
    %68 = arith.addf %66, %67 : vector<256x16xf32>
    %69 = arith.mulf %68, %58 : vector<256x16xf32>
    %cst_128 = arith.constant 0.254829586 : f32
    %70 = vector.broadcast %cst_128 : f32 to vector<256x16xf32>
    %71 = arith.addf %69, %70 : vector<256x16xf32>
    %72 = arith.mulf %71, %58 : vector<256x16xf32>
    %73 = arith.mulf %52, %52 : vector<256x16xf32>
    %cst_129 = arith.constant 0.000000e+00 : f32
    %74 = vector.broadcast %cst_129 : f32 to vector<256x16xf32>
    %75 = arith.subf %74, %73 : vector<256x16xf32>
    %76 = math.exp %75 : vector<256x16xf32>
    %77 = arith.mulf %72, %76 : vector<256x16xf32>
    %cst_130 = arith.constant 1.000000e+00 : f32
    %78 = vector.broadcast %cst_130 : f32 to vector<256x16xf32>
    %79 = arith.subf %78, %77 : vector<256x16xf32>
    %cst_131 = arith.constant 0.000000e+00 : f32
    %80 = vector.broadcast %cst_131 : f32 to vector<256x16xf32>
    %81 = arith.cmpf olt, %51, %80 : vector<256x16xf32>
    %cst_132 = arith.constant 0.000000e+00 : f32
    %82 = vector.broadcast %cst_132 : f32 to vector<256x16xf32>
    %83 = arith.subf %82, %79 : vector<256x16xf32>
    %84 = arith.select %81, %83, %79 : vector<256x16xi1>, vector<256x16xf32>
    %cst_133 = arith.constant 1.000000e+00 : f32
    %85 = vector.broadcast %cst_133 : f32 to vector<256x16xf32>
    %86 = arith.addf %85, %84 : vector<256x16xf32>
    %87 = arith.mulf %49, %86 : vector<256x16xf32>
    %88 = arith.truncf %87 : vector<256x16xf32> to vector<256x16xbf16>
    %89 = vector.shape_cast %88 : vector<256x16xbf16> to vector<1x16x16x16xbf16>
    %c0_134 = arith.constant 0 : index
    %c0_135 = arith.constant 0 : index
    %c0_136 = arith.constant 0 : index
    %c0_137 = arith.constant 0 : index
    %90 = vector.load %arg12[%c0_134, %c0_135, %c0_136, %c0_137] : memref<1x16x16x16xbf16, #tpu.memory_space<vmem>>, vector<1x16x16x16xbf16>
    tpu.vector_store %arg12[%c0_134, %c0_135, %c0_136, %c0_137], %89 {strides = array<i32>} : memref<1x16x16x16xbf16, #tpu.memory_space<vmem>>, vector<1x16x16x16xbf16>,
    %cst_138 = arith.constant 0.000000e+00 : bf16
    %91 = vector.broadcast %cst_138 : bf16 to vector<1x1x16x16xbf16>
    %cst_139 = arith.constant 0.000000e+00 : bf16
    %92 = vector.broadcast %cst_139 : bf16 to vector<1x16x1x16xbf16>
    %c0_140 = arith.constant 0 : index
    %c0_141 = arith.constant 0 : index
    %c0_142 = arith.constant 0 : index
    %c0_143 = arith.constant 0 : index
    %93 = vector.load %arg13[%c0_140, %c0_141, %c0_142, %c0_143] : memref<1x16x16x144xbf16, #tpu.memory_space<vmem>>, vector<1x1x16x16xbf16>
    tpu.vector_store %arg13[%c0_140, %c0_141, %c0_142, %c0_143], %91 {strides = array<i32>} : memref<1x16x16x144xbf16, #tpu.memory_space<vmem>>, vector<1x1x16x16xbf16>,
    %c0_144 = arith.constant 0 : index
    %c0_145 = arith.constant 0 : index
    %c0_146 = arith.constant 0 : index
    %c0_147 = arith.constant 0 : index
    %94 = vector.load %arg13[%c0_144, %c0_145, %c0_146, %c0_147] : memref<1x16x16x144xbf16, #tpu.memory_space<vmem>>, vector<1x16x1x16xbf16>
    tpu.vector_store %arg13[%c0_144, %c0_145, %c0_146, %c0_147], %92 {strides = array<i32>} : memref<1x16x16x144xbf16, #tpu.memory_space<vmem>>, vector<1x16x1x16xbf16>,
    %c0_148 = arith.constant 0 : index
    %c0_149 = arith.constant 0 : index
    %c0_150 = arith.constant 0 : index
    %c0_151 = arith.constant 0 : index
    %95 = vector.load %arg12[%c0_148, %c0_149, %c0_150, %c0_151] : memref<1x16x16x16xbf16, #tpu.memory_space<vmem>>, vector<1x15x15x16xbf16>
    %c0_152 = arith.constant 0 : index
    %c1_153 = arith.constant 1 : index
    %c1_154 = arith.constant 1 : index
    %c0_155 = arith.constant 0 : index
    %96 = vector.load %arg13[%c0_152, %c1_153, %c1_154, %c0_155] : memref<1x16x16x144xbf16, #tpu.memory_space<vmem>>, vector<1x15x15x16xbf16>
    tpu.vector_store %arg13[%c0_152, %c1_153, %c1_154, %c0_155], %95 {strides = array<i32>} : memref<1x16x16x144xbf16, #tpu.memory_space<vmem>>, vector<1x15x15x16xbf16>,
    %c0_156 = arith.constant 0 : index
    %c0_157 = arith.constant 0 : index
    %c0_158 = arith.constant 0 : index
    %c16 = arith.constant 16 : index
    %97 = vector.load %arg13[%c0_156, %c0_157, %c0_158, %c16] : memref<1x16x16x144xbf16, #tpu.memory_space<vmem>>, vector<1x1x16x16xbf16>
    tpu.vector_store %arg13[%c0_156, %c0_157, %c0_158, %c16], %91 {strides = array<i32>} : memref<1x16x16x144xbf16, #tpu.memory_space<vmem>>, vector<1x1x16x16xbf16>,
    %c0_159 = arith.constant 0 : index
    %c0_160 = arith.constant 0 : index
    %c0_161 = arith.constant 0 : index
    %c0_162 = arith.constant 0 : index
    %98 = vector.load %arg12[%c0_159, %c0_160, %c0_161, %c0_162] : memref<1x16x16x16xbf16, #tpu.memory_space<vmem>>, vector<1x15x16x16xbf16>
    %c0_163 = arith.constant 0 : index
    %c1_164 = arith.constant 1 : index
    %c0_165 = arith.constant 0 : index
    %c16_166 = arith.constant 16 : index
    %99 = vector.load %arg13[%c0_163, %c1_164, %c0_165, %c16_166] : memref<1x16x16x144xbf16, #tpu.memory_space<vmem>>, vector<1x15x16x16xbf16>
    tpu.vector_store %arg13[%c0_163, %c1_164, %c0_165, %c16_166], %98 {strides = array<i32>} : memref<1x16x16x144xbf16, #tpu.memory_space<vmem>>, vector<1x15x16x16xbf16>,
    %c0_167 = arith.constant 0 : index
    %c0_168 = arith.constant 0 : index
    %c0_169 = arith.constant 0 : index
    %c32 = arith.constant 32 : index
    %100 = vector.load %arg13[%c0_167, %c0_168, %c0_169, %c32] : memref<1x16x16x144xbf16, #tpu.memory_space<vmem>>, vector<1x1x16x16xbf16>
    tpu.vector_store %arg13[%c0_167, %c0_168, %c0_169, %c32], %91 {strides = array<i32>} : memref<1x16x16x144xbf16, #tpu.memory_space<vmem>>, vector<1x1x16x16xbf16>,
    %c0_170 = arith.constant 0 : index
    %c0_171 = arith.constant 0 : index
    %c15_172 = arith.constant 15 : index
    %c32_173 = arith.constant 32 : index
    %101 = vector.load %arg13[%c0_170, %c0_171, %c15_172, %c32_173] : memref<1x16x16x144xbf16, #tpu.memory_space<vmem>>, vector<1x16x1x16xbf16>
    tpu.vector_store %arg13[%c0_170, %c0_171, %c15_172, %c32_173], %92 {strides = array<i32>} : memref<1x16x16x144xbf16, #tpu.memory_space<vmem>>, vector<1x16x1x16xbf16>,
    %c0_174 = arith.constant 0 : index
    %c0_175 = arith.constant 0 : index
    %c1_176 = arith.constant 1 : index
    %c0_177 = arith.constant 0 : index
    %102 = vector.load %arg12[%c0_174, %c0_175, %c1_176, %c0_177] : memref<1x16x16x16xbf16, #tpu.memory_space<vmem>>, vector<1x15x15x16xbf16>
    %c0_178 = arith.constant 0 : index
    %c1_179 = arith.constant 1 : index
    %c0_180 = arith.constant 0 : index
    %c32_181 = arith.constant 32 : index
    %103 = vector.load %arg13[%c0_178, %c1_179, %c0_180, %c32_181] : memref<1x16x16x144xbf16, #tpu.memory_space<vmem>>, vector<1x15x15x16xbf16>
    tpu.vector_store %arg13[%c0_178, %c1_179, %c0_180, %c32_181], %102 {strides = array<i32>} : memref<1x16x16x144xbf16, #tpu.memory_space<vmem>>, vector<1x15x15x16xbf16>,
    %c0_182 = arith.constant 0 : index
    %c0_183 = arith.constant 0 : index
    %c0_184 = arith.constant 0 : index
    %c48_185 = arith.constant 48 : index
    %104 = vector.load %arg13[%c0_182, %c0_183, %c0_184, %c48_185] : memref<1x16x16x144xbf16, #tpu.memory_space<vmem>>, vector<1x16x1x16xbf16>
    tpu.vector_store %arg13[%c0_182, %c0_183, %c0_184, %c48_185], %92 {strides = array<i32>} : memref<1x16x16x144xbf16, #tpu.memory_space<vmem>>, vector<1x16x1x16xbf16>,
    %c0_186 = arith.constant 0 : index
    %c0_187 = arith.constant 0 : index
    %c0_188 = arith.constant 0 : index
    %c0_189 = arith.constant 0 : index
    %105 = vector.load %arg12[%c0_186, %c0_187, %c0_188, %c0_189] : memref<1x16x16x16xbf16, #tpu.memory_space<vmem>>, vector<1x16x15x16xbf16>
    %c0_190 = arith.constant 0 : index
    %c0_191 = arith.constant 0 : index
    %c1_192 = arith.constant 1 : index
    %c48_193 = arith.constant 48 : index
    %106 = vector.load %arg13[%c0_190, %c0_191, %c1_192, %c48_193] : memref<1x16x16x144xbf16, #tpu.memory_space<vmem>>, vector<1x16x15x16xbf16>
    tpu.vector_store %arg13[%c0_190, %c0_191, %c1_192, %c48_193], %105 {strides = array<i32>} : memref<1x16x16x144xbf16, #tpu.memory_space<vmem>>, vector<1x16x15x16xbf16>,
    %c0_194 = arith.constant 0 : index
    %c0_195 = arith.constant 0 : index
    %c0_196 = arith.constant 0 : index
    %c0_197 = arith.constant 0 : index
    %107 = vector.load %arg12[%c0_194, %c0_195, %c0_196, %c0_197] : memref<1x16x16x16xbf16, #tpu.memory_space<vmem>>, vector<1x16x16x16xbf16>
    %c0_198 = arith.constant 0 : index
    %c0_199 = arith.constant 0 : index
    %c0_200 = arith.constant 0 : index
    %c64 = arith.constant 64 : index
    %108 = vector.load %arg13[%c0_198, %c0_199, %c0_200, %c64] : memref<1x16x16x144xbf16, #tpu.memory_space<vmem>>, vector<1x16x16x16xbf16>
    tpu.vector_store %arg13[%c0_198, %c0_199, %c0_200, %c64], %107 {strides = array<i32>} : memref<1x16x16x144xbf16, #tpu.memory_space<vmem>>, vector<1x16x16x16xbf16>,
    %c0_201 = arith.constant 0 : index
    %c0_202 = arith.constant 0 : index
    %c15_203 = arith.constant 15 : index
    %c80 = arith.constant 80 : index
    %109 = vector.load %arg13[%c0_201, %c0_202, %c15_203, %c80] : memref<1x16x16x144xbf16, #tpu.memory_space<vmem>>, vector<1x16x1x16xbf16>
    tpu.vector_store %arg13[%c0_201, %c0_202, %c15_203, %c80], %92 {strides = array<i32>} : memref<1x16x16x144xbf16, #tpu.memory_space<vmem>>, vector<1x16x1x16xbf16>,
    %c0_204 = arith.constant 0 : index
    %c0_205 = arith.constant 0 : index
    %c1_206 = arith.constant 1 : index
    %c0_207 = arith.constant 0 : index
    %110 = vector.load %arg12[%c0_204, %c0_205, %c1_206, %c0_207] : memref<1x16x16x16xbf16, #tpu.memory_space<vmem>>, vector<1x16x15x16xbf16>
    %c0_208 = arith.constant 0 : index
    %c0_209 = arith.constant 0 : index
    %c0_210 = arith.constant 0 : index
    %c80_211 = arith.constant 80 : index
    %111 = vector.load %arg13[%c0_208, %c0_209, %c0_210, %c80_211] : memref<1x16x16x144xbf16, #tpu.memory_space<vmem>>, vector<1x16x15x16xbf16>
    tpu.vector_store %arg13[%c0_208, %c0_209, %c0_210, %c80_211], %110 {strides = array<i32>} : memref<1x16x16x144xbf16, #tpu.memory_space<vmem>>, vector<1x16x15x16xbf16>,
    %c0_212 = arith.constant 0 : index
    %c15_213 = arith.constant 15 : index
    %c0_214 = arith.constant 0 : index
    %c96_215 = arith.constant 96 : index
    %112 = vector.load %arg13[%c0_212, %c15_213, %c0_214, %c96_215] : memref<1x16x16x144xbf16, #tpu.memory_space<vmem>>, vector<1x1x16x16xbf16>
    tpu.vector_store %arg13[%c0_212, %c15_213, %c0_214, %c96_215], %91 {strides = array<i32>} : memref<1x16x16x144xbf16, #tpu.memory_space<vmem>>, vector<1x1x16x16xbf16>,
    %c0_216 = arith.constant 0 : index
    %c0_217 = arith.constant 0 : index
    %c0_218 = arith.constant 0 : index
    %c96_219 = arith.constant 96 : index
    %113 = vector.load %arg13[%c0_216, %c0_217, %c0_218, %c96_219] : memref<1x16x16x144xbf16, #tpu.memory_space<vmem>>, vector<1x16x1x16xbf16>
    tpu.vector_store %arg13[%c0_216, %c0_217, %c0_218, %c96_219], %92 {strides = array<i32>} : memref<1x16x16x144xbf16, #tpu.memory_space<vmem>>, vector<1x16x1x16xbf16>,
    %c0_220 = arith.constant 0 : index
    %c1_221 = arith.constant 1 : index
    %c0_222 = arith.constant 0 : index
    %c0_223 = arith.constant 0 : index
    %114 = vector.load %arg12[%c0_220, %c1_221, %c0_222, %c0_223] : memref<1x16x16x16xbf16, #tpu.memory_space<vmem>>, vector<1x15x15x16xbf16>
    %c0_224 = arith.constant 0 : index
    %c0_225 = arith.constant 0 : index
    %c1_226 = arith.constant 1 : index
    %c96_227 = arith.constant 96 : index
    %115 = vector.load %arg13[%c0_224, %c0_225, %c1_226, %c96_227] : memref<1x16x16x144xbf16, #tpu.memory_space<vmem>>, vector<1x15x15x16xbf16>
    tpu.vector_store %arg13[%c0_224, %c0_225, %c1_226, %c96_227], %114 {strides = array<i32>} : memref<1x16x16x144xbf16, #tpu.memory_space<vmem>>, vector<1x15x15x16xbf16>,
    %c0_228 = arith.constant 0 : index
    %c15_229 = arith.constant 15 : index
    %c0_230 = arith.constant 0 : index
    %c112 = arith.constant 112 : index
    %116 = vector.load %arg13[%c0_228, %c15_229, %c0_230, %c112] : memref<1x16x16x144xbf16, #tpu.memory_space<vmem>>, vector<1x1x16x16xbf16>
    tpu.vector_store %arg13[%c0_228, %c15_229, %c0_230, %c112], %91 {strides = array<i32>} : memref<1x16x16x144xbf16, #tpu.memory_space<vmem>>, vector<1x1x16x16xbf16>,
    %c0_231 = arith.constant 0 : index
    %c1_232 = arith.constant 1 : index
    %c0_233 = arith.constant 0 : index
    %c0_234 = arith.constant 0 : index
    %117 = vector.load %arg12[%c0_231, %c1_232, %c0_233, %c0_234] : memref<1x16x16x16xbf16, #tpu.memory_space<vmem>>, vector<1x15x16x16xbf16>
    %c0_235 = arith.constant 0 : index
    %c0_236 = arith.constant 0 : index
    %c0_237 = arith.constant 0 : index
    %c112_238 = arith.constant 112 : index
    %118 = vector.load %arg13[%c0_235, %c0_236, %c0_237, %c112_238] : memref<1x16x16x144xbf16, #tpu.memory_space<vmem>>, vector<1x15x16x16xbf16>
    tpu.vector_store %arg13[%c0_235, %c0_236, %c0_237, %c112_238], %117 {strides = array<i32>} : memref<1x16x16x144xbf16, #tpu.memory_space<vmem>>, vector<1x15x16x16xbf16>,
    %c0_239 = arith.constant 0 : index
    %c15_240 = arith.constant 15 : index
    %c0_241 = arith.constant 0 : index
    %c128 = arith.constant 128 : index
    %119 = vector.load %arg13[%c0_239, %c15_240, %c0_241, %c128] : memref<1x16x16x144xbf16, #tpu.memory_space<vmem>>, vector<1x1x16x16xbf16>
    tpu.vector_store %arg13[%c0_239, %c15_240, %c0_241, %c128], %91 {strides = array<i32>} : memref<1x16x16x144xbf16, #tpu.memory_space<vmem>>, vector<1x1x16x16xbf16>,
    %c0_242 = arith.constant 0 : index
    %c0_243 = arith.constant 0 : index
    %c15_244 = arith.constant 15 : index
    %c128_245 = arith.constant 128 : index
    %120 = vector.load %arg13[%c0_242, %c0_243, %c15_244, %c128_245] : memref<1x16x16x144xbf16, #tpu.memory_space<vmem>>, vector<1x16x1x16xbf16>
    tpu.vector_store %arg13[%c0_242, %c0_243, %c15_244, %c128_245], %92 {strides = array<i32>} : memref<1x16x16x144xbf16, #tpu.memory_space<vmem>>, vector<1x16x1x16xbf16>,
    %c0_246 = arith.constant 0 : index
    %c1_247 = arith.constant 1 : index
    %c1_248 = arith.constant 1 : index
    %c0_249 = arith.constant 0 : index
    %121 = vector.load %arg12[%c0_246, %c1_247, %c1_248, %c0_249] : memref<1x16x16x16xbf16, #tpu.memory_space<vmem>>, vector<1x15x15x16xbf16>
    %c0_250 = arith.constant 0 : index
    %c0_251 = arith.constant 0 : index
    %c0_252 = arith.constant 0 : index
    %c128_253 = arith.constant 128 : index
    %122 = vector.load %arg13[%c0_250, %c0_251, %c0_252, %c128_253] : memref<1x16x16x144xbf16, #tpu.memory_space<vmem>>, vector<1x15x15x16xbf16>
    tpu.vector_store %arg13[%c0_250, %c0_251, %c0_252, %c128_253], %121 {strides = array<i32>} : memref<1x16x16x144xbf16, #tpu.memory_space<vmem>>, vector<1x15x15x16xbf16>,
    %c0_254 = arith.constant 0 : index
    %c0_255 = arith.constant 0 : index
    %c0_256 = arith.constant 0 : index
    %c0_257 = arith.constant 0 : index
    %123 = vector.load %arg13[%c0_254, %c0_255, %c0_256, %c0_257] : memref<1x16x16x144xbf16, #tpu.memory_space<vmem>>, vector<1x16x16x144xbf16>
    %124 = vector.shape_cast %123 : vector<1x16x16x144xbf16> to vector<256x144xbf16>
    %c0_258 = arith.constant 0 : index
    %c0_259 = arith.constant 0 : index
    %125 = vector.load %arg4[%c0_258, %c0_259] : memref<144x48xbf16, #tpu.memory_space<vmem>>, vector<144x48xbf16>
    %cst_260 = arith.constant dense<0.000000e+00> : vector<256x48xf32>
    %126 = tpu.matmul %124, %125, %cst_260 {dimension_numbers = #tpu.dot_dimension_numbers<[1], [0], [0], [1], [0, 0, 1, 1], [], []>} : vector<256x144xbf16>, vector<144x48xbf16>, vector<256x48xf32> -> vector<256x48xf32>
    %c0_261 = arith.constant 0 : index
    %c0_262 = arith.constant 0 : index
    %127 = vector.load %arg5[%c0_261, %c0_262] : memref<1x48xf32, #tpu.memory_space<vmem>>, vector<1x48xf32>
    %128 = vector.broadcast %127 : vector<1x48xf32> to vector<256x48xf32>
    %129 = arith.addf %126, %128 : vector<256x48xf32>
    %130 = vector.shape_cast %129 : vector<256x48xf32> to vector<1x16x16x48xf32>
    %c0_263 = arith.constant 0 : index
    %c0_264 = arith.constant 0 : index
    %c0_265 = arith.constant 0 : index
    %c0_266 = arith.constant 0 : index
    %131 = vector.load %arg10[%c0_263, %c0_264, %c0_265, %c0_266] : memref<1x16x16x48xf32, #tpu.memory_space<vmem>>, vector<1x16x16x48xf32>
    tpu.vector_store %arg10[%c0_263, %c0_264, %c0_265, %c0_266], %130 {strides = array<i32>} : memref<1x16x16x48xf32, #tpu.memory_space<vmem>>, vector<1x16x16x48xf32>,
    %c0_267 = arith.constant 0 : index
    %c0_268 = arith.constant 0 : index
    %c0_269 = arith.constant 0 : index
    %c0_270 = arith.constant 0 : index
    %132 = vector.load %arg10[%c0_267, %c0_268, %c0_269, %c0_270] : memref<1x16x16x48xf32, #tpu.memory_space<vmem>>, vector<1x16x16x48xf32>
    %133 = vector.shape_cast %132 : vector<1x16x16x48xf32> to vector<1x256x48xf32>
    %cst_271 = arith.constant dense<0.000000e+00> : vector<1x48xf32>
    %134 = vector.multi_reduction <add>, %133, %cst_271 [1] : vector<1x256x48xf32> to vector<1x48xf32>
    %cst_272 = arith.constant 2.560000e+02 : f32
    %135 = vector.broadcast %cst_272 : f32 to vector<1x48xf32>
    %136 = arith.divf %134, %135 : vector<1x48xf32>
    %c0_273 = arith.constant 0 : index
    %c0_274 = arith.constant 0 : index
    %137 = vector.load %arg6[%c0_273, %c0_274] : memref<48x3xf32, #tpu.memory_space<vmem>>, vector<48x3xf32>
    %cst_275 = arith.constant dense<0.000000e+00> : vector<1x3xf32>
    %138 = tpu.matmul %136, %137, %cst_275 {dimension_numbers = #tpu.dot_dimension_numbers<[1], [0], [0], [1], [0, 0, 1, 1], [], []>} : vector<1x48xf32>, vector<48x3xf32>, vector<1x3xf32> -> vector<1x3xf32>
    %c0_276 = arith.constant 0 : index
    %c0_277 = arith.constant 0 : index
    %139 = vector.load %arg7[%c0_276, %c0_277] : memref<1x3xf32, #tpu.memory_space<vmem>>, vector<1x3xf32>
    %140 = arith.addf %138, %139 : vector<1x3xf32>
    %cst_278 = arith.constant 0.000000e+00 : f32
    %141 = vector.broadcast %cst_278 : f32 to vector<1x3xf32>
    %142 = arith.maximumf %140, %141 : vector<1x3xf32>
    %c0_279 = arith.constant 0 : index
    %c0_280 = arith.constant 0 : index
    %143 = vector.load %arg8[%c0_279, %c0_280] : memref<3x48xf32, #tpu.memory_space<vmem>>, vector<3x48xf32>
    %cst_281 = arith.constant dense<0.000000e+00> : vector<1x48xf32>
    %144 = tpu.matmul %142, %143, %cst_281 {dimension_numbers = #tpu.dot_dimension_numbers<[1], [0], [0], [1], [0, 0, 1, 1], [], []>} : vector<1x3xf32>, vector<3x48xf32>, vector<1x48xf32> -> vector<1x48xf32>
    %c0_282 = arith.constant 0 : index
    %c0_283 = arith.constant 0 : index
    %145 = vector.load %arg9[%c0_282, %c0_283] : memref<1x48xf32, #tpu.memory_space<vmem>>, vector<1x48xf32>
    %146 = arith.addf %144, %145 : vector<1x48xf32>
    %147 = arith.negf %146 : vector<1x48xf32>
    %148 = math.exp %147 : vector<1x48xf32>
    %cst_284 = arith.constant 1.000000e+00 : f32
    %149 = vector.broadcast %cst_284 : f32 to vector<1x48xf32>
    %150 = arith.addf %149, %148 : vector<1x48xf32>
    %151 = arith.divf %149, %150 : vector<1x48xf32>
    %c0_285 = arith.constant 0 : index
    %c0_286 = arith.constant 0 : index
    %c0_287 = arith.constant 0 : index
    %c0_288 = arith.constant 0 : index
    %152 = vector.load %arg10[%c0_285, %c0_286, %c0_287, %c0_288] : memref<1x16x16x48xf32, #tpu.memory_space<vmem>>, vector<1x16x16x48xf32>
    %153 = vector.shape_cast %151 : vector<1x48xf32> to vector<1x1x1x48xf32>
    %154 = vector.broadcast %153 : vector<1x1x1x48xf32> to vector<1x16x16x48xf32>
    %155 = arith.mulf %152, %154 : vector<1x16x16x48xf32>
    %c0_289 = arith.constant 0 : index
    %c0_290 = arith.constant 0 : index
    %c0_291 = arith.constant 0 : index
    %c0_292 = arith.constant 0 : index
    %156 = vector.load %arg10[%c0_289, %c0_290, %c0_291, %c0_292] : memref<1x16x16x48xf32, #tpu.memory_space<vmem>>, vector<1x16x16x48xf32>
    tpu.vector_store %arg10[%c0_289, %c0_290, %c0_291, %c0_292], %155 {strides = array<i32>} : memref<1x16x16x48xf32, #tpu.memory_space<vmem>>, vector<1x16x16x48xf32>,
    return
  }
  func.func @transform_0(%arg0: i32) -> (i32, i32, i32, i32) {
    %c0_i32 = arith.constant 0 : i32
    %c0_i32_0 = arith.constant 0 : i32
    %c0_i32_1 = arith.constant 0 : i32
    %c0_i32_2 = arith.constant 0 : i32
    return %arg0, %c0_i32, %c0_i32_0, %c0_i32_1 : i32, i32, i32, i32
  }
  func.func @transform_1(%arg0: i32) -> (i32, i32) {
    %c0_i32 = arith.constant 0 : i32
    %c0_i32_0 = arith.constant 0 : i32
    %c0_i32_1 = arith.constant 0 : i32
    return %c0_i32, %c0_i32_0 : i32, i32
  }
  func.func @transform_2(%arg0: i32) -> (i32, i32) {
    %c0_i32 = arith.constant 0 : i32
    %c0_i32_0 = arith.constant 0 : i32
    %c0_i32_1 = arith.constant 0 : i32
    return %c0_i32, %c0_i32_0 : i32, i32
  }
  func.func @transform_3(%arg0: i32) -> (i32, i32) {
    %c0_i32 = arith.constant 0 : i32
    %c0_i32_0 = arith.constant 0 : i32
    %c0_i32_1 = arith.constant 0 : i32
    return %c0_i32, %c0_i32_0 : i32, i32
  }
  func.func @transform_4(%arg0: i32) -> (i32, i32) {
    %c0_i32 = arith.constant 0 : i32
    %c0_i32_0 = arith.constant 0 : i32
    %c0_i32_1 = arith.constant 0 : i32
    return %c0_i32, %c0_i32_0 : i32, i32
  }
  func.func @transform_5(%arg0: i32) -> (i32, i32) {
    %c0_i32 = arith.constant 0 : i32
    %c0_i32_0 = arith.constant 0 : i32
    %c0_i32_1 = arith.constant 0 : i32
    return %c0_i32, %c0_i32_0 : i32, i32
  }
  func.func @transform_6(%arg0: i32) -> (i32, i32) {
    %c0_i32 = arith.constant 0 : i32
    %c0_i32_0 = arith.constant 0 : i32
    %c0_i32_1 = arith.constant 0 : i32
    return %c0_i32, %c0_i32_0 : i32, i32
  }
  func.func @transform_7(%arg0: i32) -> (i32, i32) {
    %c0_i32 = arith.constant 0 : i32
    %c0_i32_0 = arith.constant 0 : i32
    %c0_i32_1 = arith.constant 0 : i32
    return %c0_i32, %c0_i32_0 : i32, i32
  }
  func.func @transform_8(%arg0: i32) -> (i32, i32) {
    %c0_i32 = arith.constant 0 : i32
    %c0_i32_0 = arith.constant 0 : i32
    %c0_i32_1 = arith.constant 0 : i32
    return %c0_i32, %c0_i32_0 : i32, i32
  }
  func.func @transform_9(%arg0: i32) -> (i32, i32, i32, i32) {
    %c0_i32 = arith.constant 0 : i32
    %c0_i32_0 = arith.constant 0 : i32
    %c0_i32_1 = arith.constant 0 : i32
    %c0_i32_2 = arith.constant 0 : i32
    return %arg0, %c0_i32, %c0_i32_0, %c0_i32_1 : i32, i32, i32, i32
  }
}

</mosaic_0001>

<bundles_post_ra>
// kernel: tpu_custom_call.1
= control target key start
LH: loop header
LB: loop body
LE: loop exit
PB: predicated region body
PF: predicated region fallthrough
CT: control target
= control target key end

     0   :  { %14 = vsyncpa [#allocation6], 0  ;;  %s11286_s0 = inlined_call_operand.hbm [shape: f32[2,16,16,48], index: 0, kind: input, shape index: {}]   ;;  %s11287_s1 = inlined_call_operand.vmem [shape: bf16[432,16], index: 1, kind: input, shape index: {}]   ;;  %s11288_s2 = inlined_call_operand.vmem [shape: f32[1,16], index: 2, kind: input, shape index: {}]   ;;  %s11289_s3 = inlined_call_operand.vmem [shape: bf16[144,48], index: 3, kind: input, shape index: {}]   ;;  %s11290_s4 = inlined_call_operand.vmem [shape: f32[1,48], index: 4, kind: input, shape index: {}]   ;;  %s11291_s5 = inlined_call_operand.vmem [shape: f32[48,3], index: 5, kind: input, shape index: {}]   ;;  %s11292_s6 = inlined_call_operand.vmem [shape: f32[1,3], index: 6, kind: input, shape index: {}]   ;;  %s11293_s7 = inlined_call_operand.vmem [shape: f32[3,48], index: 7, kind: input, shape index: {}]   ;;  %s11294_s8 = inlined_call_operand.vmem [shape: f32[1,48], index: 8, kind: input, shape index: {}]   ;;  %s11295_s9 = inlined_call_operand.hbm [shape: f32[2,16,16,48], index: 9, kind: output, shape index: {}]  }
   0x1   :  { %16 = vsyncpa [#allocation6 + $0x1], 0 }
   0x2   :  { %17 = vsyncpa [#allocation7], 0 }
   0x3   :  { %19 = vsyncpa [#allocation7 + $0x1], 0  ;;  %s7264_s30 = smov 0   ;;  %s7266_s10 = smov 0  }
   0x4   :  { %s7268_s11 = smov 0   ;;  %s7270_s12 = smov 0  }
   0x5 LB: > { %s7285_s13 = sadd.s32 4294967295, %s7195_s12   ;;  %s6510_s14 = sadd.s32 4294967294, %s7195_s12   ;;  %s7195_s12 = sphi %s7270_s12, %s11654_s12   ;;  %s7191_s11 = sphi %s7268_s11, %s11653_s11   ;;  %s7187_s10 = sphi %s7266_s10, %s11652_s10   ;;  %s7183_s30 = sphi %s7264_s30, %s11651_s30  }
   0x6   : > { %s7289_s15 = sadd.s32 1, %s7195_s12   ;;  %s32_s16 = sadd.s32 1, %s7191_s11 }
   0x7   : > { %s29_s17 = ssub.s32 %s7195_s12, %s7289_s15  ;;  %p39_p0 = scmp.ne.s32.totalorder %s7191_s11, %s7187_s10 }
   0x8   : > { %p30_p1 = scmp.eq.s32.totalorder %s29_s17, 0  ;;  %p40_p2 = scmp.eq.s32.totalorder %s7195_s12, 0 }
   0x9   : > { %p45_p3 = scmp.ne.s32.totalorder %s7187_s10, %s7183_s30  ;;  %p46_p4 = scmp.eq.s32.totalorder %s7285_s13, 0 }
   0xa   : > { %s7301_s18 = scalar_select %p30_p1, %s7191_s11, %s32_s16  }
   0xb   : > { %p7303_p5 = por %p40_p2, %p39_p0  ;;  %p7307_p6 = por %p46_p4, %p45_p3 }
   0xc   : > { %p237_p7 = scmp.eq.s32.totalorder %s7285_s13, 1  ;;  %p243_p8 = scmp.eq.s32.totalorder %s6510_s14, 1 }
   0xd   : > { %p6868_p10 = scmp.lt.s32.totalorder %s7195_s12, 2  ;;  %s287_s23 = sand.u32 1, %s7191_s11  }
   0xe   : > { %p7314_p11 = por %p237_p7, %p39_p0  ;;  %p7318_p12 = por %p243_p8, %p45_p3 }
   0xf   : > { %s6688_s24 = sshll.u32 %s7195_s12, 12  ;;  %s6513_s25 = sshll.u32 %s287_s23, 8 }
  0x10   : > { %s11331_s21 = scalar_select %p7314_p11, 1, 0 }
  0x11   : > { %s11332_s22 = scalar_select %p7318_p12, 1, 0 }
  0x12   : > { %s7327_s28 = scalar_lea.hbm %s11286_s0, %s6688_s24  ;;  %s291_s29 = scalar_lea.vmem [#allocation5], %s6513_s25 }
  0x13   : > { %s298_s14 = sshll.u32 %s291_s29, 4  ;;  %p7331_p13 = pnand %p6868_p10, %p7303_p5  ;;  %s7335_s14 = int_to_ptr.vmem [resolvable:$true] %s298_s14 }
  0x14   : > { %s7337_s17 = scalar_lea.sflag [#allocation6], %s287_s23  ;;  %s7099_s26 = scalar_lea.hbm %s7327_s28, 4096 }
  0x15   : > { %p7100_p0 = scmp.ne.s32.totalorder %s7327_s28, %s7099_s26  ;;  %p7101_p1 = pneg %p7331_p13 }
  0x16   : > { %s7104_s25 = scalar_lea.hbm %s11286_s0, 8192  ;;  %p7105_p4 = scmp.lt.u32.totalorder %s7327_s28, %s11286_s0 }
  0x17   : > { %p7102_p2 = pnand %p7101_p1, %p7100_p0  ;;  %p7106_p5 = scmp.lt.u32.totalorder %s7104_s25, %s7099_s26 }
  0x18   : > { %p7108_p8 = scmp.lt.u32.totalorder %s7099_s26, %s7327_s28 }
  0x19   : > { %p7103_p3 = pneg %p7102_p2  ;;  %p7107_p7 = por %p7106_p5, %p7105_p4 }
  0x1b   : > { %p7109_p10 = por %p7108_p8, %p7107_p7 }
  0x1d   : > { %p7110_p9 = pnand %p7109_p10, %p7103_p3 }
  0x1f   : > { %7113 = shalt.err (!%p7110_p9)
}
  0x20   : > { %s7114_s23 = scalar_lea.vmem %s7335_s14, 4096  ;;  %s7197_s24 = smov [#allocation5]  }
  0x21   : > { %p7115_p0 = scmp.ne.s32.totalorder %s7335_s14, %s7114_s23  ;;  %s7119_s19 = sshll.u32 %s7197_s24, 4  ;;  %s7120_s19 = int_to_ptr.vmem [resolvable:$false] %s7119_s19 }
  0x22   : > { %s7121_s27 = scalar_lea.vmem %s7120_s19, 8192  ;;  %p7122_p11 = scmp.lt.s32.totalorder %s7335_s14, %s7120_s19 }
  0x23   : > { %p7117_p2 = pnand %p7115_p0, %p7101_p1  ;;  %p7123_p4 = scmp.lt.s32.totalorder %s7121_s27, %s7114_s23 }
  0x25   : > { %p7118_p12 = pneg %p7117_p2  ;;  %p7124_p5 = por %p7123_p4, %p7122_p11 }
  0x27   : > { %p7125_p7 = pnand %p7124_p5, %p7118_p12 }
  0x29   : > { %7128 = shalt.err (!%p7125_p7)
}
  0x2a   : > { %s7198_s26 = smov 128   ;;  %s7199_s25 = smov 8  }
  0x2b   : > { %6863 = dma.hbm_to_vmem [thread:$0]  (!%p7331_p13), %s7327_s28, 4096, %s7335_s14, %s7337_s17, %s7198_s26, %s7198_s26, %s7199_s25  }
  0x2c   : > { %p6516_p9 = scmp.ge.s32.totalorder %s7195_s12, 1  ;;  %p306_p1 = scmp.lt.s32.totalorder %s7195_s12, 3 }
  0x2e   : > { %p307_p3 = pnand %p6516_p9, %p306_p1 }
  0x30   : > { %310 = sbr.rel (%p307_p3) target bundleno = 1790 (0x6fe), region = 56 }
  0x37   : > { %s7368_s29 = sand.u32 1, %s7187_s10  }
  0x38   : > { %s11317_s23 = sshll.u32 %s7368_s29, 8  ;;  %s313_s24 = scalar_lea.sflag [#allocation6], %s7368_s29 }
  0x39   : > { %s7374_s19 = scalar_lea.vmem [#allocation5], %s11317_s23 }
  0x3a   : > { %7174 = dma.done.wait (%p7307_p6), %s313_s24, 4096  }
  0x3b   : > { %7176 = vsyncadd (%p7307_p6), %s313_s24, 4294963200  ;;  %v7381_v0 = vld [vmem:[%s7374_s19 + $0xa1] sm:$0xff]  ;;  %v867_v1 = vld [vmem:[%s7374_s19 + $0xa9] sm:$0x7f]  ;;  %s7200_s20 = smov 96   ;;  %s7201_s28 = smov 48  }
  0x3c   : > { %v862_v2 = vld [vmem:[%s7374_s19 + $0x81] sm:$0xff]  ;;  %v886_v3 = vpack.c.bf16 %v867_v1, %v7381_v0  ;;  %v863_v4 = vld [vmem:[%s7374_s19 + $0x89] sm:$0x7f]  ;;  %v7388_v5 = vld [vmem:[%s7374_s19 + $0x91] sm:$0xff]  ;;  %s7202_s14 = smov 64   ;;  %s7203_s16 = smov 16  }
  0x3d   : > { %v865_v6 = vld [vmem:[%s7374_s19 + $0x99] sm:$0x7f]  ;;  %v884_v7 = vpack.c.bf16 %v863_v4, %v862_v2  ;;  %v7392_v8 = vld [vmem:[%s7374_s19 + $0x80] sm:$0xff]  ;;  %v638_v9 = vld [vmem:[%s7374_s19 + $0x88] sm:$0xff]  ;;  %vm11301_vm0 = vsmask.f32 7966 }
  0x3e   : > { %v7396_v10 = vld [vmem:[%s7374_s19 + $0x90] sm:$0xff]  ;;  %926 = vrot.lane.b32.xlu1 %v886_v3, %s7200_s20  ;;  %v659_v11 = vpack.c.bf16 %v638_v9, %v7392_v8  ;;  %v885_v12 = vpack.c.bf16 %v865_v6, %v7388_v5  ;;  %v1373_v13 = vld [vmem:[%s7374_s19 + $0x98] sm:$0xff]  ;;  %v7405_v15 = vld [vmem:[%s7374_s19 + $0xa0] sm:$0xff]  ;;  %vm751_vm1 = vcmask 130055   ;;  %v11334_v48 = vmov 0  ;;  %s7204_s17 = smov 112  }
  0x3f   : > { %922 = vrot.lane.b32.xlu0 %v884_v7, %s7200_s20  ;;  %v1115_v14 = vld [vmem:[%s7374_s19 + $0x98] sm:$0x7f]  ;;  %v1117_v17 = vld [vmem:[%s7374_s19 + $0xa8] sm:$0x7f]  ;;  %v1118_v19 = vld [vmem:[%s7374_s19 + $0xb0] sm:$0xff]  ;;  %v1395_v21 = vpack.c.bf16 %v1373_v13, %v7396_v10  ;;  %vm354_vm4 = vcmask 385024  }
  0x40   : > { %v1137_v16 = vpack.c.bf16 %v1115_v14, %v7396_v10  ;;  %v1138_v18 = vpack.c.bf16 %v1117_v17, %v7405_v15  ;;  %v1119_v20 = vld [vmem:[%s7374_s19 + $0xb8] sm:$0x7f]  ;;  %v1375_v34 = vld [vmem:[%s7374_s19 + $0xa8] sm:$0xff]  ;;  %v1120_v41 = vld [vmem:[%s7374_s19 + $0xc0] sm:$0xff]  ;;  %vm11299_vm3 = vsmask.f32 256 }
  0x41   : > { %v1139_v24 = vpack.c.bf16 %v1119_v20, %v1118_v19  ;;  %v7416_v26 = vld [vmem:[%s7374_s19 + $0xb1] sm:$0xff]  ;;  %v869_v27 = vld [vmem:[%s7374_s19 + $0xb9] sm:$0x7f]  ;;  %v1396_v38 = vpack.c.bf16 %v1375_v34, %v7405_v15  ;;  %v7427_v39 = vld [vmem:[%s7374_s19 + $0xc1] sm:$0xff]  ;;  %vm11298_vm6 = vcmask 392192   ;;  %vm1488_vm9 = vcmask 261127  }
  0x42   : > { %697 = vrot.lane.b32.xlu1 %v659_v11, %s7201_s28  ;;  %v1208_v22 = vshrl.u32 %v1137_v16, 16  ;;  %v1211_v23 = vshll.u32 %v1137_v16, 16  ;;  %v1215_v25 = vshrl.u32 %v1138_v18, 16  ;;  %v1218_v31 = vshll.u32 %v1138_v18, 16  ;;  %v871_v40 = vld [vmem:[%s7374_s19 + $0xc9] sm:$0x7f]  ;;  %vm7441_vm2 = vmand %vm751_vm1, %vm11301_vm0 }
  0x43   : > { %924 = vrot.lane.b32.xlu0 %v885_v12, %s7200_s20  ;;  %v1222_v32 = vshrl.u32 %v1139_v24, 16  ;;  %v887_v33 = vpack.c.bf16 %v869_v27, %v7416_v26  ;;  %v1225_v37 = vshll.u32 %v1139_v24, 16  ;;  %v1121_v42 = vld [vmem:[%s7374_s19 + $0xc8] sm:$0x7f]  ;;  %v888_v44 = vpack.c.bf16 %v871_v40, %v7427_v39  ;;  %v1377_v46 = vld [vmem:[%s7374_s19 + $0xb8] sm:$0xff]  ;;  %v7450_v52 = vld [vmem:[%s7374_s19 + $0xd0] sm:$0xff] }
  0x44   : > { %v1210_v28 = vrot.slane %v1208_v22, 7  ;;  %v1217_v30 = vrot.slane %v1215_v25, 7  ;;  %v1140_v45 = vpack.c.bf16 %v1121_v42, %v1120_v41  ;;  %v7438_v47 = vld [vmem:[%s7374_s19 + $0xd1] sm:$0xff]  ;;  %v11335_v48 = vsel %vm7441_vm2, 4294967295, %v11334_v48  ;;  %v873_v50 = vld [vmem:[%s7374_s19 + $0xd9] sm:$0x7f]  ;;  %vm7466_vm5 = vmand %vm354_vm4, %vm11299_vm3 }
  0x45   : > { %v1224_v36 = vrot.slane %v1222_v32, 7  ;;  %11336 = vst [vmem:[#allocation11_spill] sm:$0xff] %v11335_v48  ;;  %v7446_v49 = vpack.c.bf16 %v1377_v46, %v1118_v19  ;;  %v1123_v53 = vld [vmem:[%s7374_s19 + $0xd8] sm:$0x7f]  ;;  %v819_v55 = vld [vmem:[#allocation2 + $0x168] sm:$0x80]  ;;  %v889_v56 = vpack.c.bf16 %v873_v50, %v7438_v47  ;;  %vm7554_vm11 = vmand %vm1488_vm9, %vm11301_vm0 }
  0x46   : > { %699 = vrot.lane.b32.xlu1 %v1395_v21, %s7201_s28  ;;  %v1213_v29 = vor.u32 %v1211_v23, %v1210_v28  ;;  %v1220_v35 = vor.u32 %v1218_v31, %v1217_v30  ;;  %v1229_v51 = vshrl.u32 %v1140_v45, 16  ;;  %v1602_v54 = vld [vmem:[%s7374_s19 + $0x99] sm:$0x7f]  ;;  %v1141_v57 = vpack.c.bf16 %v1123_v53, %v7450_v52  ;;  %v807_v59 = vld [vmem:[#allocation2 + $0x128] sm:$0x80]  ;;  %v7472_v6 = vld [vmem:[%s7374_s19 + $0xe0] sm:$0xff] }
  0x47   : > { %1436 = vrot.lane.b32.xlu0 %v1395_v21, %s7202_s14  ;;  %v1227_v43 = vor.u32 %v1225_v37, %v1224_v36  ;;  %v820_v58 = vsel %vm7441_vm2, 0, %v819_v55  ;;  %v1624_v60 = vpack.c.bf16 %v1602_v54, %v7388_v5  ;;  %v1232_v62 = vshll.u32 %v1140_v45, 16  ;;  %v1379_v63 = vld [vmem:[%s7374_s19 + $0xc8] sm:$0xff]  ;;  %v384_v7 = vld [vmem:[#allocation2 + $0x120] sm:$0x1]  ;;  %s7206_s27 = smov 32  }
  0x48   : > { %v1231_v61 = vrot.slane %v1229_v51, 7  ;;  %821 = vst [vmem:[#allocation2 + $0x168] sm:$0x80] %v820_v58  ;;  %v808_v1 = vsel %vm7441_vm2, 0, %v807_v59  ;;  %v1604_v3 = vld [vmem:[%s7374_s19 + $0xa9] sm:$0x7f]  ;;  %v7478_v11 = vpack.c.bf16 %v1379_v63, %v1120_v41 }
  0x49   : > { %809 = vst [vmem:[#allocation2 + $0x128] sm:$0x80] %v808_v1  ;;  %v813_v4 = vld [vmem:[#allocation2 + $0x148] sm:$0x80]  ;;  %v422_v9 = vld [vmem:[%s7374_s19 + $0x88] sm:$0x7f]  ;;  %v1625_v20 = vpack.c.bf16 %v1604_v3, %v7381_v0 }
  0x4a   : > { %1274 = vrot.lane.b32.xlu1 %v1213_v29, %s7203_s16  ;;  %v814_v5 = vsel %vm7441_vm2, 0, %v813_v4  ;;  %v1236_v12 = vshrl.u32 %v1141_v57, 16  ;;  %v1125_v13 = vld [vmem:[%s7374_s19 + $0xe8] sm:$0x7f]  ;;  %v385_v14 = vsel %vm7466_vm5, 0, %v384_v7  ;;  %v1234_v17 = vor.u32 %v1232_v62, %v1231_v61  ;;  %v1381_v41 = vld [vmem:[%s7374_s19 + $0xd8] sm:$0xff] }
  0x4b   : > { %928 = vrot.lane.b32.xlu0 %v887_v33, %s7200_s20  ;;  %815 = vst [vmem:[#allocation2 + $0x148] sm:$0x80] %v814_v5  ;;  %v387_v16 = vld [vmem:[#allocation2 + $0x140] sm:$0x1]  ;;  %vm11302_vm7 = vsmask.f32 7938  ;;  %v443_v18 = vpack.c.bf16 %v422_v9, %v7392_v8  ;;  %v7491_v24 = vpack.c.bf16 %v1125_v13, %v7472_v6 }
  0x4c   : > { %386 = vst [vmem:[#allocation2 + $0x120] sm:$0x1] %v385_v14  ;;  %v424_v19 = vld [vmem:[%s7374_s19 + $0x98] sm:$0x7f]  ;;  %v388_v21 = vsel %vm7466_vm5, 0, %v387_v16  ;;  %v1238_v0 = vrot.slane %v1236_v12, 7  ;;  %vm7499_vm8 = vmand %vm11298_vm6, %vm11302_vm7 }
  0x4d   : > { %v444_v22 = vpack.c.bf16 %v424_v19, %v7396_v10  ;;  %v825_v23 = vld [vmem:[#allocation2 + $0x188] sm:$0x80]  ;;  %v507_v25 = vshrl.u32 %v443_v18, 16  ;;  %v510_v27 = vshll.u32 %v443_v18, 16  ;;  %389 = vst [vmem:[#allocation2 + $0x140] sm:$0x1] %v388_v21 }
  0x4e   : > { %1276 = vrot.lane.b32.xlu1 %v1220_v35, %s7203_s16  ;;  %v826_v8 = vsel %vm7441_vm2, 0, %v825_v23  ;;  %v1239_v28 = vshll.u32 %v1141_v57, 16  ;;  %v7505_v31 = vld [vmem:[%s7374_s19 + $0xe1] sm:$0xff]  ;;  %v875_v32 = vld [vmem:[%s7374_s19 + $0xe9] sm:$0x7f]  ;;  %v1243_v36 = vshrl.u32 %v7491_v24, 16 }
  0x4f   : > { %1438 = vrot.lane.b32.xlu0 %v1396_v38, %s7202_s14  ;;  %v514_v29 = vshrl.u32 %v444_v22, 16  ;;  %v517_v30 = vshll.u32 %v444_v22, 16  ;;  %827 = vst [vmem:[#allocation2 + $0x188] sm:$0x80] %v826_v8  ;;  %v509_v33 = vrot.slane %v507_v25, 7  ;;  %v6917_v35 = vld [vmem:[%s11287_s1 + $0x40] sm:$0xff]  }
  0x50   : > { %v1241_v40 = vor.u32 %v1239_v28, %v1238_v0  ;;  %6840 = vmatprep.subr.bf16.mxu1 %v6917_v35  ;;  %v6919_v46 = vld [vmem:[%s11287_s1 + $0x48] sm:$0xff]   ;;  %6690 = vmatprep.subr.bf16.mxu0 %v6917_v35  ;;  %v1245_v54 = vrot.slane %v1243_v36, 7  ;;  %v1606_v57 = vld [vmem:[%s7374_s19 + $0xb9] sm:$0x7f]  ;;  %v6921_v58 = vld [vmem:[%s11287_s1 + $0x50] sm:$0xff]   ;;  %vm11297_vm10 = vcmask 130048  }
  0x51   : > { %v516_v34 = vrot.slane %v514_v29, 7  ;;  %v512_v37 = vor.u32 %v510_v27, %v509_v33  ;;  %v831_v50 = vld [vmem:[#allocation2 + $0x1a8] sm:$0x80]  ;;  %v390_v59 = vld [vmem:[#allocation2 + $0x160] sm:$0x1]  ;;  %v7543_v61 = vld [vmem:[%s7374_s19 + $0xf0] sm:$0xff] }
  0x52   : > { %1278 = vrot.lane.b32.xlu1 %v1227_v43, %s7203_s16  ;;  %v832_v53 = vsel %vm7441_vm2, 0, %v831_v50  ;;  %v391_v62 = vsel %vm7466_vm5, 0, %v390_v59  ;;  %v426_v63 = vld [vmem:[%s7374_s19 + $0xa8] sm:$0x7f]  ;;  %v1127_v1 = vld [vmem:[%s7374_s19 + $0xf8] sm:$0x7f] }
  0x53   : > { %930 = vrot.lane.b32.xlu0 %v888_v44, %s7200_s20  ;;  %v598_v42 = vld [vmem:[#allocation2 + $0x120] sm:$0xff]  ;;  %v519_v43 = vor.u32 %v517_v30, %v516_v34  ;;  %v890_v44 = vpack.c.bf16 %v875_v32, %v7505_v31  ;;  %833 = vst [vmem:[#allocation2 + $0x1a8] sm:$0x80] %v832_v53  ;;  %392 = vst [vmem:[#allocation2 + $0x160] sm:$0x1] %v391_v62  ;;  %v445_v3 = vpack.c.bf16 %v426_v63, %v7405_v15  ;;  %v6922_v4 = vld [vmem:[%s11287_s1 + $0x10] sm:$0xff]  }
  0x54   : > { %v599_v45 = vsel %vm7499_vm8, %v512_v37, %v598_v42  ;;  %v601_v51 = vld [vmem:[#allocation2 + $0x140] sm:$0xff]  ;;  %v847_v7 = vld [vmem:[%s7374_s19 + $0x9] sm:$0x7f]  ;;  %v6923_v15 = vld [vmem:[%s11287_s1 + $0x58] sm:$0xff]   ;;  %v11312_v13 = vmov 0   ;;  %v7579_v16 = vpack.c.bf16 %v1127_v1, %v7543_v61  ;;  %vm1046_vm12 = vcmask 516224  }
  0x55   : > { %600 = vst [vmem:[#allocation2 + $0x120] sm:$0xff] %v599_v45  ;;  %v602_v55 = vsel %vm7499_vm8, %v519_v43, %v601_v51  ;;  %v521_v9 = vshrl.u32 %v445_v3, 16  ;;  %v524_v12 = vshll.u32 %v445_v3, 16  ;;  %353 = vst.msk [vmem:[#allocation2] sm:$0xff] %vm11298_vm6, %v11312_v13  ;;  %v1383_v14 = vld [vmem:[%s7374_s19 + $0xe8] sm:$0xff]  ;;  %v6924_v23 = vld [vmem:[%s11287_s1 + $0x18] sm:$0xff]  }
  0x56   : > { %701 = vrot.lane.b32.xlu1 %v1396_v38, %s7201_s28  ;;  %v6918_v38 = vld [vmem:[%s11287_s1] sm:$0xff]   ;;  %603 = vst [vmem:[#allocation2 + $0x140] sm:$0xff] %v602_v55  ;;  %744 = vst.msk [vmem:[#allocation2 + $0x8] sm:$0xff] %vm11297_vm10, %v11312_v13  ;;  %v837_v18 = vld [vmem:[#allocation2 + $0x1c8] sm:$0x80]  ;;  %v1250_v28 = vshrl.u32 %v7579_v16, 16 }
  0x57   : > { %1440 = vrot.lane.b32.xlu0 %v7446_v49, %s7202_s14  ;;  %6848 = vmatpush3.bf16.msra.mxu1 %v6918_v38  ;;  %2213 = vst.msk [vmem:[#allocation2 + $0x1f8] sm:$0xff] %vm11298_vm6, %v11312_v13  ;;  %v7582_v19 = vld [vmem:[%s7374_s19 + $0x1] sm:$0xff]  ;;  %v838_v22 = vsel %vm7441_vm2, 0, %v837_v18  ;;  %v7609_v32 = vld [vmem:[%s7374_s19 + $0x11] sm:$0xff]  ;;  %v849_v33 = vld [vmem:[%s7374_s19 + $0x19] sm:$0x7f] }
  0x58   : > { %6841 = vmatprep.subr.bf16.mxu1 %v6919_v46  ;;  %6691 = vmatpush3.bf16.msra.mxu0 %v6918_v38  ;;  %3908 = vst.msk [vmem:[#allocation4] sm:$0xff] %vm11297_vm10, %v11312_v13  ;;  %5504 = vst.msk [vmem:[#allocation4 + $0xf8] sm:$0xff] %vm11297_vm10, %v11312_v13  ;;  %v7597_v25 = vld [vmem:[%s7374_s19] sm:$0xff]  ;;  %v1097_v27 = vld [vmem:[%s7374_s19 + $0x8] sm:$0x7f]  ;;  %v876_v0 = vpack.c.bf16 %v847_v7, %v7582_v19  ;;  %v1253_v36 = vshll.u32 %v7579_v16, 16 }
  0x59   : > { %6692 = vmatprep.subr.bf16.mxu0 %v6919_v46  ;;  %839 = vst [vmem:[#allocation2 + $0x1c8] sm:$0x80] %v838_v22  ;;  %v6925_v30 = vld [vmem:[%s11287_s1 + $0x60] sm:$0xff]   ;;  %v7620_v37 = vpack.c.bf16 %v1097_v27, %v7597_v25  ;;  %v6927_v38 = vld [vmem:[%s11287_s1 + $0x68] sm:$0xff]   ;;  %v427_v43 = vld [vmem:[%s7374_s19 + $0xb0] sm:$0xff]  ;;  %vm11300_vm14 = vcmask 785792  }
  0x5a   : > { %932 = vrot.lane.b32.xlu1 %v889_v56, %s7200_s20  ;;  %v6920_v56 = vld [vmem:[%s11287_s1 + $0x8] sm:$0xff]   ;;  %v604_v29 = vld [vmem:[#allocation2 + $0x160] sm:$0xff]  ;;  %v7634_v45 = vld [vmem:[%s7374_s19 + $0x10] sm:$0xff]  ;;  %vm741_vm15 = vcmask 1048320   ;;  %vm745_vm1 = vcmask 1048327   ;;  %vm2214_vm4 = vcmask 392199  }
  0x5b   : > { %1665 = vrot.lane.b32.xlu0 %v1624_v60, %s7204_s17  ;;  %v7540_v60 = vpack.c.bf16 %v1381_v41, %v7450_v52  ;;  %6849 = vmatpush3.bf16.msra.mxu1 %v6920_v56  ;;  %v6926_v34 = vld [vmem:[%s11287_s1 + $0x20] sm:$0xff]   ;;  %v1252_v41 = vrot.slane %v1250_v28, 7  ;;  %v1099_v46 = vld [vmem:[%s7374_s19 + $0x18] sm:$0x7f]  ;;  %v1550_v51 = vld [vmem:[#allocation2 + $0x150] sm:$0x80] }
  0x5c   : > { %6842 = vmatprep.subr.bf16.mxu1 %v6921_v58  ;;  %6693 = vmatpush3.bf16.msra.mxu0 %v6920_v56  ;;  %v1551_v53 = vsel %vm7554_vm11, 0, %v1550_v51  ;;  %v1145_v55 = vshrl.u32 %v7620_v37, 16  ;;  %v843_v59 = vld [vmem:[#allocation2 + $0x1e8] sm:$0x80]  ;;  %v1385_v62 = vld [vmem:[%s7374_s19 + $0xf8] sm:$0xff]  ;;  %v7649_v63 = vpack.c.bf16 %v1099_v46, %v7634_v45  ;;  %vm7726_vm13 = vmand %vm1046_vm12, %vm11299_vm3  ;;  %s7207_s26 = smov 80  }
  0x5d   : > { %6694 = vmatprep.subr.bf16.mxu0 %v6921_v58  ;;  %1552 = vst [vmem:[#allocation2 + $0x150] sm:$0x80] %v1551_v53  ;;  %v1255_v58 = vor.u32 %v1253_v36, %v1252_v41  ;;  %v844_v3 = vsel %vm7441_vm2, 0, %v843_v59  ;;  %v430_v18 = vld [vmem:[%s7374_s19 + $0xc8] sm:$0x7f]  ;;  %v7694_v41 = vld [vmem:[%s7374_s19 + $0x20] sm:$0xff]  ;;  %vm7862_vm9 = vmand %vm2214_vm4, %vm11301_vm0 }
  0x5e   : > { %1442 = vrot.lane.b32.xlu1 %v7478_v11, %s7202_s14  ;;  %845 = vst [vmem:[#allocation2 + $0x1e8] sm:$0x80] %v844_v3  ;;  %v1556_v27 = vld [vmem:[#allocation2 + $0x170] sm:$0x80]  ;;  %v399_v36 = vld [vmem:[#allocation2 + $0x1c0] sm:$0x1]  ;;  %vm7884_vm4 = vmand %vm745_vm1, %vm11301_vm0 }
  0x5f   : > { %1280 = vrot.lane.b32.xlu0 %v1234_v17, %s7203_s16  ;;  %6850 = vmatpush3.bf16.msra.mxu1 %v6922_v4  ;;  %v1544_v17 = vld [vmem:[#allocation2 + $0x130] sm:$0x80]  ;;  %v765_v53 = vld [vmem:[#allocation2 + $0x48] sm:$0x80]  ;;  %vm952_vm12 = vsmask.f32 7424 }
  0x60   : > { %6843 = vmatprep.subr.bf16.mxu1 %v6923_v15  ;;  %v1545_v21 = vsel %vm7554_vm11, 0, %v1544_v17  ;;  %6695 = vmatpush3.bf16.msra.mxu0 %v6922_v4  ;;  %v6930_v4 = vld [vmem:[%s11287_s1 + $0x30] sm:$0xff]   ;;  %v429_v17 = vld [vmem:[%s7374_s19 + $0xc0] sm:$0xff]  ;;  %v766_v3 = vsel %vm7441_vm2, 0, %v765_v53  ;;  %vm7904_vm1 = vmand %vm11297_vm10, %vm952_vm12  ;;  %vm1483_vm0 = vcmask 1048455   ;;  %p11648_p11 = scmp.ne.s32.totalorder %s11331_s21, 0 }
  0x61   : > { %1546 = vst [vmem:[#allocation2 + $0x130] sm:$0x80] %v1545_v21  ;;  %6696 = vmatprep.subr.bf16.mxu0 %v6923_v15  ;;  %v1401_v15 = vpack.c.bf16 %v1385_v62, %v7543_v61  ;;  %v6932_v61 = vld [vmem:[%s11287_s1 + $0x38] sm:$0xff]   ;;  %v447_v22 = vpack.c.bf16 %v430_v18, %v429_v17  ;;  %767 = vst [vmem:[#allocation2 + $0x48] sm:$0x80] %v766_v3  ;;  %v6934_v2 = vld [vmem:[%s11287_s1 + $0x88] sm:$0xff]  }
  0x62   : > { %1667 = vrot.lane.b32.xlu1 %v1625_v20, %s7204_s17  ;;  %v523_v20 = vrot.slane %v521_v9, 7  ;;  %v6931_v9 = vld [vmem:[%s11287_s1 + $0x78] sm:$0xff]   ;;  %v1568_v18 = vld [vmem:[#allocation2 + $0x1b0] sm:$0x80]  ;;  %vm7933_vm10 = vmand %vm11298_vm6, %vm952_vm12  ;;  %vm1304_vm6 = vcmask 523392   ;;  %s7211_s25 = smov [#allocation8]  }
  0x63   : > { %703 = vrot.lane.b32.xlu0 %v7446_v49, %s7201_s28  ;;  %v1246_v49 = vshll.u32 %v7491_v24, 16  ;;  %v7594_v24 = vpack.c.bf16 %v1383_v14, %v7472_v6  ;;  %6851 = vmatpush3.bf16.msra.mxu1 %v6924_v23  ;;  %v535_v28 = vshrl.u32 %v447_v22, 16  ;;  %v1613_v53 = vld [vmem:[%s7374_s19 + $0xf1] sm:$0xff]  ;;  %vm8043_vm3 = vmand %vm741_vm15, %vm952_vm12  ;;  %s7133_s23 = sshll.u32 %s7211_s25, 4  ;;  %s7134_s23 = int_to_ptr.vmem [resolvable:$false] %s7133_s23 }
  0x64   : > { %v526_v8 = vor.u32 %v524_v12, %v523_v20  ;;  %6844 = vmatprep.subr.bf16.mxu1 %v6925_v30  ;;  %6697 = vmatpush3.bf16.msra.mxu0 %v6924_v23  ;;  %v396_v12 = vld [vmem:[#allocation2 + $0x1a0] sm:$0x1]  ;;  %v1152_v20 = vshrl.u32 %v7649_v63, 16  ;;  %v851_v23 = vld [vmem:[%s7374_s19 + $0x29] sm:$0x7f]  ;;  %s7135_s24 = scalar_lea.vmem %s7134_s23, 8192 }
  0x65   : > { %v1248_v5 = vor.u32 %v1246_v49, %v1245_v54  ;;  %6698 = vmatprep.subr.bf16.mxu0 %v6925_v30  ;;  %v6929_v54 = vld [vmem:[%s11287_s1 + $0x70] sm:$0xff]   ;;  %v877_v49 = vpack.c.bf16 %v849_v33, %v7609_v32  ;;  %v397_v16 = vsel %vm7466_vm5, 0, %v396_v12  ;;  %v1557_v30 = vsel %vm7554_vm11, 0, %v1556_v27 }
  0x66   : > { %1282 = vrot.lane.b32.xlu1 %v1241_v40, %s7203_s16  ;;  %v605_v6 = vsel %vm7499_vm8, %v526_v8, %v604_v29  ;;  %v393_v40 = vld [vmem:[#allocation2 + $0x180] sm:$0x1]  ;;  %398 = vst [vmem:[#allocation2 + $0x1a0] sm:$0x1] %v397_v16  ;;  %v538_v29 = vshll.u32 %v447_v22, 16  ;;  %v1155_v33 = vshll.u32 %v7649_v63, 16 }
  0x67   : > { %934 = vrot.lane.b32.xlu0 %v890_v44, %s7200_s20  ;;  %606 = vst [vmem:[#allocation2 + $0x160] sm:$0xff] %v605_v6  ;;  %6852 = vmatpush3.bf16.msra.mxu1 %v6926_v34  ;;  %v394_v42 = vsel %vm7466_vm5, 0, %v393_v40  ;;  %v6928_v44 = vld [vmem:[%s11287_s1 + $0x28] sm:$0xff]   ;;  %v1154_v6 = vrot.slane %v1152_v20, 7  ;;  %1558 = vst [vmem:[#allocation2 + $0x170] sm:$0x80] %v1557_v30 }
  0x68   : > { %6845 = vmatprep.subr.bf16.mxu1 %v6927_v38  ;;  %395 = vst [vmem:[#allocation2 + $0x180] sm:$0x1] %v394_v42  ;;  %6699 = vmatpush3.bf16.msra.mxu0 %v6926_v34  ;;  %v1101_v42 = vld [vmem:[%s7374_s19 + $0x28] sm:$0x7f]  ;;  %v7742_v27 = vld [vmem:[%s7374_s19 + $0x31] sm:$0xff] }
  0x69   : > { %6700 = vmatprep.subr.bf16.mxu0 %v6927_v38  ;;  %v432_v38 = vld [vmem:[%s7374_s19 + $0xd8] sm:$0x7f]  ;;  %v1157_v59 = vor.u32 %v1155_v33, %v1154_v6  ;;  %v7709_v62 = vpack.c.bf16 %v1101_v42, %v7694_v41  ;;  %v434_v63 = vld [vmem:[%s7374_s19 + $0xe8] sm:$0x7f]  ;;  %v1490_v6 = vld [vmem:[#allocation2 + $0x10] sm:$0x80] }
  0x6a   : > { %705 = vrot.lane.b32.xlu1 %v7478_v11, %s7201_s28  ;;  %v1626_v11 = vpack.c.bf16 %v1606_v57, %v7416_v26  ;;  %v1608_v26 = vld [vmem:[%s7374_s19 + $0xc9] sm:$0x7f]  ;;  %v1586_v42 = vld [vmem:[%s7374_s19 + $0x19] sm:$0x7f]  ;;  %v1496_v3 = vld [vmem:[#allocation2 + $0x30] sm:$0x80] }
  0x6b   : > { %1444 = vrot.lane.b32.xlu0 %v7540_v60, %s7202_s14  ;;  %v1627_v35 = vpack.c.bf16 %v1608_v26, %v7427_v39  ;;  %v428_v39 = vld [vmem:[%s7374_s19 + $0xb8] sm:$0x7f]  ;;  %6853 = vmatpush3.bf16.msra.mxu1 %v6928_v44 }
  0x6c   : > { %v446_v50 = vpack.c.bf16 %v428_v39, %v427_v43  ;;  %6846 = vmatprep.subr.bf16.mxu1 %v6929_v54  ;;  %6701 = vmatpush3.bf16.msra.mxu0 %v6928_v44  ;;  %v400_v43 = vsel %vm7466_vm5, 0, %v399_v36  ;;  %v1562_v44 = vld [vmem:[#allocation2 + $0x190] sm:$0x80] }
  0x6d   : > { %6702 = vmatprep.subr.bf16.mxu0 %v6929_v54  ;;  %v610_v51 = vld [vmem:[#allocation2 + $0x1a0] sm:$0xff]  ;;  %401 = vst [vmem:[#allocation2 + $0x1c0] sm:$0x1] %v400_v43  ;;  %v7757_v36 = vld [vmem:[%s7374_s19 + $0x30] sm:$0xff] }
  0x6e   : > { %1284 = vrot.lane.b32.xlu1 %v1248_v5, %s7203_s16  ;;  %v528_v56 = vshrl.u32 %v446_v50, 16  ;;  %v531_v57 = vshll.u32 %v446_v50, 16  ;;  %v1610_v5 = vld [vmem:[%s7374_s19 + $0xd9] sm:$0x7f]  ;;  %v402_v54 = vld [vmem:[#allocation2 + $0x1e0] sm:$0x1] }
  0x6f   : > { %1669 = vrot.lane.b32.xlu0 %v1626_v11, %s7204_s17  ;;  %v1147_v11 = vrot.slane %v1145_v55, 7  ;;  %v607_v14 = vld [vmem:[#allocation2 + $0x180] sm:$0xff]  ;;  %6854 = vmatpush3.bf16.msra.mxu1 %v6930_v4  ;;  %v1628_v26 = vpack.c.bf16 %v1610_v5, %v7438_v47  ;;  %v1355_v47 = vld [vmem:[%s7374_s19 + $0x8] sm:$0xff]  ;;  %v1574_v43 = vld [vmem:[#allocation2 + $0x1d0] sm:$0x80] }
  0x70   : > { %v530_v1 = vrot.slane %v528_v56, 7  ;;  %6847 = vmatprep.subr.bf16.mxu1 %v6931_v9  ;;  %6703 = vmatpush3.bf16.msra.mxu0 %v6930_v4  ;;  %v7702_v46 = vpack.c.bf16 %v1355_v47, %v7597_v25  ;;  %v403_v4 = vsel %vm7466_vm5, 0, %v402_v54  ;;  %v1103_v47 = vld [vmem:[%s7374_s19 + $0x38] sm:$0x7f]  ;;  %v405_v54 = vld [vmem:[%s7374_s19] sm:$0xff] }
  0x71   : > { %6704 = vmatprep.subr.bf16.mxu0 %v6931_v9  ;;  %404 = vst [vmem:[#allocation2 + $0x1e0] sm:$0x1] %v403_v4  ;;  %v1612_v9 = vld [vmem:[%s7374_s19 + $0xe9] sm:$0x7f]  ;;  %v7788_v4 = vld [vmem:[%s7374_s19 + $0x41] sm:$0xff] }
  0x72   : > { %1446 = vrot.lane.b32.xlu1 %v7594_v24, %s7202_s14  ;;  %v533_v7 = vor.u32 %v531_v57, %v530_v1  ;;  %v1563_v57 = vsel %vm7554_vm11, 0, %v1562_v44  ;;  %v1575_v44 = vsel %vm7554_vm11, 0, %v1574_v43 }
  0x73   : > { %906 = vrot.lane.b32.xlu0 %v876_v0, %s7200_s20  ;;  %v7680_v0 = vld [vmem:[%s7374_s19 + $0x21] sm:$0xff]  ;;  %6855 = vmatpush3.bf16.msra.mxu1 %v6932_v61  ;;  %1564 = vst [vmem:[#allocation2 + $0x190] sm:$0x80] %v1563_v57  ;;  %1576 = vst [vmem:[#allocation2 + $0x1d0] sm:$0x80] %v1575_v44 }
  0x74   : > { %v608_v21 = vsel %vm7499_vm8, %v533_v7, %v607_v14  ;;  %2851 = vmatprep.subr.bf16.mxu1 %v11312_v13  ;;  %6705 = vmatpush3.bf16.msra.mxu0 %v6932_v61  ;;  %v878_v40 = vpack.c.bf16 %v851_v23, %v7680_v0  ;;  %v1357_v7 = vld [vmem:[%s7374_s19 + $0x18] sm:$0xff]  ;;  %v753_v14 = vld [vmem:[#allocation2 + $0x8] sm:$0x80]  ;;  %v613_v61 = vld [vmem:[#allocation2 + $0x1c0] sm:$0xff]  ;;  %v1629_v23 = vpack.c.bf16 %v1612_v9, %v7505_v31 }
  0x75   : > { %609 = vst [vmem:[#allocation2 + $0x180] sm:$0xff] %v608_v21  ;;  %5892 = vmatprep.subr.bf16.mxu0 %v11312_v13  ;;  %v754_v17 = vsel %vm7441_vm2, 0, %v753_v14  ;;  %v7734_v20 = vpack.c.bf16 %v1357_v7, %v7634_v45  ;;  %v1159_v21 = vshrl.u32 %v7709_v62, 16  ;;  %v360_v57 = vld [vmem:[#allocation2 + $0x20] sm:$0x1] }
  0x76   : > { %1671 = vrot.lane.b32.xlu1 %v1627_v35, %s7204_s17  ;;  %v537_v35 = vrot.slane %v535_v28, 7  ;;  %755 = vst [vmem:[#allocation2 + $0x8] sm:$0x80] %v754_v17 }
  0x77   : > { %707 = vrot.lane.b32.xlu0 %v7540_v60, %s7201_s28  ;;  %v1148_v60 = vshll.u32 %v7620_v37, 16  ;;  %v431_v37 = vld [vmem:[%s7374_s19 + $0xd0] sm:$0xff] }
  0x78   : > { %v448_v39 = vpack.c.bf16 %v432_v38, %v431_v37  ;;  %v540_v50 = vor.u32 %v538_v29, %v537_v35  ;;  %v1569_v29 = vsel %vm7554_vm11, 0, %v1568_v18  ;;  %v1162_v35 = vshll.u32 %v7709_v62, 16  ;;  %v616_v37 = vld [vmem:[#allocation2 + $0x1e0] sm:$0xff]  ;;  %v1588_v18 = vld [vmem:[%s7374_s19 + $0x29] sm:$0x7f] }
  0x79   : > { %v1150_v8 = vor.u32 %v1148_v60, %v1147_v11  ;;  %1570 = vst [vmem:[#allocation2 + $0x1b0] sm:$0x80] %v1569_v29  ;;  %v361_v62 = vsel %vm7466_vm5, 0, %v360_v57 }
  0x7a   : > { %908 = vrot.lane.b32.xlu1 %v877_v49, %s7200_s20  ;;  %v1584_v49 = vld [vmem:[%s7374_s19 + $0x9] sm:$0x7f]  ;;  %v542_v55 = vshrl.u32 %v448_v39, 16  ;;  %v545_v56 = vshll.u32 %v448_v39, 16  ;;  %v611_v25 = vsel %vm7499_vm8, %v540_v50, %v610_v51  ;;  %v1131_v39 = vpack.c.bf16 %v1103_v47, %v7757_v36  ;;  %362 = vst [vmem:[#allocation2 + $0x20] sm:$0x1] %v361_v62 }
  0x7b   : > { %1286 = vrot.lane.b32.xlu0 %v1255_v58, %s7203_s16  ;;  %v433_v58 = vld [vmem:[%s7374_s19 + $0xe0] sm:$0xff]  ;;  %612 = vst [vmem:[#allocation2 + $0x1a0] sm:$0xff] %v611_v25  ;;  %v1615_v60 = vpack.c.bf16 %v1584_v49, %v7582_v19  ;;  %v1048_v19 = vld [vmem:[#allocation2 + $0x8] sm:$0x1]  ;;  %v1616_v49 = vpack.c.bf16 %v1586_v42, %v7609_v32  ;;  %v1107_v62 = vld [vmem:[%s7374_s19 + $0x58] sm:$0x7f] }
  0x7c   : > { %v544_v1 = vrot.slane %v542_v55, 7  ;;  %v449_v5 = vpack.c.bf16 %v434_v63, %v433_v58  ;;  %v1359_v51 = vld [vmem:[%s7374_s19 + $0x28] sm:$0xff]  ;;  %v1614_v55 = vld [vmem:[%s7374_s19 + $0xf9] sm:$0x7f]  ;;  %v1166_v63 = vshrl.u32 %v1131_v39, 16 }
  0x7d   : > { %v6520_v58 = vld [vmem:[%s7374_s19 + $0x18] sm:$0x7f]  ;;  %v406_v25 = vld [vmem:[%s7374_s19 + $0x8] sm:$0x7f]  ;;  %v7784_v32 = vpack.c.bf16 %v1359_v51, %v7694_v41 }
  0x7e   : > { %709 = vrot.lane.b32.xlu1 %v7594_v24, %s7201_s28  ;;  %v759_v24 = vld [vmem:[#allocation2 + $0x28] sm:$0x80]  ;;  %v547_v12 = vor.u32 %v545_v56, %v544_v1  ;;  %v552_v11 = vshll.u32 %v449_v5, 16  ;;  %v435_v1 = vpack.c.bf16 %v406_v25, %v405_v54  ;;  %v1168_v17 = vrot.slane %v1166_v63, 7  ;;  %v357_v54 = vld [vmem:[#allocation2] sm:$0x1] }
  0x7f   : > { %1448 = vrot.lane.b32.xlu0 %v1401_v15, %s7202_s14  ;;  %v760_v34 = vsel %vm7441_vm2, 0, %v759_v24  ;;  %v549_v15 = vshrl.u32 %v449_v5, 16  ;;  %v771_v24 = vld [vmem:[#allocation2 + $0x68] sm:$0x80]  ;;  %v366_v25 = vld [vmem:[#allocation2 + $0x60] sm:$0x1] }
  0x80   : > { %761 = vst [vmem:[#allocation2 + $0x28] sm:$0x80] %v760_v34  ;;  %v614_v28 = vsel %vm7499_vm8, %v547_v12, %v613_v61  ;;  %v772_v31 = vsel %vm7441_vm2, 0, %v771_v24  ;;  %v1161_v34 = vrot.slane %v1159_v21, 7  ;;  %v777_v56 = vld [vmem:[#allocation2 + $0x88] sm:$0x80] }
  0x81   : > { %v551_v22 = vrot.slane %v549_v15, 7  ;;  %615 = vst [vmem:[#allocation2 + $0x1c0] sm:$0xff] %v614_v28  ;;  %773 = vst [vmem:[#allocation2 + $0x68] sm:$0x80] %v772_v31  ;;  %v855_v5 = vld [vmem:[%s7374_s19 + $0x49] sm:$0x7f] }
  0x82   : > { %1673 = vrot.lane.b32.xlu1 %v1628_v26, %s7204_s17  ;;  %v1049_v26 = vsel %vm7726_vm13, 0, %v1048_v19  ;;  %v1164_v50 = vor.u32 %v1162_v35, %v1161_v34  ;;  %v451_v7 = vshrl.u32 %v435_v1, 16  ;;  %v454_v9 = vshll.u32 %v435_v1, 16  ;;  %v6522_v31 = vld [vmem:[%s7374_s19 + $0x28] sm:$0x7f]  ;;  %v1361_v34 = vld [vmem:[%s7374_s19 + $0x38] sm:$0xff] }
  0x83   : > { %1256 = vrot.lane.b32.xlu0 %v1150_v8, %s7203_s16  ;;  %v853_v8 = vld [vmem:[%s7374_s19 + $0x39] sm:$0x7f]  ;;  %1050 = vst [vmem:[#allocation2 + $0x8] sm:$0x1] %v1049_v26  ;;  %v554_v30 = vor.u32 %v552_v11, %v551_v22  ;;  %v1497_v12 = vsel %vm7554_vm11, 0, %v1496_v3  ;;  %v880_v14 = vpack.c.bf16 %v855_v5, %v7788_v4  ;;  %v1169_v19 = vshll.u32 %v1131_v39, 16 }
  0x84   : > { %v879_v33 = vpack.c.bf16 %v853_v8, %v7742_v27  ;;  %1498 = vst [vmem:[#allocation2 + $0x30] sm:$0x80] %v1497_v12  ;;  %v453_v15 = vrot.slane %v451_v7, 7  ;;  %v1580_v11 = vld [vmem:[#allocation2 + $0x1f0] sm:$0x80]  ;;  %v574_v8 = vld [vmem:[#allocation2 + $0x20] sm:$0xff]  ;;  %v7820_v44 = vpack.c.bf16 %v6522_v31, %v7694_v41 }
  0x85   : > { %v617_v38 = vsel %vm7499_vm8, %v554_v30, %v616_v37  ;;  %v783_v22 = vld [vmem:[#allocation2 + $0xa8] sm:$0x80]  ;;  %v363_v26 = vld [vmem:[#allocation2 + $0x40] sm:$0x1]  ;;  %v408_v30 = vld [vmem:[%s7374_s19 + $0x18] sm:$0x7f]  ;;  %v1171_v47 = vor.u32 %v1169_v19, %v1168_v17 }
  0x86   : > { %910 = vrot.lane.b32.xlu1 %v878_v40, %s7200_s20  ;;  %v1491_v40 = vsel %vm7554_vm11, 0, %v1490_v6  ;;  %618 = vst [vmem:[#allocation2 + $0x1e0] sm:$0xff] %v617_v38  ;;  %v456_v61 = vor.u32 %v454_v9, %v453_v15  ;;  %v784_v28 = vsel %vm7441_vm2, 0, %v783_v22  ;;  %v364_v29 = vsel %vm7466_vm5, 0, %v363_v26  ;;  %v7816_v38 = vld [vmem:[%s7374_s19 + $0x40] sm:$0xff] }
  0x87   : > { %1418 = vrot.lane.b32.xlu0 %v7702_v46, %s7202_s14  ;;  %1492 = vst [vmem:[#allocation2 + $0x10] sm:$0x80] %v1491_v40  ;;  %785 = vst [vmem:[#allocation2 + $0xa8] sm:$0x80] %v784_v28  ;;  %v1105_v40 = vld [vmem:[%s7374_s19 + $0x48] sm:$0x7f] }
  0x88   : > { %v575_v24 = vsel %vm7499_vm8, %v456_v61, %v574_v8  ;;  %365 = vst [vmem:[#allocation2 + $0x40] sm:$0x1] %v364_v29  ;;  %v1502_v39 = vld [vmem:[#allocation2 + $0x50] sm:$0x80]  ;;  %v7829_v51 = vpack.c.bf16 %v1105_v40, %v7816_v38  ;;  %v409_v63 = vld [vmem:[%s7374_s19 + $0x20] sm:$0xff]  ;;  %v367_v7 = vsel %vm7466_vm5, 0, %v366_v25 }
  0x89   : > { %576 = vst [vmem:[#allocation2 + $0x20] sm:$0xff] %v575_v24  ;;  %v410_v1 = vld [vmem:[%s7374_s19 + $0x28] sm:$0x7f]  ;;  %v857_v3 = vld [vmem:[%s7374_s19 + $0x59] sm:$0x7f]  ;;  %v1905_v61 = vshll.u32 %v7820_v44, 16 }
  0x8a   : > { %1258 = vrot.lane.b32.xlu1 %v1157_v59, %s7203_s16  ;;  %v778_v59 = vsel %vm7441_vm2, 0, %v777_v56  ;;  %v1173_v5 = vshrl.u32 %v7829_v51, 16  ;;  %v437_v9 = vpack.c.bf16 %v410_v1, %v409_v63  ;;  %368 = vst [vmem:[#allocation2 + $0x60] sm:$0x1] %v367_v7  ;;  %v1508_v12 = vld [vmem:[#allocation2 + $0x70] sm:$0x80] }
  0x8b   : > { %1647 = vrot.lane.b32.xlu0 %v1615_v60, %s7204_s17  ;;  %779 = vst [vmem:[#allocation2 + $0x88] sm:$0x80] %v778_v59  ;;  %v1879_v60 = vpack.c.bf16 %v6520_v58, %v7634_v45  ;;  %v1581_v45 = vsel %vm7554_vm11, 0, %v1580_v11  ;;  %v1902_v58 = vshrl.u32 %v7820_v44, 16  ;;  %v7839_v59 = vld [vmem:[%s7374_s19 + $0x50] sm:$0xff]  ;;  %v11345_v11 = vmov 0 }
  0x8c   : > { %1582 = vst [vmem:[#allocation2 + $0x1f0] sm:$0x80] %v1581_v45  ;;  %v789_v15 = vld [vmem:[#allocation2 + $0xc8] sm:$0x80]  ;;  %v11346_v11 = vsel %vm7862_vm9, 4294967295, %v11345_v11  ;;  %v468_v17 = vshll.u32 %v437_v9, 16 }
  0x8d   : > { %v1895_v21 = vshrl.u32 %v1879_v60, 16  ;;  %v1898_v37 = vshll.u32 %v1879_v60, 16  ;;  %v1509_v19 = vsel %vm7554_vm11, 0, %v1508_v12  ;;  %v1175_v22 = vrot.slane %v1173_v5, 7  ;;  %v795_v31 = vld [vmem:[#allocation2 + $0xe8] sm:$0x80] }
  0x8e   : > { %1420 = vrot.lane.b32.xlu1 %v7734_v20, %s7202_s14  ;;  %1510 = vst [vmem:[#allocation2 + $0x70] sm:$0x80] %v1509_v19  ;;  %v1176_v26 = vshll.u32 %v7829_v51, 16  ;;  %v11347_v29 = vmov 0  ;;  %v7922_v5 = vld [vmem:[%s7374_s19 + $0x61] sm:$0xff] }
  0x8f   : > { %1675 = vrot.lane.b32.xlu0 %v1629_v23, %s7204_s17  ;;  %v407_v23 = vld [vmem:[%s7374_s19 + $0x10] sm:$0xff]  ;;  %v1897_v35 = vrot.slane %v1895_v21, 7  ;;  %v577_v57 = vld [vmem:[#allocation2 + $0x40] sm:$0xff]  ;;  %v1904_v21 = vrot.slane %v1902_v58, 7  ;;  %v11348_v29 = vsel %vm7884_vm4, 4294967295, %v11347_v29  ;;  %v1363_v58 = vld [vmem:[%s7374_s19 + $0x48] sm:$0xff] }
  0x90   : > { %v436_v6 = vpack.c.bf16 %v408_v30, %v407_v23  ;;  %v7877_v23 = vpack.c.bf16 %v1107_v62, %v7839_v59  ;;  %v6524_v30 = vld [vmem:[%s7374_s19 + $0x38] sm:$0x7f] }
  0x91   : > { %v1900_v41 = vor.u32 %v1898_v37, %v1897_v35  ;;  %v411_v35 = vld [vmem:[%s7374_s19 + $0x30] sm:$0xff]  ;;  %v412_v37 = vld [vmem:[%s7374_s19 + $0x38] sm:$0x7f]  ;;  %v1907_v40 = vor.u32 %v1905_v61, %v1904_v21  ;;  %v7928_v7 = vpack.c.bf16 %v6524_v30, %v7757_v36  ;;  %v413_v21 = vld [vmem:[%s7374_s19 + $0x40] sm:$0xff] }
  0x92   : > { %912 = vrot.lane.b32.xlu1 %v879_v33, %s7200_s20  ;;  %v1617_v33 = vpack.c.bf16 %v1588_v18, %v7680_v0  ;;  %v458_v42 = vshrl.u32 %v436_v6, 16  ;;  %v461_v43 = vshll.u32 %v436_v6, 16  ;;  %v7826_v0 = vpack.c.bf16 %v1361_v34, %v7757_v36  ;;  %v1019_v6 = vld [vmem:[#allocation2 + $0x168] sm:$0xff]  ;;  %v369_v34 = vld [vmem:[#allocation2 + $0x80] sm:$0x1] }
  0x93   : > { %681 = vrot.lane.b32.xlu0 %v7702_v46, %s7201_s28  ;;  %v1630_v46 = vpack.c.bf16 %v1614_v55, %v1613_v53  ;;  %v7835_v55 = vld [vmem:[%s7374_s19 + $0x39] sm:$0x7f]  ;;  %v790_v18 = vsel %vm7441_vm2, 0, %v789_v15  ;;  %v438_v44 = vpack.c.bf16 %v412_v37, %v411_v35  ;;  %v6582_v15 = vld [vmem:[%s7374_s19 + $0x29] sm:$0x7f]  ;;  %v1183_v30 = vshll.u32 %v7877_v23, 16 }
  0x94   : > { %v460_v53 = vrot.slane %v458_v42, 7  ;;  %v1618_v45 = vpack.c.bf16 %v7835_v55, %v7742_v27  ;;  %791 = vst [vmem:[#allocation2 + $0xc8] sm:$0x80] %v790_v18  ;;  %v2216_v27 = vld [vmem:[#allocation2 + $0x18] sm:$0x80]  ;;  %v6581_v18 = vld [vmem:[%s7374_s19 + $0x21] sm:$0xff] }
  0x95   : > { %v2217_v24 = vsel %vm7862_vm9, 0, %v2216_v27  ;;  %v472_v25 = vshrl.u32 %v438_v44, 16  ;;  %v475_v63 = vshll.u32 %v438_v44, 16  ;;  %v414_v61 = vld [vmem:[%s7374_s19 + $0x48] sm:$0x7f]  ;;  %v7954_v27 = vpack.c.bf16 %v1363_v58, %v7816_v38 }
  0x96   : > { %1260 = vrot.lane.b32.xlu1 %v1164_v50, %s7203_s16  ;;  %v1503_v50 = vsel %vm7554_vm11, 0, %v1502_v39  ;;  %v463_v56 = vor.u32 %v461_v43, %v460_v53  ;;  %2218 = vst [vmem:[#allocation2 + $0x18] sm:$0x80] %v2217_v24  ;;  %v6579_v43 = vld [vmem:[%s7374_s19 + $0x11] sm:$0xff]  ;;  %v370_v39 = vsel %vm7466_vm5, 0, %v369_v34  ;;  %v1178_v53 = vor.u32 %v1176_v26, %v1175_v22 }
  0x97   : > { %1649 = vrot.lane.b32.xlu0 %v1616_v49, %s7204_s17  ;;  %1504 = vst [vmem:[#allocation2 + $0x50] sm:$0x80] %v1503_v50  ;;  %v358_v49 = vsel %vm7466_vm5, 0, %v357_v54  ;;  %v1514_v50 = vld [vmem:[#allocation2 + $0x90] sm:$0x80]  ;;  %v1180_v54 = vshrl.u32 %v7877_v23, 16  ;;  %v439_v26 = vpack.c.bf16 %v414_v61, %v413_v21 }
  0x98   : > { %359 = vst [vmem:[#allocation2] sm:$0x1] %v358_v49  ;;  %v578_v60 = vsel %vm7499_vm8, %v463_v56, %v577_v57  ;;  %v580_v49 = vld [vmem:[#allocation2 + $0x60] sm:$0xff]  ;;  %371 = vst [vmem:[#allocation2 + $0x80] sm:$0x1] %v370_v39  ;;  %v1515_v55 = vsel %vm7554_vm11, 0, %v1514_v50 }
  0x99   : > { %620 = vst.msk [vmem:[#allocation2] sm:$0xff] %vm11300_vm14, %v11312_v13  ;;  %579 = vst [vmem:[#allocation2 + $0x40] sm:$0xff] %v578_v60  ;;  %v2219_v56 = vld [vmem:[#allocation2 + $0x38] sm:$0x80]  ;;  %v1007_v57 = vld [vmem:[#allocation2 + $0x128] sm:$0xff]  ;;  %v474_v36 = vrot.slane %v472_v25, 7 }
  0x9a   : > { %1422 = vrot.lane.b32.xlu1 %v7784_v32, %s7202_s14  ;;  %742 = vst.msk [vmem:[#allocation2] sm:$0xff] %vm741_vm15, %v11312_v13  ;;  %1516 = vst [vmem:[#allocation2 + $0x90] sm:$0x80] %v1515_v55  ;;  %v2220_v1 = vsel %vm7862_vm9, 0, %v2219_v56  ;;  %v7925_v60 = vld [vmem:[%s7374_s19 + $0x69] sm:$0x7f] }
  0x9b   : > { %1677 = vrot.lane.b32.xlu0 %v1630_v46, %s7204_s17  ;;  %v7849_v46 = vld [vmem:[%s7374_s19 + $0x51] sm:$0xff]  ;;  %2221 = vst [vmem:[#allocation2 + $0x38] sm:$0x80] %v2220_v1  ;;  %v479_v34 = vshrl.u32 %v439_v26, 16  ;;  %v882_v37 = vpack.c.bf16 %v7925_v60, %v7922_v5  ;;  %v1592_v39 = vld [vmem:[%s7374_s19 + $0x49] sm:$0x7f] }
  0x9c   : > { %v881_v28 = vpack.c.bf16 %v857_v3, %v7849_v46  ;;  %v1365_v1 = vld [vmem:[%s7374_s19 + $0x58] sm:$0xff]  ;;  %v1912_v60 = vshll.u32 %v7928_v7, 16  ;;  %v1619_v61 = vpack.c.bf16 %v1592_v39, %v7788_v4  ;;  %vm11357_vm15 = vcmask 916992  }
  0x9d   : > { %v2310_v24 = vld [vmem:[#allocation2 + $0x18] sm:$0xff]  ;;  %v481_v50 = vrot.slane %v479_v34, 7  ;;  %v8012_v4 = vpack.c.bf16 %v1365_v1, %v7839_v59  ;;  %v1031_v1 = vld [vmem:[#allocation2 + $0x1a8] sm:$0xff] }
  0x9e   : > { %914 = vrot.lane.b32.xlu1 %v880_v14, %s7200_s20  ;;  %v465_v14 = vshrl.u32 %v437_v9, 16 }
  0x9f   : > { %683 = vrot.lane.b32.xlu0 %v7734_v20, %s7201_s28  ;;  %v583_v23 = vld [vmem:[#allocation2 + $0x80] sm:$0xff] }
  0xa0   : > { %v467_v8 = vrot.slane %v465_v14, 7  ;;  %v372_v14 = vld [vmem:[#allocation2 + $0xa0] sm:$0x1] }
  0xa1   : > { %v748_v42 = vld [vmem:[#allocation2] sm:$0x80] }
  0xa2   : > { %1262 = vrot.lane.b32.xlu1 %v1171_v47, %s7203_s16  ;;  %v7892_v47 = vld [vmem:[%s7374_s19 + $0x19] sm:$0x7f] }
  0xa3   : > { %1651 = vrot.lane.b32.xlu0 %v1617_v33, %s7204_s17  ;;  %v470_v33 = vor.u32 %v468_v17, %v467_v8  ;;  %v2294_v9 = vpack.c.bf16 %v7892_v47, %v6579_v43  ;;  %v1013_v8 = vld [vmem:[#allocation2 + $0x148] sm:$0xff]  ;;  %v477_v47 = vor.u32 %v475_v63, %v474_v36 }
  0xa4   : > { %v1025_v63 = vld [vmem:[#allocation2 + $0x188] sm:$0xff] }
  0xa5   : > { %v581_v62 = vsel %vm7499_vm8, %v470_v33, %v580_v49  ;;  %v2311_v33 = vsel %vm7933_vm10, %v2294_v9, %v2310_v24  ;;  %v584_v44 = vsel %vm7499_vm8, %v477_v47, %v583_v23  ;;  %v2222_v49 = vld [vmem:[#allocation2 + $0x58] sm:$0x80]  ;;  %v6526_v9 = vld [vmem:[%s7374_s19 + $0x48] sm:$0x7f]  ;;  %v375_v23 = vld [vmem:[#allocation2 + $0xc0] sm:$0x1] }
  0xa6   : > { %1424 = vrot.lane.b32.xlu1 %v7826_v0, %s7202_s14  ;;  %582 = vst [vmem:[#allocation2 + $0x60] sm:$0xff] %v581_v62  ;;  %2312 = vst [vmem:[#allocation2 + $0x18] sm:$0xff] %v2311_v33  ;;  %v2223_v58 = vsel %vm7862_vm9, 0, %v2222_v49  ;;  %v376_v39 = vsel %vm7466_vm5, 0, %v375_v23 }
  0xa7   : > { %1999 = vrot.lane.b32.xlu0 %v1900_v41, %s7206_s27  ;;  %v749_v41 = vsel %vm7884_vm4, 0, %v748_v42  ;;  %v1520_v42 = vld [vmem:[#allocation2 + $0xb0] sm:$0x80]  ;;  %585 = vst [vmem:[#allocation2 + $0x80] sm:$0xff] %v584_v44  ;;  %2224 = vst [vmem:[#allocation2 + $0x58] sm:$0x80] %v2223_v58 }
  0xa8   : > { %750 = vst [vmem:[#allocation2] sm:$0x80] %v749_v41  ;;  %v2313_v41 = vld [vmem:[#allocation2 + $0x38] sm:$0xff]  ;;  %v415_v44 = vld [vmem:[%s7374_s19 + $0x50] sm:$0xff]  ;;  %377 = vst [vmem:[#allocation2 + $0xc0] sm:$0x1] %v376_v39 }
  0xaa   : > { %685 = vrot.lane.b32.xlu1 %v7784_v32, %s7201_s28 }
  0xab   : > { %2153 = vrot.lane.b32.xlu0 %v7734_v20, %s7207_s26  ;;  %v796_v20 = vsel %vm7441_vm2, 0, %v795_v31 }
  0xac   : > { %797 = vst [vmem:[#allocation2 + $0xe8] sm:$0x80] %v796_v20  ;;  %v2295_v20 = vpack.c.bf16 %v6582_v15, %v6581_v18 }
  0xae   : > { %1653 = vrot.lane.b32.xlu1 %v1618_v45, %s7204_s17  ;;  %v373_v45 = vsel %vm7466_vm5, 0, %v372_v14  ;;  %v2314_v56 = vsel %vm7933_vm10, %v2295_v20, %v2313_v41  ;;  %v1526_v41 = vld [vmem:[#allocation2 + $0xd0] sm:$0x80] }
  0xaf   : > { %916 = vrot.lane.b32.xlu0 %v881_v28, %s7200_s20  ;;  %374 = vst [vmem:[#allocation2 + $0xa0] sm:$0x1] %v373_v45  ;;  %v1182_v28 = vrot.slane %v1180_v54, 7  ;;  %v801_v54 = vld [vmem:[#allocation2 + $0x108] sm:$0x80]  ;;  %2315 = vst [vmem:[#allocation2 + $0x38] sm:$0xff] %v2314_v56 }
  0xb0   : > { %v7919_v3 = vpop.permute.xlu1 %926  ;;  %v1109_v45 = vld [vmem:[%s7374_s19 + $0x68] sm:$0x7f]  ;;  %v1527_v58 = vsel %vm7554_vm11, 0, %v1526_v41  ;;  %v1111_v41 = vld [vmem:[%s7374_s19 + $0x78] sm:$0x7f] }
  0xb1   : > { %v1020_v17 = vsel %vm7904_vm1, %v7919_v3, %v1019_v6  ;;  %v7941_v19 = vpop.permute.xlu0 %922  ;;  %v1909_v6 = vshrl.u32 %v7928_v7, 16  ;;  %v1185_v36 = vor.u32 %v1183_v30, %v1182_v28  ;;  %1528 = vst [vmem:[#allocation2 + $0xd0] sm:$0x80] %v1527_v58 }
  0xb2   : > { %1021 = vst [vmem:[#allocation2 + $0x168] sm:$0xff] %v1020_v17  ;;  %v1008_v22 = vsel %vm7904_vm1, %v7941_v19, %v1007_v57  ;;  %2001 = vrot.lane.b32.xlu1 %v1907_v40, %s7206_s27  ;;  %v482_v40 = vshll.u32 %v439_v26, 16 }
  0xb3   : > { %1009 = vst [vmem:[#allocation2 + $0x128] sm:$0xff] %v1008_v22  ;;  %1264 = vrot.lane.b32.xlu0 %v1178_v53, %s7203_s16  ;;  %v1521_v53 = vsel %vm7554_vm11, 0, %v1520_v42  ;;  %v1911_v18 = vrot.slane %v1909_v6, 7  ;;  %v8001_v22 = vld [vmem:[%s7374_s19 + $0x60] sm:$0xff]  ;;  %v6583_v6 = vld [vmem:[%s7374_s19 + $0x31] sm:$0xff] }
  0xb4   : > { %v698_v31 = vpop.permute.xlu1 %697  ;;  %1522 = vst [vmem:[#allocation2 + $0xb0] sm:$0x80] %v1521_v53  ;;  %v484_v57 = vor.u32 %v482_v40, %v481_v50  ;;  %v8022_v34 = vpack.c.bf16 %v1109_v45, %v8001_v22  ;;  %v11353_v53 = vmov 0 }
  0xb5   : > { %v7960_v35 = vpop.permute.xlu0 %924  ;;  %734 = vst.msk [vmem:[#allocation2 + $0x120] sm:$0xff] %vm11300_vm14, %v698_v31  ;;  %v8015_v31 = vpack.c.bf16 %v6526_v9, %v7816_v38  ;;  %v1914_v20 = vor.u32 %v1912_v60, %v1911_v18  ;;  %v2225_v9 = vld [vmem:[#allocation2 + $0x78] sm:$0x80] }
  0xb6   : > { %v1014_v43 = vsel %vm7904_vm1, %v7960_v35, %v1013_v8  ;;  %2155 = vrot.lane.b32.xlu1 %v7784_v32, %s7207_s26  ;;  %v802_v32 = vsel %vm7441_vm2, 0, %v801_v54  ;;  %v586_v15 = vld [vmem:[#allocation2 + $0xa0] sm:$0xff]  ;;  %v1187_v60 = vshrl.u32 %v8022_v34, 16  ;;  %v861_v18 = vld [vmem:[%s7374_s19 + $0x79] sm:$0x7f]  ;;  %vm11364_vm2 = vcmask 916992  }
  0xb7   : > { %1015 = vst [vmem:[#allocation2 + $0x148] sm:$0xff] %v1014_v43  ;;  %1426 = vrot.lane.b32.xlu0 %v7954_v27, %s7202_s14  ;;  %803 = vst [vmem:[#allocation2 + $0x108] sm:$0x80] %v802_v32  ;;  %v587_v21 = vsel %vm7499_vm8, %v484_v57, %v586_v15  ;;  %v2316_v43 = vld [vmem:[#allocation2 + $0x58] sm:$0xff]  ;;  %v1916_v56 = vshrl.u32 %v8015_v31, 16 }
  0xb8   : > { %v700_v55 = vpop.permute.xlu1 %699  ;;  %588 = vst [vmem:[#allocation2 + $0xa0] sm:$0xff] %v587_v21  ;;  %v416_v32 = vld [vmem:[%s7374_s19 + $0x58] sm:$0x7f]  ;;  %v2226_v21 = vsel %vm7862_vm9, 0, %v2225_v9 }
  0xb9   : > { %v1081_v62 = vld [vmem:[#allocation2 + $0x168] sm:$0x1]  ;;  %v7983_v25 = vpop.permute.xlu0 %1436  ;;  %735 = vst.msk [vmem:[#allocation2 + $0x140] sm:$0xff] %vm11300_vm14, %v700_v55  ;;  %vm8034_vm14 = vmand %vm1304_vm6, %vm11302_vm7  ;;  %v1594_v55 = vld [vmem:[%s7374_s19 + $0x59] sm:$0x7f]  ;;  %vm1700_vm6 = vcmask 261120  }
  0xba   : > { %v1082_v14 = vsel %vm7726_vm13, 0, %v1081_v62  ;;  %v1075_v17 = vld [vmem:[#allocation2 + $0x128] sm:$0x1]  ;;  %918 = vrot.lane.b32.xlu1 %v882_v37, %s7200_s20  ;;  %v6584_v37 = vld [vmem:[%s7374_s19 + $0x39] sm:$0x7f]  ;;  %v11354_v53 = vsel %vm8034_vm14, 4294967295, %v11353_v53  ;;  %v440_v62 = vpack.c.bf16 %v416_v32, %v415_v44 }
  0xbb   : > { %1083 = vst [vmem:[#allocation2 + $0x168] sm:$0x1] %v1082_v14  ;;  %v1076_v7 = vsel %vm7726_vm13, 0, %v1075_v17  ;;  %687 = vrot.lane.b32.xlu0 %v7826_v0, %s7201_s28  ;;  %v2296_v42 = vpack.c.bf16 %v6584_v37, %v6583_v6  ;;  %2227 = vst [vmem:[#allocation2 + $0x78] sm:$0x80] %v2226_v21  ;;  %v589_v32 = vld [vmem:[#allocation2 + $0xc0] sm:$0xff] }
  0xbc   : > { %1077 = vst [vmem:[#allocation2 + $0x128] sm:$0x1] %v1076_v7  ;;  %v804_v26 = vld [vmem:[#allocation2 + $0x120] sm:$0x80]  ;;  %v1275_v8 = vpop.permute.xlu1 %1274  ;;  %v486_v45 = vshrl.u32 %v440_v62, 16 }
  0xbd   : > { %v805_v28 = vsel %vm7884_vm4, 0, %v804_v26  ;;  %v8005_v30 = vpop.permute.xlu0 %928  ;;  %v2317_v57 = vsel %vm7933_vm10, %v2296_v42, %v2316_v43  ;;  %vm11358_vm7 = vsmask.f32 7966  ;;  %v1190_v42 = vshll.u32 %v8022_v34, 16  ;;  %v417_v21 = vld [vmem:[%s7374_s19 + $0x60] sm:$0xff] }
  0xbe   : > { %v1078_v24 = vld [vmem:[#allocation2 + $0x148] sm:$0x1]  ;;  %806 = vst [vmem:[#allocation2 + $0x120] sm:$0x80] %v805_v28  ;;  %v1026_v47 = vsel %vm7904_vm1, %v8005_v30, %v1025_v63  ;;  %1266 = vrot.lane.b32.xlu1 %v1185_v36, %s7203_s16  ;;  %2318 = vst [vmem:[#allocation2 + $0x58] sm:$0xff] %v2317_v57  ;;  %v8060_v36 = vld [vmem:[%s7374_s19 + $0x71] sm:$0xff]  ;;  %v1620_v28 = vpack.c.bf16 %v1594_v55, %v7849_v46 }
  0xbf   : > { %v1079_v33 = vsel %vm7726_vm13, 0, %v1078_v24  ;;  %1027 = vst [vmem:[#allocation2 + $0x188] sm:$0xff] %v1026_v47  ;;  %1655 = vrot.lane.b32.xlu0 %v1619_v61, %s7204_s17  ;;  %v6528_v24 = vld [vmem:[%s7374_s19 + $0x58] sm:$0x7f]  ;;  %v489_v47 = vshll.u32 %v440_v62, 16  ;;  %v1918_v46 = vrot.slane %v1916_v56, 7  ;;  %v883_v23 = vpack.c.bf16 %v861_v18, %v8060_v36 }
  0xc0   : > { %1080 = vst [vmem:[#allocation2 + $0x148] sm:$0x1] %v1079_v33  ;;  %v810_v40 = vld [vmem:[#allocation2 + $0x140] sm:$0x80]  ;;  %v8025_v38 = vpop.permute.xlu1 %1276  ;;  %v8101_v44 = vpack.c.bf16 %v6528_v24, %v7839_v59 }
  0xc1   : > { %v811_v50 = vsel %vm7884_vm4, 0, %v810_v40  ;;  %v8038_v54 = vpop.permute.xlu0 %1438  ;;  %v1189_v40 = vrot.slane %v1187_v60, 7  ;;  %v6585_v62 = vld [vmem:[%s7374_s19 + $0x41] sm:$0xff] }
  0xc2   : > { %812 = vst [vmem:[#allocation2 + $0x140] sm:$0x80] %v811_v50  ;;  %1428 = vrot.lane.b32.xlu1 %v8012_v4, %s7202_s14  ;;  %v1339_v14 = vld [vmem:[#allocation2 + $0x168] sm:$0xff]  ;;  %v8104_v50 = vld [vmem:[%s7374_s19 + $0x70] sm:$0xff]  ;;  %v2319_v18 = vld [vmem:[#allocation2 + $0x78] sm:$0xff] }
  0xc3   : > { %v1333_v63 = vld [vmem:[#allocation2 + $0x128] sm:$0xff]  ;;  %2003 = vrot.lane.b32.xlu0 %v1914_v20, %s7206_s27  ;;  %v8131_v60 = vpack.c.bf16 %v1111_v41, %v8104_v50 }
  0xc4   : > { %v1334_v15 = vsel %vm8034_vm14, %v1275_v8, %v1333_v63  ;;  %v1279_v17 = vpop.permute.xlu1 %1278  ;;  %v1919_v8 = vshll.u32 %v8015_v31, 16  ;;  %v488_v31 = vrot.slane %v486_v45, 7  ;;  %v6586_v63 = vld [vmem:[%s7374_s19 + $0x49] sm:$0x7f] }
  0xc5   : > { %v1004_v7 = vld [vmem:[#allocation2 + $0x120] sm:$0xff]  ;;  %1335 = vst [vmem:[#allocation2 + $0x128] sm:$0xff] %v1334_v15  ;;  %v8065_v61 = vpop.permute.xlu0 %930  ;;  %v1340_v26 = vsel %vm8034_vm14, %v1279_v17, %v1339_v14  ;;  %v2297_v9 = vpack.c.bf16 %v6586_v63, %v6585_v62  ;;  %v1923_v17 = vshrl.u32 %v8101_v44, 16 }
  0xc6   : > { %v8075_v6 = vsel %vm8043_vm3, %v7941_v19, %v1004_v7  ;;  %v1084_v33 = vld [vmem:[#allocation2 + $0x188] sm:$0x1]  ;;  %1476 = vst.msk [vmem:[#allocation2 + $0x128] sm:$0xff] %vm11357_vm15, %v7983_v25  ;;  %v1032_v20 = vsel %vm7904_vm1, %v8065_v61, %v1031_v1  ;;  %1341 = vst [vmem:[#allocation2 + $0x168] sm:$0xff] %v1340_v26  ;;  %689 = vrot.lane.b32.xlu1 %v7954_v27, %s7201_s28  ;;  %v1921_v57 = vor.u32 %v1919_v8, %v1918_v46  ;;  %v378_v15 = vld [vmem:[#allocation2 + $0xe0] sm:$0x1] }
  0xc7   : > { %1006 = vst [vmem:[#allocation2 + $0x120] sm:$0xff] %v8075_v6  ;;  %v1085_v19 = vsel %vm7726_vm13, 0, %v1084_v33  ;;  %vm8089_vm15 = vmand %vm1483_vm0, %vm11358_vm7  ;;  %v1336_v37 = vld [vmem:[#allocation2 + $0x148] sm:$0xff]  ;;  %2157 = vrot.lane.b32.xlu0 %v7826_v0, %s7207_s26  ;;  %v491_v0 = vor.u32 %v489_v47, %v488_v31  ;;  %vm11361_vm0 = vcmask 785792   ;;  %v379_v45 = vsel %vm7466_vm5, 0, %v378_v15  ;;  %v1762_v15 = vld [vmem:[#allocation2 + $0x150] sm:$0xff] }
  0xc8   : > { %1033 = vst [vmem:[#allocation2 + $0x1a8] sm:$0xff] %v1032_v20  ;;  %1086 = vst [vmem:[#allocation2 + $0x188] sm:$0x1] %v1085_v19  ;;  %v1337_v43 = vsel %vm8034_vm14, %v8025_v38, %v1336_v37  ;;  %v702_v39 = vpop.permute.xlu1 %701  ;;  %v1037_v38 = vld [vmem:[#allocation2 + $0x1c8] sm:$0xff]  ;;  %v2320_v24 = vsel %vm7933_vm10, %v2297_v9, %v2319_v18  ;;  %v1532_v47 = vld [vmem:[#allocation2 + $0xf0] sm:$0x80] }
  0xc9   : > { %v1010_v55 = vld [vmem:[#allocation2 + $0x140] sm:$0xff]  ;;  %1338 = vst [vmem:[#allocation2 + $0x148] sm:$0xff] %v1337_v43  ;;  %v1441_v56 = vpop.permute.xlu0 %1440  ;;  %736 = vst.msk [vmem:[#allocation2 + $0x160] sm:$0xff] %vm11361_vm0, %v702_v39  ;;  %v590_v58 = vsel %vm7499_vm8, %v491_v0, %v589_v32  ;;  %v1367_v1 = vld [vmem:[%s7374_s19 + $0x68] sm:$0xff]  ;;  %v1533_v37 = vsel %vm7554_vm11, 0, %v1532_v47 }
  0xca   : > { %vm8110_vm7 = vmand %vm1700_vm6, %vm952_vm12  ;;  %v8117_v59 = vsel %vm8043_vm3, %v7960_v35, %v1010_v55  ;;  %1477 = vst.msk [vmem:[#allocation2 + $0x148] sm:$0xff] %vm11364_vm2, %v8038_v54  ;;  %1657 = vrot.lane.b32.xlu1 %v1620_v28, %s7204_s17  ;;  %vm11311_vm6 = vcmask 1048448   ;;  %v1756_v35 = vld [vmem:[#allocation2 + $0x130] sm:$0xff]  ;;  %v1192_v54 = vor.u32 %v1190_v42, %v1189_v40  ;;  %v418_v7 = vld [vmem:[%s7374_s19 + $0x68] sm:$0x7f]  ;;  %v8160_v40 = vpack.c.bf16 %v1367_v1, %v8001_v22 }
  0xcb   : > { %vm11365_vm14 = vmmov %vm11364_vm2  ;;  %1012 = vst [vmem:[#allocation2 + $0x140] sm:$0xff] %v8117_v59  ;;  %920 = vrot.lane.b32.xlu0 %v883_v23, %s7200_s20  ;;  %v441_v33 = vpack.c.bf16 %v418_v7, %v417_v21  ;;  %v1596_v19 = vld [vmem:[%s7374_s19 + $0x69] sm:$0x7f]  ;;  %v1194_v42 = vshrl.u32 %v8131_v60, 16  ;;  %v2228_v39 = vld [vmem:[#allocation2 + $0x98] sm:$0x80] }
  0xcc   : > { %1478 = vst.msk [vmem:[#allocation2 + $0x168] sm:$0xff] %vm11365_vm14, %v1441_v56  ;;  %591 = vst [vmem:[#allocation2 + $0xc0] sm:$0xff] %v590_v58  ;;  %v8133_v14 = vpop.permute.xlu1 %932  ;;  %v1925_v55 = vrot.slane %v1923_v17, 7  ;;  %v1926_v56 = vshll.u32 %v8101_v44, 16  ;;  %vm11366_vm14 = vnez %v11354_v53  ;;  %v6530_v17 = vld [vmem:[%s7374_s19 + $0x68] sm:$0x7f] }
  0xcd   : > { %v1541_v26 = vld [vmem:[#allocation2 + $0x128] sm:$0x80]  ;;  %v8140_v28 = vpop.permute.xlu0 %1665  ;;  %v1038_v8 = vsel %vm7904_vm1, %v8133_v14, %v1037_v38  ;;  %380 = vst [vmem:[#allocation2 + $0xe0] sm:$0x1] %v379_v45  ;;  %2321 = vst [vmem:[#allocation2 + $0x78] sm:$0xff] %v2320_v24  ;;  %v493_v43 = vshrl.u32 %v441_v33, 16 }
  0xce   : > { %v1542_v20 = vsel %vm8089_vm15, 0, %v1541_v26  ;;  %v1757_v31 = vsel %vm8110_vm7, %v8140_v28, %v1756_v35  ;;  %1039 = vst [vmem:[#allocation2 + $0x1c8] sm:$0xff] %v1038_v8  ;;  %2005 = vrot.lane.b32.xlu1 %v1921_v57, %s7206_s27  ;;  %1534 = vst [vmem:[#allocation2 + $0xf0] sm:$0x80] %v1533_v37  ;;  %v2229_v38 = vsel %vm7862_vm9, 0, %v2228_v39  ;;  %v1621_v35 = vpack.c.bf16 %v1596_v19, %v7922_v5  ;;  %v8188_v7 = vld [vmem:[%s7374_s19 + $0x80] sm:$0xff] }
  0xcf   : > { %v1087_v46 = vld [vmem:[#allocation2 + $0x1a8] sm:$0x1]  ;;  %1543 = vst [vmem:[#allocation2 + $0x128] sm:$0x80] %v1542_v20  ;;  %1758 = vst [vmem:[#allocation2 + $0x130] sm:$0xff] %v1757_v31  ;;  %1268 = vrot.lane.b32.xlu0 %v1192_v54, %s7203_s16  ;;  %v495_v54 = vrot.slane %v493_v43, 7  ;;  %v8201_v31 = vpack.c.bf16 %v6530_v17, %v8001_v22 }
  0xd0   : > { %v1088_v23 = vsel %vm7726_vm13, 0, %v1087_v46  ;;  %v816_v41 = vld [vmem:[#allocation2 + $0x160] sm:$0x80]  ;;  %v1342_v0 = vld [vmem:[#allocation2 + $0x188] sm:$0xff]  ;;  %v1443_v32 = vpop.permute.xlu1 %1442  ;;  %2230 = vst [vmem:[#allocation2 + $0x98] sm:$0x80] %v2229_v38  ;;  %vm8180_vm0 = vmand %vm11311_vm6, %vm952_vm12 }
  0xd1   : > { %1089 = vst [vmem:[#allocation2 + $0x1a8] sm:$0x1] %v1088_v23  ;;  %v1547_v57 = vld [vmem:[#allocation2 + $0x148] sm:$0x80]  ;;  %v817_v62 = vsel %vm7884_vm4, 0, %v816_v41  ;;  %v1281_v63 = vpop.permute.xlu0 %1280  ;;  %v496_v5 = vshll.u32 %v441_v33, 16 }
  0xd2   : > { %v1548_v1 = vsel %vm8089_vm15, 0, %v1547_v57  ;;  %818 = vst [vmem:[#allocation2 + $0x160] sm:$0x80] %v817_v62  ;;  %v1343_v9 = vsel %vm11366_vm14, %v1281_v63, %v1342_v0  ;;  %2159 = vrot.lane.b32.xlu1 %v7954_v27, %s7207_s26  ;;  %v1196_v45 = vrot.slane %v1194_v42, 7  ;;  %v1197_v21 = vshll.u32 %v8131_v60, 16  ;;  %v1043_v46 = vld [vmem:[#allocation2 + $0x1e8] sm:$0xff] }
  0xd3   : > { %v1553_v58 = vld [vmem:[#allocation2 + $0x168] sm:$0x80]  ;;  %1549 = vst [vmem:[#allocation2 + $0x148] sm:$0x80] %v1548_v1  ;;  %1344 = vst [vmem:[#allocation2 + $0x188] sm:$0xff] %v1343_v9  ;;  %1430 = vrot.lane.b32.xlu0 %v8160_v40, %s7202_s14  ;;  %vm11370_vm4 = vcmask 647424   ;;  %v498_v24 = vor.u32 %v496_v5, %v495_v54  ;;  %v1928_v42 = vor.u32 %v1926_v56, %v1925_v55 }
  0xd4   : > { %v1554_v44 = vsel %vm8089_vm15, 0, %v1553_v58  ;;  %v1113_v27 = vld [vmem:[%s7374_s19 + $0x88] sm:$0x7f]  ;;  %vm11369_vm2 = vsmask.f32 256  ;;  %vm11373_vm6 = vcmask 916992   ;;  %v1668_v8 = vpop.permute.xlu1 %1667  ;;  %v1199_v56 = vor.u32 %v1197_v21, %v1196_v45 }
  0xd5   : > { %1555 = vst [vmem:[#allocation2 + $0x168] sm:$0x80] %v1554_v44  ;;  %vm8193_vm9 = vmand %vm11370_vm4, %vm11369_vm2  ;;  %v592_v47 = vld [vmem:[#allocation2 + $0xe0] sm:$0xff]  ;;  %v1090_v33 = vld [vmem:[#allocation2 + $0x1c8] sm:$0x1]  ;;  %v704_v20 = vpop.permute.xlu0 %703  ;;  %v1763_v60 = vsel %vm8110_vm7, %v1668_v8, %v1762_v15  ;;  %vm11374_vm4 = vcmask 785792   ;;  %v8209_v39 = vpack.c.bf16 %v1113_v27, %v8188_v7  ;;  %vm11377_vm2 = vnez %v11348_v29 }
  0xd6   : > { %1479 = vst.msk [vmem:[#allocation2 + $0x188] sm:$0xff] %vm11373_vm6, %v1443_v32  ;;  %v1753_v19 = vld [vmem:[#allocation2 + $0x128] sm:$0xff]  ;;  %v1827_v37 = vld [vmem:[#allocation2 + $0x130] sm:$0x1]  ;;  %v1091_v23 = vsel %vm7726_vm13, 0, %v1090_v33  ;;  %1764 = vst [vmem:[#allocation2 + $0x150] sm:$0xff] %v1763_v60  ;;  %1659 = vrot.lane.b32.xlu1 %v1621_v35, %s7204_s17  ;;  %v593_v41 = vsel %vm7499_vm8, %v498_v24, %v592_v47 }
  0xd7   : > { %737 = vst.msk [vmem:[#allocation2 + $0x180] sm:$0xff] %vm11374_vm4, %v704_v20  ;;  %v1369_v43 = vld [vmem:[%s7374_s19 + $0x78] sm:$0xff]  ;;  %v6933_v22 = vld [vmem:[%s11287_s1 + $0x80] sm:$0xff]   ;;  %v1754_v0 = vsel %vm8180_vm0, %v8140_v28, %v1753_v19  ;;  %v1828_v32 = vsel %vm8193_vm9, 0, %v1827_v37  ;;  %1092 = vst [vmem:[#allocation2 + $0x1c8] sm:$0x1] %v1091_v23  ;;  %691 = vrot.lane.b32.xlu0 %v8012_v4, %s7201_s28 }
  0xd8   : > { %v1345_v55 = vld [vmem:[#allocation2 + $0x1a8] sm:$0xff]  ;;  %594 = vst [vmem:[#allocation2 + $0xe0] sm:$0xff] %v593_v41  ;;  %v6587_v38 = vld [vmem:[%s7374_s19 + $0x51] sm:$0xff]  ;;  %v6588_v57 = vld [vmem:[%s7374_s19 + $0x59] sm:$0x7f]  ;;  %v1283_v58 = vpop.permute.xlu1 %1282  ;;  %2794 = vmatprep.mubr.bf16.mxu1 %v1754_v0  ;;  %v1930_v9 = vshrl.u32 %v8201_v31, 16  ;;  %v8258_v33 = vpack.c.bf16 %v1369_v43, %v8104_v50 }
  0xd9   : > { %1755 = vst [vmem:[#allocation2 + $0x128] sm:$0xff] %v1754_v0  ;;  %1829 = vst [vmem:[#allocation2 + $0x130] sm:$0x1] %v1828_v32  ;;  %v2298_v62 = vpack.c.bf16 %v6588_v57, %v6587_v38  ;;  %v2322_v28 = vld [vmem:[#allocation2 + $0x98] sm:$0xff]  ;;  %v381_v63 = vld [vmem:[#allocation2 + $0x100] sm:$0x1]  ;;  %v8226_v1 = vpop.permute.xlu0 %934  ;;  %v1346_v44 = vsel %vm11366_vm14, %v1283_v58, %v1345_v55  ;;  %2795 = vmatmul.mubr.bf16.vlgmr.msra.gmra.mrb[0].mxu1 %v8075_v6 }
  0xda   : > { %v419_v35 = vld [vmem:[%s7374_s19 + $0x70] sm:$0xff]  ;;  %v1016_v54 = vld [vmem:[#allocation2 + $0x160] sm:$0xff]  ;;  %v382_v15 = vsel %vm7466_vm5, 0, %v381_v63  ;;  %v420_v17 = vld [vmem:[%s7374_s19 + $0x78] sm:$0x7f]  ;;  %v1044_v21 = vsel %vm7904_vm1, %v8226_v1, %v1043_v46  ;;  %1347 = vst [vmem:[#allocation2 + $0x1a8] sm:$0xff] %v1346_v44  ;;  %2007 = vrot.lane.b32.xlu1 %v1928_v42, %s7206_s27  ;;  %2852 = vmatpush1.bf16.msra.mxu1 %v6933_v22  ;;  %vm11375_vm5 = vnez %v11346_v11 }
  0xdb   : > { %v8238_v5 = vsel %vm8043_vm3, %v7919_v3, %v1016_v54  ;;  %v1759_v45 = vld [vmem:[#allocation2 + $0x148] sm:$0xff]  ;;  %v8245_v6 = vld [vmem:[%s7374_s19 + $0x79] sm:$0x7f]  ;;  %v1201_v27 = vshrl.u32 %v8209_v39, 16  ;;  %v2323_v3 = vsel %vm7933_vm10, %v2298_v62, %v2322_v28  ;;  %383 = vst [vmem:[#allocation2 + $0x100] sm:$0x1] %v382_v15  ;;  %1270 = vrot.lane.b32.xlu0 %v1199_v56, %s7203_s16  ;;  %2853 = vmatprep.subr.bf16.mxu1 %v11312_v13  ;;  %vm11376_vm6 = vmmov %vm11374_vm4 }
  0xdc   : > { %1018 = vst [vmem:[#allocation2 + $0x160] sm:$0xff] %v8238_v5  ;;  %v1760_v47 = vsel %vm8180_vm0, %v1668_v8, %v1759_v45  ;;  %1045 = vst [vmem:[#allocation2 + $0x1e8] sm:$0xff] %v1044_v21  ;;  %v442_v20 = vpack.c.bf16 %v420_v17, %v419_v35  ;;  %v1538_v60 = vld [vmem:[#allocation2 + $0x110] sm:$0x80]  ;;  %v2231_v46 = vld [vmem:[#allocation2 + $0xb8] sm:$0x80]  ;;  %v706_v37 = vpop.permute.xlu1 %705  ;;  %v1622_v0 = vpack.c.bf16 %v8245_v6, %v8060_v36 }
  0xdd   : > { %v1559_v24 = vld [vmem:[#allocation2 + $0x188] sm:$0x80]  ;;  %2324 = vst [vmem:[#allocation2 + $0x98] sm:$0xff] %v2323_v3  ;;  %1761 = vst [vmem:[#allocation2 + $0x148] sm:$0xff] %v1760_v47  ;;  %2802 = vmatprep.mubr.bf16.mxu1 %v1760_v47  ;;  %v6532_v23 = vld [vmem:[%s7374_s19 + $0x78] sm:$0x7f]  ;;  %v1445_v41 = vpop.permute.xlu0 %1444 }
  0xde   : > { %v1560_v19 = vsel %vm8089_vm15, 0, %v1559_v24  ;;  %v1539_v8 = vsel %vm7554_vm11, 0, %v1538_v60  ;;  %v2232_v42 = vsel %vm11375_vm5, 0, %v2231_v46  ;;  %v822_v43 = vld [vmem:[#allocation2 + $0x180] sm:$0x80]  ;;  %738 = vst.msk [vmem:[#allocation2 + $0x1a0] sm:$0xff] %vm11376_vm6, %v706_v37  ;;  %2161 = vrot.lane.b32.xlu1 %v8012_v4, %s7207_s26  ;;  %2854 = vmatpush1.bf16.msra.mxu1 %v6934_v2 }
  0xdf   : > { %1561 = vst [vmem:[#allocation2 + $0x188] sm:$0x80] %v1560_v19  ;;  %v1830_v22 = vld [vmem:[#allocation2 + $0x150] sm:$0x1]  ;;  %v500_v32 = vshrl.u32 %v442_v20, 16  ;;  %v503_v55 = vshll.u32 %v442_v20, 16  ;;  %1432 = vrot.lane.b32.xlu0 %v8258_v33, %s7202_s14  ;;  %2855 = vmatprep.subr.bf16.mxu1 %v11312_v13 }
  0xe0   : > { %1540 = vst [vmem:[#allocation2 + $0x110] sm:$0x80] %v1539_v8  ;;  %2233 = vst [vmem:[#allocation2 + $0xb8] sm:$0x80] %v2232_v42  ;;  %v823_v52 = vsel %vm11377_vm2, 0, %v822_v43  ;;  %v1831_v56 = vsel %vm8193_vm9, 0, %v1830_v22  ;;  %v1285_v35 = vpop.permute.xlu1 %1284 }
  0xe1   : > { %vm11378_vm11 = vcmask 916992   ;;  %v1932_v38 = vrot.slane %v1930_v9, 7  ;;  %v1933_v57 = vshll.u32 %v8201_v31, 16  ;;  %v6935_v36 = vld [vmem:[%s11287_s1 + $0x90] sm:$0xff]   ;;  %824 = vst [vmem:[#allocation2 + $0x180] sm:$0x80] %v823_v52  ;;  %v8287_v31 = vpack.c.bf16 %v6532_v23, %v8104_v50  ;;  %v1670_v54 = vpop.permute.xlu0 %1669  ;;  %2803 = vmatmul.mubr.bf16.gmra.mrb[4].mxu1 %v8117_v59 }
  0xe2   : > { %1480 = vst.msk [vmem:[#allocation2 + $0x1a8] sm:$0xff] %vm11378_vm11, %v1445_v41  ;;  %1832 = vst [vmem:[#allocation2 + $0x150] sm:$0x1] %v1831_v56  ;;  %v1768_v58 = vld [vmem:[#allocation2 + $0x170] sm:$0xff]  ;;  %v1203_v62 = vrot.slane %v1201_v27, 7  ;;  %v1204_v28 = vshll.u32 %v8209_v39, 16  ;;  %1661 = vrot.lane.b32.xlu1 %v1622_v0, %s7204_s17  ;;  %2856 = vmatpush1.bf16.msra.mxu1 %v6935_v36 }
  0xe3   : > { %v502_v4 = vrot.slane %v500_v32, 7  ;;  %v1348_v63 = vld [vmem:[#allocation2 + $0x1c8] sm:$0xff]  ;;  %v6936_v39 = vld [vmem:[%s11287_s1 + $0x98] sm:$0xff]   ;;  %v595_v17 = vld [vmem:[#allocation2 + $0x100] sm:$0xff]  ;;  %v1769_v50 = vsel %vm8110_vm7, %v1670_v54, %v1768_v58  ;;  %v1935_v6 = vor.u32 %v1933_v57, %v1932_v38  ;;  %693 = vrot.lane.b32.xlu0 %v8160_v40, %s7201_s28  ;;  %v1937_v37 = vshrl.u32 %v8287_v31, 16  ;;  %2857 = vmatprep.subr.bf16.mxu1 %v11312_v13 }
  0xe4   : > { %v1765_v44 = vld [vmem:[#allocation2 + $0x168] sm:$0xff]  ;;  %v1349_v9 = vsel %vm11366_vm14, %v1285_v35, %v1348_v63  ;;  %1770 = vst [vmem:[#allocation2 + $0x170] sm:$0xff] %v1769_v50  ;;  %v1206_v24 = vor.u32 %v1204_v28, %v1203_v62  ;;  %v1447_v46 = vpop.permute.xlu1 %1446  ;;  %vm11379_vm4 = vmmov %vm11378_vm11  ;;  %v2234_v22 = vld [vmem:[#allocation2 + $0xd8] sm:$0x80]  ;;  %v1940_v35 = vshll.u32 %v8287_v31, 16 }
  0xe5   : > { %v505_v15 = vor.u32 %v503_v55, %v502_v4  ;;  %v1093_v45 = vld [vmem:[#allocation2 + $0x1e8] sm:$0x1]  ;;  %v1766_v21 = vsel %vm8180_vm0, %v1670_v54, %v1765_v44  ;;  %1350 = vst [vmem:[#allocation2 + $0x1c8] sm:$0xff] %v1349_v9  ;;  %v6590_v27 = vld [vmem:[%s7374_s19 + $0x69] sm:$0x7f]  ;;  %v8314_v43 = vpop.permute.xlu0 %906  ;;  %v1774_v55 = vld [vmem:[#allocation2 + $0x190] sm:$0xff] }
  0xe6   : > { %v6589_v59 = vld [vmem:[%s7374_s19 + $0x61] sm:$0xff]  ;;  %v1094_v2 = vsel %vm7726_vm13, 0, %v1093_v45  ;;  %1767 = vst [vmem:[#allocation2 + $0x168] sm:$0xff] %v1766_v21  ;;  %2810 = vmatprep.mubr.bf16.mxu1 %v1766_v21  ;;  %1481 = vst.msk [vmem:[#allocation2 + $0x1c8] sm:$0xff] %vm11379_vm4, %v1447_v46  ;;  %2009 = vrot.lane.b32.xlu1 %v1935_v6, %s7206_s27  ;;  %v2235_v56 = vsel %vm11375_vm5, 0, %v2234_v22  ;;  %v1939_v63 = vrot.slane %v1937_v37, 7 }
  0xe7   : > { %v959_v3 = vld [vmem:[#allocation2 + $0x28] sm:$0xff]  ;;  %v596_v47 = vsel %vm7499_vm8, %v505_v15, %v595_v17  ;;  %v2299_v20 = vpack.c.bf16 %v6590_v27, %v6589_v59  ;;  %1095 = vst [vmem:[#allocation2 + $0x1e8] sm:$0x1] %v1094_v2  ;;  %v828_v60 = vld [vmem:[#allocation2 + $0x1a0] sm:$0x80]  ;;  %v2325_v10 = vld [vmem:[#allocation2 + $0xb8] sm:$0xff]  ;;  %2858 = vmatpush1.bf16.msra.mxu1 %v6936_v39  ;;  %1272 = vrot.lane.b32.xlu0 %v1206_v24, %s7203_s16 }
  0xe8   : > { %v1371_v19 = vld [vmem:[%s7374_s19 + $0x88] sm:$0xff]  ;;  %597 = vst [vmem:[#allocation2 + $0x100] sm:$0xff] %v596_v47  ;;  %v829_v42 = vsel %vm11377_vm2, 0, %v828_v60  ;;  %v1022_v41 = vld [vmem:[#allocation2 + $0x180] sm:$0xff]  ;;  %v960_v32 = vsel %vm7904_vm1, %v8314_v43, %v959_v3  ;;  %2859 = vmatprep.subr.bf16.mxu1 %v11312_v13  ;;  %2236 = vst [vmem:[#allocation2 + $0xd8] sm:$0x80] %v2235_v56  ;;  %v1672_v4 = vpop.permute.xlu1 %1671  ;;  %v1942_v2 = vor.u32 %v1940_v35, %v1939_v63 }
  0xe9   : > { %v6534_v23 = vld [vmem:[%s7374_s19 + $0x88] sm:$0x7f]  ;;  %v1565_v8 = vld [vmem:[#allocation2 + $0x1a8] sm:$0x80]  ;;  %830 = vst [vmem:[#allocation2 + $0x1a0] sm:$0x80] %v829_v42  ;;  %v2326_v52 = vsel %vm7933_vm10, %v2299_v20, %v2325_v10  ;;  %v8330_v38 = vsel %vm8043_vm3, %v8005_v30, %v1022_v41  ;;  %v8334_v57 = vpack.c.bf16 %v1371_v19, %v8188_v7  ;;  %v1775_v39 = vsel %vm8110_vm7, %v1672_v4, %v1774_v55  ;;  %vm11380_vm8 = vmmov %vm11376_vm6 }
  0xea   : > { %v1566_v0 = vsel %vm8089_vm15, 0, %v1565_v8  ;;  %961 = vst [vmem:[#allocation2 + $0x28] sm:$0xff] %v960_v32  ;;  %v1599_v36 = vld [vmem:[%s7374_s19 + $0x81] sm:$0xff]  ;;  %v1600_v58 = vld [vmem:[%s7374_s19 + $0x89] sm:$0x7f]  ;;  %v8339_v62 = vpack.c.bf16 %v6534_v23, %v8188_v7  ;;  %2327 = vst [vmem:[#allocation2 + $0xb8] sm:$0xff] %v2326_v52  ;;  %v708_v7 = vpop.permute.xlu0 %707  ;;  %2811 = vmatmul.mubr.bf16.gmra.mrb[8].mxu1 %v8238_v5  ;;  %2163 = vrot.lane.b32.xlu1 %v8160_v40, %s7207_s26 }
  0xeb   : > { %1567 = vst [vmem:[#allocation2 + $0x1a8] sm:$0x80] %v1566_v0  ;;  %v6937_v30 = vld [vmem:[%s11287_s1 + $0xa0] sm:$0xff]   ;;  %1024 = vst [vmem:[#allocation2 + $0x180] sm:$0xff] %v8330_v38  ;;  %v1771_v28 = vld [vmem:[#allocation2 + $0x188] sm:$0xff]  ;;  %v1623_v17 = vpack.c.bf16 %v1600_v58, %v1599_v36  ;;  %1434 = vrot.lane.b32.xlu0 %v8334_v57, %s7202_s14 }
  0xec   : > { %v8348_v54 = vld [vmem:[%s7374_s19 + $0x90] sm:$0xff]  ;;  %v6536_v44 = vld [vmem:[%s7374_s19 + $0x98] sm:$0x7f]  ;;  %v1772_v9 = vsel %vm8180_vm0, %v1672_v4, %v1771_v28  ;;  %739 = vst.msk [vmem:[#allocation2 + $0x1c0] sm:$0xff] %vm11380_vm8, %v708_v7  ;;  %1776 = vst [vmem:[#allocation2 + $0x190] sm:$0xff] %v1775_v39  ;;  %v1944_v5 = vshrl.u32 %v8339_v62, 16  ;;  %2860 = vmatpush1.bf16.msra.mxu1 %v6937_v30  ;;  %v8374_v27 = vpop.permute.xlu1 %908 }
  0xed   : > { %v1833_v15 = vld [vmem:[#allocation2 + $0x170] sm:$0x1]  ;;  %1773 = vst [vmem:[#allocation2 + $0x188] sm:$0xff] %v1772_v9  ;;  %v965_v31 = vld [vmem:[#allocation2 + $0x48] sm:$0xff]  ;;  %2818 = vmatprep.mubr.bf16.mxu1 %v1772_v9  ;;  %v8365_v21 = vpack.c.bf16 %v6536_v44, %v8348_v54  ;;  %v8368_v50 = vld [vmem:[%s7374_s19 + $0xa0] sm:$0xff]  ;;  %2861 = vmatprep.subr.bf16.mxu1 %v11312_v13  ;;  %v1947_v37 = vshll.u32 %v8339_v62, 16 }
  0xee   : > { %v1834_v45 = vsel %vm8193_vm9, 0, %v1833_v15  ;;  %v6538_v6 = vld [vmem:[%s7374_s19 + $0xa8] sm:$0x7f]  ;;  %v1571_v59 = vld [vmem:[#allocation2 + $0x1c8] sm:$0x80]  ;;  %v6591_v3 = vld [vmem:[%s7374_s19 + $0x71] sm:$0xff]  ;;  %v1287_v46 = vpop.permute.xlu0 %1286  ;;  %v966_v19 = vsel %vm7904_vm1, %v8374_v27, %v965_v31  ;;  %1663 = vrot.lane.b32.xlu1 %v1623_v17, %s7204_s17 }
  0xef   : > { %v6938_v40 = vld [vmem:[%s11287_s1 + $0xa8] sm:$0xff]   ;;  %1835 = vst [vmem:[#allocation2 + $0x170] sm:$0x1] %v1834_v45  ;;  %v6592_v24 = vld [vmem:[%s7374_s19 + $0x79] sm:$0x7f]  ;;  %v1572_v20 = vsel %vm8089_vm15, 0, %v1571_v59  ;;  %v8394_v41 = vpack.c.bf16 %v6538_v6, %v8368_v50  ;;  %695 = vrot.lane.b32.xlu0 %v8258_v33, %s7201_s28  ;;  %vm11381_vm11 = vmmov %vm11379_vm4 }
  0xf0   : > { %v1028_v47 = vld [vmem:[#allocation2 + $0x1a0] sm:$0xff]  ;;  %v1351_v60 = vld [vmem:[#allocation2 + $0x1e8] sm:$0xff]  ;;  %v2300_v23 = vpack.c.bf16 %v6592_v24, %v6591_v3  ;;  %v2237_v8 = vld [vmem:[#allocation2 + $0xf8] sm:$0x80]  ;;  %1573 = vst [vmem:[#allocation2 + $0x1c8] sm:$0x80] %v1572_v20  ;;  %2862 = vmatpush1.bf16.msra.mxu1 %v6938_v40  ;;  %v710_v58 = vpop.permute.xlu1 %709 }
  0xf1   : > { %v8388_v42 = vsel %vm8043_vm3, %v8065_v61, %v1028_v47  ;;  %v1051_v10 = vld [vmem:[#allocation2 + $0x28] sm:$0x1]  ;;  %v1352_v22 = vsel %vm11366_vm14, %v1287_v46, %v1351_v60  ;;  %967 = vst [vmem:[#allocation2 + $0x48] sm:$0xff] %v966_v19  ;;  %v2328_v0 = vld [vmem:[#allocation2 + $0xd8] sm:$0xff]  ;;  %v2238_v32 = vsel %vm11375_vm5, 0, %v2237_v8  ;;  %v1946_v55 = vrot.slane %v1944_v5, 7  ;;  %2863 = vmatprep.subr.bf16.mxu1 %v11312_v13  ;;  %vm11382_vm8 = vmmov %vm11379_vm4 }
  0xf2   : > { %1030 = vst [vmem:[#allocation2 + $0x1a0] sm:$0xff] %v8388_v42  ;;  %v1052_v61 = vsel %vm7726_vm13, 0, %v1051_v10  ;;  %1353 = vst [vmem:[#allocation2 + $0x1e8] sm:$0xff] %v1352_v22  ;;  %v1951_v52 = vshrl.u32 %v8365_v21, 16  ;;  %v6939_v56 = vld [vmem:[%s11287_s1 + $0xb0] sm:$0xff]   ;;  %v2329_v36 = vsel %vm7933_vm10, %v2300_v23, %v2328_v0  ;;  %v1449_v4 = vpop.permute.xlu0 %1448  ;;  %2819 = vmatmul.mubr.bf16.gmra.mrb[12].mxu1 %v8330_v38  ;;  %v8414_v63 = vld [vmem:[%s7374_s19 + $0x98] sm:$0xff]  ;;  %2165 = vrot.lane.b32.xlu1 %v8258_v33, %s7207_s26 }
  0xf3   : > { %2239 = vst [vmem:[#allocation2 + $0xf8] sm:$0x80] %v2238_v32  ;;  %1053 = vst [vmem:[#allocation2 + $0x28] sm:$0x1] %v1052_v61  ;;  %v6540_v62 = vld [vmem:[%s7374_s19 + $0xb8] sm:$0x7f]  ;;  %2011 = vrot.lane.b32.xlu0 %v1942_v2, %s7206_s27  ;;  %v1949_v39 = vor.u32 %v1947_v37, %v1946_v55  ;;  %v2131_v59 = vpack.c.bf16 %v8414_v63, %v8348_v54 }
  0xf4   : > { %2330 = vst [vmem:[#allocation2 + $0xd8] sm:$0xff] %v2329_v36  ;;  %v834_v30 = vld [vmem:[#allocation2 + $0x1c0] sm:$0x80]  ;;  %v1836_v28 = vld [vmem:[#allocation2 + $0x190] sm:$0x1]  ;;  %740 = vst.msk [vmem:[#allocation2 + $0x1e0] sm:$0xff] %vm11376_vm6, %v710_v58  ;;  %2864 = vmatpush1.bf16.msra.mxu1 %v6939_v56  ;;  %v1674_v40 = vpop.permute.xlu1 %1673 }
  0xf5   : > { %v835_v35 = vsel %vm11377_vm2, 0, %v834_v30  ;;  %v1837_v44 = vsel %vm8193_vm9, 0, %v1836_v28  ;;  %1482 = vst.msk [vmem:[#allocation2 + $0x1e8] sm:$0xff] %vm11381_vm11, %v1449_v4  ;;  %v1780_v7 = vld [vmem:[#allocation2 + $0x1b0] sm:$0xff]  ;;  %v1958_v9 = vshrl.u32 %v8394_v41, 16  ;;  %v1306_v38 = vld [vmem:[#allocation2 + $0x8] sm:$0xff]  ;;  %2865 = vmatprep.subr.bf16.mxu1 %v11312_v13  ;;  %vm11383_vm11 = vmmov %vm11379_vm4 }
  0xf6   : > { %836 = vst [vmem:[#allocation2 + $0x1c0] sm:$0x80] %v835_v35  ;;  %1838 = vst [vmem:[#allocation2 + $0x190] sm:$0x1] %v1837_v44  ;;  %v1953_v15 = vrot.slane %v1951_v52, 7  ;;  %v1954_v31 = vshll.u32 %v8365_v21, 16  ;;  %v1257_v21 = vpop.permute.xlu0 %1256  ;;  %v1781_v20 = vsel %vm8110_vm7, %v1674_v40, %v1780_v7  ;;  %2167 = vrot.lane.b32.xlu1 %v8334_v57, %s7207_s26 }
  0xf7   : > { %v7085_v17 = vld [vmem:[%s7374_s19 + $0xb0] sm:$0xff]  ;;  %v6542_v5 = vld [vmem:[%s7374_s19 + $0xc8] sm:$0x7f]  ;;  %v6940_v33 = vld [vmem:[%s11287_s1 + $0xb8] sm:$0xff]   ;;  %v1961_v60 = vshll.u32 %v8394_v41, 16  ;;  %v1307_v37 = vsel %vm11366_vm14, %v1257_v21, %v1306_v38  ;;  %1782 = vst [vmem:[#allocation2 + $0x1b0] sm:$0xff] %v1781_v20  ;;  %2013 = vrot.lane.b32.xlu0 %v1949_v39, %s7206_s27 }
  0xf8   : > { %v8427_v45 = vpack.c.bf16 %v6540_v62, %v7085_v17  ;;  %v1777_v6 = vld [vmem:[#allocation2 + $0x1a8] sm:$0xff]  ;;  %v2240_v19 = vld [vmem:[#allocation2 + $0x118] sm:$0x80]  ;;  %v1960_v8 = vrot.slane %v1958_v9, 7  ;;  %1308 = vst [vmem:[#allocation2 + $0x8] sm:$0xff] %v1307_v37  ;;  %v1956_v41 = vor.u32 %v1954_v31, %v1953_v15  ;;  %v7086_v32 = vld [vmem:[%s7374_s19 + $0xc0] sm:$0xff]  ;;  %2866 = vmatpush1.bf16.msra.mxu1 %v6940_v33  ;;  %v8462_v36 = vpop.permute.xlu1 %910 }
  0xf9   : > { %v6593_v2 = vld [vmem:[%s7374_s19 + $0x81] sm:$0xff]  ;;  %v6594_v3 = vld [vmem:[%s7374_s19 + $0x89] sm:$0x7f]  ;;  %v1778_v47 = vsel %vm8180_vm0, %v1674_v40, %v1777_v6  ;;  %v2241_v22 = vsel %vm11375_vm5, 0, %v2240_v19  ;;  %v8454_v61 = vpack.c.bf16 %v6542_v5, %v7086_v32  ;;  %v6544_v58 = vld [vmem:[%s7374_s19 + $0xd8] sm:$0x7f]  ;;  %2867 = vmatprep.subr.bf16.mxu1 %v11312_v13 }
  0xfa   : > { %v1054_v24 = vld [vmem:[#allocation2 + $0x48] sm:$0x1]  ;;  %v2301_v46 = vpack.c.bf16 %v6594_v3, %v6593_v2  ;;  %1779 = vst [vmem:[#allocation2 + $0x1a8] sm:$0xff] %v1778_v47  ;;  %2826 = vmatprep.mubr.bf16.mxu1 %v1778_v47  ;;  %v2331_v10 = vld [vmem:[#allocation2 + $0xf8] sm:$0xff]  ;;  %v1965_v0 = vshrl.u32 %v8427_v45, 16  ;;  %v6941_v57 = vld [vmem:[%s11287_s1 + $0xc0] sm:$0xff]   ;;  %v1419_v28 = vpop.permute.xlu0 %1418  ;;  %v1963_v7 = vor.u32 %v1961_v60, %v1960_v8  ;;  %2169 = vrot.lane.b32.xlu1 %v2131_v59, %s7207_s26 }
  0xfb   : > { %v1055_v54 = vsel %vm7726_vm13, 0, %v1054_v24  ;;  %v971_v23 = vld [vmem:[#allocation2 + $0x68] sm:$0xff]  ;;  %2242 = vst [vmem:[#allocation2 + $0x118] sm:$0x80] %v2241_v22  ;;  %v840_v56 = vld [vmem:[#allocation2 + $0x1e0] sm:$0x80]  ;;  %2827 = vmatmul.mubr.bf16.gmra.mrb[16].mxu1 %v8388_v42  ;;  %2015 = vrot.lane.b32.xlu0 %v1956_v41, %s7206_s27 }
  0xfc   : > { %1056 = vst [vmem:[#allocation2 + $0x48] sm:$0x1] %v1055_v54  ;;  %v6568_v55 = vld [vmem:[%s7374_s19 + $0xa8] sm:$0xff]  ;;  %v2332_v52 = vsel %vm7933_vm10, %v2301_v46, %v2331_v10  ;;  %v841_v30 = vsel %vm11377_vm2, 0, %v840_v56  ;;  %v972_v4 = vsel %vm7904_vm1, %v8462_v36, %v971_v23  ;;  %1467 = vst.msk [vmem:[#allocation2 + $0x8] sm:$0xff] %vm11379_vm4, %v1419_v28  ;;  %v1702_v44 = vld [vmem:[#allocation2 + $0x10] sm:$0xff]  ;;  %2868 = vmatpush1.bf16.msra.mxu1 %v6941_v57  ;;  %v1259_v6 = vpop.permute.xlu1 %1258 }
  0xfd   : > { %2333 = vst [vmem:[#allocation2 + $0xf8] sm:$0xff] %v2332_v52  ;;  %v1577_v62 = vld [vmem:[#allocation2 + $0x1e8] sm:$0x80]  ;;  %v1034_v63 = vld [vmem:[#allocation2 + $0x1c0] sm:$0xff]  ;;  %842 = vst [vmem:[#allocation2 + $0x1e0] sm:$0x80] %v841_v30  ;;  %v2132_v38 = vpack.c.bf16 %v6568_v55, %v8368_v50  ;;  %2869 = vmatprep.subr.bf16.mxu1 %v11312_v13 }
  0xfe   : > { %v1578_v35 = vsel %vm8089_vm15, 0, %v1577_v62  ;;  %973 = vst [vmem:[#allocation2 + $0x68] sm:$0xff] %v972_v4  ;;  %v1968_v9 = vshll.u32 %v8427_v45, 16  ;;  %v6546_v42 = vld [vmem:[%s7374_s19 + $0xe8] sm:$0x7f]  ;;  %v8482_v39 = vsel %vm8043_vm3, %v8133_v14, %v1034_v63  ;;  %v1967_v15 = vrot.slane %v1965_v0, 7  ;;  %v8498_v3 = vpop.permute.xlu0 %1647 }
  0xff   : > { %1579 = vst [vmem:[#allocation2 + $0x1e8] sm:$0x80] %v1578_v35  ;;  %v1972_v31 = vshrl.u32 %v8454_v61, 16  ;;  %v7087_v17 = vld [vmem:[%s7374_s19 + $0xd0] sm:$0xff]  ;;  %v6570_v50 = vld [vmem:[%s7374_s19 + $0xb8] sm:$0xff]  ;;  %v6942_v33 = vld [vmem:[%s11287_s1 + $0xc8] sm:$0xff]   ;;  %v1703_v54 = vsel %vm8110_vm7, %v8498_v3, %v1702_v44  ;;  %2171 = vrot.lane.b32.xlu1 %v2132_v38, %s7207_s26 }
 0x100   : > { %v8487_v45 = vpack.c.bf16 %v6544_v58, %v7087_v17  ;;  %v6569_v5 = vld [vmem:[%s7374_s19 + $0xb0] sm:$0xff]  ;;  %1036 = vst [vmem:[#allocation2 + $0x1c0] sm:$0xff] %v8482_v39  ;;  %v1309_v14 = vld [vmem:[#allocation2 + $0x28] sm:$0xff]  ;;  %v6596_v59 = vld [vmem:[%s7374_s19 + $0x99] sm:$0x7f]  ;;  %v1975_v21 = vshll.u32 %v8454_v61, 16  ;;  %2017 = vrot.lane.b32.xlu0 %v1963_v7, %s7206_s27  ;;  %v1970_v0 = vor.u32 %v1968_v9, %v1967_v15  ;;  %2870 = vmatpush1.bf16.msra.mxu1 %v6942_v33  ;;  %v1421_v56 = vpop.permute.xlu1 %1420 }
 0x101   : > { %v6595_v40 = vld [vmem:[%s7374_s19 + $0x91] sm:$0xff]  ;;  %v1839_v2 = vld [vmem:[#allocation2 + $0x1b0] sm:$0x1]  ;;  %v1310_v24 = vsel %vm11366_vm14, %v1259_v6, %v1309_v14  ;;  %v8504_v47 = vld [vmem:[%s7374_s19 + $0xe0] sm:$0xff]  ;;  %v2133_v37 = vpack.c.bf16 %v6570_v50, %v6569_v5  ;;  %1704 = vst [vmem:[#allocation2 + $0x10] sm:$0xff] %v1703_v54  ;;  %v1974_v32 = vrot.slane %v1972_v31, 7  ;;  %2871 = vmatprep.subr.bf16.mxu1 %v11312_v13 }
 0x102   : > { %v8507_v20 = vpack.c.bf16 %v6546_v42, %v8504_v47  ;;  %v2302_v60 = vpack.c.bf16 %v6596_v59, %v6595_v40  ;;  %v2243_v46 = vld [vmem:[#allocation2 + $0x138] sm:$0x80]  ;;  %v1840_v19 = vsel %vm8193_vm9, 0, %v1839_v2  ;;  %1311 = vst [vmem:[#allocation2 + $0x28] sm:$0xff] %v1310_v24  ;;  %v6571_v23 = vld [vmem:[%s7374_s19 + $0xc0] sm:$0xff]  ;;  %v6572_v8 = vld [vmem:[%s7374_s19 + $0xc8] sm:$0xff]  ;;  %v1676_v35 = vpop.permute.xlu0 %1675 }
 0x103   : > { %v2334_v10 = vld [vmem:[#allocation2 + $0x118] sm:$0xff]  ;;  %v2244_v22 = vsel %vm11375_vm5, 0, %v2243_v46  ;;  %1841 = vst [vmem:[#allocation2 + $0x1b0] sm:$0x1] %v1840_v19  ;;  %v1786_v41 = vld [vmem:[#allocation2 + $0x1d0] sm:$0xff]  ;;  %v1979_v61 = vshrl.u32 %v8487_v45, 16  ;;  %v2134_v7 = vpack.c.bf16 %v6572_v8, %v6571_v23  ;;  %2173 = vrot.lane.b32.xlu1 %v2133_v37, %s7207_s26  ;;  %v1977_v17 = vor.u32 %v1975_v21, %v1974_v32 }
 0x104   : > { %v8522_v55 = vld [vmem:[%s7374_s19 + $0xf0] sm:$0xff]  ;;  %v8526_v57 = vsel %vm7933_vm10, %v2302_v60, %v2334_v10  ;;  %2245 = vst [vmem:[#allocation2 + $0x138] sm:$0x80] %v2244_v22  ;;  %v1783_v52 = vld [vmem:[#allocation2 + $0x1c8] sm:$0xff]  ;;  %v1982_v58 = vshll.u32 %v8487_v45, 16  ;;  %v1040_v28 = vld [vmem:[#allocation2 + $0x1e0] sm:$0xff]  ;;  %2019 = vrot.lane.b32.xlu0 %v1970_v0, %s7206_s27  ;;  %v8558_v14 = vpop.permute.xlu1 %912 }
 0x105   : > { %v6548_v62 = vld [vmem:[%s7374_s19 + $0xf8] sm:$0x7f]  ;;  %v6943_v30 = vld [vmem:[%s11287_s1 + $0xd0] sm:$0xff]   ;;  %2336 = vst [vmem:[#allocation2 + $0x118] sm:$0xff] %v8526_v57  ;;  %v1485_v4 = vld [vmem:[#allocation2 + $0x8] sm:$0x80]  ;;  %v8540_v9 = vsel %vm8043_vm3, %v8226_v1, %v1040_v28  ;;  %v1784_v15 = vsel %vm8180_vm0, %v1676_v35, %v1783_v52  ;;  %v1787_v1 = vsel %vm8110_vm7, %v1676_v35, %v1786_v41 }
 0x106   : > { %v1057_v63 = vld [vmem:[#allocation2 + $0x68] sm:$0x1]  ;;  %1468 = vst.msk [vmem:[#allocation2 + $0x28] sm:$0xff] %vm11382_vm8, %v1421_v56  ;;  %v1986_v44 = vshrl.u32 %v8507_v20, 16  ;;  %v1486_v38 = vsel %vm8089_vm15, 0, %v1485_v4  ;;  %1042 = vst [vmem:[#allocation2 + $0x1e0] sm:$0xff] %v8540_v9  ;;  %2834 = vmatprep.mubr.bf16.mxu1 %v1784_v15  ;;  %v8554_v5 = vpack.c.bf16 %v6548_v62, %v8522_v55  ;;  %v682_v2 = vpop.permute.xlu0 %681  ;;  %2872 = vmatpush1.bf16.msra.mxu1 %v6943_v30 }
 0x107   : > { %v1058_v42 = vsel %vm7726_vm13, 0, %v1057_v63  ;;  %v977_v31 = vld [vmem:[#allocation2 + $0x88] sm:$0xff]  ;;  %1487 = vst [vmem:[#allocation2 + $0x8] sm:$0x80] %v1486_v38  ;;  %1785 = vst [vmem:[#allocation2 + $0x1c8] sm:$0xff] %v1784_v15  ;;  %v1981_v45 = vrot.slane %v1979_v61, 7  ;;  %2835 = vmatmul.mubr.bf16.gmra.mrb[20].mxu1 %v8482_v39  ;;  %2175 = vrot.lane.b32.xlu1 %v2134_v7, %s7207_s26 }
 0x108   : > { %1059 = vst [vmem:[#allocation2 + $0x68] sm:$0x1] %v1058_v42  ;;  %v6573_v50 = vld [vmem:[%s7374_s19 + $0xd0] sm:$0xff]  ;;  %v6574_v33 = vld [vmem:[%s7374_s19 + $0xd8] sm:$0xff]  ;;  %1788 = vst [vmem:[#allocation2 + $0x1d0] sm:$0xff] %v1787_v1  ;;  %v978_v59 = vsel %vm7904_vm1, %v8558_v14, %v977_v31  ;;  %v1988_v46 = vrot.slane %v1986_v44, 7  ;;  %2021 = vrot.lane.b32.xlu0 %v1977_v17, %s7206_s27  ;;  %v1261_v61 = vpop.permute.xlu1 %1260 }
 0x109   : > { %v6597_v6 = vld [vmem:[%s7374_s19 + $0xa1] sm:$0xff]  ;;  %v6598_v40 = vld [vmem:[%s7374_s19 + $0xa9] sm:$0x7f]  ;;  %v2246_v21 = vld [vmem:[#allocation2 + $0x158] sm:$0x80]  ;;  %979 = vst [vmem:[#allocation2 + $0x88] sm:$0xff] %v978_v59  ;;  %v2135_v39 = vpack.c.bf16 %v6574_v33, %v6573_v50  ;;  %v1984_v22 = vor.u32 %v1982_v58, %v1981_v45 }
 0x10a   : > { %v2303_v24 = vpack.c.bf16 %v6598_v40, %v6597_v6  ;;  %v1800_v60 = vld [vmem:[#allocation2 + $0x10] sm:$0x1]  ;;  %726 = vst.msk [vmem:[#allocation2 + $0x20] sm:$0xff] %vm11376_vm6, %v682_v2  ;;  %v1989_v19 = vshll.u32 %v8507_v20, 16  ;;  %v2247_v37 = vsel %vm11375_vm5, 0, %v2246_v21  ;;  %v1312_v8 = vld [vmem:[#allocation2 + $0x48] sm:$0xff]  ;;  %v1650_v30 = vpop.permute.xlu0 %1649 }
 0x10b   : > { %v2337_v54 = vld [vmem:[#allocation2 + $0x138] sm:$0xff]  ;;  %v1801_v23 = vsel %vm8193_vm9, 0, %v1800_v60  ;;  %v1708_v10 = vld [vmem:[#allocation2 + $0x30] sm:$0xff]  ;;  %v1993_v41 = vshrl.u32 %v8554_v5, 16  ;;  %v6576_v20 = vld [vmem:[%s7374_s19 + $0xe8] sm:$0xff]  ;;  %v1313_v58 = vsel %vm11366_vm14, %v1261_v61, %v1312_v8  ;;  %2177 = vrot.lane.b32.xlu1 %v2135_v39, %s7207_s26  ;;  %v1996_v1 = vshll.u32 %v8554_v5, 16 }
 0x10c   : > { %v8578_v0 = vsel %vm7933_vm10, %v2303_v24, %v2337_v54  ;;  %2248 = vst [vmem:[#allocation2 + $0x158] sm:$0x80] %v2247_v37  ;;  %1802 = vst [vmem:[#allocation2 + $0x10] sm:$0x1] %v1801_v23  ;;  %v6599_v52 = vld [vmem:[%s7374_s19 + $0xb1] sm:$0xff]  ;;  %v1709_v4 = vsel %vm8110_vm7, %v1650_v30, %v1708_v10  ;;  %v1991_v63 = vor.u32 %v1989_v19, %v1988_v46  ;;  %v2355_v35 = vld [vmem:[#allocation2] sm:$0xff]  ;;  %2023 = vrot.lane.b32.xlu0 %v1984_v22, %s7206_s27  ;;  %v1423_v50 = vpop.permute.xlu1 %1422 }
 0x10d   : > { %v1493_v32 = vld [vmem:[#allocation2 + $0x28] sm:$0x80]  ;;  %2339 = vst [vmem:[#allocation2 + $0x138] sm:$0xff] %v8578_v0  ;;  %v6600_v56 = vld [vmem:[%s7374_s19 + $0xb9] sm:$0x7f]  ;;  %1314 = vst [vmem:[#allocation2 + $0x48] sm:$0xff] %v1313_v58  ;;  %v2136_v44 = vpack.c.bf16 %v6576_v20, %v8504_v47 }
 0x10e   : > { %v1494_v62 = vsel %vm8089_vm15, 0, %v1493_v32  ;;  %v1697_v28 = vld [vmem:[#allocation2 + $0x8] sm:$0xff]  ;;  %v6578_v7 = vld [vmem:[%s7374_s19 + $0xf8] sm:$0xff]  ;;  %1710 = vst [vmem:[#allocation2 + $0x30] sm:$0xff] %v1709_v4  ;;  %v1792_v15 = vld [vmem:[#allocation2 + $0x1f0] sm:$0xff]  ;;  %v1995_v31 = vrot.slane %v1993_v41, 7  ;;  %v2304_v17 = vpack.c.bf16 %v6600_v56, %v6599_v52 }
 0x10f   : > { %1495 = vst [vmem:[#allocation2 + $0x28] sm:$0x80] %v1494_v62  ;;  %v1698_v38 = vsel %vm8180_vm0, %v8498_v3, %v1697_v28  ;;  %v1842_v42 = vld [vmem:[#allocation2 + $0x1d0] sm:$0x1]  ;;  %v1789_v47 = vld [vmem:[#allocation2 + $0x1e8] sm:$0xff]  ;;  %1469 = vst.msk [vmem:[#allocation2 + $0x48] sm:$0xff] %vm11383_vm11, %v1423_v50  ;;  %v1678_v3 = vpop.permute.xlu0 %1677  ;;  %v2137_v40 = vpack.c.bf16 %v6578_v7, %v8522_v55  ;;  %2179 = vrot.lane.b32.xlu1 %v2136_v44, %s7207_s26 }
 0x110   : > { %1699 = vst [vmem:[#allocation2 + $0x8] sm:$0xff] %v1698_v38  ;;  %v1843_v45 = vsel %vm8193_vm9, 0, %v1842_v42  ;;  %2722 = vmatprep.mubr.bf16.mxu0 %v1698_v38  ;;  %v1060_v33 = vld [vmem:[#allocation2 + $0x88] sm:$0x1]  ;;  %v2249_v59 = vld [vmem:[#allocation2 + $0x178] sm:$0x80]  ;;  %v1790_v24 = vsel %vm8180_vm0, %v1678_v3, %v1789_v47  ;;  %v1793_v21 = vsel %vm8110_vm7, %v1678_v3, %v1792_v15  ;;  %2025 = vrot.lane.b32.xlu0 %v1991_v63, %s7206_s27  ;;  %v8619_v54 = vpop.permute.xlu1 %914 }
 0x111   : > { %1844 = vst [vmem:[#allocation2 + $0x1d0] sm:$0x1] %v1843_v45  ;;  %v756_v6 = vld [vmem:[#allocation2 + $0x20] sm:$0x80]  ;;  %2723 = vmatmul.mubr.bf16.vlgmr.msra.gmra.mrb[0].mxu0 %v2355_v35  ;;  %v1061_v5 = vsel %vm7726_vm13, 0, %v1060_v33  ;;  %v983_v60 = vld [vmem:[#allocation2 + $0xa8] sm:$0xff]  ;;  %v1998_v55 = vor.u32 %v1996_v1, %v1995_v31  ;;  %2842 = vmatprep.mubr.bf16.mxu1 %v1790_v24 }
 0x112   : > { %v757_v2 = vsel %vm11377_vm2, 0, %v756_v6  ;;  %1062 = vst [vmem:[#allocation2 + $0x88] sm:$0x1] %v1061_v5  ;;  %vm1796_vm4 = vcmask 654592   ;;  %1791 = vst [vmem:[#allocation2 + $0x1e8] sm:$0xff] %v1790_v24  ;;  %v2250_v39 = vsel %vm11375_vm5, 0, %v2249_v59  ;;  %2843 = vmatmul.mubr.bf16.gmra.mrb[24].mxu1 %v8540_v9  ;;  %v984_v23 = vsel %vm7904_vm1, %v8619_v54, %v983_v60 }
 0x113   : > { %v2340_v46 = vld [vmem:[#allocation2 + $0x158] sm:$0xff]  ;;  %758 = vst [vmem:[#allocation2 + $0x20] sm:$0x80] %v757_v2  ;;  %1794 = vst [vmem:[#allocation2 + $0x1f0] sm:$0xff] %v1793_v21  ;;  %v684_v8 = vpop.permute.xlu0 %683  ;;  %vm11384_vm8 = vcmask 392192   ;;  %v6601_v22 = vld [vmem:[%s7374_s19 + $0xc1] sm:$0xff]  ;;  %2181 = vrot.lane.b32.xlu1 %v2137_v40, %s7207_s26 }
 0x114   : > { %v8613_v19 = vsel %vm7933_vm10, %v2304_v17, %v2340_v46  ;;  %1797 = vst.msk [vmem:[#allocation2 + $0x1f0] sm:$0xff] %vm1796_vm4, %v11312_v13  ;;  %2251 = vst [vmem:[#allocation2 + $0x178] sm:$0x80] %v2250_v39  ;;  %v7089_v10 = vld [vmem:[#allocation2 + $0x18] sm:$0xff]  ;;  %v6602_v41 = vld [vmem:[%s7374_s19 + $0xc9] sm:$0x7f]  ;;  %2027 = vrot.lane.b32.xlu0 %v1998_v55, %s7206_s27  ;;  %v1263_v62 = vpop.permute.xlu1 %1262 }
 0x115   : > { %2342 = vst [vmem:[#allocation2 + $0x158] sm:$0xff] %v8613_v19  ;;  %6637 = vmatprep.mubr.msk.bf16.mxu1 %vm11384_vm8, %v7089_v10  ;;  %v1803_v32 = vld [vmem:[#allocation2 + $0x30] sm:$0x1]  ;;  %985 = vst [vmem:[#allocation2 + $0xa8] sm:$0xff] %v984_v23  ;;  %v1315_v56 = vld [vmem:[#allocation2 + $0x68] sm:$0xff]  ;;  %v2305_v58 = vpack.c.bf16 %v6602_v41, %v6601_v22 }
 0x116   : > { %v1705_v37 = vld [vmem:[#allocation2 + $0x28] sm:$0xff]  ;;  %727 = vst.msk [vmem:[#allocation2 + $0x40] sm:$0xff] %vm11376_vm6, %v684_v8  ;;  %v1804_v9 = vsel %vm8193_vm9, 0, %v1803_v32  ;;  %v1714_v61 = vld [vmem:[#allocation2 + $0x50] sm:$0xff]  ;;  %v1316_v28 = vsel %vm11366_vm14, %v1263_v62, %v1315_v56  ;;  %v2252_v63 = vld [vmem:[#allocation2 + $0x198] sm:$0x80] }
 0x117   : > { %v1706_v20 = vsel %vm8180_vm0, %v1650_v30, %v1705_v37  ;;  %1805 = vst [vmem:[#allocation2 + $0x30] sm:$0x1] %v1804_v9  ;;  %v1499_v52 = vld [vmem:[#allocation2 + $0x48] sm:$0x80]  ;;  %v1652_v4 = vpop.permute.xlu0 %1651  ;;  %1317 = vst [vmem:[#allocation2 + $0x68] sm:$0xff] %v1316_v28  ;;  %v2253_v7 = vsel %vm11375_vm5, 0, %v2252_v63 }
 0x118   : > { %1707 = vst [vmem:[#allocation2 + $0x28] sm:$0xff] %v1706_v20  ;;  %2730 = vmatprep.mubr.bf16.mxu0 %v1706_v20  ;;  %v1500_v30 = vsel %vm8089_vm15, 0, %v1499_v52  ;;  %v1715_v44 = vsel %vm8110_vm7, %v1652_v4, %v1714_v61  ;;  %vm11385_vm11 = vsmask.f32 7938  ;;  %2254 = vst [vmem:[#allocation2 + $0x198] sm:$0x80] %v2253_v7  ;;  %v1425_v17 = vpop.permute.xlu1 %1424 }
 0x119   : > { %1501 = vst [vmem:[#allocation2 + $0x48] sm:$0x80] %v1500_v30  ;;  %vm8649_vm8 = vmand %vm1796_vm4, %vm11385_vm11  ;;  %v6604_v50 = vld [vmem:[%s7374_s19 + $0xd9] sm:$0x7f]  ;;  %vm2091_vm4 = vcmask 1048192   ;;  %vm11388_vm6 = vcmask 916992  }
 0x11a   : > { %v954_v35 = vld [vmem:[#allocation2 + $0x20] sm:$0xff]  ;;  %1716 = vst [vmem:[#allocation2 + $0x50] sm:$0xff] %v1715_v44  ;;  %1470 = vst.msk [vmem:[#allocation2 + $0x68] sm:$0xff] %vm11388_vm6, %v1425_v17  ;;  %v2046_v6 = vld [vmem:[#allocation2 + $0x10] sm:$0xff]  ;;  %vm11389_vm11 = vcmask 785792   ;;  %vm11390_vm6 = vcmask 392192  }
 0x11b   : > { %v955_v38 = vsel %vm8043_vm3, %v8314_v43, %v954_v35  ;;  %v1845_v15 = vld [vmem:[#allocation2 + $0x1f0] sm:$0x1]  ;;  %v2343_v31 = vld [vmem:[#allocation2 + $0x178] sm:$0xff]  ;;  %v2000_v3 = vpop.permute.xlu0 %1999  ;;  %v989_v22 = vld [vmem:[#allocation2 + $0xc8] sm:$0xff] }
 0x11c   : > { %956 = vst [vmem:[#allocation2 + $0x20] sm:$0xff] %v955_v38  ;;  %v1846_v1 = vsel %vm8193_vm9, 0, %v1845_v15  ;;  %2731 = vmatmul.mubr.bf16.gmra.mrb[4].mxu0 %v955_v38  ;;  %v8657_v45 = vsel %vm7933_vm10, %v2305_v58, %v2343_v31  ;;  %v6603_v43 = vld [vmem:[%s7374_s19 + $0xd1] sm:$0xff]  ;;  %v1063_v47 = vld [vmem:[#allocation2 + $0xa8] sm:$0x1]  ;;  %v2047_v5 = vsel %vm8649_vm8, %v2000_v3, %v2046_v6  ;;  %v686_v24 = vpop.permute.xlu1 %685 }
 0x11d   : > { %1847 = vst [vmem:[#allocation2 + $0x1f0] sm:$0x1] %v1846_v1  ;;  %v762_v33 = vld [vmem:[#allocation2 + $0x40] sm:$0x80]  ;;  %2345 = vst [vmem:[#allocation2 + $0x178] sm:$0xff] %v8657_v45  ;;  %v1064_v40 = vsel %vm7726_vm13, 0, %v1063_v47  ;;  %v2306_v2 = vpack.c.bf16 %v6604_v50, %v6603_v43 }
 0x11e   : > { %2092 = vst.msk [vmem:[#allocation2 + $0x1f0] sm:$0xff] %vm2091_vm4, %v11312_v13  ;;  %v763_v59 = vsel %vm11377_vm2, 0, %v762_v33  ;;  %1065 = vst [vmem:[#allocation2 + $0xa8] sm:$0x1] %v1064_v40  ;;  %v2255_v46 = vld [vmem:[#allocation2 + $0x1b8] sm:$0x80] }
 0x11f   : > { %764 = vst [vmem:[#allocation2 + $0x40] sm:$0x80] %v763_v59  ;;  %2048 = vst [vmem:[#allocation2 + $0x10] sm:$0xff] %v2047_v5  ;;  %v2154_v60 = vpop.permute.xlu0 %2153  ;;  %v1720_v37 = vld [vmem:[#allocation2 + $0x70] sm:$0xff]  ;;  %v2346_v23 = vld [vmem:[#allocation2 + $0x198] sm:$0xff]  ;;  %v2256_v8 = vsel %vm11375_vm5, 0, %v2255_v46 }
 0x120   : > { %v1711_v21 = vld [vmem:[#allocation2 + $0x48] sm:$0xff]  ;;  %728 = vst.msk [vmem:[#allocation2 + $0x60] sm:$0xff] %vm11389_vm11, %v686_v24  ;;  %v8681_v41 = vsel %vm7933_vm10, %v2306_v2, %v2346_v23  ;;  %2257 = vst [vmem:[#allocation2 + $0x1b8] sm:$0x80] %v2256_v8  ;;  %v1654_v32 = vpop.permute.xlu1 %1653  ;;  %v2049_v44 = vld [vmem:[#allocation2 + $0x30] sm:$0xff]  ;;  %vm11391_vm11 = vcmask 916992  }
 0x121   : > { %v1712_v55 = vsel %vm8180_vm0, %v1652_v4, %v1711_v21  ;;  %v1806_v39 = vld [vmem:[#allocation2 + $0x50] sm:$0x1]  ;;  %2198 = vst.msk [vmem:[#allocation2 + $0x10] sm:$0xff] %vm2091_vm4, %v2154_v60  ;;  %v1505_v20 = vld [vmem:[#allocation2 + $0x68] sm:$0x80]  ;;  %2348 = vst [vmem:[#allocation2 + $0x198] sm:$0xff] %v8681_v41  ;;  %v1721_v56 = vsel %vm8110_vm7, %v1654_v32, %v1720_v37 }
 0x122   : > { %1713 = vst [vmem:[#allocation2 + $0x48] sm:$0xff] %v1712_v55  ;;  %v1807_v10 = vsel %vm8193_vm9, 0, %v1806_v39  ;;  %2738 = vmatprep.mubr.bf16.mxu0 %v1712_v55  ;;  %v6605_v9 = vld [vmem:[%s7374_s19 + $0xe1] sm:$0xff]  ;;  %v6606_v61 = vld [vmem:[%s7374_s19 + $0xe9] sm:$0x7f]  ;;  %v1506_v52 = vsel %vm8089_vm15, 0, %v1505_v20 }
 0x123   : > { %1808 = vst [vmem:[#allocation2 + $0x50] sm:$0x1] %v1807_v10  ;;  %v8690_v62 = vpop.permute.xlu0 %916  ;;  %1507 = vst [vmem:[#allocation2 + $0x68] sm:$0x80] %v1506_v52  ;;  %v2307_v4 = vpack.c.bf16 %v6606_v61, %v6605_v9  ;;  %v1318_v15 = vld [vmem:[#allocation2 + $0x88] sm:$0xff]  ;;  %v7090_v47 = vld [vmem:[#allocation2 + $0x38] sm:$0xff] }
 0x124   : > { %1722 = vst [vmem:[#allocation2 + $0x70] sm:$0xff] %v1721_v56  ;;  %v990_v30 = vsel %vm7904_vm1, %v8690_v62, %v989_v22  ;;  %v2002_v35 = vpop.permute.xlu1 %2001  ;;  %v2258_v17 = vld [vmem:[#allocation2 + $0x1d8] sm:$0x80]  ;;  %v6607_v3 = vld [vmem:[%s7374_s19 + $0xf1] sm:$0xff]  ;;  %v995_v46 = vld [vmem:[#allocation2 + $0xe8] sm:$0xff] }
 0x125   : > { %991 = vst [vmem:[#allocation2 + $0xc8] sm:$0xff] %v990_v30  ;;  %v2050_v38 = vsel %vm8649_vm8, %v2002_v35, %v2049_v44  ;;  %v2259_v50 = vsel %vm11375_vm5, 0, %v2258_v17  ;;  %v6608_v40 = vld [vmem:[%s7374_s19 + $0xf9] sm:$0x7f]  ;;  %v1726_v9 = vld [vmem:[#allocation2 + $0x90] sm:$0xff]  ;;  %v1321_v56 = vld [vmem:[#allocation2 + $0xa8] sm:$0xff] }
 0x126   : > { %v962_v58 = vld [vmem:[#allocation2 + $0x40] sm:$0xff]  ;;  %2051 = vst [vmem:[#allocation2 + $0x30] sm:$0xff] %v2050_v38  ;;  %2260 = vst [vmem:[#allocation2 + $0x1d8] sm:$0x80] %v2259_v50  ;;  %v2308_v39 = vpack.c.bf16 %v6608_v40, %v6607_v3  ;;  %v2073_v29 = vld [vmem:[#allocation2 + $0x130] sm:$0xff] }
 0x127   : > { %v963_v28 = vsel %vm8043_vm3, %v8374_v27, %v962_v58  ;;  %v768_v63 = vld [vmem:[#allocation2 + $0x60] sm:$0x80]  ;;  %v1265_v31 = vpop.permute.xlu0 %1264  ;;  %v2349_v43 = vld [vmem:[#allocation2 + $0x1b8] sm:$0xff]  ;;  %v2079_v49 = vld [vmem:[#allocation2 + $0x170] sm:$0xff] }
 0x128   : > { %964 = vst [vmem:[#allocation2 + $0x40] sm:$0xff] %v963_v28  ;;  %2739 = vmatmul.mubr.bf16.gmra.mrb[8].mxu0 %v963_v28  ;;  %v769_v7 = vsel %vm11377_vm2, 0, %v768_v63  ;;  %v2357_v1 = vld [vmem:[#allocation2 + $0x10] sm:$0xff]  ;;  %v1319_v27 = vsel %vm11366_vm14, %v1265_v31, %v1318_v15  ;;  %v8709_v33 = vsel %vm7933_vm10, %v2307_v4, %v2349_v43  ;;  %v2156_v6 = vpop.permute.xlu1 %2155  ;;  %v7091_v63 = vld [vmem:[#allocation2 + $0x58] sm:$0xff] }
 0x129   : > { %770 = vst [vmem:[#allocation2 + $0x60] sm:$0x80] %v769_v7  ;;  %2884 = vmatmul.mubr.bf16.vlgmr.msra.gmra.mrb[28].mxu1 %v2357_v1  ;;  %1320 = vst [vmem:[#allocation2 + $0x88] sm:$0xff] %v1319_v27 }
 0x12a   : > { %6638 = vmatprep.mubr.msk.bf16.mxu1 %vm11390_vm6, %v7090_v47  ;;  %2351 = vst [vmem:[#allocation2 + $0x1b8] sm:$0xff] %v8709_v33  ;;  %v1717_v59 = vld [vmem:[#allocation2 + $0x68] sm:$0xff]  ;;  %2199 = vst.msk [vmem:[#allocation2 + $0x30] sm:$0xff] %vm2091_vm4, %v2156_v6  ;;  %vm11392_vm6 = vcmask 785792   ;;  %v2052_v38 = vld [vmem:[#allocation2 + $0x50] sm:$0xff] }
 0x12b   : > { %v1809_v5 = vld [vmem:[#allocation2 + $0x70] sm:$0x1]  ;;  %v1427_v2 = vpop.permute.xlu0 %1426  ;;  %v1718_v24 = vsel %vm8180_vm0, %v1654_v32, %v1717_v59  ;;  %v2261_v32 = vld [vmem:[#allocation2 + $0x1f8] sm:$0x80]  ;;  %v1001_v59 = vld [vmem:[#allocation2 + $0x108] sm:$0xff] }
 0x12c   : > { %v1810_v21 = vsel %vm8193_vm9, 0, %v1809_v5  ;;  %v1066_v60 = vld [vmem:[#allocation2 + $0xc8] sm:$0x1]  ;;  %1471 = vst.msk [vmem:[#allocation2 + $0x88] sm:$0xff] %vm11391_vm11, %v1427_v2  ;;  %1719 = vst [vmem:[#allocation2 + $0x68] sm:$0xff] %v1718_v24  ;;  %2746 = vmatprep.mubr.bf16.mxu0 %v1718_v24  ;;  %v8722_v37 = vpop.permute.xlu1 %918  ;;  %v2262_v52 = vsel %vm11375_vm5, 0, %v2261_v32 }
 0x12d   : > { %1811 = vst [vmem:[#allocation2 + $0x70] sm:$0x1] %v1810_v21  ;;  %v1067_v55 = vsel %vm7726_vm13, 0, %v1066_v60  ;;  %v996_v8 = vsel %vm7904_vm1, %v8722_v37, %v995_v46  ;;  %v2352_v20 = vld [vmem:[#allocation2 + $0x1d8] sm:$0xff]  ;;  %2263 = vst [vmem:[#allocation2 + $0x1f8] sm:$0x80] %v2262_v52 }
 0x12e   : > { %1068 = vst [vmem:[#allocation2 + $0xc8] sm:$0x1] %v1067_v55  ;;  %997 = vst [vmem:[#allocation2 + $0xe8] sm:$0xff] %v996_v8  ;;  %v8733_v61 = vsel %vm7933_vm10, %v2308_v39, %v2352_v20  ;;  %vm11393_vm10 = vcmask 392192   ;;  %v1732_v6 = vld [vmem:[#allocation2 + $0xb0] sm:$0xff] }
 0x12f   : > { %v688_v10 = vpop.permute.xlu0 %687  ;;  %2354 = vst [vmem:[#allocation2 + $0x1d8] sm:$0xff] %v8733_v61  ;;  %vm11394_vm5 = vmmov %vm11391_vm11 }
 0x130   : > { %v968_v23 = vld [vmem:[#allocation2 + $0x60] sm:$0xff]  ;;  %729 = vst.msk [vmem:[#allocation2 + $0x80] sm:$0xff] %vm11392_vm6, %v688_v10  ;;  %v1267_v58 = vpop.permute.xlu1 %1266  ;;  %vm11395_vm11 = vmmov %vm11392_vm6 }
 0x131   : > { %v969_v22 = vsel %vm8043_vm3, %v8462_v36, %v968_v23  ;;  %v2361_v30 = vld [vmem:[#allocation2 + $0x30] sm:$0xff]  ;;  %v1322_v28 = vsel %vm11366_vm14, %v1267_v58, %v1321_v56  ;;  %v7092_v56 = vld [vmem:[#allocation2 + $0x78] sm:$0xff]  ;;  %vm11396_vm6 = vmmov %vm11393_vm10 }
 0x132   : > { %970 = vst [vmem:[#allocation2 + $0x60] sm:$0xff] %v969_v22  ;;  %2747 = vmatmul.mubr.bf16.gmra.mrb[12].mxu0 %v969_v22  ;;  %2892 = vmatmul.mubr.bf16.gmra.mrb[32].mxu1 %v2361_v30  ;;  %1323 = vst [vmem:[#allocation2 + $0xa8] sm:$0xff] %v1322_v28 }
 0x133   : > { %v1511_v36 = vld [vmem:[#allocation2 + $0x88] sm:$0x80]  ;;  %v1656_v4 = vpop.permute.xlu0 %1655  ;;  %6639 = vmatprep.mubr.msk.bf16.mxu1 %vm11393_vm10, %v7091_v63  ;;  %vm11397_vm10 = vmmov %vm11394_vm5  ;;  %v1738_v63 = vld [vmem:[#allocation2 + $0xd0] sm:$0xff] }
 0x134   : > { %v1512_v12 = vsel %vm8089_vm15, 0, %v1511_v36  ;;  %v1727_v11 = vsel %vm8110_vm7, %v1656_v4, %v1726_v9  ;;  %v1429_v35 = vpop.permute.xlu1 %1428  ;;  %v2055_v8 = vld [vmem:[#allocation2 + $0x70] sm:$0xff] }
 0x135   : > { %1513 = vst [vmem:[#allocation2 + $0x88] sm:$0x80] %v1512_v12  ;;  %1728 = vst [vmem:[#allocation2 + $0x90] sm:$0xff] %v1727_v11  ;;  %v1069_v44 = vld [vmem:[#allocation2 + $0xe8] sm:$0x1] }
 0x136   : > { %1472 = vst.msk [vmem:[#allocation2 + $0xa8] sm:$0xff] %vm11394_vm5, %v1429_v35  ;;  %v1070_v31 = vsel %vm7726_vm13, 0, %v1069_v44  ;;  %v1324_v32 = vld [vmem:[#allocation2 + $0xc8] sm:$0xff]  ;;  %vm11398_vm5 = vmmov %vm11395_vm11 }
 0x137   : > { %v774_v7 = vld [vmem:[#allocation2 + $0x80] sm:$0x80]  ;;  %v2004_v15 = vpop.permute.xlu0 %2003  ;;  %1071 = vst [vmem:[#allocation2 + $0xe8] sm:$0x1] %v1070_v31 }
 0x138   : > { %v775_v1 = vsel %vm11377_vm2, 0, %v774_v7  ;;  %v2053_v17 = vsel %vm8649_vm8, %v2004_v15, %v2052_v38  ;;  %v690_v27 = vpop.permute.xlu1 %689 }
 0x139   : > { %776 = vst [vmem:[#allocation2 + $0x80] sm:$0x80] %v775_v1  ;;  %2054 = vst [vmem:[#allocation2 + $0x50] sm:$0xff] %v2053_v17 }
 0x13a   : > { %730 = vst.msk [vmem:[#allocation2 + $0xa0] sm:$0xff] %vm11395_vm11, %v690_v27  ;;  %vm11400_vm11 = vmmov %vm11397_vm10 }
 0x13b   : > { %v2158_v43 = vpop.permute.xlu0 %2157 }
 0x13c   : > { %v1723_v50 = vld [vmem:[#allocation2 + $0x88] sm:$0xff]  ;;  %v1812_v47 = vld [vmem:[#allocation2 + $0x90] sm:$0x1]  ;;  %2200 = vst.msk [vmem:[#allocation2 + $0x50] sm:$0xff] %vm2091_vm4, %v2158_v43  ;;  %v1658_v2 = vpop.permute.xlu1 %1657 }
 0x13d   : > { %v1724_v3 = vsel %vm8180_vm0, %v1656_v4, %v1723_v50  ;;  %v1813_v40 = vsel %vm8193_vm9, 0, %v1812_v47  ;;  %v1517_v5 = vld [vmem:[#allocation2 + $0xa8] sm:$0x80]  ;;  %v1733_v21 = vsel %vm8110_vm7, %v1658_v2, %v1732_v6 }
 0x13e   : > { %1725 = vst [vmem:[#allocation2 + $0x88] sm:$0xff] %v1724_v3  ;;  %1814 = vst [vmem:[#allocation2 + $0x90] sm:$0x1] %v1813_v40  ;;  %2754 = vmatprep.mubr.bf16.mxu0 %v1724_v3  ;;  %v1518_v24 = vsel %vm8089_vm15, 0, %v1517_v5  ;;  %v1327_v50 = vld [vmem:[#allocation2 + $0xe8] sm:$0xff]  ;;  %v7093_v3 = vld [vmem:[#allocation2 + $0x98] sm:$0xff] }
 0x13f   : > { %v8762_v60 = vpop.permute.xlu0 %920  ;;  %1519 = vst [vmem:[#allocation2 + $0xa8] sm:$0x80] %v1518_v24  ;;  %1734 = vst [vmem:[#allocation2 + $0xb0] sm:$0xff] %v1733_v21 }
 0x140   : > { %v974_v46 = vld [vmem:[#allocation2 + $0x80] sm:$0xff]  ;;  %v1002_v55 = vsel %vm7904_vm1, %v8762_v60, %v1001_v59  ;;  %v2006_v10 = vpop.permute.xlu1 %2005 }
 0x141   : > { %v975_v39 = vsel %vm8043_vm3, %v8558_v14, %v974_v46  ;;  %1003 = vst [vmem:[#allocation2 + $0x108] sm:$0xff] %v1002_v55  ;;  %v780_v23 = vld [vmem:[#allocation2 + $0xa0] sm:$0x80]  ;;  %v2056_v20 = vsel %vm8649_vm8, %v2006_v10, %v2055_v8  ;;  %v1744_v46 = vld [vmem:[#allocation2 + $0xf0] sm:$0xff] }
 0x142   : > { %976 = vst [vmem:[#allocation2 + $0x80] sm:$0xff] %v975_v39  ;;  %2755 = vmatmul.mubr.bf16.gmra.mrb[16].mxu0 %v975_v39  ;;  %v781_v22 = vsel %vm11377_vm2, 0, %v780_v23  ;;  %2057 = vst [vmem:[#allocation2 + $0x70] sm:$0xff] %v2056_v20 }
 0x143   : > { %v1269_v9 = vpop.permute.xlu0 %1268  ;;  %v2365_v52 = vld [vmem:[#allocation2 + $0x50] sm:$0xff]  ;;  %782 = vst [vmem:[#allocation2 + $0xa0] sm:$0x80] %v781_v22 }
 0x144   : > { %v1325_v14 = vsel %vm11366_vm14, %v1269_v9, %v1324_v32  ;;  %2900 = vmatmul.mubr.bf16.gmra.mrb[36].mxu1 %v2365_v52  ;;  %v2160_v58 = vpop.permute.xlu1 %2159 }
 0x145   : > { %1326 = vst [vmem:[#allocation2 + $0xc8] sm:$0xff] %v1325_v14  ;;  %6640 = vmatprep.mubr.msk.bf16.mxu1 %vm11396_vm6, %v7092_v56  ;;  %2201 = vst.msk [vmem:[#allocation2 + $0x70] sm:$0xff] %vm2091_vm4, %v2160_v58  ;;  %v2058_v16 = vld [vmem:[#allocation2 + $0x90] sm:$0xff] }
 0x146   : > { %v1729_v30 = vld [vmem:[#allocation2 + $0xa8] sm:$0xff]  ;;  %v1815_v36 = vld [vmem:[#allocation2 + $0xb0] sm:$0x1] }
 0x147   : > { %v1431_v28 = vpop.permute.xlu0 %1430  ;;  %v1730_v4 = vsel %vm8180_vm0, %v1658_v2, %v1729_v30  ;;  %v1816_v12 = vsel %vm8193_vm9, 0, %v1815_v36 }
 0x148   : > { %v1072_v11 = vld [vmem:[#allocation2 + $0x108] sm:$0x1]  ;;  %1473 = vst.msk [vmem:[#allocation2 + $0xc8] sm:$0xff] %vm11397_vm10, %v1431_v28  ;;  %1731 = vst [vmem:[#allocation2 + $0xa8] sm:$0xff] %v1730_v4  ;;  %2762 = vmatprep.mubr.bf16.mxu0 %v1730_v4  ;;  %v1660_v44 = vpop.permute.xlu1 %1659  ;;  %v7094_v28 = vld [vmem:[#allocation2 + $0xb8] sm:$0xff] }
 0x149   : > { %1817 = vst [vmem:[#allocation2 + $0xb0] sm:$0x1] %v1816_v12  ;;  %v1073_v35 = vsel %vm7726_vm13, 0, %v1072_v11  ;;  %v1739_v38 = vsel %vm8110_vm7, %v1660_v44, %v1738_v63  ;;  %vm11399_vm13 = vmmov %vm11396_vm6 }
 0x14a   : > { %1074 = vst [vmem:[#allocation2 + $0x108] sm:$0x1] %v1073_v35  ;;  %v980_v7 = vld [vmem:[#allocation2 + $0xa0] sm:$0xff]  ;;  %1740 = vst [vmem:[#allocation2 + $0xd0] sm:$0xff] %v1739_v38 }
 0x14b   : > { %v692_v15 = vpop.permute.xlu0 %691  ;;  %v981_v31 = vsel %vm8043_vm3, %v8619_v54, %v980_v7  ;;  %vm11401_vm6 = vmmov %vm11398_vm5  ;;  %v1750_v7 = vld [vmem:[#allocation2 + $0x110] sm:$0xff] }
 0x14c   : > { %731 = vst.msk [vmem:[#allocation2 + $0xc0] sm:$0xff] %vm11398_vm5, %v692_v15  ;;  %982 = vst [vmem:[#allocation2 + $0xa0] sm:$0xff] %v981_v31  ;;  %2763 = vmatmul.mubr.bf16.gmra.mrb[20].mxu0 %v981_v31  ;;  %v2008_v1 = vpop.permute.xlu1 %2007  ;;  %v2369_v17 = vld [vmem:[#allocation2 + $0x70] sm:$0xff] }
 0x14d   : > { %v2059_v43 = vsel %vm8649_vm8, %v2008_v1, %v2058_v16  ;;  %2908 = vmatmul.mubr.bf16.gmra.mrb[40].mxu1 %v2369_v17  ;;  %vm11402_vm10 = vmmov %vm11399_vm13 }
 0x14e   : > { %2060 = vst [vmem:[#allocation2 + $0x90] sm:$0xff] %v2059_v43  ;;  %6641 = vmatprep.mubr.msk.bf16.mxu1 %vm11399_vm13, %v7093_v3 }
 0x14f   : > { %v1523_v27 = vld [vmem:[#allocation2 + $0xc8] sm:$0x80]  ;;  %v1271_v47 = vpop.permute.xlu0 %1270 }
 0x150   : > { %v1524_v6 = vsel %vm8089_vm15, 0, %v1523_v27  ;;  %v1328_v54 = vsel %vm11366_vm14, %v1271_v47, %v1327_v50  ;;  %v2162_v40 = vpop.permute.xlu1 %2161  ;;  %v2061_v22 = vld [vmem:[#allocation2 + $0xb0] sm:$0xff] }
 0x151   : > { %1525 = vst [vmem:[#allocation2 + $0xc8] sm:$0x80] %v1524_v6  ;;  %1329 = vst [vmem:[#allocation2 + $0xe8] sm:$0xff] %v1328_v54  ;;  %v1818_v59 = vld [vmem:[#allocation2 + $0xd0] sm:$0x1]  ;;  %v1330_v14 = vld [vmem:[#allocation2 + $0x108] sm:$0xff] }
 0x152   : > { %2202 = vst.msk [vmem:[#allocation2 + $0x90] sm:$0xff] %vm2091_vm4, %v2162_v40  ;;  %v1819_v24 = vsel %vm8193_vm9, 0, %v1818_v59  ;;  %v7095_v54 = vld [vmem:[#allocation2 + $0xd8] sm:$0xff] }
 0x153   : > { %v786_v5 = vld [vmem:[#allocation2 + $0xc0] sm:$0x80]  ;;  %v1433_v2 = vpop.permute.xlu0 %1432  ;;  %1820 = vst [vmem:[#allocation2 + $0xd0] sm:$0x1] %v1819_v24 }
 0x154   : > { %v787_v21 = vsel %vm11377_vm2, 0, %v786_v5  ;;  %1474 = vst.msk [vmem:[#allocation2 + $0xe8] sm:$0xff] %vm11400_vm11, %v1433_v2  ;;  %v1662_v55 = vpop.permute.xlu1 %1661 }
 0x155   : > { %788 = vst [vmem:[#allocation2 + $0xc0] sm:$0x80] %v787_v21  ;;  %v1745_v39 = vsel %vm8110_vm7, %v1662_v55, %v1744_v46 }
 0x156   : > { %1746 = vst [vmem:[#allocation2 + $0xf0] sm:$0xff] %v1745_v39 }
 0x157   : > { %v694_v23 = vpop.permute.xlu0 %693 }
 0x158   : > { %v1735_v8 = vld [vmem:[#allocation2 + $0xc8] sm:$0xff]  ;;  %732 = vst.msk [vmem:[#allocation2 + $0xe0] sm:$0xff] %vm11401_vm6, %v694_v23  ;;  %v2010_v20 = vpop.permute.xlu1 %2009  ;;  %vm11420_vm6 = vnez %v11335_v48 }
 0x159   : > { %v1736_v10 = vsel %vm8180_vm0, %v1660_v44, %v1735_v8  ;;  %v2373_v32 = vld [vmem:[#allocation2 + $0x90] sm:$0xff]  ;;  %v2062_v52 = vsel %vm8649_vm8, %v2010_v20, %v2061_v22 }
 0x15a   : > { %1737 = vst [vmem:[#allocation2 + $0xc8] sm:$0xff] %v1736_v10  ;;  %2770 = vmatprep.mubr.bf16.mxu0 %v1736_v10  ;;  %2916 = vmatmul.mubr.bf16.gmra.mrb[44].mxu1 %v2373_v32  ;;  %2063 = vst [vmem:[#allocation2 + $0xb0] sm:$0xff] %v2062_v52  ;;  %v2064_v27 = vld [vmem:[#allocation2 + $0xd0] sm:$0xff]  ;;  %v7096_v10 = vld [vmem:[#allocation2 + $0xf8] sm:$0xff] }
 0x15b   : > { %v1529_v9 = vld [vmem:[#allocation2 + $0xe8] sm:$0x80]  ;;  %v1273_v56 = vpop.permute.xlu0 %1272  ;;  %6642 = vmatprep.mubr.msk.bf16.mxu1 %vm11402_vm10, %v7094_v28 }
 0x15c   : > { %v986_v58 = vld [vmem:[#allocation2 + $0xc0] sm:$0xff]  ;;  %v1530_v30 = vsel %vm8089_vm15, 0, %v1529_v9  ;;  %v1331_v36 = vsel %vm11366_vm14, %v1273_v56, %v1330_v14  ;;  %v2164_v12 = vpop.permute.xlu1 %2163  ;;  %vm11403_vm14 = vmmov %vm11400_vm11  ;;  %v2076_v14 = vld [vmem:[#allocation2 + $0x150] sm:$0xff] }
 0x15d   : > { %v987_v4 = vsel %vm8043_vm3, %v8690_v62, %v986_v58  ;;  %1531 = vst [vmem:[#allocation2 + $0xe8] sm:$0x80] %v1530_v30  ;;  %1332 = vst [vmem:[#allocation2 + $0x108] sm:$0xff] %v1331_v36  ;;  %v1821_v11 = vld [vmem:[#allocation2 + $0xf0] sm:$0x1] }
 0x15e   : > { %988 = vst [vmem:[#allocation2 + $0xc0] sm:$0xff] %v987_v4  ;;  %2771 = vmatmul.mubr.bf16.gmra.mrb[24].mxu0 %v987_v4  ;;  %2203 = vst.msk [vmem:[#allocation2 + $0xb0] sm:$0xff] %vm2091_vm4, %v2164_v12  ;;  %v1822_v53 = vsel %vm8193_vm9, 0, %v1821_v11  ;;  %v2082_v12 = vld [vmem:[#allocation2 + $0x190] sm:$0xff] }
 0x15f   : > { %v792_v63 = vld [vmem:[#allocation2 + $0xe0] sm:$0x80]  ;;  %v1435_v35 = vpop.permute.xlu0 %1434  ;;  %1823 = vst [vmem:[#allocation2 + $0xf0] sm:$0x1] %v1822_v53 }
 0x160   : > { %v793_v44 = vsel %vm11377_vm2, 0, %v792_v63  ;;  %1475 = vst.msk [vmem:[#allocation2 + $0x108] sm:$0xff] %vm11403_vm14, %v1435_v35  ;;  %v1664_v62 = vpop.permute.xlu1 %1663 }
 0x161   : > { %794 = vst [vmem:[#allocation2 + $0xe0] sm:$0x80] %v793_v44  ;;  %v1751_v15 = vsel %vm8110_vm7, %v1664_v62, %v1750_v7  ;;  %vm11404_vm7 = vmmov %vm11402_vm10  ;;  %v2085_v44 = vld [vmem:[#allocation2 + $0x1b0] sm:$0xff] }
 0x162   : > { %1752 = vst [vmem:[#allocation2 + $0x110] sm:$0xff] %v1751_v15 }
 0x163   : > { %v696_v38 = vpop.permute.xlu0 %695 }
 0x164   : > { %v1741_v31 = vld [vmem:[#allocation2 + $0xe8] sm:$0xff]  ;;  %733 = vst.msk [vmem:[#allocation2 + $0x100] sm:$0xff] %vm11398_vm5, %v696_v38  ;;  %v2166_v50 = vpop.permute.xlu1 %2165  ;;  %v2088_v38 = vld [vmem:[#allocation2 + $0x1d0] sm:$0xff] }
 0x165   : > { %v1742_v1 = vsel %vm8180_vm0, %v1662_v55, %v1741_v31  ;;  %v2377_v16 = vld [vmem:[#allocation2 + $0xb0] sm:$0xff] }
 0x166   : > { %1743 = vst [vmem:[#allocation2 + $0xe8] sm:$0xff] %v1742_v1  ;;  %2778 = vmatprep.mubr.bf16.mxu0 %v1742_v1  ;;  %2924 = vmatmul.mubr.bf16.gmra.mrb[48].mxu1 %v2377_v16  ;;  %v2067_v25 = vld [vmem:[#allocation2 + $0xf0] sm:$0xff] }
 0x167   : > { %v1535_v17 = vld [vmem:[#allocation2 + $0x108] sm:$0x80]  ;;  %v2012_v43 = vpop.permute.xlu0 %2011  ;;  %6643 = vmatprep.mubr.msk.bf16.mxu1 %vm11404_vm7, %v7095_v54 }
 0x168   : > { %v992_v47 = vld [vmem:[#allocation2 + $0xe0] sm:$0xff]  ;;  %v1536_v34 = vsel %vm8089_vm15, 0, %v1535_v17  ;;  %v2065_v6 = vsel %vm8649_vm8, %v2012_v43, %v2064_v27  ;;  %v2168_v2 = vpop.permute.xlu1 %2167 }
 0x169   : > { %v993_v3 = vsel %vm8043_vm3, %v8722_v37, %v992_v47  ;;  %1537 = vst [vmem:[#allocation2 + $0x108] sm:$0x80] %v1536_v34  ;;  %2066 = vst [vmem:[#allocation2 + $0xd0] sm:$0xff] %v2065_v6  ;;  %v1824_v59 = vld [vmem:[#allocation2 + $0x110] sm:$0x1]  ;;  %v2418_v34 = vld [vmem:[#allocation2 + $0x1f8] sm:$0xff] }
 0x16a   : > { %994 = vst [vmem:[#allocation2 + $0xe0] sm:$0xff] %v993_v3  ;;  %2204 = vst.msk [vmem:[#allocation2 + $0xd0] sm:$0xff] %vm2091_vm4, %v2166_v50  ;;  %2779 = vmatmul.mubr.bf16.gmra.mrb[28].mxu0 %v993_v3  ;;  %v1825_v21 = vsel %vm8193_vm9, 0, %v1824_v59 }
 0x16b   : > { %v798_v40 = vld [vmem:[#allocation2 + $0x100] sm:$0x80]  ;;  %v2014_v5 = vpop.permute.xlu0 %2013  ;;  %1826 = vst [vmem:[#allocation2 + $0x110] sm:$0x1] %v1825_v21  ;;  %vm11405_vm9 = vmmov %vm11404_vm7 }
 0x16c   : > { %v799_v24 = vsel %vm11377_vm2, 0, %v798_v40  ;;  %v2068_v37 = vsel %vm8649_vm8, %v2014_v5, %v2067_v25  ;;  %v2170_v55 = vpop.permute.xlu1 %2169 }
 0x16d   : > { %800 = vst [vmem:[#allocation2 + $0x100] sm:$0x80] %v799_v24  ;;  %2069 = vst [vmem:[#allocation2 + $0xf0] sm:$0xff] %v2068_v37 }
 0x16e   : > { %2205 = vst.msk [vmem:[#allocation2 + $0xf0] sm:$0xff] %vm2091_vm4, %v2168_v2 }
 0x16f   : > { %v2016_v46 = vpop.permute.xlu0 %2015 }
 0x170   : > { %v1747_v39 = vld [vmem:[#allocation2 + $0x108] sm:$0xff] }
 0x171   : > { %v1748_v23 = vsel %vm8180_vm0, %v1664_v62, %v1747_v39  ;;  %v2381_v8 = vld [vmem:[#allocation2 + $0xd0] sm:$0xff]  ;;  %v2172_v22 = vpop.permute.xlu1 %2171 }
 0x172   : > { %1749 = vst [vmem:[#allocation2 + $0x108] sm:$0xff] %v1748_v23  ;;  %2932 = vmatmul.mubr.bf16.gmra.mrb[52].mxu1 %v2381_v8  ;;  %2786 = vmatprep.mubr.bf16.mxu0 %v1748_v23  ;;  %v2070_v32 = vld [vmem:[#allocation2 + $0x110] sm:$0xff] }
 0x173   : > { %v2018_v26 = vpop.permute.xlu0 %2017  ;;  %6644 = vmatprep.mubr.msk.bf16.mxu1 %vm11405_vm9, %v7096_v10  ;;  %v2071_v52 = vsel %vm8649_vm8, %v2016_v46, %v2070_v32 }
 0x174   : > { %v998_v20 = vld [vmem:[#allocation2 + $0x100] sm:$0xff]  ;;  %v2074_v9 = vsel %vm8649_vm8, %v2018_v26, %v2073_v29  ;;  %2072 = vst [vmem:[#allocation2 + $0x110] sm:$0xff] %v2071_v52 }
 0x175   : > { %v999_v18 = vsel %vm8043_vm3, %v8762_v60, %v998_v20  ;;  %2075 = vst [vmem:[#allocation2 + $0x130] sm:$0xff] %v2074_v9  ;;  %2206 = vst.msk [vmem:[#allocation2 + $0x110] sm:$0xff] %vm2091_vm4, %v2170_v55  ;;  %v2385_v58 = vld [vmem:[#allocation2 + $0xf0] sm:$0xff]  ;;  %v2174_v30 = vpop.permute.xlu1 %2173 }
 0x176   : > { %1000 = vst [vmem:[#allocation2 + $0x100] sm:$0xff] %v999_v18  ;;  %2787 = vmatmul.mubr.bf16.gmra.mrb[32].mxu0 %v999_v18  ;;  %2207 = vst.msk [vmem:[#allocation2 + $0x130] sm:$0xff] %vm2091_vm4, %v2172_v22 }
 0x177   : > { %v2020_v56 = vpop.permute.xlu0 %2019  ;;  %vm11406_vm3 = vmmov %vm11404_vm7  ;;  %vm11421_vm7 = vcmask 130048  }
 0x178   : > { %v2077_v36 = vsel %vm8649_vm8, %v2020_v56, %v2076_v14  ;;  %vm11407_vm15 = vmmov %vm11406_vm3 }
 0x179   : > { %2078 = vst [vmem:[#allocation2 + $0x150] sm:$0xff] %v2077_v36  ;;  %v2176_v28 = vpop.permute.xlu1 %2175  ;;  %vm11408_vm0 = vmmov %vm11406_vm3 }
 0x17a   : > { %2940 = vmatmul.mubr.bf16.gmra.mrb[56].mxu1 %v2385_v58  ;;  %2208 = vst.msk [vmem:[#allocation2 + $0x150] sm:$0xff] %vm2091_vm4, %v2174_v30  ;;  %vm11409_vm2 = vmmov %vm11408_vm0 }
 0x17b   : > { %v2022_v60 = vpop.permute.xlu0 %2021  ;;  %6645 = vmatprep.mubr.msk.bf16.mxu1 %vm11406_vm3, %v8526_v57  ;;  %vm11410_vm13 = vmmov %vm11408_vm0 }
 0x17c   : > { %v2080_v4 = vsel %vm8649_vm8, %v2022_v60, %v2079_v49  ;;  %v2389_v63 = vld [vmem:[#allocation2 + $0x110] sm:$0xff]  ;;  %vm11413_vm11 = vmmov %vm11408_vm0 }
 0x17d   : > { %2081 = vst [vmem:[#allocation2 + $0x170] sm:$0xff] %v2080_v4  ;;  %v2178_v35 = vpop.permute.xlu1 %2177  ;;  %v2393_v31 = vld [vmem:[#allocation2 + $0x130] sm:$0xff]  ;;  %vm11422_vm3 = vmmov %vm11421_vm7 }
 0x17e   : > { %2209 = vst.msk [vmem:[#allocation2 + $0x170] sm:$0xff] %vm2091_vm4, %v2176_v28 }
 0x17f   : > { %v2024_v11 = vpop.permute.xlu0 %2023 }
 0x180   : > { %v2083_v53 = vsel %vm8649_vm8, %v2024_v11, %v2082_v12 }
 0x181   : > { %2084 = vst [vmem:[#allocation2 + $0x190] sm:$0xff] %v2083_v53  ;;  %v2180_v7 = vpop.permute.xlu1 %2179 }
 0x182   : > { %2948 = vmatmul.mubr.bf16.gmra.mrb[60].mxu1 %v2389_v63  ;;  %2210 = vst.msk [vmem:[#allocation2 + $0x190] sm:$0xff] %vm2091_vm4, %v2178_v35 }
 0x183   : > { %v2026_v57 = vpop.permute.xlu0 %2025  ;;  %6646 = vmatprep.mubr.msk.bf16.mxu1 %vm11407_vm15, %v8578_v0  ;;  %v2397_v0 = vld [vmem:[#allocation2 + $0x150] sm:$0xff] }
 0x184   : > { %v2086_v62 = vsel %vm8649_vm8, %v2026_v57, %v2085_v44 }
 0x185   : > { %2087 = vst [vmem:[#allocation2 + $0x1b0] sm:$0xff] %v2086_v62  ;;  %v2182_v1 = vpop.permute.xlu1 %2181  ;;  %v2401_v17 = vld [vmem:[#allocation2 + $0x170] sm:$0xff] }
 0x186   : > { %2211 = vst.msk [vmem:[#allocation2 + $0x1b0] sm:$0xff] %vm2091_vm4, %v2180_v7  ;;  %v5505_v7 = vld [vmem:[#allocation4 + $0x8] sm:$0x80] }
 0x187   : > { %v2028_v15 = vpop.permute.xlu0 %2027 }
 0x188   : > { %v2089_v16 = vsel %vm8649_vm8, %v2028_v15, %v2088_v38  ;;  %vm11411_vm8 = vmmov %vm11408_vm0  ;;  %v5506_v38 = vsel %vm11420_vm6, 0, %v5505_v7 }
 0x189   : > { %2090 = vst [vmem:[#allocation2 + $0x1d0] sm:$0xff] %v2089_v16  ;;  %v2405_v27 = vld [vmem:[#allocation2 + $0x190] sm:$0xff]  ;;  %5507 = vst [vmem:[#allocation4 + $0x8] sm:$0x80] %v5506_v38 }
 0x18a   : > { %2956 = vmatmul.mubr.bf16.gmra.mrb[64].mxu1 %v2393_v31  ;;  %2212 = vst.msk [vmem:[#allocation2 + $0x1d0] sm:$0xff] %vm2091_vm4, %v2182_v1  ;;  %vm11412_vm4 = vmmov %vm11408_vm0 }
 0x18b   : > { %6647 = vmatprep.mubr.msk.bf16.mxu1 %vm11408_vm0, %v8613_v19 }
 0x18d   : > { %v2409_v42 = vld [vmem:[#allocation2 + $0x1b0] sm:$0xff] }
 0x191   : > { %v2413_v43 = vld [vmem:[#allocation2 + $0x1d0] sm:$0xff] }
 0x192   : > { %2964 = vmatmul.mubr.bf16.gmra.mrb[68].mxu1 %v2397_v0 }
 0x193   : > { %6648 = vmatprep.mubr.msk.bf16.mxu1 %vm11409_vm2, %v8657_v45 }
 0x19a   : > { %2972 = vmatmul.mubr.bf16.gmra.mrb[72].mxu1 %v2401_v17 }
 0x19b   : > { %6649 = vmatprep.mubr.msk.bf16.mxu1 %vm11410_vm13, %v8681_v41 }
 0x1a2   : > { %2980 = vmatmul.mubr.bf16.gmra.mrb[76].mxu1 %v2405_v27  ;;  %v8921_v27 = vld [vmem:[%s11288_s2] ss:$0 sm:$0xff] }
 0x1a3   : > { %6650 = vmatprep.mubr.msk.bf16.mxu1 %vm11411_vm8, %v8709_v33  ;;  %v2417_v33 = vld [vmem:[#allocation2 + $0x1f0] sm:$0xff]  ;;  %vm11423_vm8 = vmmov %vm11422_vm3 }
 0x1aa   : > { %2988 = vmatmul.mubr.bf16.gmra.mrb[80].mxu1 %v2409_v42 }
 0x1ab   : > { %6651 = vmatprep.mubr.msk.bf16.mxu1 %vm11412_vm4, %v8733_v61  ;;  %vm11425_vm4 = vmmov %vm11422_vm3 }
 0x1ac   : > { %v6760_v19 = vpop.f32.mrb[0].mxu1 }
 0x1ad   : > { %v6761_v50 = vpop.f32.mrb[1].mxu1 }
 0x1ae   : > { %v8887_v47 = vadd.f32 %v6761_v50, %v6760_v19  ;;  %v6763_v45 = vpop.f32.mrb[2].mxu1 }
 0x1af   : > { %v6764_v6 = vpop.f32.mrb[3].mxu1 }
 0x1b0   : > { %v8889_v41 = vadd.f32 %v6764_v6, %v6763_v45 }
 0x1b2   : > { %2996 = vmatmul.mubr.bf16.gmra.mrb[84].mxu1 %v2413_v43 }
 0x1b3   : > { %6652 = vmatprep.mubr.msk.bf16.mxu1 %vm11413_vm11, %v2418_v34 }
 0x1b4   : > { %v6766_v54 = vpop.f32.mrb[4].mxu1 }
 0x1b5   : > { %v6767_v3 = vpop.f32.mrb[5].mxu1 }
 0x1b6   : > { %v8892_v40 = vadd.f32 %v6767_v3, %v6766_v54  ;;  %v6769_v59 = vpop.f32.mrb[6].mxu1 }
 0x1b7   : > { %v6770_v61 = vpop.f32.mrb[7].mxu1 }
 0x1b8   : > { %v8894_v25 = vadd.f32 %v6770_v61, %v6769_v59 }
 0x1ba   : > { %3004 = vmatmul.mubr.bf16.gmra.mrb[88].mxu1 %v2417_v33 }
 0x1bd   : > { %v6772_v5 = vpop.f32.mrb[8].mxu1 }
 0x1be   : > { %v6773_v2 = vpop.f32.mrb[9].mxu1 }
 0x1bf   : > { %v8896_v24 = vadd.f32 %v6773_v2, %v6772_v5  ;;  %v6775_v21 = vpop.f32.mrb[10].mxu1 }
 0x1c0   : > { %v6776_v37 = vpop.f32.mrb[11].mxu1 }
 0x1c1   : > { %v8898_v46 = vadd.f32 %v6776_v37, %v6775_v21 }
 0x1c5   : > { %v6778_v55 = vpop.f32.mrb[12].mxu1 }
 0x1c6   : > { %v6779_v39 = vpop.f32.mrb[13].mxu1 }
 0x1c7   : > { %v8900_v23 = vadd.f32 %v6779_v39, %v6778_v55  ;;  %v6781_v8 = vpop.f32.mrb[14].mxu1 }
 0x1c8   : > { %v6782_v29 = vpop.f32.mrb[15].mxu1 }
 0x1c9   : > { %v8902_v26 = vadd.f32 %v6782_v29, %v6781_v8 }
 0x1ce   : > { %v6784_v10 = vpop.f32.mrb[16].mxu1 }
 0x1cf   : > { %v6785_v22 = vpop.f32.mrb[17].mxu1 }
 0x1d0   : > { %v8904_v20 = vadd.f32 %v6785_v22, %v6784_v10  ;;  %v6787_v32 = vpop.f32.mrb[18].mxu1 }
 0x1d1   : > { %v6788_v9 = vpop.f32.mrb[19].mxu1 }
 0x1d2   : > { %11414 = vst [vmem:[#allocation12_spill] sm:$0xff] %v8904_v20  ;;  %v8906_v18 = vadd.f32 %v6788_v9, %v6787_v32 }
 0x1d4   : > { %11415 = vst [vmem:[#allocation13_spill] sm:$0xff] %v8906_v18 }
 0x1da   : > { %v6790_v52 = vpop.f32.mrb[20].mxu1 }
 0x1db   : > { %v6791_v14 = vpop.f32.mrb[21].mxu1 }
 0x1dc   : > { %v8908_v56 = vadd.f32 %v6791_v14, %v6790_v52  ;;  %v6793_v58 = vpop.f32.mrb[22].mxu1 }
 0x1dd   : > { %v6794_v30 = vpop.f32.mrb[23].mxu1 }
 0x1de   : > { %11416 = vst [vmem:[#allocation14_spill] sm:$0xff] %v8908_v56  ;;  %v8910_v36 = vadd.f32 %v6794_v30, %v6793_v58 }
 0x1e0   : > { %11417 = vst [vmem:[#allocation15_spill] sm:$0xff] %v8910_v36 }
 0x1e4   : > { %v6706_v49 = vpop.f32.mrb[0].mxu0 }
 0x1e5   : > { %v6707_v60 = vpop.f32.mrb[1].mxu0  ;;  %v6796_v12 = vpop.f32.mrb[24].mxu1 }
 0x1e6   : > { %v6708_v28 = vadd.f32 %v6707_v60, %v6706_v49  ;;  %v6709_v4 = vpop.f32.mrb[2].mxu0  ;;  %v6797_v63 = vpop.f32.mrb[25].mxu1 }
 0x1e7   : > { %v6710_v11 = vpop.f32.mrb[3].mxu0  ;;  %v8912_v53 = vadd.f32 %v6797_v63, %v6796_v12  ;;  %v6799_v44 = vpop.f32.mrb[26].mxu1 }
 0x1e8   : > { %v6711_v35 = vadd.f32 %v6710_v11, %v6709_v4  ;;  %v6800_v57 = vpop.f32.mrb[27].mxu1  ;;  %v2725_v42 = vadd.f32 %v6708_v28, %v8921_v27 }
 0x1e9   : > { %11418 = vst [vmem:[#allocation16_spill] sm:$0xff] %v8912_v53  ;;  %v8914_v62 = vadd.f32 %v6800_v57, %v6799_v44 }
 0x1ea   : > { %v2728_v43 = vadd.f32 %v6711_v35, %v8921_v27 }
 0x1eb   : > { %11419 = vst [vmem:[#allocation17_spill] sm:$0xff] %v8914_v62 }
 0x1ef   : > { %v6712_v15 = vpop.f32.mrb[4].mxu0 }
 0x1f0   : > { %v6713_v31 = vpop.f32.mrb[5].mxu0 }
 0x1f1   : > { %v6714_v1 = vadd.f32 %v6713_v31, %v6712_v15  ;;  %v6715_v16 = vpop.f32.mrb[6].mxu0 }
 0x1f2   : > { %v6716_v0 = vpop.f32.mrb[7].mxu0 }
 0x1f3   : > { %v6717_v17 = vadd.f32 %v6716_v0, %v6715_v16  ;;  %v2733_v32 = vadd.f32 %v6714_v1, %v8921_v27 }
 0x1f5   : > { %v2736_v60 = vadd.f32 %v6717_v17, %v8921_v27 }
 0x1fb   : > { %v6718_v19 = vpop.f32.mrb[8].mxu0 }
 0x1fc   : > { %v6719_v50 = vpop.f32.mrb[9].mxu0  ;;  %v2885_v45 = vpop.f32.mrb[28].mxu1 }
 0x1fd   : > { %v6720_v34 = vadd.f32 %v6719_v50, %v6718_v19  ;;  %v6721_v6 = vpop.f32.mrb[10].mxu0  ;;  %v8925_v54 = vadd.f32 %v2885_v45, %v2725_v42  ;;  %v2887_v33 = vpop.f32.mrb[29].mxu1 }
 0x1fe   : > { %v6722_v3 = vpop.f32.mrb[11].mxu0  ;;  %v2888_v59 = vpop.f32.mrb[30].mxu1 }
 0x1ff   : > { %v6723_v61 = vadd.f32 %v6722_v3, %v6721_v6  ;;  %v8928_v5 = vmul.f32 0.70710677, %v8925_v54  ;;  %v8930_v2 = vadd.f32 %v2888_v59, %v2728_v43  ;;  %v2890_v21 = vpop.f32.mrb[31].mxu1 }
 0x201   : > { %v3076_v37 = vand.u32 2147483647, %v8928_v5  ;;  %v8934_v55 = vmul.f32 0.70710677, %v8930_v2  ;;  %vm3716_vm10 = vcmp.lt.f32.partialorder %v8928_v5, 0.0 }
 0x203   : > { %v3108_v39 = vmul.f32 0.3275911, %v3076_v37  ;;  %v3077_v8 = vand.u32 2147483647, %v8934_v55  ;;  %v3524_v38 = vmul.f32 %v3076_v37, %v3076_v37  ;;  %vm3717_vm14 = vcmp.lt.f32.partialorder %v8934_v55, 0.0 }
 0x205   : > { %v3140_v29 = vadd.f32 1.0, %v3108_v39  ;;  %v3109_v10 = vmul.f32 0.3275911, %v3077_v8  ;;  %v6724_v22 = vpop.f32.mrb[12].mxu0  ;;  %v2893_v14 = vpop.f32.mrb[32].mxu1  ;;  %v3525_v1 = vmul.f32 %v3077_v8, %v3077_v8  ;;  %v3556_v42 = vsub.f32 0.0, %v3524_v38 }
 0x206   : > { %v6725_v9 = vpop.f32.mrb[13].mxu0  ;;  %v8938_v30 = vadd.f32 %v2893_v14, %v2733_v32  ;;  %v2895_v49 = vpop.f32.mrb[33].mxu1  ;;  %v2741_v8 = vadd.f32 %v6720_v34, %v8921_v27 }
 0x207   : > { %6953 = vrcp.f32 %v3140_v29  ;;  %v3141_v52 = vadd.f32 1.0, %v3109_v10  ;;  %v6727_v58 = vpop.f32.mrb[14].mxu0  ;;  %v8941_v28 = vadd.f32 %v6725_v9, %v6724_v22  ;;  %v2896_v12 = vpop.f32.mrb[34].mxu1  ;;  %v3557_v6 = vsub.f32 0.0, %v3525_v1 }
 0x208   : > { %v6728_v4 = vpop.f32.mrb[15].mxu0  ;;  %v8946_v63 = vmul.f32 0.70710677, %v8938_v30  ;;  %v8948_v35 = vadd.f32 %v2896_v12, %v2736_v60  ;;  %v2898_v44 = vpop.f32.mrb[35].mxu1  ;;  %v3588_v33 = vmul.f32 1.442695, %v3556_v42  ;;  %v2744_v9 = vadd.f32 %v6723_v61, %v8921_v27 }
 0x209   : > { %v8943_v11 = vadd.f32 %v6728_v4, %v6727_v58  ;;  %6955 = vrcp.f32 %v3141_v52  ;;  %v3590_v22 = vmul.f32 1.442695, %v3557_v6 }
 0x20a   : > { %v3078_v57 = vand.u32 2147483647, %v8946_v63  ;;  %v8952_v7 = vmul.f32 0.70710677, %v8948_v35  ;;  %vm3718_vm5 = vcmp.lt.f32.partialorder %v8946_v63, 0.0 }
 0x20c   : > { %v3110_v15 = vmul.f32 0.3275911, %v3078_v57  ;;  %v3079_v31 = vand.u32 2147483647, %v8952_v7  ;;  %v3526_v21 = vmul.f32 %v3078_v57, %v3078_v57  ;;  %vm3719_vm9 = vcmp.lt.f32.partialorder %v8952_v7, 0.0 }
 0x20e   : > { %v3142_v16 = vadd.f32 1.0, %v3110_v15  ;;  %v3111_v0 = vmul.f32 0.3275911, %v3079_v31  ;;  %v3527_v49 = vmul.f32 %v3079_v31, %v3079_v31  ;;  %v3558_v57 = vsub.f32 0.0, %v3526_v21 }
 0x20f   : > { %v8975_v31 = vmul.f32 0.5, %v8925_v54 }
 0x210   : > { %6957 = vrcp.f32 %v3142_v16  ;;  %v3143_v43 = vadd.f32 1.0, %v3111_v0 }
 0x211   : > { %v6954_v17 = vpop.eup %6953 }
 0x212   : > { %v3236_v19 = vmul.f32 1.0614054, %v6954_v17  ;;  %6959 = vrcp.f32 %v3143_v43 }
 0x213   : > { %v8955_v50 = vpop.eup %6955  ;;  %6961 = vpow2.f32 %v3588_v33 }
 0x214   : > { %v3268_v45 = vadd.f32 -1.4531521, %v3236_v19  ;;  %v3237_v3 = vmul.f32 1.0614054, %v8955_v50  ;;  %6963 = vpow2.f32 %v3590_v22 }
 0x215   : > { %v6730_v37 = vpop.f32.mrb[16].mxu0 }
 0x216   : > { %v3300_v59 = vmul.f32 %v6954_v17, %v3268_v45  ;;  %v3269_v39 = vadd.f32 -1.4531521, %v3237_v3  ;;  %v6731_v29 = vpop.f32.mrb[17].mxu0  ;;  %v3559_v45 = vsub.f32 0.0, %v3527_v49  ;;  %v8981_v3 = vmul.f32 0.5, %v8930_v2 }
 0x217   : > { %v2901_v32 = vpop.f32.mrb[36].mxu1  ;;  %v8960_v52 = vadd.f32 %v6731_v29, %v6730_v37  ;;  %v6733_v14 = vpop.f32.mrb[18].mxu0 }
 0x218   : > { %v3332_v10 = vadd.f32 1.4214138, %v3300_v59  ;;  %v3301_v58 = vmul.f32 %v8955_v50, %v3269_v39  ;;  %v8963_v60 = vadd.f32 %v2901_v32, %v2741_v8  ;;  %v2903_v4 = vpop.f32.mrb[37].mxu1  ;;  %v6734_v12 = vpop.f32.mrb[19].mxu0  ;;  %v3592_v59 = vmul.f32 1.442695, %v3558_v57 }
 0x219   : > { %v2904_v34 = vpop.f32.mrb[38].mxu1  ;;  %v8965_v38 = vadd.f32 %v6734_v12, %v6733_v14 }
 0x21a   : > { %v3364_v44 = vmul.f32 %v6954_v17, %v3332_v10  ;;  %v3333_v15 = vadd.f32 1.4214138, %v3301_v58  ;;  %v8968_v1 = vmul.f32 0.70710677, %v8963_v60  ;;  %v8970_v61 = vadd.f32 %v2904_v34, %v2744_v9  ;;  %v2906_v16 = vpop.f32.mrb[39].mxu1  ;;  %v8972_v0 = vpop.eup %6957 }
 0x21b   : > { %v3238_v43 = vmul.f32 1.0614054, %v8972_v0  ;;  %v3594_v9 = vmul.f32 1.442695, %v3559_v45 }
 0x21c   : > { %v3396_v42 = vadd.f32 -0.28449672, %v3364_v44  ;;  %v3365_v19 = vmul.f32 %v8955_v50, %v3333_v15  ;;  %v3080_v6 = vand.u32 2147483647, %v8968_v1  ;;  %v8984_v21 = vmul.f32 0.70710677, %v8970_v61  ;;  %v8986_v37 = vpop.eup %6959 }
 0x21d   : > { %v3270_v39 = vadd.f32 -1.4531521, %v3238_v43  ;;  %v3239_v10 = vmul.f32 1.0614054, %v8986_v37  ;;  %v2749_v44 = vadd.f32 %v8941_v28, %v8921_v27  ;;  %v6962_v34 = vpop.eup %6961  ;;  %vm3720_vm15 = vcmp.lt.f32.partialorder %v8968_v1, 0.0 }
 0x21e   : > { %v3428_v33 = vmul.f32 %v6954_v17, %v3396_v42  ;;  %v3397_v54 = vadd.f32 -0.28449672, %v3365_v19  ;;  %v3112_v8 = vmul.f32 0.3275911, %v3080_v6  ;;  %v3081_v22 = vand.u32 2147483647, %v8984_v21 }
 0x21f   : > { %v3302_v2 = vmul.f32 %v8972_v0, %v3270_v39  ;;  %v6736_v58 = vpop.f32.mrb[20].mxu0  ;;  %v3271_v4 = vadd.f32 -1.4531521, %v3239_v10  ;;  %v2752_v42 = vadd.f32 %v8943_v11, %v8921_v27  ;;  %v3528_v39 = vmul.f32 %v3080_v6, %v3080_v6  ;;  %v6964_v10 = vpop.eup %6963 }
 0x220   : > { %v3460_v29 = vadd.f32 0.2548296, %v3428_v33  ;;  %v3429_v32 = vmul.f32 %v8955_v50, %v3397_v54  ;;  %v3144_v14 = vadd.f32 1.0, %v3112_v8  ;;  %v3113_v12 = vmul.f32 0.3275911, %v3081_v22  ;;  %v6737_v57 = vpop.f32.mrb[21].mxu0 }
 0x221   : > { %v3334_v16 = vadd.f32 1.4214138, %v3302_v2  ;;  %v3303_v43 = vmul.f32 %v8986_v37, %v3271_v4  ;;  %v2909_v33 = vpop.f32.mrb[40].mxu1  ;;  %v9010_v6 = vmul.f32 0.5, %v8938_v30  ;;  %vm3721_vm0 = vcmp.lt.f32.partialorder %v8984_v21, 0.0 }
 0x222   : > { %v3492_v49 = vmul.f32 %v6954_v17, %v3460_v29  ;;  %v3461_v15 = vadd.f32 0.2548296, %v3429_v32  ;;  %6965 = vrcp.f32 %v3144_v14  ;;  %v3145_v45 = vadd.f32 1.0, %v3113_v12  ;;  %v8998_v17 = vpop.f32.mrb[22].mxu0  ;;  %v2911_v8 = vpop.f32.mrb[41].mxu1 }
 0x223   : > { %6967 = vpow2.f32 %v3592_v59  ;;  %v3366_v28 = vmul.f32 %v8972_v0, %v3334_v16  ;;  %v9002_v29 = vpop.f32.mrb[23].mxu0  ;;  %v3335_v11 = vadd.f32 1.4214138, %v3303_v43  ;;  %v2912_v59 = vpop.f32.mrb[42].mxu1 }
 0x224   : > { %v3652_v19 = vmul.f32 %v6962_v34, %v3492_v49  ;;  %v3493_v54 = vmul.f32 %v8955_v50, %v3461_v15  ;;  %6969 = vpow2.f32 %v3594_v9  ;;  %v9005_v49 = vadd.f32 %v2909_v33, %v2749_v44  ;;  %v2914_v50 = vpop.f32.mrb[43].mxu1 }
 0x225   : > { %6971 = vrcp.f32 %v3145_v45  ;;  %v3398_v14 = vadd.f32 -0.28449672, %v3366_v28  ;;  %v9007_v4 = vadd.f32 %v2912_v59, %v2752_v42  ;;  %v3367_v9 = vmul.f32 %v8986_v37, %v3335_v11 }
 0x226   : > { %v3684_v32 = vsub.f32 1.0, %v3652_v19  ;;  %v3653_v2 = vmul.f32 %v6964_v10, %v3493_v54  ;;  %v9013_v34 = vadd.f32 %v6737_v57, %v6736_v58  ;;  %v3560_v19 = vsub.f32 0.0, %v3528_v39 }
 0x227   : > { %v3430_v16 = vmul.f32 %v8972_v0, %v3398_v14  ;;  %v9017_v43 = vmul.f32 0.70710677, %v9005_v49  ;;  %v9022_v42 = vmul.f32 0.5, %v8948_v35  ;;  %v3399_v45 = vadd.f32 -0.28449672, %v3367_v9 }
 0x228   : > { %v3748_v12 = vsub.f32 0.0, %v3684_v32  ;;  %v3685_v15 = vsub.f32 1.0, %v3653_v2  ;;  %v9025_v30 = vmul.f32 0.70710677, %v9007_v4  ;;  %v3529_v57 = vmul.f32 %v3081_v22, %v3081_v22 }
 0x229   : > { %v3462_v58 = vadd.f32 0.2548296, %v3430_v16  ;;  %v3082_v54 = vand.u32 2147483647, %v9017_v43  ;;  %v3431_v39 = vmul.f32 %v8986_v37, %v3399_v45  ;;  %v2757_v35 = vadd.f32 %v8960_v52, %v8921_v27 }
 0x22a   : > { %v3780_v44 = vsel %vm3716_vm10, %v3748_v12, %v3684_v32  ;;  %v3749_v33 = vsub.f32 0.0, %v3685_v15  ;;  %v3083_v5 = vand.u32 2147483647, %v9025_v30  ;;  %v3596_v22 = vmul.f32 1.442695, %v3560_v19 }
 0x22b   : > { %v3812_v28 = vadd.f32 1.0, %v3780_v44  ;;  %v3494_v32 = vmul.f32 %v8972_v0, %v3462_v58  ;;  %v3114_v11 = vmul.f32 0.3275911, %v3082_v54  ;;  %v3463_v14 = vadd.f32 0.2548296, %v3431_v39 }
 0x22c   : > { %v9033_v8 = vpop.eup %6965  ;;  %v3781_v10 = vsel %vm3717_vm14, %v3749_v33, %v3685_v15  ;;  %v2760_v12 = vadd.f32 %v8965_v38, %v8921_v27  ;;  %v3561_v52 = vsub.f32 0.0, %v3529_v57  ;;  %v3115_v45 = vmul.f32 0.3275911, %v3083_v5  ;;  %vm11427_vm14 = vmmov %vm11422_vm3 }
 0x22d   : > { %v6968_v59 = vpop.eup %6967  ;;  %v3813_v2 = vadd.f32 1.0, %v3781_v10  ;;  %v3240_v50 = vmul.f32 1.0614054, %v9033_v8  ;;  %v3146_v44 = vadd.f32 1.0, %v3114_v11  ;;  %v2917_v13 = vpop.f32.mrb[44].mxu1  ;;  %v3844_v0 = vmul.f32 %v3812_v28, %v8975_v31 }
 0x22e   : > { %v6970_v9 = vpop.eup %6969  ;;  %v3654_v16 = vmul.f32 %v6968_v59, %v3494_v32  ;;  %v3495_v19 = vmul.f32 %v8986_v37, %v3463_v14  ;;  %v2919_v58 = vpop.f32.mrb[45].mxu1  ;;  %v3147_v38 = vadd.f32 1.0, %v3115_v45  ;;  %vm3722_vm2 = vcmp.lt.f32.partialorder %v9017_v43, 0.0 }
 0x22f   : > { %v9041_v55 = vpop.eup %6971  ;;  %v3845_v15 = vmul.f32 %v3813_v2, %v8981_v3  ;;  %v3272_v33 = vadd.f32 -1.4531521, %v3240_v50  ;;  %6973 = vrcp.f32 %v3146_v44  ;;  %v2920_v32 = vpop.f32.mrb[46].mxu1  ;;  %v3598_v3 = vmul.f32 1.442695, %v3561_v52 }
 0x230   : > { %v3686_v39 = vsub.f32 1.0, %v3654_v16  ;;  %v3241_v10 = vmul.f32 1.0614054, %v9041_v55  ;;  %v3655_v11 = vmul.f32 %v6970_v9, %v3495_v19  ;;  %6975 = vpow2.f32 %v3596_v22  ;;  %v2922_v48 = vpop.f32.mrb[47].mxu1 }
 0x231   : > { %v3876_v57 = vpack.c.bf16 %v3845_v15, %v3844_v0  ;;  %v3304_v59 = vmul.f32 %v9033_v8, %v3272_v33  ;;  %v6742_v62 = vpop.f32.mrb[24].mxu0  ;;  %6977 = vrcp.f32 %v3147_v38  ;;  %v3530_v50 = vmul.f32 %v3082_v54, %v3082_v54 }
 0x232   : > { %v3750_v31 = vsub.f32 0.0, %v3686_v39  ;;  %v3273_v28 = vadd.f32 -1.4531521, %v3241_v10  ;;  %v6743_v37 = vpop.f32.mrb[25].mxu0  ;;  %v3687_v2 = vsub.f32 1.0, %v3655_v11  ;;  %v9051_v16 = vadd.f32 %v9002_v29, %v8998_v17 }
 0x233   : > { %3892 = vst.msk [vmem:[#allocation3] sm:$0xff] %vm11421_vm7, %v3876_v57  ;;  %v3336_v14 = vadd.f32 1.4214138, %v3304_v59  ;;  %v9053_v9 = vpop.f32.mrb[26].mxu0  ;;  %v3531_v44 = vmul.f32 %v3083_v5, %v3083_v5  ;;  %v9058_v52 = vadd.f32 %v2917_v13, %v2757_v35  ;;  %v9064_v15 = vadd.f32 %v2920_v32, %v2760_v12 }
 0x234   : > { %v3782_v48 = vsel %vm3718_vm5, %v3750_v31, %v3686_v39  ;;  %v3305_v22 = vmul.f32 %v9041_v55, %v3273_v28  ;;  %v9060_v45 = vpop.f32.mrb[27].mxu0  ;;  %v3751_v0 = vsub.f32 0.0, %v3687_v2  ;;  %v9067_v29 = vmul.f32 0.5, %v8963_v60  ;;  %vm11428_vm5 = vmmov %vm11422_vm3 }
 0x235   : > { %v3368_v54 = vmul.f32 %v9033_v8, %v3336_v14  ;;  %v3814_v17 = vadd.f32 1.0, %v3782_v48  ;;  %v9070_v19 = vmul.f32 0.70710677, %v9058_v52  ;;  %6979 = vpow2.f32 %v3598_v3 }
 0x236   : > { %v3337_v63 = vadd.f32 1.4214138, %v3305_v22  ;;  %v3783_v5 = vsel %vm3719_vm9, %v3751_v0, %v3687_v2  ;;  %v3562_v35 = vsub.f32 0.0, %v3530_v50  ;;  %v3563_v58 = vsub.f32 0.0, %v3531_v44 }
 0x237   : > { %v3400_v13 = vadd.f32 -0.28449672, %v3368_v54  ;;  %v3815_v33 = vadd.f32 1.0, %v3783_v5  ;;  %v3084_v39 = vand.u32 2147483647, %v9070_v19  ;;  %v9078_v60 = vadd.f32 %v6743_v37, %v6742_v62 }
 0x238   : > { %v3369_v7 = vmul.f32 %v9041_v55, %v3337_v63  ;;  %v9076_v10 = vmul.f32 0.70710677, %v9064_v15  ;;  %v2765_v38 = vadd.f32 %v9013_v34, %v8921_v27  ;;  %v3846_v57 = vmul.f32 %v3814_v17, %v9010_v6 }
 0x239   : > { %v3432_v12 = vmul.f32 %v9033_v8, %v3400_v13  ;;  %v9082_v32 = vpop.eup %6973  ;;  %v3847_v11 = vmul.f32 %v3815_v33, %v9022_v42  ;;  %v3116_v31 = vmul.f32 0.3275911, %v3084_v39  ;;  %v2925_v3 = vpop.f32.mrb[48].mxu1  ;;  %v3532_v22 = vmul.f32 %v3084_v39, %v3084_v39 }
 0x23a   : > { %v3401_v59 = vadd.f32 -0.28449672, %v3369_v7  ;;  %v9086_v28 = vld [vmem:[#allocation3] sm:$0xff]  ;;  %v6976_v2 = vpop.eup %6975  ;;  %v3242_v50 = vmul.f32 1.0614054, %v9082_v32  ;;  %v9094_v6 = vadd.f32 %v2925_v3, %v2765_v38  ;;  %v2927_v44 = vpop.f32.mrb[49].mxu1 }
 0x23b   : > { %v3464_v14 = vadd.f32 0.2548296, %v3432_v12  ;;  %v3085_v62 = vand.u32 2147483647, %v9076_v10  ;;  %4805 = vrot.lane.b32.xlu1 %v9086_v28, %s7202_s14  ;;  %4173 = vrot.lane.b32.xlu0 %v9086_v28, %s7203_s16  ;;  %v9096_v34 = vpop.eup %6977  ;;  %v3877_v42 = vpack.c.bf16 %v3847_v11, %v3846_v57  ;;  %v3148_v48 = vadd.f32 1.0, %v3116_v31  ;;  %v2928_v33 = vpop.f32.mrb[50].mxu1 }
 0x23c   : > { %v3433_v37 = vmul.f32 %v9041_v55, %v3401_v59  ;;  %v3274_v54 = vadd.f32 -1.4531521, %v3242_v50  ;;  %v3243_v17 = vmul.f32 1.0614054, %v9096_v34  ;;  %v3600_v13 = vmul.f32 1.442695, %v3562_v35 }
 0x23d   : > { %v3496_v0 = vmul.f32 %v9033_v8, %v3464_v14  ;;  %v3117_v63 = vmul.f32 0.3275911, %v3085_v62  ;;  %3893 = vst.msk [vmem:[#allocation3 + $0x8] sm:$0xff] %vm11422_vm3, %v3877_v42  ;;  %6981 = vrcp.f32 %v3148_v48  ;;  %v9102_v7 = vpop.f32.mrb[28].mxu0  ;;  %v2930_v11 = vpop.f32.mrb[51].mxu1  ;;  %v3564_v3 = vsub.f32 0.0, %v3532_v22 }
 0x23e   : > { %v3465_v5 = vadd.f32 0.2548296, %v3433_v37  ;;  %v3306_v38 = vmul.f32 %v9082_v32, %v3274_v54  ;;  %v3275_v57 = vadd.f32 -1.4531521, %v3243_v17  ;;  %v9105_v59 = vpop.f32.mrb[29].mxu0  ;;  %v3533_v44 = vmul.f32 %v3085_v62, %v3085_v62 }
 0x23f   : > { %v3656_v12 = vmul.f32 %v6976_v2, %v3496_v0  ;;  %v3149_v39 = vadd.f32 1.0, %v3117_v63  ;;  %v3602_v31 = vmul.f32 1.442695, %v3563_v58  ;;  %v9109_v14 = vpop.f32.mrb[30].mxu0  ;;  %v6980_v35 = vpop.eup %6979  ;;  %v9115_v0 = vmul.f32 0.70710677, %v9094_v6 }
 0x240   : > { %v3497_v8 = vmul.f32 %v9041_v55, %v3465_v5  ;;  %v3338_v42 = vadd.f32 1.4214138, %v3306_v38  ;;  %v3307_v2 = vmul.f32 %v9096_v34, %v3275_v57  ;;  %v9112_v37 = vpop.f32.mrb[31].mxu0  ;;  %v9120_v22 = vadd.f32 %v9060_v45, %v9053_v9 }
 0x241   : > { %v3688_v50 = vsub.f32 1.0, %v3656_v12  ;;  %6983 = vrcp.f32 %v3149_v39  ;;  %v3017_v17 = vmul.f32 0.5, %v8970_v61  ;;  %v9124_v5 = vand.u32 2147483647, %v9115_v0 }
 0x242   : > { %v3657_v48 = vmul.f32 %v6980_v35, %v3497_v8  ;;  %6985 = vpow2.f32 %v3600_v13  ;;  %v3370_v55 = vmul.f32 %v9082_v32, %v3338_v42  ;;  %v3339_v58 = vadd.f32 1.4214138, %v3307_v2 }
 0x243   : > { %v3752_v54 = vsub.f32 0.0, %v3688_v50  ;;  %6987 = vpow2.f32 %v3602_v31  ;;  %v3604_v38 = vmul.f32 1.442695, %v3564_v3  ;;  %v3565_v9 = vsub.f32 0.0, %v3533_v44 }
 0x244   : > { %v3689_v63 = vsub.f32 1.0, %v3657_v48  ;;  %v3402_v13 = vadd.f32 -0.28449672, %v3370_v55  ;;  %v3371_v12 = vmul.f32 %v9096_v34, %v3339_v58  ;;  %v2768_v61 = vadd.f32 %v9051_v16, %v8921_v27 }
 0x245   : > { %v3784_v62 = vsel %vm3720_vm15, %v3752_v54, %v3688_v50  ;;  %v9129_v57 = vpop.f32.mrb[52].mxu1  ;;  %v3118_v1 = vmul.f32 0.3275911, %v9124_v5  ;;  %v9141_v42 = vmul.f32 0.5, %v9005_v49  ;;  %v9144_v2 = vmul.f32 0.5, %v9007_v4 }
 0x246   : > { %v3816_v39 = vadd.f32 1.0, %v3784_v62  ;;  %v3753_v11 = vsub.f32 0.0, %v3689_v63  ;;  %v2935_v45 = vpop.f32.mrb[53].mxu1  ;;  %v3434_v8 = vmul.f32 %v9082_v32, %v3402_v13  ;;  %v3403_v31 = vadd.f32 -0.28449672, %v3371_v12  ;;  %v9158_v13 = vld [vmem:[#allocation3 + $0x8] sm:$0xff] }
 0x247   : > { %v9136_v35 = vpop.f32.mrb[54].mxu1  ;;  %v9138_v50 = vpop.eup %6981  ;;  %v9146_v16 = vadd.f32 %v2928_v33, %v2768_v61  ;;  %6989 = vpow2.f32 %v3604_v38  ;;  %v3606_v49 = vmul.f32 1.442695, %v3565_v9  ;;  %vm3723_vm13 = vcmp.lt.f32.partialorder %v9025_v30, 0.0 }
 0x248   : > { %v3785_v3 = vsel %vm3721_vm0, %v3753_v11, %v3689_v63  ;;  %v2938_v48 = vpop.f32.mrb[55].mxu1  ;;  %v3466_v44 = vadd.f32 0.2548296, %v3434_v8  ;;  %v3435_v54 = vmul.f32 %v9096_v34, %v3403_v31  ;;  %v3244_v55 = vmul.f32 1.0614054, %v9138_v50 }
 0x249   : > { %v3817_v21 = vadd.f32 1.0, %v3785_v3  ;;  %v9150_v58 = vpop.f32.mrb[32].mxu0  ;;  %v3848_v62 = vmul.f32 %v3816_v39, %v9067_v29  ;;  %v3150_v63 = vadd.f32 1.0, %v3118_v1  ;;  %v9166_v38 = vmul.f32 0.70710677, %v9146_v16 }
 0x24a   : > { %v9154_v4 = vpop.f32.mrb[33].mxu0  ;;  %v3498_v11 = vmul.f32 %v9082_v32, %v3466_v44  ;;  %v3467_v61 = vadd.f32 0.2548296, %v3435_v54  ;;  %v3276_v45 = vadd.f32 -1.4531521, %v3244_v55  ;;  %vm3724_vm11 = vcmp.lt.f32.partialorder %v9070_v19, 0.0 }
 0x24b   : > { %v9156_v33 = vpop.eup %6983  ;;  %v3849_v12 = vmul.f32 %v3817_v21, %v3017_v17  ;;  %v9161_v8 = vpop.f32.mrb[34].mxu0  ;;  %6991 = vrcp.f32 %v3150_v63  ;;  %v3087_v54 = vand.u32 2147483647, %v9166_v38  ;;  %vm3725_vm10 = vcmp.lt.f32.partialorder %v9076_v10, 0.0 }
 0x24c   : > { %v6986_v31 = vpop.eup %6985  ;;  %v3245_v29 = vmul.f32 1.0614054, %v9156_v33  ;;  %v3499_v1 = vmul.f32 %v9096_v34, %v3467_v61  ;;  %v3308_v17 = vmul.f32 %v9138_v50, %v3276_v45  ;;  %v9172_v3 = vpop.f32.mrb[35].mxu0  ;;  %6993 = vpow2.f32 %v3606_v49 }
 0x24d   : > { %v3878_v39 = vpack.c.bf16 %v3849_v12, %v3848_v62  ;;  %v3658_v9 = vmul.f32 %v6986_v31, %v3498_v11  ;;  %v9170_v32 = vpop.f32.mrb[56].mxu1  ;;  %v6988_v48 = vpop.eup %6987  ;;  %v4301_v34 = vshrl.u32 %v9086_v28, 16  ;;  %v3534_v45 = vmul.f32 %v9124_v5, %v9124_v5 }
 0x24e   : > { %v3277_v44 = vadd.f32 -1.4531521, %v3245_v29  ;;  %v2943_v55 = vpop.f32.mrb[57].mxu1  ;;  %v3659_v63 = vmul.f32 %v6988_v48, %v3499_v1  ;;  %v3340_v12 = vadd.f32 1.4214138, %v3308_v17  ;;  %v4303_v49 = vshll.u32 %v9086_v28, 16 }
 0x24f   : > { %3894 = vst.msk [vmem:[#allocation3 + $0x10] sm:$0xff] %vm11423_vm8, %v3878_v39  ;;  %v3690_v62 = vsub.f32 1.0, %v3658_v9  ;;  %v9178_v11 = vpop.f32.mrb[58].mxu1  ;;  %v3119_v31 = vmul.f32 0.3275911, %v3087_v54  ;;  %v4566_v9 = vrot.slane %v4301_v34, 7 }
 0x250   : > { %v3309_v61 = vmul.f32 %v9156_v33, %v3277_v44  ;;  %v2946_v29 = vpop.f32.mrb[59].mxu1  ;;  %v3691_v55 = vsub.f32 1.0, %v3659_v63  ;;  %v3372_v39 = vmul.f32 %v9138_v50, %v3340_v12  ;;  %v11424_v1 = vshll.u32 %v9158_v13, 16 }
 0x251   : > { %v3754_v21 = vsub.f32 0.0, %v3690_v62  ;;  %v3151_v53 = vadd.f32 1.0, %v3119_v31  ;;  %v4305_v36 = vrot.slane %v4303_v49, 1  ;;  %v4569_v18 = vor.u32 %v4566_v9, %v4303_v49  ;;  %v6990_v28 = vpop.eup %6989 }
 0x252   : > { %v9187_v17 = vrot.slane %v11424_v1, 1  ;;  %v3341_v48 = vadd.f32 1.4214138, %v3309_v61  ;;  %v3755_v5 = vsub.f32 0.0, %v3691_v55  ;;  %v3404_v56 = vadd.f32 -0.28449672, %v3372_v39 }
 0x253   : > { %v3786_v44 = vsel %vm3722_vm2, %v3754_v21, %v3690_v62  ;;  %v3566_v20 = vsub.f32 0.0, %v3534_v45  ;;  %6995 = vrcp.f32 %v3151_v53  ;;  %v3535_v61 = vmul.f32 %v3087_v54, %v3087_v54  ;;  %4675 = vrot.lane.b32.xlu0 %v4569_v18, %s7201_s28 }
 0x254   : > { %v3818_v29 = vadd.f32 1.0, %v3786_v44  ;;  %v3373_v63 = vmul.f32 %v9156_v33, %v3341_v48  ;;  %v3787_v12 = vsel %vm3723_vm13, %v3755_v5, %v3691_v55  ;;  %v3436_v1 = vmul.f32 %v9138_v50, %v3404_v56  ;;  %vm11430_vm13 = vmmov %vm11422_vm3 }
 0x255   : > { %v4306_v31 = vor.u32 %v4305_v36, %v4301_v34  ;;  %v9196_v43 = vpop.f32.mrb[60].mxu1  ;;  %v9198_v21 = vpop.eup %6991  ;;  %v3819_v39 = vadd.f32 1.0, %v3787_v12  ;;  %v2773_v53 = vadd.f32 %v9078_v60, %v8921_v27  ;;  %v9216_v60 = vadd.f32 %v9105_v59, %v9102_v7 }
 0x256   : > { %v9200_v62 = vld [vmem:[#allocation3 + $0x10] sm:$0xff]  ;;  %v3850_v49 = vmul.f32 %v3818_v29, %v9141_v42  ;;  %v3405_v45 = vadd.f32 -0.28449672, %v3373_v63  ;;  %v2951_v30 = vpop.f32.mrb[61].mxu1  ;;  %v3468_v54 = vadd.f32 0.2548296, %v3436_v1  ;;  %v6994_v34 = vpop.eup %6993 }
 0x257   : > { %v5576_v56 = vshrl.u32 %v9200_v62, 16  ;;  %v11316_v36 = vshll.u32 %v9200_v62, 16  ;;  %v3246_v18 = vmul.f32 1.0614054, %v9198_v21  ;;  %4405 = vrot.lane.b32.xlu1 %v4306_v31, %s7206_s27  ;;  %v3851_v55 = vmul.f32 %v3819_v39, %v9144_v2  ;;  %v9218_v48 = vpop.f32.mrb[62].mxu1  ;;  %5048 = vrot.lane.b32.xlu0 %v4306_v31, %s7207_s26 }
 0x258   : > { %v3437_v42 = vmul.f32 %v9156_v33, %v3405_v45  ;;  %v9212_v9 = vadd.f32 %v9129_v57, %v2773_v53  ;;  %v3500_v5 = vmul.f32 %v9138_v50, %v3468_v54  ;;  %v2776_v2 = vadd.f32 %v9120_v22, %v8921_v27  ;;  %v2954_v63 = vpop.f32.mrb[63].mxu1 }
 0x259   : > { %v5580_v44 = vrot.slane %v11316_v36, 1  ;;  %v3278_v29 = vadd.f32 -1.4531521, %v3246_v18  ;;  %v3879_v57 = vpack.c.bf16 %v3851_v55, %v3850_v49  ;;  %v3608_v1 = vmul.f32 1.442695, %v3566_v20 }
 0x25a   : > { %v3469_v12 = vadd.f32 0.2548296, %v3437_v42  ;;  %v9227_v7 = vmul.f32 0.70710677, %v9212_v9  ;;  %v3660_v39 = vmul.f32 %v6990_v28, %v3500_v5  ;;  %v9237_v31 = vadd.f32 %v9136_v35, %v2776_v2 }
 0x25b   : > { %v9231_v59 = vor.u32 %v5580_v44, %v5576_v56  ;;  %v3310_v50 = vmul.f32 %v9198_v21, %v3278_v29  ;;  %4175 = vrot.lane.b32.xlu1 %v9158_v13, %s7203_s16  ;;  %3895 = vst.msk [vmem:[#allocation3 + $0x18] sm:$0xff] %vm11425_vm4, %v3879_v57  ;;  %v3567_v22 = vsub.f32 0.0, %v3535_v61  ;;  %v6753_v45 = vadd.f32 %v9112_v37, %v9109_v14  ;;  %vm11431_vm4 = vmmov %vm11422_vm3 }
 0x25c   : > { %v3501_v20 = vmul.f32 %v9156_v33, %v3469_v12  ;;  %v3088_v49 = vand.u32 2147483647, %v9227_v7  ;;  %v3692_v53 = vsub.f32 1.0, %v3660_v39  ;;  %v9246_v30 = vmul.f32 0.70710677, %v9237_v31  ;;  %5444 = vrot.lane.b32.xlu0 %v9158_v13, %s7204_s17 }
 0x25d   : > { %v3342_v28 = vadd.f32 1.4214138, %v3310_v50  ;;  %v9250_v35 = vpop.eup %6995  ;;  %v5569_v33 = vshrl.u32 %v9158_v13, 16  ;;  %6997 = vpow2.f32 %v3608_v1  ;;  %v9253_v18 = vpop.f32.mrb[64].mxu1  ;;  %v3610_v2 = vmul.f32 1.442695, %v3567_v22 }
 0x25e   : > { %v3661_v61 = vmul.f32 %v6994_v34, %v3501_v20  ;;  %v3120_v54 = vmul.f32 0.3275911, %v3088_v49  ;;  %v3756_v14 = vsub.f32 0.0, %v3692_v53  ;;  %v3247_v55 = vmul.f32 1.0614054, %v9250_v35  ;;  %v2959_v44 = vpop.f32.mrb[65].mxu1 }
 0x25f   : > { %v3374_v37 = vmul.f32 %v9198_v21, %v3342_v28  ;;  %v3089_v42 = vand.u32 2147483647, %v9246_v30  ;;  %4807 = vrot.lane.b32.xlu1 %v9158_v13, %s7202_s14  ;;  %v5574_v5 = vor.u32 %v9187_v17, %v5569_v33  ;;  %v9261_v63 = vpop.f32.mrb[66].mxu1  ;;  %v4573_v28 = vrot.slane %v5569_v33, 7 }
 0x260   : > { %v3693_v29 = vsub.f32 1.0, %v3661_v61  ;;  %v3152_v34 = vadd.f32 1.0, %v3120_v54  ;;  %v3788_v57 = vsel %vm3724_vm11, %v3756_v14, %v3692_v53  ;;  %v3279_v1 = vadd.f32 -1.4531521, %v3247_v55  ;;  %v2962_v36 = vpop.f32.mrb[67].mxu1 }
 0x261   : > { %v3406_v12 = vadd.f32 -0.28449672, %v3374_v37  ;;  %v3121_v39 = vmul.f32 0.3275911, %v3089_v42  ;;  %v3820_v50 = vadd.f32 1.0, %v3788_v57  ;;  %v3020_v19 = vmul.f32 0.5, %v9058_v52 }
 0x262   : > { %v3757_v20 = vsub.f32 0.0, %v3693_v29  ;;  %6999 = vrcp.f32 %v3152_v34  ;;  %v3311_v22 = vmul.f32 %v9250_v35, %v3279_v1  ;;  %v3021_v53 = vmul.f32 0.5, %v9064_v15 }
 0x263   : > { %v3438_v17 = vmul.f32 %v9198_v21, %v3406_v12  ;;  %v3153_v61 = vadd.f32 1.0, %v3121_v39  ;;  %4407 = vrot.lane.b32.xlu1 %v5574_v5, %s7206_s27  ;;  %v3536_v14 = vmul.f32 %v3088_v49, %v3088_v49  ;;  %7001 = vpow2.f32 %v3610_v2 }
 0x264   : > { %v3789_v54 = vsel %vm3725_vm10, %v3757_v20, %v3693_v29  ;;  %v3343_v44 = vadd.f32 1.4214138, %v3311_v22  ;;  %v3852_v10 = vmul.f32 %v3820_v50, %v3020_v19  ;;  %v11426_v33 = vshll.u32 %v9158_v13, 16 }
 0x265   : > { %v3821_v37 = vadd.f32 1.0, %v3789_v54  ;;  %v3470_v55 = vadd.f32 0.2548296, %v3438_v17  ;;  %v9271_v36 = vpop.f32.mrb[68].mxu1  ;;  %7003 = vrcp.f32 %v3153_v61  ;;  %v2781_v15 = vadd.f32 %v9216_v60, %v8921_v27  ;;  %v5688_v17 = vld [vmem:[#allocation4 + $0x8] sm:$0xff] }
 0x266   : > { %v4576_v34 = vor.u32 %v11426_v33, %v4573_v28  ;;  %v2967_v57 = vpop.f32.mrb[69].mxu1  ;;  %v3375_v52 = vmul.f32 %v9250_v35, %v3343_v44  ;;  %v3568_v2 = vsub.f32 0.0, %v3536_v14  ;;  %v2784_v13 = vadd.f32 %v6753_v45, %v8921_v27 }
 0x267   : > { %v3853_v12 = vmul.f32 %v3821_v37, %v3021_v53  ;;  %v3502_v1 = vmul.f32 %v9198_v21, %v3470_v55  ;;  %5050 = vrot.lane.b32.xlu1 %v5574_v5, %s7207_s26  ;;  %v9280_v49 = vpop.f32.mrb[70].mxu1  ;;  %v6998_v29 = vpop.eup %6997  ;;  %v9285_v21 = vadd.f32 %v9170_v32, %v2781_v15  ;;  %v6756_v22 = vadd.f32 %v9154_v4, %v9150_v58 }
 0x268   : > { %4677 = vrot.lane.b32.xlu0 %v4576_v34, %s7201_s28  ;;  %v2970_v39 = vpop.f32.mrb[71].mxu1  ;;  %v3407_v28 = vadd.f32 -0.28449672, %v3375_v52  ;;  %v9288_v60 = vadd.f32 %v9178_v11, %v2784_v13  ;;  %v3537_v27 = vmul.f32 %v3089_v42, %v3089_v42  ;;  %v3612_v53 = vmul.f32 1.442695, %v3568_v2 }
 0x269   : > { %v3880_v50 = vpack.c.bf16 %v3853_v12, %v3852_v10  ;;  %v3662_v20 = vmul.f32 %v6998_v29, %v3502_v1  ;;  %v9295_v45 = vmul.f32 0.70710677, %v9285_v21  ;;  %v6759_v58 = vadd.f32 %v9172_v3, %v9161_v8 }
 0x26a   : > { %v3439_v19 = vmul.f32 %v9250_v35, %v3407_v28  ;;  %v9302_v11 = vmul.f32 0.70710677, %v9288_v60  ;;  %v5689_v4 = vsel %vm7904_vm1, %v5574_v5, %v5688_v17  ;;  %v3569_v3 = vsub.f32 0.0, %v3537_v27 }
 0x26b   : > { %3896 = vst.msk [vmem:[#allocation3 + $0x20] sm:$0xff] %vm11427_vm14, %v3880_v50  ;;  %v3694_v61 = vsub.f32 1.0, %v3662_v20  ;;  %4809 = vrot.lane.b32.xlu1 %v9200_v62, %s7202_s14  ;;  %5690 = vst [vmem:[#allocation4 + $0x8] sm:$0xff] %v5689_v4  ;;  %6663 = vmatprep.mubr.msk.bf16.mxu0 %vm11428_vm5, %v5689_v4  ;;  %v3090_v37 = vand.u32 2147483647, %v9295_v45  ;;  %vm3726_vm7 = vcmp.lt.f32.partialorder %v9115_v0, 0.0  ;;  %7005 = vpow2.f32 %v3612_v53 }
 0x26c   : > { %v9299_v32 = vpop.eup %6999  ;;  %5320 = vrot.lane.b32.xlu0 %v4576_v34, %s7200_s20  ;;  %v3471_v54 = vadd.f32 0.2548296, %v3439_v19  ;;  %v3091_v55 = vand.u32 2147483647, %v9302_v11  ;;  %v9330_v0 = vld [vmem:[%s11288_s2] ss:$0 sm:$0xff]  ;;  %vm11435_vm14 = vmmov %vm11422_vm3 }
 0x26d   : > { %v3758_v42 = vsub.f32 0.0, %v3694_v61  ;;  %v3248_v14 = vmul.f32 1.0614054, %v9299_v32  ;;  %v9313_v44 = vpop.f32.mrb[72].mxu1  ;;  %v7002_v10 = vpop.eup %7001  ;;  %v3122_v57 = vmul.f32 0.3275911, %v3090_v37  ;;  %v2797_v50 = vadd.f32 %v9330_v0, %v8887_v47 }
 0x26e   : > { %v3503_v33 = vmul.f32 %v9250_v35, %v3471_v54  ;;  %v2975_v5 = vpop.f32.mrb[73].mxu1  ;;  %v3123_v12 = vmul.f32 0.3275911, %v3091_v55  ;;  %v3614_v17 = vmul.f32 1.442695, %v3569_v3  ;;  %v2792_v53 = vadd.f32 %v9330_v0, %v6759_v58 }
 0x26f   : > { %v3280_v8 = vadd.f32 -1.4531521, %v3248_v14  ;;  %5446 = vrot.lane.b32.xlu1 %v9200_v62, %s7204_s17  ;;  %v9318_v34 = vpop.eup %7003  ;;  %v9323_v1 = vpop.f32.mrb[74].mxu1  ;;  %v3790_v52 = vsel %vm3726_vm7, %v3758_v42, %v3694_v61  ;;  %v3154_v13 = vadd.f32 1.0, %v3122_v57  ;;  %v2789_v61 = vadd.f32 %v9330_v0, %v6756_v22 }
 0x270   : > { %4177 = vrot.lane.b32.xlu0 %v9200_v62, %s7203_s16  ;;  %v3663_v15 = vmul.f32 %v7002_v10, %v3503_v33  ;;  %v3249_v29 = vmul.f32 1.0614054, %v9318_v34  ;;  %v2978_v2 = vpop.f32.mrb[75].mxu1  ;;  %v3155_v39 = vadd.f32 1.0, %v3123_v12  ;;  %v3822_v19 = vadd.f32 1.0, %v3790_v52 }
 0x271   : > { %v3312_v35 = vmul.f32 %v9299_v32, %v3280_v8  ;;  %7007 = vrcp.f32 %v3154_v13  ;;  %v3538_v54 = vmul.f32 %v3090_v37, %v3090_v37  ;;  %v3022_v10 = vmul.f32 0.5, %v9094_v6 }
 0x272   : > { %v3695_v20 = vsub.f32 1.0, %v3663_v15  ;;  %v3281_v27 = vadd.f32 -1.4531521, %v3249_v29  ;;  %7009 = vrcp.f32 %v3155_v39  ;;  %vm3727_vm9 = vcmp.lt.f32.partialorder %v9166_v38, 0.0 }
 0x273   : > { %v3344_v28 = vadd.f32 1.4214138, %v3312_v35  ;;  %v9343_v22 = vadd.f32 %v9196_v43, %v2789_v61  ;;  %v3023_v8 = vmul.f32 0.5, %v9146_v16  ;;  %v9347_v5 = vadd.f32 %v9218_v48, %v2792_v53 }
 0x274   : > { %v3759_v4 = vsub.f32 0.0, %v3695_v20  ;;  %v3313_v47 = vmul.f32 %v9318_v34, %v3281_v27  ;;  %v3854_v57 = vmul.f32 %v3822_v19, %v3022_v10  ;;  %7011 = vpow2.f32 %v3614_v17 }
 0x275   : > { %v3376_v42 = vmul.f32 %v9299_v32, %v3344_v28  ;;  %v9337_v14 = vpop.f32.mrb[76].mxu1  ;;  %v3570_v15 = vsub.f32 0.0, %v3538_v54  ;;  %v9353_v43 = vmul.f32 0.70710677, %v9343_v22  ;;  %v9356_v16 = vmul.f32 0.70710677, %v9347_v5  ;;  %v7006_v28 = vpop.eup %7005 }
 0x276   : > { %v2983_v33 = vpop.f32.mrb[77].mxu1  ;;  %v3791_v58 = vsel %vm3727_vm9, %v3759_v4, %v3695_v20  ;;  %v3345_v6 = vadd.f32 1.4214138, %v3313_v47  ;;  %v4580_v29 = vrot.slane %v5576_v56, 7  ;;  %v9362_v2 = vadd.f32 %v9253_v18, %v2797_v50  ;;  %vm11440_vm9 = vmmov %vm11422_vm3 }
 0x277   : > { %v3408_v3 = vadd.f32 -0.28449672, %v3376_v42  ;;  %v9349_v37 = vpop.f32.mrb[78].mxu1  ;;  %v3823_v12 = vadd.f32 1.0, %v3791_v58  ;;  %v3539_v39 = vmul.f32 %v3091_v55, %v3091_v55  ;;  %v3092_v20 = vand.u32 2147483647, %v9353_v43 }
 0x278   : > { %v2986_v38 = vpop.f32.mrb[79].mxu1  ;;  %v3377_v48 = vmul.f32 %v9318_v34, %v3345_v6  ;;  %v3093_v19 = vand.u32 2147483647, %v9356_v16  ;;  %v11429_v27 = vshll.u32 %v9200_v62, 16  ;;  %v9371_v56 = vadd.f32 %v9330_v0, %v8889_v41 }
 0x279   : > { %v3440_v52 = vmul.f32 %v9299_v32, %v3408_v3  ;;  %v3855_v35 = vmul.f32 %v3823_v12, %v3023_v8  ;;  %v3124_v42 = vmul.f32 0.3275911, %v3092_v20  ;;  %v3616_v54 = vmul.f32 1.442695, %v3570_v15 }
 0x27a   : > { %v3409_v61 = vadd.f32 -0.28449672, %v3377_v48  ;;  %v4583_v53 = vor.u32 %v11429_v27, %v4580_v29  ;;  %v3125_v10 = vmul.f32 0.3275911, %v3093_v19  ;;  %v9382_v62 = vadd.f32 %v9330_v0, %v8892_v40 }
 0x27b   : > { %v3472_v13 = vadd.f32 0.2548296, %v3440_v52  ;;  %v3881_v17 = vpack.c.bf16 %v3855_v35, %v3854_v57  ;;  %v9375_v55 = vpop.eup %7007  ;;  %v3156_v8 = vadd.f32 1.0, %v3124_v42  ;;  %v9388_v58 = vmul.f32 0.70710677, %v9362_v2 }
 0x27c   : > { %v3441_v50 = vmul.f32 %v9318_v34, %v3409_v61  ;;  %4679 = vrot.lane.b32.xlu0 %v4583_v53, %s7201_s28  ;;  %v9384_v47 = vpop.eup %7009  ;;  %v3250_v33 = vmul.f32 1.0614054, %v9375_v55  ;;  %v3571_v6 = vsub.f32 0.0, %v3539_v39  ;;  %v3157_v38 = vadd.f32 1.0, %v3125_v10 }
 0x27d   : > { %v3504_v4 = vmul.f32 %v9299_v32, %v3472_v13  ;;  %v9373_v18 = vpop.f32.mrb[80].mxu1  ;;  %3897 = vst.msk [vmem:[#allocation3 + $0x28] sm:$0xff] %vm11422_vm3, %v3881_v17  ;;  %v3251_v12 = vmul.f32 1.0614054, %v9384_v47  ;;  %7013 = vrcp.f32 %v3156_v8  ;;  %v3540_v15 = vmul.f32 %v3092_v20, %v3092_v20 }
 0x27e   : > { %v2991_v32 = vpop.f32.mrb[81].mxu1  ;;  %v3473_v57 = vadd.f32 0.2548296, %v3441_v50  ;;  %v3282_v40 = vadd.f32 -1.4531521, %v3250_v33  ;;  %v7012_v48 = vpop.eup %7011  ;;  %7015 = vrcp.f32 %v3157_v38  ;;  %v9398_v39 = vadd.f32 %v9330_v0, %v8894_v25 }
 0x27f   : > { %v3664_v41 = vmul.f32 %v7006_v28, %v3504_v4  ;;  %v9390_v3 = vpop.f32.mrb[82].mxu1  ;;  %v3283_v13 = vadd.f32 -1.4531521, %v3251_v12  ;;  %v3541_v28 = vmul.f32 %v3093_v19, %v3093_v19  ;;  %v3094_v27 = vand.u32 2147483647, %v9388_v58  ;;  %v4287_v12 = vld [vmem:[#allocation3 + $0x10] sm:$0xff] }
 0x280   : > { %v2994_v35 = vpop.f32.mrb[83].mxu1  ;;  %v3505_v29 = vmul.f32 %v9318_v34, %v3473_v57  ;;  %v3314_v61 = vmul.f32 %v9375_v55, %v3282_v40  ;;  %vm3728_vm15 = vcmp.lt.f32.partialorder %v9227_v7, 0.0  ;;  %v3618_v4 = vmul.f32 1.442695, %v3571_v6 }
 0x281   : > { %v3696_v52 = vsub.f32 1.0, %v3664_v41  ;;  %v3315_v20 = vmul.f32 %v9384_v47, %v3283_v13  ;;  %v3572_v50 = vsub.f32 0.0, %v3540_v15  ;;  %v3126_v10 = vmul.f32 0.3275911, %v3094_v27 }
 0x282   : > { %v3665_v53 = vmul.f32 %v7012_v48, %v3505_v29  ;;  %v3346_v34 = vadd.f32 1.4214138, %v3314_v61  ;;  %v3024_v19 = vmul.f32 0.5, %v9212_v9  ;;  %7017 = vpow2.f32 %v3616_v54 }
 0x283   : > { %v3760_v17 = vsub.f32 0.0, %v3696_v52  ;;  %v3573_v41 = vsub.f32 0.0, %v3541_v28  ;;  %v3347_v57 = vadd.f32 1.4214138, %v3315_v20  ;;  %v3158_v7 = vadd.f32 1.0, %v3126_v10 }
 0x284   : > { %v3697_v32 = vsub.f32 1.0, %v3665_v53  ;;  %v3378_v25 = vmul.f32 %v9375_v55, %v3346_v34  ;;  %v3025_v6 = vmul.f32 0.5, %v9237_v31  ;;  %vm3729_vm0 = vcmp.lt.f32.partialorder %v9246_v30, 0.0 }
 0x285   : > { %v3792_v42 = vsel %vm3728_vm15, %v3760_v17, %v3696_v52  ;;  %v9403_v33 = vpop.f32.mrb[84].mxu1  ;;  %7019 = vpow2.f32 %v3618_v4  ;;  %v3379_v54 = vmul.f32 %v9384_v47, %v3347_v57  ;;  %v3620_v15 = vmul.f32 1.442695, %v3572_v50 }
 0x286   : > { %v3824_v8 = vadd.f32 1.0, %v3792_v42  ;;  %v2999_v38 = vpop.f32.mrb[85].mxu1  ;;  %v3761_v52 = vsub.f32 0.0, %v3697_v32  ;;  %v3410_v9 = vadd.f32 -0.28449672, %v3378_v25  ;;  %7021 = vrcp.f32 %v3158_v7 }
 0x287   : > { %v9408_v40 = vpop.f32.mrb[86].mxu1  ;;  %v3622_v29 = vmul.f32 1.442695, %v3573_v41  ;;  %v4317_v13 = vshll.u32 %v4287_v12, 16  ;;  %v9413_v28 = vadd.f32 %v9261_v63, %v9371_v56  ;;  %v9415_v31 = vpop.eup %7013  ;;  %v3411_v53 = vadd.f32 -0.28449672, %v3379_v54 }
 0x288   : > { %v3002_v35 = vpop.f32.mrb[87].mxu1  ;;  %v3793_v48 = vsel %vm3729_vm0, %v3761_v52, %v3697_v32  ;;  %v3856_v30 = vmul.f32 %v3824_v8, %v3024_v19  ;;  %v3442_v61 = vmul.f32 %v9375_v55, %v3410_v9  ;;  %v9418_v20 = vpop.eup %7015  ;;  %v3252_v4 = vmul.f32 1.0614054, %v9415_v31  ;;  %vm11441_vm0 = vmmov %vm11431_vm4 }
 0x289   : > { %v3825_v17 = vadd.f32 1.0, %v3793_v48  ;;  %v4315_v42 = vshrl.u32 %v4287_v12, 16  ;;  %v4319_v34 = vrot.slane %v4317_v13, 1  ;;  %v9422_v50 = vmul.f32 0.70710677, %v9413_v28 }
 0x28a   : > { %v3474_v32 = vadd.f32 0.2548296, %v3442_v61  ;;  %v3443_v63 = vmul.f32 %v9384_v47, %v3411_v53  ;;  %v3253_v56 = vmul.f32 1.0614054, %v9418_v20  ;;  %vm3730_vm2 = vcmp.lt.f32.partialorder %v9295_v45, 0.0 }
 0x28b   : > { %v3857_v10 = vmul.f32 %v3825_v17, %v3025_v6  ;;  %v3284_v41 = vadd.f32 -1.4531521, %v3252_v4  ;;  %v3542_v8 = vmul.f32 %v3094_v27, %v3094_v27  ;;  %v4320_v25 = vor.u32 %v4319_v34, %v4315_v42 }
 0x28c   : > { %v3095_v57 = vand.u32 2147483647, %v9422_v50  ;;  %v3506_v38 = vmul.f32 %v9375_v55, %v3474_v32  ;;  %v3475_v52 = vadd.f32 0.2548296, %v3443_v63  ;;  %v3285_v6 = vadd.f32 -1.4531521, %v3253_v56  ;;  %v7018_v54 = vpop.eup %7017 }
 0x28d   : > { %v9426_v19 = vpop.f32.mrb[88].mxu1  ;;  %v3882_v12 = vpack.c.bf16 %v3857_v10, %v3856_v30  ;;  %v3316_v35 = vmul.f32 %v9415_v31, %v3284_v41  ;;  %7023 = vpow2.f32 %v3620_v15  ;;  %4409 = vrot.lane.b32.xlu1 %v4320_v25, %s7206_s27  ;;  %5052 = vrot.lane.b32.xlu0 %v4320_v25, %s7207_s26  ;;  %v5225_v27 = vrot.slane %v4315_v42, 7  ;;  %v9445_v25 = vld [vmem:[#allocation3 + $0x18] sm:$0xff] }
 0x28e   : > { %v3007_v7 = vpop.f32.mrb[89].mxu1  ;;  %v3127_v48 = vmul.f32 0.3275911, %v3095_v57  ;;  %v3666_v30 = vmul.f32 %v7018_v54, %v3506_v38  ;;  %v3507_v55 = vmul.f32 %v9384_v47, %v3475_v52  ;;  %v3317_v61 = vmul.f32 %v9418_v20, %v3285_v6 }
 0x28f   : > { %v9431_v9 = vpop.f32.mrb[90].mxu1  ;;  %3898 = vst.msk [vmem:[#allocation3 + $0x30] sm:$0xff] %vm11430_vm13, %v3882_v12  ;;  %v9441_v53 = vadd.f32 %v9271_v36, %v9382_v62  ;;  %v7020_v4 = vpop.eup %7019  ;;  %v3348_v15 = vadd.f32 1.4214138, %v3316_v35  ;;  %v3574_v34 = vsub.f32 0.0, %v3542_v8  ;;  %v5228_v32 = vor.u32 %v5225_v27, %v4317_v13 }
 0x290   : > { %v3010_v17 = vpop.f32.mrb[91].mxu1  ;;  %v3159_v10 = vadd.f32 1.0, %v3127_v48  ;;  %v9443_v63 = vpop.eup %7021  ;;  %v3698_v42 = vsub.f32 1.0, %v3666_v30  ;;  %v3667_v56 = vmul.f32 %v7020_v4, %v3507_v55  ;;  %v3349_v41 = vadd.f32 1.4214138, %v3317_v61 }
 0x291   : > { %7025 = vpow2.f32 %v3622_v29  ;;  %v3380_v47 = vmul.f32 %v9415_v31, %v3348_v15  ;;  %v3254_v7 = vmul.f32 1.0614054, %v9443_v63  ;;  %v3543_v36 = vmul.f32 %v3095_v57, %v3095_v57  ;;  %5322 = vrot.lane.b32.xlu1 %v5228_v32, %s7200_s20  ;;  %4179 = vrot.lane.b32.xlu0 %v9445_v25, %s7203_s16 }
 0x292   : > { %7027 = vrcp.f32 %v3159_v10  ;;  %v3762_v62 = vsub.f32 0.0, %v3698_v42  ;;  %v3699_v13 = vsub.f32 1.0, %v3667_v56  ;;  %v3381_v8 = vmul.f32 %v9418_v20, %v3349_v41 }
 0x293   : > { %v9454_v12 = vmul.f32 0.70710677, %v9441_v53  ;;  %v3412_v29 = vadd.f32 -0.28449672, %v3380_v47  ;;  %v3286_v38 = vadd.f32 -1.4531521, %v3254_v7  ;;  %v9458_v6 = vadd.f32 %v9280_v49, %v9398_v39 }
 0x294   : > { %v3624_v52 = vmul.f32 1.442695, %v3574_v34  ;;  %v3794_v57 = vsel %vm3730_vm2, %v3762_v62, %v3698_v42  ;;  %v3763_v54 = vsub.f32 0.0, %v3699_v13  ;;  %v3413_v35 = vadd.f32 -0.28449672, %v3381_v8 }
 0x295   : > { %v3096_v48 = vand.u32 2147483647, %v9454_v12  ;;  %v3826_v27 = vadd.f32 1.0, %v3794_v57  ;;  %vm3731_vm8 = vcmp.lt.f32.partialorder %v9302_v11, 0.0  ;;  %v3444_v17 = vmul.f32 %v9415_v31, %v3412_v29  ;;  %4811 = vrot.lane.b32.xlu0 %v9445_v25, %s7202_s14 }
 0x296   : > { %v3318_v30 = vmul.f32 %v9443_v63, %v3286_v38  ;;  %v3026_v49 = vmul.f32 0.5, %v9285_v21  ;;  %v3795_v39 = vsel %vm3731_vm8, %v3763_v54, %v3699_v13  ;;  %v3445_v45 = vmul.f32 %v9418_v20, %v3413_v35  ;;  %vm11442_vm8 = vmmov %vm11441_vm0 }
 0x297   : > { %v3575_v55 = vsub.f32 0.0, %v3543_v36  ;;  %v7024_v61 = vpop.eup %7023  ;;  %v3027_v4 = vmul.f32 0.5, %v9288_v60  ;;  %v3827_v15 = vadd.f32 1.0, %v3795_v39  ;;  %v3476_v34 = vadd.f32 0.2548296, %v3444_v17 }
 0x298   : > { %v3350_v10 = vadd.f32 1.4214138, %v3318_v30  ;;  %v3477_v11 = vadd.f32 0.2548296, %v3445_v45  ;;  %7029 = vpow2.f32 %v3624_v52  ;;  %v3128_v32 = vmul.f32 0.3275911, %v3096_v48 }
 0x299   : > { %v2813_v42 = vadd.f32 %v9330_v0, %v8896_v24  ;;  %v3858_v56 = vmul.f32 %v3826_v27, %v3026_v49  ;;  %v3859_v41 = vmul.f32 %v3827_v15, %v3027_v4  ;;  %v3508_v21 = vmul.f32 %v9415_v31, %v3476_v34  ;;  %5448 = vrot.lane.b32.xlu0 %v9445_v25, %s7204_s17 }
 0x29a   : > { %v3382_v47 = vmul.f32 %v9443_v63, %v3350_v10  ;;  %v3509_v60 = vmul.f32 %v9418_v20, %v3477_v11  ;;  %v3626_v36 = vmul.f32 1.442695, %v3575_v55  ;;  %v3160_v62 = vadd.f32 1.0, %v3128_v32 }
 0x29b   : > { %v7026_v7 = vpop.eup %7025  ;;  %v2816_v13 = vadd.f32 %v9330_v0, %v8898_v46  ;;  %v3883_v24 = vpack.c.bf16 %v3859_v41, %v3858_v56  ;;  %v3668_v29 = vmul.f32 %v7024_v61, %v3508_v21  ;;  %v9483_v31 = vmul.f32 0.70710677, %v9458_v6 }
 0x29c   : > { %v9480_v8 = vpop.eup %7027  ;;  %v3414_v38 = vadd.f32 -0.28449672, %v3382_v47  ;;  %v3669_v52 = vmul.f32 %v7026_v7, %v3509_v60  ;;  %7031 = vrcp.f32 %v3160_v62  ;;  %v9488_v20 = vadd.f32 %v9330_v0, %v8900_v23 }
 0x29d   : > { %v3255_v57 = vmul.f32 1.0614054, %v9480_v8  ;;  %3899 = vst.msk [vmem:[#allocation3 + $0x38] sm:$0xff] %vm11431_vm4, %v3883_v24  ;;  %v3700_v54 = vsub.f32 1.0, %v3668_v29  ;;  %v3097_v35 = vand.u32 2147483647, %v9483_v31  ;;  %v9495_v27 = vadd.f32 %v9330_v0, %v8902_v26 }
 0x29e   : > { %v3446_v46 = vmul.f32 %v9443_v63, %v3414_v38  ;;  %vm3732_vm11 = vcmp.lt.f32.partialorder %v9353_v43, 0.0  ;;  %v3701_v17 = vsub.f32 1.0, %v3669_v52  ;;  %vm3733_vm10 = vcmp.lt.f32.partialorder %v9356_v16, 0.0  ;;  %v11432_v24 = vld [vmem:[#allocation12_spill] sm:$0xff]  ;;  %v11433_v16 = vld [vmem:[#allocation13_spill] sm:$0xff] }
 0x29f   : > { %v3287_v30 = vadd.f32 -1.4531521, %v3255_v57  ;;  %v3764_v49 = vsub.f32 0.0, %v3700_v54  ;;  %7033 = vpow2.f32 %v3626_v36  ;;  %v3129_v39 = vmul.f32 0.3275911, %v3097_v35 }
 0x2a0   : > { %v3478_v23 = vadd.f32 0.2548296, %v3446_v46  ;;  %v3765_v45 = vsub.f32 0.0, %v3701_v17  ;;  %v4322_v61 = vshrl.u32 %v9445_v25, 16  ;;  %v4324_v4 = vshll.u32 %v9445_v25, 16 }
 0x2a1   : > { %v3319_v55 = vmul.f32 %v9480_v8, %v3287_v30  ;;  %v3796_v15 = vsel %vm3732_vm11, %v3764_v49, %v3700_v54  ;;  %v3544_v34 = vmul.f32 %v3096_v48, %v3096_v48  ;;  %v3161_v43 = vadd.f32 1.0, %v3129_v39  ;;  %v11434_v49 = vld [vmem:[#allocation14_spill] sm:$0xff] }
 0x2a2   : > { %v3510_v26 = vmul.f32 %v9443_v63, %v3478_v23  ;;  %v7030_v10 = vpop.eup %7029  ;;  %v3828_v11 = vadd.f32 1.0, %v3796_v15  ;;  %v3797_v32 = vsel %vm3733_vm10, %v3765_v45, %v3701_v17  ;;  %v4326_v41 = vrot.slane %v4324_v4, 1  ;;  %vm11443_vm10 = vmmov %vm11441_vm0 }
 0x2a3   : > { %v3351_v56 = vadd.f32 1.4214138, %v3319_v55  ;;  %v3028_v21 = vmul.f32 0.5, %v9343_v22  ;;  %v3029_v47 = vmul.f32 0.5, %v9347_v5  ;;  %v3829_v7 = vadd.f32 1.0, %v3797_v32 }
 0x2a4   : > { %7035 = vrcp.f32 %v3161_v43  ;;  %v3670_v60 = vmul.f32 %v7030_v10, %v3510_v26  ;;  %v4327_v36 = vor.u32 %v4326_v41, %v4322_v61  ;;  %v4587_v63 = vrot.slane %v4322_v61, 7  ;;  %v11437_v26 = vld [vmem:[#allocation16_spill] sm:$0xff] }
 0x2a5   : > { %v3383_v25 = vmul.f32 %v9480_v8, %v3351_v56  ;;  %v3860_v48 = vmul.f32 %v3828_v11, %v3028_v21  ;;  %v3861_v62 = vmul.f32 %v3829_v7, %v3029_v47  ;;  %v9510_v29 = vadd.f32 %v9330_v0, %v11432_v24  ;;  %v11438_v11 = vld [vmem:[#allocation17_spill] sm:$0xff] }
 0x2a6   : > { %v9514_v38 = vadd.f32 %v9330_v0, %v11433_v16  ;;  %v9516_v22 = vpop.eup %7031  ;;  %v3576_v52 = vsub.f32 0.0, %v3544_v34  ;;  %4411 = vrot.lane.b32.xlu1 %v4327_v36, %s7206_s27  ;;  %v9520_v57 = vadd.f32 %v9313_v44, %v2813_v42  ;;  %v9523_v54 = vadd.f32 %v9323_v1, %v2816_v13  ;;  %v9534_v42 = vld [vmem:[#allocation3 + $0x18] sm:$0xff] }
 0x2a7   : > { %v3415_v5 = vadd.f32 -0.28449672, %v3383_v25  ;;  %v3884_v46 = vpack.c.bf16 %v3861_v62, %v3860_v48  ;;  %v3256_v17 = vmul.f32 1.0614054, %v9516_v22  ;;  %v3545_v30 = vmul.f32 %v3097_v35, %v3097_v35  ;;  %v11436_v35 = vld [vmem:[#allocation15_spill] sm:$0xff] }
 0x2a8   : > { %v9528_v23 = vadd.f32 %v9330_v0, %v11434_v49  ;;  %v3702_v39 = vsub.f32 1.0, %v3670_v60  ;;  %v4590_v55 = vor.u32 %v4587_v63, %v4324_v4  ;;  %v9532_v61 = vmul.f32 0.70710677, %v9520_v57 }
 0x2a9   : > { %v3447_v45 = vmul.f32 %v9480_v8, %v3415_v5  ;;  %v7034_v44 = vpop.eup %7033  ;;  %3900 = vst.msk [vmem:[#allocation3 + $0x40] sm:$0xff] %vm11435_vm14, %v3884_v46  ;;  %v3288_v1 = vadd.f32 -1.4531521, %v3256_v17  ;;  %v9538_v13 = vmul.f32 0.70710677, %v9523_v54  ;;  %v9542_v15 = vadd.f32 %v9330_v0, %v11436_v35 }
 0x2aa   : > { %v9546_v34 = vadd.f32 %v9330_v0, %v11437_v26  ;;  %v3628_v43 = vmul.f32 1.442695, %v3576_v52  ;;  %4681 = vrot.lane.b32.xlu1 %v4590_v55, %s7201_s28  ;;  %v3098_v10 = vand.u32 2147483647, %v9532_v61  ;;  %v9552_v32 = vadd.f32 %v9330_v0, %v11438_v11  ;;  %5324 = vrot.lane.b32.xlu0 %v4590_v55, %s7200_s20  ;;  %v9592_v11 = vld [vmem:[#allocation3 + $0x20] sm:$0xff] }
 0x2ab   : > { %v3479_v4 = vadd.f32 0.2548296, %v3447_v45  ;;  %v3320_v56 = vmul.f32 %v9516_v22, %v3288_v1  ;;  %v3577_v41 = vsub.f32 0.0, %v3545_v30  ;;  %v3099_v21 = vand.u32 2147483647, %v9538_v13  ;;  %v6944_v1 = vld [vmem:[%s11289_s3] sm:$0xff]  }
 0x2ac   : > { %v5585_v47 = vshll.u32 %v9534_v42, 16  ;;  %v3766_v7 = vsub.f32 0.0, %v3702_v39  ;;  %v3130_v25 = vmul.f32 0.3275911, %v3098_v10  ;;  %vm3734_vm5 = vcmp.lt.f32.partialorder %v9388_v58, 0.0  ;;  %5893 = vmatpush1.bf16.msra.mxu0 %v6944_v1 }
 0x2ad   : > { %v3511_v60 = vmul.f32 %v9480_v8, %v3479_v4  ;;  %v3352_v48 = vadd.f32 1.4214138, %v3320_v56  ;;  %v3131_v62 = vmul.f32 0.3275911, %v3099_v21  ;;  %7037 = vpow2.f32 %v3628_v43 }
 0x2ae   : > { %v9558_v63 = vpop.eup %7035  ;;  %v3162_v16 = vadd.f32 1.0, %v3130_v25  ;;  %5054 = vrot.lane.b32.xlu1 %v4327_v36, %s7207_s26  ;;  %v3630_v52 = vmul.f32 1.442695, %v3577_v41  ;;  %v9567_v8 = vadd.f32 %v9337_v14, %v9488_v20  ;;  %v3798_v58 = vsel %vm3734_vm5, %v3766_v7, %v3702_v39  ;;  %v9570_v36 = vld [vmem:[#allocation3 + $0x20] sm:$0xff] }
 0x2af   : > { %v3671_v24 = vmul.f32 %v7034_v44, %v3511_v60  ;;  %v3257_v0 = vmul.f32 1.0614054, %v9558_v63  ;;  %v3384_v5 = vmul.f32 %v9516_v22, %v3352_v48  ;;  %v3163_v46 = vadd.f32 1.0, %v3131_v62  ;;  %4181 = vrot.lane.b32.xlu0 %v9570_v36, %s7203_s16 }
 0x2b0   : > { %7039 = vrcp.f32 %v3162_v16  ;;  %v5583_v49 = vshrl.u32 %v9534_v42, 16  ;;  %v5587_v45 = vrot.slane %v5585_v47, 1  ;;  %v3030_v55 = vmul.f32 0.5, %v9362_v2 }
 0x2b1   : > { %v3703_v17 = vsub.f32 1.0, %v3671_v24  ;;  %v3289_v30 = vadd.f32 -1.4531521, %v3257_v0  ;;  %v3416_v44 = vadd.f32 -0.28449672, %v3384_v5  ;;  %7041 = vrcp.f32 %v3163_v46 }
 0x2b2   : > { %v3031_v14 = vmul.f32 0.5, %v9413_v28  ;;  %4813 = vrot.lane.b32.xlu1 %v9570_v36, %s7202_s14  ;;  %v3830_v42 = vadd.f32 1.0, %v3798_v58  ;;  %vm3735_vm7 = vcmp.lt.f32.partialorder %v9422_v50, 0.0  ;;  %v9585_v26 = vmul.f32 0.70710677, %v9567_v8 }
 0x2b3   : > { %v3767_v20 = vsub.f32 0.0, %v3703_v17  ;;  %v3321_v39 = vmul.f32 %v9558_v63, %v3289_v30  ;;  %v3448_v35 = vmul.f32 %v9516_v22, %v3416_v44  ;;  %7043 = vpow2.f32 %v3630_v52 }
 0x2b4   : > { %v9589_v4 = vadd.f32 %v9349_v37, %v9495_v27  ;;  %v11439_v43 = vmov 0   ;;  %v3546_v41 = vmul.f32 %v3098_v10, %v3098_v10  ;;  %v3100_v47 = vand.u32 2147483647, %v9585_v26 }
 0x2b5   : > { %v3799_v2 = vsel %vm3735_vm7, %v3767_v20, %v3703_v17  ;;  %v3353_v28 = vadd.f32 1.4214138, %v3321_v39  ;;  %5894 = vmatprep.subr.bf16.mxu0 %v11439_v43  ;;  %v3480_v56 = vadd.f32 0.2548296, %v3448_v35  ;;  %v9595_v7 = vor.u32 %v5587_v45, %v5583_v49  ;;  %v6945_v20 = vld [vmem:[%s11289_s3 + $0x8] sm:$0xff]   ;;  %vm11444_vm7 = vmmov %vm11441_vm0 }
 0x2b6   : > { %v3831_v50 = vadd.f32 1.0, %v3799_v2  ;;  %v3547_v25 = vmul.f32 %v3099_v21, %v3099_v21  ;;  %v9599_v48 = vmul.f32 0.70710677, %v9589_v4  ;;  %5450 = vrot.lane.b32.xlu1 %v9570_v36, %s7204_s17  ;;  %v3862_v37 = vmul.f32 %v3830_v42, %v3030_v55  ;;  %5895 = vmatpush1.bf16.msra.mxu0 %v6945_v20 }
 0x2b7   : > { %v3385_v60 = vmul.f32 %v9558_v63, %v3353_v28  ;;  %v3512_v62 = vmul.f32 %v9516_v22, %v3480_v56  ;;  %v3132_v24 = vmul.f32 0.3275911, %v3100_v47  ;;  %v7038_v0 = vpop.eup %7037  ;;  %v5590_v10 = vshrl.u32 %v9592_v11, 16  ;;  %5896 = vmatprep.subr.bf16.mxu0 %v11439_v43 }
 0x2b8   : > { %v3863_v27 = vmul.f32 %v3831_v50, %v3031_v14  ;;  %v9606_v16 = vmul.f32 0.5, %v9441_v53  ;;  %v3101_v21 = vand.u32 2147483647, %v9599_v48  ;;  %v3578_v58 = vsub.f32 0.0, %v3546_v41 }
 0x2b9   : > { %v3417_v5 = vadd.f32 -0.28449672, %v3385_v60  ;;  %v3672_v46 = vmul.f32 %v7038_v0, %v3512_v62  ;;  %v3164_v17 = vadd.f32 1.0, %v3132_v24  ;;  %v3579_v45 = vsub.f32 0.0, %v3547_v25 }
 0x2ba   : > { %v3885_v52 = vpack.c.bf16 %v3863_v27, %v3862_v37  ;;  %v9609_v30 = vpop.eup %7039  ;;  %v3133_v22 = vmul.f32 0.3275911, %v3101_v21  ;;  %v4331_v44 = vshll.u32 %v9570_v36, 16  ;;  %v4329_v14 = vshrl.u32 %v9570_v36, 16 }
 0x2bb   : > { %v3449_v49 = vmul.f32 %v9558_v63, %v3417_v5  ;;  %v9613_v1 = vpop.eup %7041  ;;  %v3704_v53 = vsub.f32 1.0, %v3672_v46  ;;  %v3258_v55 = vmul.f32 1.0614054, %v9609_v30  ;;  %7045 = vrcp.f32 %v3164_v17 }
 0x2bc   : > { %3901 = vst.msk [vmem:[#allocation3 + $0x48] sm:$0xff] %vm11440_vm9, %v3885_v52  ;;  %vm3736_vm3 = vcmp.lt.f32.partialorder %v9454_v12, 0.0  ;;  %v3259_v42 = vmul.f32 1.0614054, %v9613_v1  ;;  %v3165_v35 = vadd.f32 1.0, %v3133_v22  ;;  %v4333_v56 = vrot.slane %v4331_v44, 1 }
 0x2bd   : > { %v3481_v39 = vadd.f32 0.2548296, %v3449_v49  ;;  %v3768_v2 = vsub.f32 0.0, %v3704_v53  ;;  %v3290_v28 = vadd.f32 -1.4531521, %v3258_v55  ;;  %v7044_v41 = vpop.eup %7043  ;;  %v3548_v27 = vmul.f32 %v3100_v47, %v3100_v47 }
 0x2be   : > { %v3632_v50 = vmul.f32 1.442695, %v3578_v58  ;;  %v3291_v25 = vadd.f32 -1.4531521, %v3259_v42  ;;  %v3634_v36 = vmul.f32 1.442695, %v3579_v45  ;;  %7047 = vrcp.f32 %v3165_v35 }
 0x2bf   : > { %v3513_v60 = vmul.f32 %v9558_v63, %v3481_v39  ;;  %v3322_v37 = vmul.f32 %v9609_v30, %v3290_v28  ;;  %v4334_v62 = vor.u32 %v4333_v56, %v4329_v14  ;;  %v5239_v24 = vrot.slane %v4329_v14, 7 }
 0x2c0   : > { %v3800_v0 = vsel %vm3736_vm3, %v3768_v2, %v3704_v53  ;;  %v3323_v52 = vmul.f32 %v9613_v1, %v3291_v25  ;;  %v3549_v46 = vmul.f32 %v3101_v21, %v3101_v21  ;;  %v9632_v17 = vadd.f32 %v9373_v18, %v9510_v29 }
 0x2c1   : > { %v3673_v5 = vmul.f32 %v7044_v41, %v3513_v60  ;;  %v3354_v58 = vadd.f32 1.4214138, %v3322_v37  ;;  %4413 = vrot.lane.b32.xlu0 %v4334_v62, %s7206_s27  ;;  %v5242_v63 = vor.u32 %v5239_v24, %v4331_v44  ;;  %7049 = vpow2.f32 %v3632_v50 }
 0x2c2   : > { %v3355_v47 = vadd.f32 1.4214138, %v3323_v52  ;;  %v9636_v45 = vadd.f32 %v9390_v3, %v9514_v38  ;;  %7051 = vpow2.f32 %v3634_v36  ;;  %v3580_v22 = vsub.f32 0.0, %v3548_v27 }
 0x2c3   : > { %v3705_v49 = vsub.f32 1.0, %v3673_v5  ;;  %v3386_v12 = vmul.f32 %v9609_v30, %v3354_v58  ;;  %5326 = vrot.lane.b32.xlu1 %v5242_v63, %s7200_s20  ;;  %v3832_v21 = vadd.f32 1.0, %v3800_v0  ;;  %v9642_v18 = vmul.f32 0.70710677, %v9632_v17 }
 0x2c4   : > { %v3387_v44 = vmul.f32 %v9613_v1, %v3355_v47  ;;  %vm3737_vm15 = vcmp.lt.f32.partialorder %v9483_v31, 0.0  ;;  %v3581_v3 = vsub.f32 0.0, %v3549_v46  ;;  %v9649_v38 = vmul.f32 0.70710677, %v9636_v45  ;;  %v6946_v31 = vld [vmem:[%s11289_s3 + $0x10] sm:$0xff]  }
 0x2c5   : > { %v3769_v53 = vsub.f32 0.0, %v3705_v49  ;;  %v9644_v29 = vpop.eup %7045  ;;  %v3418_v55 = vadd.f32 -0.28449672, %v3386_v12  ;;  %4683 = vrot.lane.b32.xlu0 %v5242_v63, %s7201_s28  ;;  %v3102_v42 = vand.u32 2147483647, %v9642_v18  ;;  %v3033_v35 = vmul.f32 0.5, %v9458_v6  ;;  %5897 = vmatpush1.bf16.msra.mxu0 %v6946_v31 }
 0x2c6   : > { %v3419_v20 = vadd.f32 -0.28449672, %v3387_v44  ;;  %v3260_v39 = vmul.f32 1.0614054, %v9644_v29  ;;  %v3636_v50 = vmul.f32 1.442695, %v3580_v22  ;;  %v3864_v41 = vmul.f32 %v3832_v21, %v9606_v16  ;;  %5898 = vmatprep.subr.bf16.mxu0 %v11439_v43 }
 0x2c7   : > { %v3801_v14 = vsel %vm3737_vm15, %v3769_v53, %v3705_v49  ;;  %v3450_v28 = vmul.f32 %v9609_v30, %v3418_v55  ;;  %v3134_v36 = vmul.f32 0.3275911, %v3102_v42  ;;  %v6947_v6 = vld [vmem:[%s11289_s3 + $0x18] sm:$0xff]   ;;  %v3103_v0 = vand.u32 2147483647, %v9649_v38 }
 0x2c8   : > { %v3833_v2 = vadd.f32 1.0, %v3801_v14  ;;  %v9658_v56 = vpop.eup %7047  ;;  %v3451_v60 = vmul.f32 %v9613_v1, %v3419_v20  ;;  %v3292_v25 = vadd.f32 -1.4531521, %v3260_v39  ;;  %v3638_v52 = vmul.f32 1.442695, %v3581_v3 }
 0x2c9   : > { %v3482_v27 = vadd.f32 0.2548296, %v3450_v28  ;;  %v3261_v24 = vmul.f32 1.0614054, %v9658_v56  ;;  %5056 = vrot.lane.b32.xlu0 %v4334_v62, %s7207_s26  ;;  %v3166_v46 = vadd.f32 1.0, %v3134_v36  ;;  %v5592_v22 = vshll.u32 %v9592_v11, 16  ;;  %5899 = vmatpush1.bf16.msra.mxu0 %v6947_v6 }
 0x2ca   : > { %v3865_v37 = vmul.f32 %v3833_v2, %v3033_v35  ;;  %v3483_v5 = vadd.f32 0.2548296, %v3451_v60  ;;  %v3324_v16 = vmul.f32 %v9644_v29, %v3292_v25  ;;  %v3135_v47 = vmul.f32 0.3275911, %v3103_v0  ;;  %v9673_v62 = vld [vmem:[#allocation3 + $0x28] sm:$0xff]  ;;  %5900 = vmatprep.subr.bf16.mxu0 %v11439_v43 }
 0x2cb   : > { %v3514_v63 = vmul.f32 %v9609_v30, %v3482_v27  ;;  %v3293_v49 = vadd.f32 -1.4531521, %v3261_v24  ;;  %v7050_v12 = vpop.eup %7049  ;;  %7053 = vrcp.f32 %v3166_v46  ;;  %v6948_v30 = vld [vmem:[%s11289_s3 + $0x20] sm:$0xff]   ;;  %vm3738_vm2 = vcmp.lt.f32.partialorder %v9532_v61, 0.0  ;;  %v6950_v61 = vld [vmem:[%s11289_s3 + $0x30] sm:$0xff]  }
 0x2cc   : > { %v3886_v58 = vpack.c.bf16 %v3865_v37, %v3864_v41  ;;  %v3515_v21 = vmul.f32 %v9613_v1, %v3483_v5  ;;  %v3356_v53 = vadd.f32 1.4214138, %v3324_v16  ;;  %v7052_v44 = vpop.eup %7051  ;;  %7055 = vpow2.f32 %v3636_v50  ;;  %v6949_v5 = vld [vmem:[%s11289_s3 + $0x28] sm:$0xff]  }
 0x2cd   : > { %v3674_v55 = vmul.f32 %v7050_v12, %v3514_v63  ;;  %v3325_v3 = vmul.f32 %v9658_v56, %v3293_v49  ;;  %v3167_v14 = vadd.f32 1.0, %v3135_v47  ;;  %4183 = vrot.lane.b32.xlu0 %v9673_v62, %s7203_s16  ;;  %v3034_v1 = vmul.f32 0.5, %v9520_v57  ;;  %5901 = vmatpush1.bf16.msra.mxu0 %v6948_v30 }
 0x2ce   : > { %3902 = vst.msk [vmem:[#allocation3 + $0x50] sm:$0xff] %vm11441_vm0, %v3886_v58  ;;  %v3675_v20 = vmul.f32 %v7052_v44, %v3515_v21  ;;  %v3388_v39 = vmul.f32 %v9644_v29, %v3356_v53  ;;  %7057 = vpow2.f32 %v3638_v52  ;;  %v4336_v31 = vshrl.u32 %v9673_v62, 16  ;;  %5902 = vmatprep.subr.bf16.mxu0 %v11439_v43  ;;  %v9720_v44 = vld [vmem:[#allocation3 + $0x28] sm:$0xff] }
 0x2cf   : > { %v3706_v35 = vsub.f32 1.0, %v3674_v55  ;;  %v3357_v2 = vadd.f32 1.4214138, %v3325_v3  ;;  %7059 = vrcp.f32 %v3167_v14  ;;  %v4338_v41 = vshll.u32 %v9673_v62, 16 }
 0x2d0   : > { %v3707_v28 = vsub.f32 1.0, %v3675_v20  ;;  %v3420_v50 = vadd.f32 -0.28449672, %v3388_v39  ;;  %v3550_v25 = vmul.f32 %v3102_v42, %v3102_v42  ;;  %v9691_v36 = vadd.f32 %v9403_v33, %v9528_v23 }
 0x2d1   : > { %v3770_v60 = vsub.f32 0.0, %v3706_v35  ;;  %v3389_v57 = vmul.f32 %v9658_v56, %v3357_v2  ;;  %4815 = vrot.lane.b32.xlu0 %v9673_v62, %s7202_s14  ;;  %v3551_v27 = vmul.f32 %v3103_v0, %v3103_v0  ;;  %v4340_v24 = vrot.slane %v4338_v41, 1  ;;  %5903 = vmatpush1.bf16.msra.mxu0 %v6949_v5 }
 0x2d2   : > { %v3771_v6 = vsub.f32 0.0, %v3707_v28  ;;  %v3452_v37 = vmul.f32 %v9644_v29, %v3420_v50  ;;  %vm3739_vm13 = vcmp.lt.f32.partialorder %v9538_v13, 0.0  ;;  %v4601_v23 = vrot.slane %v4336_v31, 7  ;;  %5904 = vmatprep.subr.bf16.mxu0 %v11439_v43 }
 0x2d3   : > { %v3802_v42 = vsel %vm3738_vm2, %v3770_v60, %v3706_v35  ;;  %v3421_v33 = vadd.f32 -0.28449672, %v3389_v57  ;;  %v4341_v58 = vor.u32 %v4340_v24, %v4336_v31  ;;  %v3035_v0 = vmul.f32 0.5, %v9523_v54  ;;  %v6951_v60 = vld [vmem:[%s11289_s3 + $0x38] sm:$0xff]  }
 0x2d4   : > { %v3834_v16 = vadd.f32 1.0, %v3802_v42  ;;  %v3803_v52 = vsel %vm3739_vm13, %v3771_v6, %v3707_v28  ;;  %v3484_v46 = vadd.f32 0.2548296, %v3452_v37  ;;  %v3582_v47 = vsub.f32 0.0, %v3550_v25 }
 0x2d5   : > { %v3835_v63 = vadd.f32 1.0, %v3803_v52  ;;  %v3453_v49 = vmul.f32 %v9658_v56, %v3421_v33  ;;  %5452 = vrot.lane.b32.xlu0 %v9673_v62, %s7204_s17  ;;  %v9710_v13 = vpop.eup %7053  ;;  %v9712_v12 = vrot.slane %v5592_v22, 1  ;;  %v3583_v53 = vsub.f32 0.0, %v3551_v27  ;;  %4415 = vrot.lane.b32.xlu1 %v4341_v58, %s7206_s27 }
 0x2d6   : > { %v3516_v21 = vmul.f32 %v9644_v29, %v3484_v46  ;;  %v9717_v54 = vmul.f32 0.70710677, %v9691_v36  ;;  %v7056_v62 = vpop.eup %7055  ;;  %v3866_v55 = vmul.f32 %v3834_v16, %v3034_v1  ;;  %v3262_v30 = vmul.f32 1.0614054, %v9710_v13  ;;  %5905 = vmatpush1.bf16.msra.mxu0 %v6950_v61  ;;  %v9758_v61 = vpop.permute.xlu0 %4173 }
 0x2d7   : > { %v3867_v3 = vmul.f32 %v3835_v63, %v3035_v0  ;;  %v3485_v14 = vadd.f32 0.2548296, %v3453_v49  ;;  %v9723_v39 = vor.u32 %v4601_v23, %v4338_v41  ;;  %v9728_v35 = vadd.f32 %v9408_v40, %v9542_v15  ;;  %5906 = vmatprep.subr.bf16.mxu0 %v11439_v43 }
 0x2d8   : > { %v7058_v22 = vpop.eup %7057  ;;  %v3676_v20 = vmul.f32 %v7056_v62, %v3516_v21  ;;  %v3104_v29 = vand.u32 2147483647, %v9717_v54  ;;  %v3294_v1 = vadd.f32 -1.4531521, %v3262_v30  ;;  %v3640_v31 = vmul.f32 1.442695, %v3582_v47 }
 0x2d9   : > { %v9730_v2 = vpop.eup %7059  ;;  %v3887_v28 = vpack.c.bf16 %v3867_v3, %v3866_v55  ;;  %v3517_v50 = vmul.f32 %v9658_v56, %v3485_v14  ;;  %v5599_v41 = vshll.u32 %v9720_v44, 16  ;;  %4685 = vrot.lane.b32.xlu1 %v9723_v39, %s7201_s28  ;;  %vm3740_vm4 = vcmp.lt.f32.partialorder %v9585_v26, 0.0  ;;  %v6952_v26 = vld [vmem:[%s11289_s3 + $0x40] sm:$0xff]   ;;  %v9760_v21 = vld [vmem:[#allocation3 + $0x30] sm:$0xff]  ;;  %5328 = vrot.lane.b32.xlu0 %v9723_v39, %s7200_s20  ;;  %v9821_v39 = vpop.permute.xlu1 %4805 }
 0x2da   : > { %v3708_v57 = vsub.f32 1.0, %v3676_v20  ;;  %v3263_v25 = vmul.f32 1.0614054, %v9730_v2  ;;  %v3136_v40 = vmul.f32 0.3275911, %v3104_v29  ;;  %v3326_v56 = vmul.f32 %v9710_v13, %v3294_v1  ;;  %5907 = vmatpush1.bf16.msra.mxu0 %v6951_v60  ;;  %v9767_v30 = vld [vmem:[#allocation3 + $0x30] sm:$0xff] }
 0x2db   : > { %3903 = vst.msk [vmem:[#allocation3 + $0x58] sm:$0xff] %vm11442_vm8, %v3887_v28  ;;  %v3677_v15 = vmul.f32 %v7058_v22, %v3517_v50  ;;  %v9745_v6 = vmul.f32 0.70710677, %v9728_v35  ;;  %v3642_v24 = vmul.f32 1.442695, %v3583_v53  ;;  %7061 = vpow2.f32 %v3640_v31  ;;  %5908 = vmatprep.subr.bf16.mxu0 %v11439_v43  ;;  %v9778_v31 = vpop.permute.xlu0 %4675 }
 0x2dc   : > { %v3772_v37 = vsub.f32 0.0, %v3708_v57  ;;  %v3295_v27 = vadd.f32 -1.4531521, %v3263_v25  ;;  %v3168_v5 = vadd.f32 1.0, %v3136_v40  ;;  %v3358_v33 = vadd.f32 1.4214138, %v3326_v56 }
 0x2dd   : > { %v3709_v42 = vsub.f32 1.0, %v3677_v15  ;;  %v3105_v23 = vand.u32 2147483647, %v9745_v6  ;;  %v5597_v16 = vshrl.u32 %v9720_v44, 16  ;;  %5058 = vrot.lane.b32.xlu1 %v4341_v58, %s7207_s26  ;;  %v9755_v0 = vrot.slane %v5599_v41, 1 }
 0x2de   : > { %v3804_v52 = vsel %vm3740_vm4, %v3772_v37, %v3708_v57  ;;  %v3327_v46 = vmul.f32 %v9730_v2, %v3295_v27  ;;  %7063 = vrcp.f32 %v3168_v5  ;;  %v3390_v49 = vmul.f32 %v9710_v13, %v3358_v33  ;;  %5909 = vmatpush1.bf16.msra.mxu0 %v6952_v26  ;;  %vm11449_vm4 = vmmov %vm11444_vm7 }
 0x2df   : > { %v3773_v63 = vsub.f32 0.0, %v3709_v42  ;;  %v3137_v47 = vmul.f32 0.3275911, %v3105_v23  ;;  %v3836_v53 = vadd.f32 1.0, %v3804_v52  ;;  %vm3741_vm11 = vcmp.lt.f32.partialorder %v9599_v48, 0.0 }
 0x2e0   : > { %v3359_v62 = vadd.f32 1.4214138, %v3327_v46  ;;  %v9765_v55 = vadd.f32 %v9426_v19, %v9546_v34  ;;  %v3422_v3 = vadd.f32 -0.28449672, %v3390_v49  ;;  %7065 = vpow2.f32 %v3642_v24  ;;  %v9775_v34 = vld [vmem:[#allocation3 + $0x38] sm:$0xff] }
 0x2e1   : > { %v3805_v58 = vsel %vm3741_vm11, %v3773_v63, %v3709_v42  ;;  %v3169_v14 = vadd.f32 1.0, %v3137_v47  ;;  %v3036_v22 = vmul.f32 0.5, %v9567_v8  ;;  %v3037_v20 = vmul.f32 0.5, %v9589_v4  ;;  %4185 = vrot.lane.b32.xlu1 %v9767_v30, %s7203_s16 }
 0x2e2   : > { %v3837_v28 = vadd.f32 1.0, %v3805_v58  ;;  %v3391_v50 = vmul.f32 %v9730_v2, %v3359_v62  ;;  %v5606_v19 = vshll.u32 %v9760_v21, 16  ;;  %v3454_v48 = vmul.f32 %v9710_v13, %v3422_v3 }
 0x2e3   : > { %v3552_v1 = vmul.f32 %v3104_v29, %v3104_v29  ;;  %7067 = vrcp.f32 %v3169_v14  ;;  %v3868_v60 = vmul.f32 %v3836_v53, %v3036_v22  ;;  %v9781_v4 = vmul.f32 0.70710677, %v9765_v55  ;;  %v9805_v53 = vpop.permute.xlu0 %5048 }
 0x2e4   : > { %v3869_v8 = vmul.f32 %v3837_v28, %v3037_v20  ;;  %v3423_v41 = vadd.f32 -0.28449672, %v3391_v50  ;;  %v5604_v57 = vshrl.u32 %v9760_v21, 16  ;;  %v3486_v25 = vadd.f32 0.2548296, %v3454_v48 }
 0x2e5   : > { %v9786_v40 = vadd.f32 %v9431_v9, %v9552_v32  ;;  %v5613_v15 = vshll.u32 %v9775_v34, 16  ;;  %v3106_v37 = vand.u32 2147483647, %v9781_v4  ;;  %4817 = vrot.lane.b32.xlu1 %v9767_v30, %s7202_s14  ;;  %v7062_v27 = vpop.eup %7061  ;;  %v9793_v24 = vrot.slane %v5606_v19, 1 }
 0x2e6   : > { %v3888_v56 = vpack.c.bf16 %v3869_v8, %v3868_v60  ;;  %v3455_v29 = vmul.f32 %v9730_v2, %v3423_v41  ;;  %v5611_v5 = vshrl.u32 %v9775_v34, 16  ;;  %v3518_v42 = vmul.f32 %v9710_v13, %v3486_v25 }
 0x2e7   : > { %v3584_v33 = vsub.f32 0.0, %v3552_v1  ;;  %v3553_v26 = vmul.f32 %v3105_v23, %v3105_v23  ;;  %v3138_v52 = vmul.f32 0.3275911, %v3106_v37  ;;  %v9801_v46 = vmul.f32 0.70710677, %v9786_v40 }
 0x2e8   : > { %v9797_v9 = vpop.eup %7063  ;;  %3904 = vst.msk [vmem:[#allocation3 + $0x60] sm:$0xff] %vm11443_vm10, %v3888_v56  ;;  %v3487_v32 = vadd.f32 0.2548296, %v3455_v29  ;;  %v3678_v63 = vmul.f32 %v7062_v27, %v3518_v42  ;;  %v4606_v47 = vshrl.u32 %v9767_v30, 16  ;;  %v9807_v62 = vrot.slane %v5613_v15, 1 }
 0x2e9   : > { %v3264_v49 = vmul.f32 1.0614054, %v9797_v9  ;;  %v3170_v58 = vadd.f32 1.0, %v3138_v52  ;;  %v3107_v3 = vand.u32 2147483647, %v9801_v46  ;;  %5454 = vrot.lane.b32.xlu1 %v9767_v30, %s7204_s17  ;;  %v3585_v19 = vsub.f32 0.0, %v3553_v26 }
 0x2ea   : > { %v3519_v13 = vmul.f32 %v9730_v2, %v3487_v32  ;;  %v7066_v23 = vpop.eup %7065  ;;  %v3710_v14 = vsub.f32 1.0, %v3678_v63  ;;  %v3644_v20 = vmul.f32 1.442695, %v3584_v33  ;;  %v4608_v28 = vrot.slane %v4606_v47, 7  ;;  %v9824_v32 = vpop.permute.xlu0 %5444 }
 0x2eb   : > { %v3296_v22 = vadd.f32 -1.4531521, %v3264_v49  ;;  %7069 = vrcp.f32 %v3170_v58  ;;  %v3139_v48 = vmul.f32 0.3275911, %v3107_v3  ;;  %vm3742_vm14 = vcmp.lt.f32.partialorder %v9642_v18, 0.0 }
 0x2ec   : > { %v3679_v50 = vmul.f32 %v7066_v23, %v3519_v13  ;;  %v3774_v2 = vsub.f32 0.0, %v3710_v14  ;;  %v4609_v8 = vshll.u32 %v9767_v30, 16  ;;  %v3554_v15 = vmul.f32 %v3106_v37, %v3106_v37  ;;  %v9829_v37 = vld [vmem:[#allocation3 + $0x38] sm:$0xff]  ;;  %v9831_v23 = vpop.permute.xlu1 %4405 }
 0x2ed   : > { %v9815_v1 = vpop.eup %7067  ;;  %v3328_v60 = vmul.f32 %v9797_v9, %v3296_v22  ;;  %v3171_v56 = vadd.f32 1.0, %v3139_v48  ;;  %v3038_v29 = vmul.f32 0.5, %v9632_v17  ;;  %vm3743_vm5 = vcmp.lt.f32.partialorder %v9649_v38, 0.0 }
 0x2ee   : > { %v3711_v41 = vsub.f32 1.0, %v3679_v50  ;;  %v3265_v25 = vmul.f32 1.0614054, %v9815_v1  ;;  %v3806_v27 = vsel %vm3742_vm14, %v3774_v2, %v3710_v14  ;;  %v4611_v33 = vor.u32 %v4609_v8, %v4608_v28 }
 0x2ef   : > { %v3360_v42 = vadd.f32 1.4214138, %v3328_v60  ;;  %7071 = vpow2.f32 %v3644_v20  ;;  %v3646_v26 = vmul.f32 1.442695, %v3585_v19  ;;  %v3838_v30 = vadd.f32 1.0, %v3806_v27 }
 0x2f0   : > { %v3775_v18 = vsub.f32 0.0, %v3711_v41  ;;  %v3297_v63 = vadd.f32 -1.4531521, %v3265_v25  ;;  %7073 = vrcp.f32 %v3171_v56  ;;  %4687 = vrot.lane.b32.xlu0 %v4611_v33, %s7201_s28  ;;  %v3586_v49 = vsub.f32 0.0, %v3554_v15  ;;  %v9843_v15 = vpop.permute.xlu1 %4175 }
 0x2f1   : > { %v3392_v52 = vmul.f32 %v9797_v9, %v3360_v42  ;;  %v3555_v13 = vmul.f32 %v3107_v3, %v3107_v3  ;;  %v4347_v58 = vrot.slane %v4609_v8, 1  ;;  %v3039_v38 = vmul.f32 0.5, %v9636_v45 }
 0x2f2   : > { %v3807_v17 = vsel %vm3743_vm5, %v3775_v18, %v3711_v41  ;;  %v3329_v20 = vmul.f32 %v9815_v1, %v3297_v63  ;;  %7075 = vpow2.f32 %v3646_v26  ;;  %v4613_v50 = vshrl.u32 %v9829_v37, 16  ;;  %v9837_v41 = vpop.permute.xlu0 %4677 }
 0x2f3   : > { %v3839_v14 = vadd.f32 1.0, %v3807_v17  ;;  %v3424_v22 = vadd.f32 -0.28449672, %v3392_v52  ;;  %v4348_v28 = vor.u32 %v4606_v47, %v4347_v58  ;;  %v3870_v19 = vmul.f32 %v3838_v30, %v3038_v29  ;;  %v9863_v52 = vld [vmem:[#allocation3 + $0x40] sm:$0xff]  ;;  %v5544_v17 = vld [vmem:[#allocation4 + $0xd8] sm:$0x80] }
 0x2f4   : > { %v3361_v60 = vadd.f32 1.4214138, %v3329_v20  ;;  %v3648_v8 = vmul.f32 1.442695, %v3586_v49  ;;  %v3587_v25 = vsub.f32 0.0, %v3555_v13  ;;  %v4616_v45 = vshll.u32 %v9829_v37, 16 }
 0x2f5   : > { %v3871_v48 = vmul.f32 %v3839_v14, %v3039_v38  ;;  %v3456_v2 = vmul.f32 %v9797_v9, %v3424_v22  ;;  %v9839_v3 = vpop.eup %7069  ;;  %4417 = vrot.lane.b32.xlu1 %v4348_v28, %s7206_s27  ;;  %v9850_v42 = vor.u32 %v9712_v12, %v5590_v10  ;;  %v9855_v18 = vor.u32 %v9755_v0, %v5597_v16  ;;  %v3914_v16 = vld [vmem:[#allocation4 + $0x10] sm:$0x1]  ;;  %v3911_v14 = vld [vmem:[#allocation4] sm:$0x1]  ;;  %v9893_v22 = vpop.permute.xlu1 %4807 }
 0x2f6   : > { %v3393_v29 = vmul.f32 %v9815_v1, %v3361_v60  ;;  %v3266_v27 = vmul.f32 1.0614054, %v9839_v3  ;;  %v9860_v26 = vor.u32 %v9793_v24, %v5604_v57  ;;  %5060 = vrot.lane.b32.xlu0 %v4348_v28, %s7207_s26  ;;  %v4615_v30 = vrot.slane %v4613_v50, 7  ;;  %v3959_v24 = vld [vmem:[#allocation3] sm:$0xff]  ;;  %v9883_v49 = vpop.permute.xlu0 %5320 }
 0x2f7   : > { %v3889_v47 = vpack.c.bf16 %v3871_v48, %v3870_v19  ;;  %v3488_v56 = vadd.f32 0.2548296, %v3456_v2  ;;  %v9868_v11 = vor.u32 %v9807_v62, %v5611_v5  ;;  %7077 = vpow2.f32 %v3648_v8  ;;  %v9895_v60 = vld [vmem:[#allocation3 + $0x40] sm:$0xff] }
 0x2f8   : > { %v3425_v12 = vadd.f32 -0.28449672, %v3393_v29  ;;  %v3298_v44 = vadd.f32 -1.4531521, %v3266_v27  ;;  %v3650_v21 = vmul.f32 1.442695, %v3587_v25  ;;  %v9888_v13 = vor.u32 %v4616_v45, %v4615_v30 }
 0x2f9   : > { %3905 = vst.msk [vmem:[#allocation3 + $0x68] sm:$0xff] %vm11444_vm7, %v3889_v47  ;;  %v3520_v10 = vmul.f32 %v9797_v9, %v3488_v56  ;;  %v7072_v0 = vpop.eup %7071  ;;  %5330 = vrot.lane.b32.xlu1 %v4611_v33, %s7200_s20  ;;  %v4990_v57 = vrot.slane %v4616_v45, 1  ;;  %vm3909_vm9 = vcmask 122880   ;;  %v4620_v9 = vshrl.u32 %v9863_v52, 16 }
 0x2fa   : > { %v9873_v63 = vpop.eup %7073  ;;  %v3457_v5 = vmul.f32 %v9815_v1, %v3425_v12  ;;  %v3330_v62 = vmul.f32 %v9839_v3, %v3298_v44  ;;  %vm11445_vm3 = vsmask.f32 256  ;;  %4187 = vrot.lane.b32.xlu0 %v9829_v37, %s7203_s16  ;;  %v4623_v58 = vshll.u32 %v9863_v52, 16  ;;  %v9901_v27 = vpop.permute.xlu0 %4177 }
 0x2fb   : > { %v3680_v34 = vmul.f32 %v7072_v0, %v3520_v10  ;;  %vm9879_vm15 = vmand %vm3909_vm9, %vm11445_vm3  ;;  %v3267_v33 = vmul.f32 1.0614054, %v9873_v63  ;;  %v3975_v48 = vshrl.u32 %v3959_v24, 16  ;;  %v4991_v25 = vor.u32 %v4990_v57, %v4613_v50 }
 0x2fc   : > { %v3915_v38 = vsel %vm9879_vm15, 0, %v3914_v16  ;;  %v3489_v28 = vadd.f32 0.2548296, %v3457_v5  ;;  %v3362_v19 = vadd.f32 1.4214138, %v3330_v62  ;;  %v7076_v2 = vpop.eup %7075  ;;  %vm4141_vm0 = vcmask 261248  }
 0x2fd   : > { %v3712_v20 = vsub.f32 1.0, %v3680_v34  ;;  %3916 = vst [vmem:[#allocation4 + $0x10] sm:$0x1] %v3915_v38  ;;  %v3299_v8 = vadd.f32 -1.4531521, %v3267_v33  ;;  %4689 = vrot.lane.b32.xlu1 %v9888_v13, %s7201_s28  ;;  %v3977_v29 = vrot.slane %v3975_v48, 7  ;;  %7079 = vpow2.f32 %v3650_v21 }
 0x2fe   : > { %v3521_v47 = vmul.f32 %v9815_v1, %v3489_v28  ;;  %v3394_v56 = vmul.f32 %v9839_v3, %v3362_v19  ;;  %4819 = vrot.lane.b32.xlu0 %v9829_v37, %s7202_s14  ;;  %v3978_v10 = vshll.u32 %v3959_v24, 16  ;;  %vm4233_vm2 = vcmask 392448   ;;  %v9926_v62 = vpop.permute.xlu0 %4679 }
 0x2ff   : > { %v3776_v45 = vsub.f32 0.0, %v3712_v20  ;;  %v3331_v30 = vmul.f32 %v9873_v63, %v3299_v8  ;;  %v3912_v12 = vsel %vm9879_vm15, 0, %v3911_v14  ;;  %v5620_v50 = vshll.u32 %v9895_v60, 16  ;;  %v3960_v8 = vld [vmem:[#allocation3 + $0x8] sm:$0xff] }
 0x300   : > { %vm3744_vm13 = vcmp.lt.f32.partialorder %v9717_v54, 0.0  ;;  %v3681_v1 = vmul.f32 %v7076_v2, %v3521_v47  ;;  %v4622_v44 = vrot.slane %v4620_v9, 7  ;;  %3913 = vst [vmem:[#allocation4] sm:$0x1] %v3912_v12  ;;  %v3426_v16 = vadd.f32 -0.28449672, %v3394_v56  ;;  %v9921_v54 = vpop.permute.xlu1 %4407 }
 0x301   : > { %v3363_v0 = vadd.f32 1.4214138, %v3331_v30  ;;  %5062 = vrot.lane.b32.xlu1 %v4991_v25, %s7207_s26  ;;  %vm11448_vm8 = vsmask.f32 7938  ;;  %v3980_v24 = vor.u32 %v3978_v10, %v3977_v29  ;;  %4142 = vst.msk [vmem:[#allocation4] sm:$0xff] %vm4141_vm0, %v11439_v43  ;;  %v3808_v34 = vsel %vm3744_vm13, %v3776_v45, %v3712_v20  ;;  %v7078_v33 = vpop.eup %7077  ;;  %v9933_v2 = vld [vmem:[#allocation3 + $0x48] sm:$0xff] }
 0x302   : > { %vm9915_vm11 = vmand %vm11449_vm4, %vm11448_vm8  ;;  %v3713_v5 = vsub.f32 1.0, %v3681_v1  ;;  %vm3745_vm10 = vcmp.lt.f32.partialorder %v9745_v6, 0.0  ;;  %4234 = vst.msk [vmem:[#allocation4] sm:$0xff] %vm4233_vm2, %v11439_v43  ;;  %v3458_v38 = vmul.f32 %v9839_v3, %v3426_v16  ;;  %4419 = vrot.lane.b32.xlu0 %v4991_v25, %s7206_s27  ;;  %v4997_v28 = vrot.slane %v4623_v58, 1  ;;  %v3917_v20 = vld [vmem:[#allocation4 + $0x20] sm:$0x1] }
 0x303   : > { %v3395_v14 = vmul.f32 %v9873_v63, %v3363_v0  ;;  %vm4235_vm14 = vcmask 392455   ;;  %11452 = vst [vmem:[#allocation12_spill] sm:$0xff] %v9933_v2  ;;  %vm4497_vm5 = vcmask 516480   ;;  %v9935_v45 = vld [vmem:[#allocation3 + $0x48] sm:$0xff]  ;;  %v3840_v47 = vadd.f32 1.0, %v3808_v34  ;;  %v9971_v34 = vpop.permute.xlu0 %5052 }
 0x304   : > { %v4096_v19 = vld [vmem:[#allocation4 + $0x10] sm:$0xff]  ;;  %v3777_v48 = vsub.f32 0.0, %v3713_v5  ;;  %v3490_v56 = vadd.f32 0.2548296, %v3458_v38  ;;  %v9939_v25 = vor.u32 %v4623_v58, %v4622_v44  ;;  %v3040_v30 = vmul.f32 0.5, %v9691_v36  ;;  %vm9961_vm13 = vmand %vm4497_vm5, %vm11445_vm3  ;;  %11458 = vst [vmem:[#allocation13_spill] sm:$0xff] %v9971_v34 }
 0x305   : > { %v4097_v21 = vsel %vm9915_vm11, %v3980_v24, %v4096_v19  ;;  %v3427_v29 = vadd.f32 -0.28449672, %v3395_v14  ;;  %4189 = vrot.lane.b32.xlu1 %v9863_v52, %s7203_s16  ;;  %v3041_v10 = vmul.f32 0.5, %v9728_v35  ;;  %vm11453_vm7 = vsmask.f32 7966 }
 0x306   : > { %4098 = vst [vmem:[#allocation4 + $0x10] sm:$0xff] %v4097_v21  ;;  %v3809_v12 = vsel %vm3745_vm10, %v3777_v48, %v3713_v5  ;;  %vm9947_vm9 = vmand %vm4235_vm14, %vm11453_vm7  ;;  %v3918_v58 = vsel %vm9879_vm15, 0, %v3917_v20  ;;  %v3522_v36 = vmul.f32 %v9839_v3, %v3490_v56  ;;  %4691 = vrot.lane.b32.xlu0 %v9939_v25, %s7201_s28  ;;  %v4627_v16 = vshrl.u32 %v9933_v2, 16 }
 0x307   : > { %4218 = vst.msk [vmem:[#allocation4 + $0x10] sm:$0xff] %vm4141_vm0, %v9758_v61  ;;  %v3841_v44 = vadd.f32 1.0, %v3809_v12  ;;  %v3459_v35 = vmul.f32 %v9873_v63, %v3427_v29  ;;  %3919 = vst [vmem:[#allocation4 + $0x20] sm:$0x1] %v3918_v58  ;;  %v9966_v61 = vpop.permute.xlu1 %5050  ;;  %v5627_v0 = vshll.u32 %v9935_v45, 16  ;;  %v4998_v3 = vor.u32 %v4997_v28, %v4620_v9 }
 0x308   : > { %v3982_v24 = vshrl.u32 %v3960_v8, 16  ;;  %v3872_v5 = vmul.f32 %v3840_v47, %v3040_v30  ;;  %v3682_v14 = vmul.f32 %v7078_v33, %v3522_v36  ;;  %v3985_v9 = vshll.u32 %v3960_v8, 16  ;;  %v3920_v28 = vld [vmem:[#allocation4 + $0x30] sm:$0x1]  ;;  %v7080_v33 = vpop.eup %7079 }
 0x309   : > { %v3873_v38 = vmul.f32 %v3841_v44, %v3041_v10  ;;  %v3491_v19 = vadd.f32 0.2548296, %v3459_v35  ;;  %4821 = vrot.lane.b32.xlu1 %v9863_v52, %s7202_s14  ;;  %v4237_v20 = vld [vmem:[#allocation4] sm:$0x80]  ;;  %v4499_v48 = vld [vmem:[#allocation4] sm:$0x1] }
 0x30a   : > { %v4238_v21 = vsel %vm9947_vm9, 0, %v4237_v20  ;;  %v4500_v56 = vsel %vm9961_vm13, 0, %v4499_v48  ;;  %v3984_v29 = vrot.slane %v3982_v24, 7  ;;  %v3714_v58 = vsub.f32 1.0, %v3682_v14  ;;  %5064 = vrot.lane.b32.xlu0 %v4998_v3, %s7207_s26  ;;  %v3961_v8 = vld [vmem:[#allocation3 + $0x10] sm:$0xff] }
 0x30b   : > { %v3890_v12 = vpack.c.bf16 %v3873_v38, %v3872_v5  ;;  %v3523_v47 = vmul.f32 %v9873_v63, %v3491_v19  ;;  %4239 = vst [vmem:[#allocation4] sm:$0x80] %v4238_v21  ;;  %4501 = vst [vmem:[#allocation4] sm:$0x1] %v4500_v56  ;;  %v4629_v52 = vrot.slane %v4627_v16, 7  ;;  %v5622_v30 = vrot.slane %v5620_v50, 1  ;;  %v9990_v38 = vpop.permute.xlu1 %4809 }
 0x30c   : > { %v5629_v10 = vrot.slane %v5627_v0, 1  ;;  %vm4723_vm8 = vcmask 523648   ;;  %v3987_v44 = vor.u32 %v3985_v9, %v3984_v29  ;;  %v9985_v36 = vld [vmem:[#allocation3 + $0x50] sm:$0xff]  ;;  %v3778_v63 = vsub.f32 0.0, %v3714_v58 }
 0x30d   : > { %3906 = vst.msk [vmem:[#allocation3 + $0x70] sm:$0xff] %vm11449_vm4, %v3890_v12  ;;  %v3683_v35 = vmul.f32 %v7080_v33, %v3523_v47  ;;  %4421 = vrot.lane.b32.xlu1 %v4998_v3, %s7206_s27  ;;  %v4630_v5 = vshll.u32 %v9933_v2, 16  ;;  %v3921_v50 = vsel %vm9879_vm15, 0, %v3920_v28  ;;  %v5618_v0 = vshrl.u32 %v9895_v60, 16  ;;  %v9999_v20 = vld [vmem:[#allocation3 + $0x50] sm:$0xff]  ;;  %v10001_v3 = vpop.permute.xlu0 %4179  ;;  %v10020_v47 = vld [vmem:[#allocation3 + $0x58] sm:$0xff] }
 0x30e   : > { %v4240_v24 = vld [vmem:[#allocation4 + $0x10] sm:$0x80]  ;;  %v5625_v14 = vshrl.u32 %v9935_v45, 16  ;;  %vm3746_vm10 = vcmp.lt.f32.partialorder %v9781_v4, 0.0  ;;  %11459 = vst [vmem:[#allocation14_spill] sm:$0xff] %v9999_v20  ;;  %v4099_v48 = vld [vmem:[#allocation4 + $0x20] sm:$0xff]  ;;  %4191 = vrot.lane.b32.xlu0 %v9933_v2, %s7203_s16 }
 0x30f   : > { %v4241_v19 = vsel %vm9947_vm9, 0, %v4240_v24  ;;  %3922 = vst [vmem:[#allocation4 + $0x30] sm:$0x1] %v3921_v50  ;;  %v3810_v21 = vsel %vm3746_vm10, %v3778_v63, %v3714_v58  ;;  %v3715_v56 = vsub.f32 1.0, %v3683_v35  ;;  %v10005_v60 = vor.u32 %v4630_v5, %v4629_v52  ;;  %v3923_v58 = vld [vmem:[#allocation4 + $0x40] sm:$0x1] }
 0x310   : > { %4242 = vst [vmem:[#allocation4 + $0x10] sm:$0x80] %v4241_v19  ;;  %v4100_v4 = vsel %vm9915_vm11, %v3987_v44, %v4099_v48  ;;  %v10009_v45 = vor.u32 %v5622_v30, %v5618_v0  ;;  %v10011_v29 = vor.u32 %v5629_v10, %v5625_v14  ;;  %v5634_v9 = vshll.u32 %v9985_v36, 16  ;;  %v3962_v24 = vld [vmem:[#allocation3 + $0x18] sm:$0xff] }
 0x311   : > { %11460 = vst [vmem:[#allocation15_spill] sm:$0xff] %v10005_v60  ;;  %vm11463_vm14 = vsmask.f32 7938  ;;  %4101 = vst [vmem:[#allocation4 + $0x20] sm:$0xff] %v4100_v4  ;;  %v3989_v12 = vshrl.u32 %v3961_v8, 16  ;;  %vm3747_vm7 = vcmp.lt.f32.partialorder %v9801_v46, 0.0  ;;  %4693 = vrot.lane.b32.xlu1 %v10005_v60, %s7201_s28 }
 0x312   : > { %11461 = vst [vmem:[#allocation16_spill] sm:$0xff] %v10009_v45  ;;  %11462 = vst [vmem:[#allocation17_spill] sm:$0xff] %v10011_v29  ;;  %v3779_v52 = vsub.f32 0.0, %v3715_v56  ;;  %v4368_v33 = vrot.slane %v4630_v5, 1  ;;  %v11318_v30 = vshrl.u32 %v9999_v20, 16  ;;  %v3842_v10 = vadd.f32 1.0, %v3810_v21  ;;  %4823 = vrot.lane.b32.xlu0 %v9933_v2, %s7202_s14  ;;  %v10048_v21 = vpop.permute.xlu0 %4811 }
 0x313   : > { %vm10016_vm5 = vmand %vm4723_vm8, %vm11463_vm14  ;;  %4219 = vst.msk [vmem:[#allocation4 + $0x20] sm:$0xff] %vm4141_vm0, %v9843_v15  ;;  %v4725_v44 = vld [vmem:[#allocation4] sm:$0xff]  ;;  %vm4853_vm3 = vcmask 654848   ;;  %v3991_v63 = vrot.slane %v3989_v12, 7  ;;  %v3992_v35 = vshll.u32 %v3961_v8, 16  ;;  %v3042_v50 = vmul.f32 0.5, %v9765_v55  ;;  %v10034_v15 = vpop.permute.xlu1 %5446 }
 0x314   : > { %v3811_v0 = vsel %vm3747_vm7, %v3779_v52, %v3715_v56  ;;  %v4726_v46 = vsel %vm10016_vm5, %v9778_v31, %v4725_v44  ;;  %11466 = vst [vmem:[#allocation18_spill] sm:$0xff] %v10034_v15  ;;  %v3924_v5 = vsel %vm9879_vm15, 0, %v3923_v58  ;;  %v5641_v14 = vshll.u32 %v10020_v47, 16  ;;  %vm10042_vm8 = vmand %vm4233_vm2, %vm952_vm12  ;;  %v10046_v31 = vld [vmem:[#allocation3 + $0x58] sm:$0xff]  ;;  %v3938_v29 = vld [vmem:[#allocation4 + $0x90] sm:$0x1] }
 0x315   : > { %v3043_v8 = vmul.f32 0.5, %v9786_v40  ;;  %v3843_v19 = vadd.f32 1.0, %v3811_v0  ;;  %4727 = vst [vmem:[#allocation4] sm:$0xff] %v4726_v46  ;;  %11469 = vst [vmem:[#allocation19_spill] sm:$0xff] %v10046_v31  ;;  %v3994_v48 = vor.u32 %v3992_v35, %v3991_v63  ;;  %vm4870_vm4 = vcmask 786055   ;;  %4193 = vrot.lane.b32.xlu1 %v9999_v20, %s7203_s16 }
 0x316   : > { %3925 = vst [vmem:[#allocation4 + $0x40] sm:$0x1] %v3924_v5  ;;  %11470 = vst [vmem:[#allocation20_spill] sm:$0xff] %v10048_v21  ;;  %v10056_v40 = vor.u32 %v4627_v16, %v4368_v33  ;;  %v4636_v56 = vrot.slane %v11318_v30, 7  ;;  %v4102_v4 = vld [vmem:[#allocation4 + $0x30] sm:$0xff]  ;;  %v3996_v12 = vshrl.u32 %v3962_v24, 16  ;;  %v3874_v52 = vmul.f32 %v3842_v10, %v3042_v50 }
 0x317   : > { %4854 = vst.msk [vmem:[#allocation4] sm:$0xff] %vm4853_vm3, %v9821_v39  ;;  %v5508_v58 = vld [vmem:[#allocation4 + $0x18] sm:$0x80]  ;;  %v3875_v44 = vmul.f32 %v3843_v19, %v3043_v8  ;;  %v4452_v63 = vld [vmem:[#allocation4 + $0x10] sm:$0xff]  ;;  %v4637_v35 = vshll.u32 %v9999_v20, 16  ;;  %v4103_v39 = vsel %vm9915_vm11, %v3994_v48, %v4102_v4  ;;  %v11320_v33 = vshll.u32 %v10046_v31, 16 }
 0x318   : > { %v3926_v0 = vld [vmem:[#allocation4 + $0x50] sm:$0x1]  ;;  %v4453_v16 = vsel %vm10042_vm8, %v9831_v23, %v4452_v63  ;;  %4423 = vrot.lane.b32.xlu0 %v10056_v40, %s7206_s27  ;;  %4104 = vst [vmem:[#allocation4 + $0x30] sm:$0xff] %v4103_v39  ;;  %v3998_v46 = vrot.slane %v3996_v12, 7  ;;  %v3999_v10 = vshll.u32 %v3962_v24, 16  ;;  %v3963_v50 = vld [vmem:[#allocation3 + $0x20] sm:$0xff]  ;;  %v10085_v39 = vpop.permute.xlu1 %4409 }
 0x319   : > { %v3929_v5 = vld [vmem:[#allocation4 + $0x60] sm:$0x1]  ;;  %v10070_v19 = vrot.slane %v5634_v9, 1  ;;  %v3891_v4 = vpack.c.bf16 %v3875_v44, %v3874_v52  ;;  %4454 = vst [vmem:[#allocation4 + $0x10] sm:$0xff] %v4453_v16  ;;  %4220 = vst.msk [vmem:[#allocation4 + $0x30] sm:$0xff] %vm4141_vm0, %v9901_v27  ;;  %v5509_v63 = vsel %vm11420_vm6, 0, %v5508_v58  ;;  %5332 = vrot.lane.b32.xlu1 %v9888_v13, %s7200_s20  ;;  %v10083_v9 = vor.u32 %v4637_v35, %v4636_v56  ;;  %v10097_v56 = vpop.permute.xlu0 %5448 }
 0x31a   : > { %v10072_v48 = vld [vmem:[#allocation3 + $0x60] sm:$0xff]  ;;  %v4001_v52 = vor.u32 %v3999_v10, %v3998_v46  ;;  %5510 = vst [vmem:[#allocation4 + $0x18] sm:$0x80] %v5509_v63  ;;  %v3964_v44 = vld [vmem:[#allocation3 + $0x28] sm:$0xff]  ;;  %vm11473_vm2 = vcmask 130048   ;;  %v4378_v58 = vshrl.u32 %v10046_v31, 16 }
 0x31b   : > { %v4243_v30 = vld [vmem:[#allocation4 + $0x20] sm:$0x80]  ;;  %11472 = vst [vmem:[#allocation11_spill] sm:$0xff] %v10083_v9  ;;  %3907 = vst.msk [vmem:[#allocation3 + $0x78] sm:$0xff] %vm11473_vm2, %v3891_v4  ;;  %vm11474_vm10 = vsmask.f32 7966 }
 0x31c   : > { %v4244_v24 = vsel %vm9947_vm9, 0, %v4243_v30  ;;  %vm10090_vm14 = vmand %vm4870_vm4, %vm11474_vm10  ;;  %v4375_v30 = vrot.slane %v4637_v35, 1  ;;  %v10095_v13 = vld [vmem:[#allocation3 + $0x60] sm:$0xff]  ;;  %11477 = vst [vmem:[#allocation21_spill] sm:$0xff] %v10097_v56  ;;  %v3927_v16 = vsel %vm9879_vm15, 0, %v3926_v0  ;;  %v4003_v46 = vshrl.u32 %v3963_v50, 16  ;;  %4695 = vrot.lane.b32.xlu0 %v10083_v9, %s7201_s28 }
 0x31d   : > { %4245 = vst [vmem:[#allocation4 + $0x20] sm:$0x80] %v4244_v24  ;;  %v3932_v10 = vld [vmem:[#allocation4 + $0x70] sm:$0x1]  ;;  %v10101_v4 = vrot.slane %v5641_v14, 1  ;;  %v4382_v35 = vrot.slane %v11320_v33, 1  ;;  %4825 = vrot.lane.b32.xlu1 %v9999_v20, %s7202_s14 }
 0x31e   : > { %v4105_v24 = vld [vmem:[#allocation4 + $0x40] sm:$0xff]  ;;  %3928 = vst [vmem:[#allocation4 + $0x50] sm:$0x1] %v3927_v16  ;;  %v3930_v12 = vsel %vm9879_vm15, 0, %v3929_v5  ;;  %v5648_v8 = vshll.u32 %v10072_v48, 16  ;;  %v4005_v43 = vrot.slane %v4003_v46, 7 }
 0x31f   : > { %v4872_v0 = vld [vmem:[#allocation4] sm:$0x80]  ;;  %v4106_v14 = vsel %vm9915_vm11, %v4001_v52, %v4105_v24  ;;  %3931 = vst [vmem:[#allocation4 + $0x60] sm:$0x1] %v3930_v12  ;;  %v4010_v63 = vshrl.u32 %v3964_v44, 16  ;;  %v10113_v56 = vld [vmem:[#allocation3 + $0x30] sm:$0xff]  ;;  %v10128_v34 = vor.u32 %v4382_v35, %v4378_v58  ;;  %v10144_v35 = vpop.permute.xlu0 %5324 }
 0x320   : > { %v4873_v15 = vsel %vm10090_vm14, 0, %v4872_v0  ;;  %vm5096_vm7 = vcmask 786048   ;;  %4107 = vst [vmem:[#allocation4 + $0x40] sm:$0xff] %v4106_v14  ;;  %v4006_v16 = vshll.u32 %v3963_v50, 16  ;;  %v11478_v33 = vshrl.u32 %v9999_v20, 16  ;;  %4195 = vrot.lane.b32.xlu0 %v10046_v31, %s7203_s16  ;;  %v10130_v50 = vpop.permute.xlu1 %5322  ;;  %v10135_v5 = vld [vmem:[#allocation3 + $0x68] sm:$0xff] }
 0x321   : > { %4874 = vst [vmem:[#allocation4] sm:$0x80] %v4873_v15  ;;  %v4643_v12 = vrot.slane %v4378_v58, 7  ;;  %4221 = vst.msk [vmem:[#allocation4 + $0x40] sm:$0xff] %vm4141_vm0, %v10001_v3  ;;  %v4012_v46 = vrot.slane %v4010_v63, 7  ;;  %v4013_v24 = vshll.u32 %v3964_v44, 16 }
 0x322   : > { %v10122_v52 = vor.u32 %v11478_v33, %v4375_v30  ;;  %v5511_v0 = vld [vmem:[#allocation4 + $0x28] sm:$0x80]  ;;  %v4502_v9 = vld [vmem:[#allocation4 + $0x10] sm:$0x1]  ;;  %11479 = vst [vmem:[#allocation22_spill] sm:$0xff] %v10128_v34  ;;  %11480 = vst [vmem:[#allocation23_spill] sm:$0xff] %v10130_v50  ;;  %v4008_v15 = vor.u32 %v4006_v16, %v4005_v43 }
 0x323   : > { %v4246_v14 = vld [vmem:[#allocation4 + $0x30] sm:$0x80]  ;;  %v3933_v33 = vsel %vm9879_vm15, 0, %v3932_v10  ;;  %v4017_v30 = vshrl.u32 %v10113_v56, 16  ;;  %v4503_v3 = vsel %vm9961_vm13, 0, %v4502_v9  ;;  %v4385_v58 = vshrl.u32 %v10095_v13, 16  ;;  %vm10169_vm4 = vmand %vm5096_vm7, %vm952_vm12 }
 0x324   : > { %v4247_v44 = vsel %vm9947_vm9, 0, %v4246_v14  ;;  %v10142_v63 = vld [vmem:[#allocation3 + $0x68] sm:$0xff]  ;;  %11481 = vst [vmem:[#allocation24_spill] sm:$0xff] %v10144_v35  ;;  %v5691_v43 = vld [vmem:[#allocation4 + $0x18] sm:$0xff]  ;;  %v4015_v16 = vor.u32 %v4013_v24, %v4012_v46  ;;  %3934 = vst [vmem:[#allocation4 + $0x70] sm:$0x1] %v3933_v33  ;;  %4425 = vrot.lane.b32.xlu1 %v10122_v52, %s7206_s27  ;;  %4427 = vrot.lane.b32.xlu0 %v10128_v34, %s7206_s27 }
 0x325   : > { %4504 = vst [vmem:[#allocation4 + $0x10] sm:$0x1] %v4503_v3  ;;  %v4455_v10 = vld [vmem:[#allocation4 + $0x20] sm:$0xff]  ;;  %4248 = vst [vmem:[#allocation4 + $0x30] sm:$0x80] %v4247_v44  ;;  %v11482_v9 = vshll.u32 %v10095_v13, 16  ;;  %v10153_v14 = vsel %vm7904_vm1, %v9231_v59, %v5691_v43 }
 0x326   : > { %11483 = vst [vmem:[#allocation25_spill] sm:$0xff] %v10153_v14  ;;  %v4019_v20 = vrot.slane %v4017_v30, 7  ;;  %v5514_v60 = vld [vmem:[#allocation4 + $0x38] sm:$0x80]  ;;  %v10155_v35 = vrot.slane %v5648_v8, 1  ;;  %v10157_v46 = vld [vmem:[#allocation3 + $0x70] sm:$0xff]  ;;  %v4456_v24 = vsel %vm10042_vm8, %v9921_v54, %v4455_v10  ;;  %v10175_v54 = vpop.permute.xlu1 %4411 }
 0x327   : > { %v4389_v50 = vrot.slane %v11482_v9, 1  ;;  %5693 = vst [vmem:[#allocation4 + $0x18] sm:$0xff] %v10153_v14  ;;  %v4108_v33 = vld [vmem:[#allocation4 + $0x50] sm:$0xff]  ;;  %v4020_v3 = vshll.u32 %v10113_v56, 16  ;;  %v5512_v44 = vsel %vm11420_vm6, 0, %v5511_v0  ;;  %vm5149_vm2 = vcmask 910080  }
 0x328   : > { %11484 = vst [vmem:[#allocation26_spill] sm:$0xff] %v10155_v35  ;;  %4457 = vst [vmem:[#allocation4 + $0x20] sm:$0xff] %v4456_v24  ;;  %v4109_v0 = vsel %vm9915_vm11, %v4008_v15, %v4108_v33  ;;  %v4111_v30 = vld [vmem:[#allocation4 + $0x60] sm:$0xff]  ;;  %v11487_v10 = vshll.u32 %v10046_v31, 16  ;;  %v4650_v59 = vrot.slane %v4385_v58, 7  ;;  %v4182_v24 = vpop.permute.xlu0 %4181  ;;  %v10184_v14 = vld [vmem:[#allocation3 + $0x70] sm:$0xff]  ;;  %4197 = vrot.lane.b32.xlu1 %v10095_v13, %s7203_s16 }
 0x329   : > { %5513 = vst [vmem:[#allocation4 + $0x28] sm:$0x80] %v5512_v44  ;;  %v3935_v43 = vld [vmem:[#allocation4 + $0x80] sm:$0x1]  ;;  %4110 = vst [vmem:[#allocation4 + $0x50] sm:$0xff] %v4109_v0  ;;  %v4112_v34 = vsel %vm9915_vm11, %v4015_v16, %v4111_v30  ;;  %v4022_v2 = vor.u32 %v4020_v3, %v4019_v20  ;;  %v3966_v56 = vld [vmem:[#allocation3 + $0x38] sm:$0xff] }
 0x32a   : > { %v10182_v9 = vor.u32 %v4643_v12, %v11487_v10  ;;  %v10189_v33 = vld [vmem:[#allocation3 + $0x78] sm:$0xff]  ;;  %v5098_v44 = vld [vmem:[#allocation4] sm:$0xff]  ;;  %v10193_v12 = vor.u32 %v4389_v50, %v4385_v58  ;;  %4222 = vst.msk [vmem:[#allocation4 + $0x50] sm:$0xff] %vm4141_vm0, %v4182_v24  ;;  %4113 = vst [vmem:[#allocation4 + $0x60] sm:$0xff] %v4112_v34  ;;  %v5515_v16 = vsel %vm11420_vm6, 0, %v5514_v60  ;;  %v11489_v34 = vshll.u32 %v10142_v63, 16 }
 0x32b   : > { %v4249_v0 = vld [vmem:[#allocation4 + $0x40] sm:$0x80]  ;;  %v5517_v20 = vld [vmem:[#allocation4 + $0x48] sm:$0x80]  ;;  %v5099_v3 = vsel %vm10169_vm4, %v9805_v53, %v5098_v44  ;;  %5516 = vst [vmem:[#allocation4 + $0x38] sm:$0x80] %v5515_v16  ;;  %v10226_v16 = vpop.permute.xlu1 %4681 }
 0x32c   : > { %11488 = vst [vmem:[#allocation27_spill] sm:$0xff] %v10182_v9  ;;  %v4250_v30 = vsel %vm9947_vm9, 0, %v4249_v0  ;;  %v3967_v50 = vld [vmem:[#allocation3 + $0x40] sm:$0xff]  ;;  %5100 = vst [vmem:[#allocation4] sm:$0xff] %v5099_v3  ;;  %4697 = vrot.lane.b32.xlu0 %v10182_v9, %s7201_s28  ;;  %v10208_v60 = vrot.slane %v11489_v34, 1  ;;  %v4114_v53 = vld [vmem:[#allocation4 + $0x70] sm:$0xff]  ;;  %5456 = vrot.lane.b32.xlu1 %v9829_v37, %s7204_s17 }
 0x32d   : > { %v3941_v58 = vld [vmem:[#allocation4 + $0xa0] sm:$0x1]  ;;  %4251 = vst [vmem:[#allocation4 + $0x40] sm:$0x80] %v4250_v30  ;;  %v3936_v44 = vsel %vm9879_vm15, 0, %v3935_v43  ;;  %v4024_v0 = vshrl.u32 %v3966_v56, 16  ;;  %v4115_v9 = vsel %vm9915_vm11, %v4022_v2, %v4114_v53 }
 0x32e   : > { %v3944_v15 = vld [vmem:[#allocation4 + $0xb0] sm:$0x1]  ;;  %3937 = vst [vmem:[#allocation4 + $0x80] sm:$0x1] %v3936_v44  ;;  %v4027_v30 = vshll.u32 %v3966_v56, 16  ;;  %v3939_v34 = vsel %vm9879_vm15, 0, %v3938_v29 }
 0x32f   : > { %v4728_v10 = vld [vmem:[#allocation4 + $0x10] sm:$0xff]  ;;  %v5520_v45 = vld [vmem:[#allocation4 + $0x58] sm:$0x80]  ;;  %4116 = vst [vmem:[#allocation4 + $0x70] sm:$0xff] %v4115_v9  ;;  %v4026_v2 = vrot.slane %v4024_v0, 7  ;;  %v4031_v56 = vshrl.u32 %v3967_v50, 16 }
 0x330   : > { %v4458_v3 = vld [vmem:[#allocation4 + $0x30] sm:$0xff]  ;;  %v4729_v24 = vsel %vm10016_vm5, %v9837_v41, %v4728_v10  ;;  %3940 = vst [vmem:[#allocation4 + $0x90] sm:$0x1] %v3939_v34  ;;  %v3968_v53 = vld [vmem:[#allocation3 + $0x48] sm:$0xff]  ;;  %v3947_v44 = vld [vmem:[#allocation4 + $0xc0] sm:$0x1]  ;;  %4429 = vrot.lane.b32.xlu0 %v10193_v12, %s7206_s27  ;;  %4827 = vrot.lane.b32.xlu1 %v10046_v31, %s7202_s14 }
 0x331   : > { %v4459_v43 = vsel %vm10042_vm8, %v10085_v39, %v4458_v3  ;;  %v3969_v29 = vld [vmem:[#allocation3 + $0x50] sm:$0xff]  ;;  %4730 = vst [vmem:[#allocation4 + $0x10] sm:$0xff] %v4729_v24  ;;  %v4505_v21 = vld [vmem:[#allocation4 + $0x20] sm:$0x1]  ;;  %vm5147_vm12 = vcmask 917248   ;;  %v11490_v41 = vshll.u32 %v10095_v13, 16 }
 0x332   : > { %4460 = vst [vmem:[#allocation4 + $0x30] sm:$0xff] %v4459_v43  ;;  %v5694_v10 = vld [vmem:[#allocation4 + $0x28] sm:$0xff]  ;;  %v4034_v35 = vshll.u32 %v3967_v50, 16  ;;  %v5518_v39 = vsel %vm11420_vm6, 0, %v5517_v20  ;;  %v3942_v9 = vsel %vm9879_vm15, 0, %v3941_v58  ;;  %4855 = vst.msk [vmem:[#allocation4 + $0x10] sm:$0xff] %vm4853_vm3, %v9893_v22  ;;  %v4029_v50 = vor.u32 %v4027_v30, %v4026_v2 }
 0x333   : > { %v10230_v37 = vor.u32 %v4650_v59, %v11490_v41  ;;  %v4506_v24 = vsel %vm9961_vm13, 0, %v4505_v21  ;;  %v10245_v59 = vsel %vm7904_vm1, %v9595_v7, %v5694_v10  ;;  %v4033_v0 = vrot.slane %v4031_v56, 7  ;;  %5519 = vst [vmem:[#allocation4 + $0x48] sm:$0x80] %v5518_v39  ;;  %3943 = vst [vmem:[#allocation4 + $0xa0] sm:$0x1] %v3942_v9 }
 0x334   : > { %v10247_v20 = vld [vmem:[#allocation3 + $0x58] sm:$0xff]  ;;  %v3950_v58 = vld [vmem:[#allocation4 + $0xd0] sm:$0x1]  ;;  %vm11491_vm10 = vsmask.f32 256  ;;  %5696 = vst [vmem:[#allocation4 + $0x28] sm:$0xff] %v10245_v59  ;;  %4199 = vrot.lane.b32.xlu0 %v10135_v5, %s7203_s16 }
 0x335   : > { %vm10251_vm7 = vmand %vm5149_vm2, %vm11491_vm10  ;;  %4507 = vst [vmem:[#allocation4 + $0x20] sm:$0x1] %v4506_v24  ;;  %v4252_v21 = vld [vmem:[#allocation4 + $0x50] sm:$0x80]  ;;  %v4038_v3 = vshrl.u32 %v3968_v53, 16  ;;  %v4041_v7 = vshll.u32 %v3968_v53, 16  ;;  %v4036_v56 = vor.u32 %v4034_v35, %v4033_v0  ;;  %v10280_v0 = vpop.permute.xlu1 %5054  ;;  %4699 = vrot.lane.b32.xlu1 %v10230_v37, %s7201_s28 }
 0x336   : > { %v3945_v30 = vsel %vm9879_vm15, 0, %v3944_v15  ;;  %v4045_v34 = vshrl.u32 %v3969_v29, 16  ;;  %v4253_v43 = vsel %vm9947_vm9, 0, %v4252_v21  ;;  %v5697_v2 = vld [vmem:[#allocation4 + $0x38] sm:$0xff]  ;;  %v4048_v41 = vshll.u32 %v3969_v29, 16  ;;  %v10264_v39 = vld [vmem:[#allocation3 + $0x60] sm:$0xff] }
 0x337   : > { %3946 = vst [vmem:[#allocation4 + $0xb0] sm:$0x1] %v3945_v30  ;;  %v5521_v10 = vsel %vm11420_vm6, 0, %v5520_v45  ;;  %v5151_v53 = vld [vmem:[#allocation4] sm:$0x1]  ;;  %v10269_v15 = vsel %vm7904_vm1, %v9850_v42, %v5697_v2  ;;  %v4040_v24 = vrot.slane %v4038_v3, 7 }
 0x338   : > { %v4461_v9 = vld [vmem:[#allocation4 + $0x40] sm:$0xff]  ;;  %4254 = vst [vmem:[#allocation4 + $0x50] sm:$0x80] %v4253_v43  ;;  %v4047_v31 = vrot.slane %v4045_v34, 7  ;;  %5522 = vst [vmem:[#allocation4 + $0x58] sm:$0x80] %v5521_v10  ;;  %5066 = vrot.lane.b32.xlu0 %v10056_v40, %s7207_s26 }
 0x339   : > { %v3948_v35 = vsel %vm9879_vm15, 0, %v3947_v44  ;;  %v5152_v29 = vsel %vm10251_vm7, 0, %v5151_v53  ;;  %v4462_v45 = vsel %vm10042_vm8, %v10175_v54, %v4461_v9  ;;  %5699 = vst [vmem:[#allocation4 + $0x38] sm:$0xff] %v10269_v15  ;;  %v4117_v42 = vld [vmem:[#allocation4 + $0x80] sm:$0xff]  ;;  %v4052_v21 = vshrl.u32 %v10247_v20, 16  ;;  %v4120_v34 = vld [vmem:[#allocation4 + $0x90] sm:$0xff]  ;;  %5068 = vrot.lane.b32.xlu1 %v10122_v52, %s7207_s26 }
 0x33a   : > { %3949 = vst [vmem:[#allocation4 + $0xc0] sm:$0x1] %v3948_v35  ;;  %v4055_v44 = vshll.u32 %v10247_v20, 16  ;;  %v5523_v3 = vld [vmem:[#allocation4 + $0x68] sm:$0x80]  ;;  %4463 = vst [vmem:[#allocation4 + $0x40] sm:$0xff] %v4462_v45  ;;  %v4118_v30 = vsel %vm9915_vm11, %v4029_v50, %v4117_v42  ;;  %v4043_v43 = vor.u32 %v4041_v7, %v4040_v24  ;;  %v4050_v2 = vor.u32 %v4048_v41, %v4047_v31  ;;  %v4414_v42 = vpop.permute.xlu0 %4413 }
 0x33b   : > { %5153 = vst [vmem:[#allocation4] sm:$0x1] %v5152_v29  ;;  %v3951_v54 = vsel %vm9879_vm15, 0, %v3950_v58  ;;  %v3953_v10 = vld [vmem:[#allocation4 + $0xe0] sm:$0x1]  ;;  %4119 = vst [vmem:[#allocation4 + $0x80] sm:$0xff] %v4118_v30  ;;  %v4121_v20 = vsel %vm9915_vm11, %v4036_v56, %v4120_v34 }
 0x33c   : > { %v5526_v53 = vld [vmem:[#allocation4 + $0x78] sm:$0x80]  ;;  %v3956_v9 = vld [vmem:[#allocation4 + $0xf0] sm:$0x1]  ;;  %v4054_v29 = vrot.slane %v4052_v21, 7  ;;  %v4059_v50 = vshrl.u32 %v10264_v39, 16  ;;  %5334 = vrot.lane.b32.xlu0 %v9939_v25, %s7200_s20 }
 0x33d   : > { %v4508_v35 = vld [vmem:[#allocation4 + $0x30] sm:$0x1]  ;;  %3952 = vst [vmem:[#allocation4 + $0xd0] sm:$0x1] %v3951_v54  ;;  %v4062_v31 = vshll.u32 %v10264_v39, 16  ;;  %v10295_v7 = vld [vmem:[#allocation3 + $0x68] sm:$0xff] }
 0x33e   : > { %v4875_v58 = vld [vmem:[#allocation4 + $0x10] sm:$0x80]  ;;  %v4509_v41 = vsel %vm9961_vm13, 0, %v4508_v35  ;;  %v11494_v24 = vshrl.u32 %v10142_v63, 16  ;;  %4122 = vst [vmem:[#allocation4 + $0x90] sm:$0xff] %v4121_v20  ;;  %v5700_v56 = vld [vmem:[#allocation4 + $0x48] sm:$0xff]  ;;  %v4057_v20 = vor.u32 %v4055_v44, %v4054_v29 }
 0x33f   : > { %v4123_v21 = vld [vmem:[#allocation4 + $0xa0] sm:$0xff]  ;;  %v5524_v30 = vsel %vm11420_vm6, 0, %v5523_v3  ;;  %v5529_v34 = vld [vmem:[#allocation4 + $0x88] sm:$0x80]  ;;  %v4876_v39 = vsel %vm10090_vm14, 0, %v4875_v58  ;;  %v4126_v40 = vld [vmem:[#allocation4 + $0xb0] sm:$0xff] }
 0x340   : > { %v10302_v45 = vor.u32 %v10208_v60, %v11494_v24  ;;  %v4731_v54 = vld [vmem:[#allocation4 + $0x20] sm:$0xff]  ;;  %4510 = vst [vmem:[#allocation4 + $0x30] sm:$0x1] %v4509_v41  ;;  %v10313_v60 = vsel %vm7904_vm1, %v9855_v18, %v5700_v56  ;;  %v4124_v35 = vsel %vm9915_vm11, %v4043_v43, %v4123_v21  ;;  %5525 = vst [vmem:[#allocation4 + $0x68] sm:$0x80] %v5524_v30  ;;  %v4061_v41 = vrot.slane %v4059_v50, 7 }
 0x341   : > { %v5532_v3 = vld [vmem:[#allocation4 + $0x98] sm:$0x80]  ;;  %v5535_v24 = vld [vmem:[#allocation4 + $0xa8] sm:$0x80]  ;;  %4877 = vst [vmem:[#allocation4 + $0x10] sm:$0x80] %v4876_v39  ;;  %v4732_v58 = vsel %vm10016_vm5, %v9926_v62, %v4731_v54  ;;  %v10332_v62 = vpop.permute.xlu1 %4813 }
 0x342   : > { %5702 = vst [vmem:[#allocation4 + $0x48] sm:$0xff] %v10313_v60  ;;  %4125 = vst [vmem:[#allocation4 + $0xa0] sm:$0xff] %v4124_v35  ;;  %v3954_v18 = vsel %vm9879_vm15, 0, %v3953_v10  ;;  %v4066_v56 = vshrl.u32 %v10295_v7, 16  ;;  %v5538_v43 = vld [vmem:[#allocation4 + $0xb8] sm:$0x80]  ;;  %v4127_v10 = vsel %vm9915_vm11, %v4050_v2, %v4126_v40  ;;  %v10345_v35 = vpop.permute.xlu0 %4683  ;;  %4431 = vrot.lane.b32.xlu1 %v10302_v45, %s7206_s27 }
 0x343   : > { %v5541_v44 = vld [vmem:[#allocation4 + $0xc8] sm:$0x80]  ;;  %vm11495_vm2 = vsmask.f32 7938  ;;  %4733 = vst [vmem:[#allocation4 + $0x20] sm:$0xff] %v4732_v58  ;;  %v4464_v50 = vld [vmem:[#allocation4 + $0x50] sm:$0xff]  ;;  %v4064_v58 = vor.u32 %v4062_v31, %v4061_v41 }
 0x344   : > { %vm10326_vm10 = vmand %vm5147_vm12, %vm11495_vm2  ;;  %v5703_v21 = vld [vmem:[#allocation4 + $0x58] sm:$0xff]  ;;  %3955 = vst [vmem:[#allocation4 + $0xe0] sm:$0x1] %v3954_v18  ;;  %v4069_v30 = vshll.u32 %v10295_v7, 16  ;;  %v5527_v39 = vsel %vm11420_vm6, 0, %v5526_v53  ;;  %v3957_v54 = vsel %vm9879_vm15, 0, %v3956_v9  ;;  %v4465_v52 = vsel %vm10042_vm8, %v4414_v42, %v4464_v50 }
 0x345   : > { %4856 = vst.msk [vmem:[#allocation4 + $0x20] sm:$0xff] %vm4853_vm3, %v9990_v38  ;;  %4128 = vst [vmem:[#allocation4 + $0xb0] sm:$0xff] %v4127_v10  ;;  %v10350_v2 = vsel %vm7904_vm1, %v9860_v26, %v5703_v21  ;;  %v4129_v7 = vld [vmem:[#allocation4 + $0xc0] sm:$0xff]  ;;  %v4068_v53 = vrot.slane %v4066_v56, 7  ;;  %v5547_v9 = vld [vmem:[#allocation4 + $0xe8] sm:$0x80] }
 0x346   : > { %5528 = vst [vmem:[#allocation4 + $0x78] sm:$0x80] %v5527_v39  ;;  %3958 = vst [vmem:[#allocation4 + $0xf0] sm:$0x1] %v3957_v54  ;;  %v5367_v40 = vld [vmem:[#allocation4] sm:$0xff]  ;;  %v4130_v42 = vsel %vm9915_vm11, %v4057_v20, %v4129_v7  ;;  %v11498_v26 = vshrl.u32 %v10184_v14, 16  ;;  %4201 = vrot.lane.b32.xlu1 %v10157_v46, %s7203_s16 }
 0x347   : > { %v4511_v38 = vld [vmem:[#allocation4 + $0x40] sm:$0x1]  ;;  %4466 = vst [vmem:[#allocation4 + $0x50] sm:$0xff] %v4465_v52  ;;  %5705 = vst [vmem:[#allocation4 + $0x58] sm:$0xff] %v10350_v2  ;;  %v5530_v31 = vsel %vm11420_vm6, 0, %v5529_v34  ;;  %v5533_v41 = vsel %vm11420_vm6, 0, %v5532_v3  ;;  %v5368_v25 = vsel %vm10326_vm10, %v9883_v49, %v5367_v40  ;;  %v4071_v34 = vor.u32 %v4069_v30, %v4068_v53  ;;  %v10383_v52 = vpop.permute.xlu0 %5056 }
 0x348   : > { %v4075_v18 = vrot.slane %v11498_v26, 7  ;;  %v4512_v56 = vsel %vm9961_vm13, 0, %v4511_v38  ;;  %v4401_v50 = vshll.u32 %v10184_v14, 16  ;;  %4131 = vst [vmem:[#allocation4 + $0xc0] sm:$0xff] %v4130_v42  ;;  %v4132_v20 = vld [vmem:[#allocation4 + $0xd0] sm:$0xff]  ;;  %v5536_v10 = vsel %vm11420_vm6, 0, %v5535_v24 }
 0x349   : > { %5531 = vst [vmem:[#allocation4 + $0x88] sm:$0x80] %v5530_v31  ;;  %5534 = vst [vmem:[#allocation4 + $0x98] sm:$0x80] %v5533_v41  ;;  %v4133_v49 = vsel %vm9915_vm11, %v4064_v58, %v4132_v20  ;;  %v5539_v3 = vsel %vm11420_vm6, 0, %v5538_v43  ;;  %v5542_v21 = vsel %vm11420_vm6, 0, %v5541_v44 }
 0x34a   : > { %5369 = vst [vmem:[#allocation4] sm:$0xff] %v5368_v25  ;;  %4513 = vst [vmem:[#allocation4 + $0x40] sm:$0x1] %v4512_v56  ;;  %v11499_v39 = vshll.u32 %v10135_v5, 16  ;;  %vm11500_vm15 = vcmask 1048448   ;;  %v4734_v24 = vld [vmem:[#allocation4 + $0x30] sm:$0xff]  ;;  %v10387_v30 = vor.u32 %v4401_v50, %v4075_v18  ;;  %v10401_v18 = vpop.permute.xlu1 %5450 }
 0x34b   : > { %5537 = vst [vmem:[#allocation4 + $0xa8] sm:$0x80] %v5536_v10  ;;  %5489 = vst.msk [vmem:[#allocation4] sm:$0xff] %vm11500_vm15, %v9824_v32  ;;  %v5706_v7 = vld [vmem:[#allocation4 + $0x68] sm:$0xff]  ;;  %v5545_v43 = vsel %vm11420_vm6, 0, %v5544_v17  ;;  %v5548_v44 = vsel %vm11420_vm6, 0, %v5547_v9  ;;  %v4735_v26 = vsel %vm10016_vm5, %v10226_v16, %v4734_v24  ;;  %v4184_v24 = vpop.permute.xlu0 %4183 }
 0x34c   : > { %v5657_v54 = vrot.slane %v11499_v39, 1  ;;  %4134 = vst [vmem:[#allocation4 + $0xd0] sm:$0xff] %v4133_v49  ;;  %5540 = vst [vmem:[#allocation4 + $0xb8] sm:$0x80] %v5539_v3  ;;  %v11501_v58 = vshll.u32 %v10157_v46, 16  ;;  %v11502_v53 = vshll.u32 %v10189_v33, 16  ;;  %v10406_v17 = vsel %vm7904_vm1, %v9868_v11, %v5706_v7 }
 0x34d   : > { %5543 = vst [vmem:[#allocation4 + $0xc8] sm:$0x80] %v5542_v21  ;;  %v5101_v38 = vld [vmem:[#allocation4 + $0x10] sm:$0xff]  ;;  %v7098_v42 = vld [vmem:[#allocation3 + $0x40] sm:$0xff]  ;;  %5546 = vst [vmem:[#allocation4 + $0xd8] sm:$0x80] %v5545_v43 }
 0x34e   : > { %v5664_v32 = vrot.slane %v11501_v58, 1  ;;  %v5671_v40 = vrot.slane %v11502_v53, 1  ;;  %5458 = vrot.lane.b32.xlu0 %v7098_v42, %s7204_s17  ;;  %5549 = vst [vmem:[#allocation4 + $0xe8] sm:$0x80] %v5548_v44  ;;  %v11503_v9 = vshrl.u32 %v9985_v36, 16  ;;  %v11504_v41 = vshrl.u32 %v10020_v47, 16 }
 0x34f   : > { %v5653_v56 = vshrl.u32 %v10135_v5, 16  ;;  %v5102_v16 = vsel %vm10169_vm4, %v9966_v61, %v5101_v38  ;;  %4736 = vst [vmem:[#allocation4 + $0x30] sm:$0xff] %v4735_v26  ;;  %5708 = vst [vmem:[#allocation4 + $0x68] sm:$0xff] %v10406_v17  ;;  %v4135_v11 = vld [vmem:[#allocation4 + $0xe0] sm:$0xff]  ;;  %v11505_v20 = vshrl.u32 %v10072_v48, 16  ;;  %v11506_v10 = vld [vmem:[#allocation26_spill] sm:$0xff] }
 0x350   : > { %v5637_v31 = vor.u32 %v10070_v19, %v11503_v9  ;;  %v5644_v25 = vor.u32 %v10101_v4, %v11504_v41  ;;  %v5660_v19 = vshrl.u32 %v10157_v46, 16  ;;  %v5667_v47 = vshrl.u32 %v10189_v33, 16  ;;  %5103 = vst [vmem:[#allocation4 + $0x10] sm:$0xff] %v5102_v16  ;;  %v4878_v4 = vld [vmem:[#allocation4 + $0x20] sm:$0x80]  ;;  %v11507_v49 = vld [vmem:[#allocation20_spill] sm:$0xff] }
 0x351   : > { %v5651_v36 = vor.u32 %v11506_v10, %v11505_v20  ;;  %4857 = vst.msk [vmem:[#allocation4 + $0x30] sm:$0xff] %vm4853_vm3, %v11507_v49  ;;  %v4136_v61 = vsel %vm9915_vm11, %v4071_v34, %v4135_v11  ;;  %v5709_v5 = vld [vmem:[#allocation4 + $0x78] sm:$0xff]  ;;  %v4138_v3 = vld [vmem:[#allocation4 + $0xf0] sm:$0xff]  ;;  %v5658_v48 = vor.u32 %v5657_v54, %v5653_v56  ;;  %v4879_v21 = vsel %vm10090_vm14, 0, %v4878_v4  ;;  %v11508_v33 = vld [vmem:[#allocation16_spill] sm:$0xff]  ;;  %v10459_v56 = vpop.permute.xlu1 %5326 }
 0x352   : > { %v4514_v39 = vld [vmem:[#allocation4 + $0x50] sm:$0x1]  ;;  %4137 = vst [vmem:[#allocation4 + $0xe0] sm:$0xff] %v4136_v61  ;;  %v10435_v7 = vsel %vm7904_vm1, %v11508_v33, %v5709_v5  ;;  %v4139_v46 = vsel %vm9915_vm11, %v10387_v30, %v4138_v3  ;;  %v5665_v43 = vor.u32 %v5664_v32, %v5660_v19  ;;  %v5672_v34 = vor.u32 %v5671_v40, %v5667_v47  ;;  %v5712_v44 = vld [vmem:[#allocation4 + $0x88] sm:$0xff]  ;;  %v5715_v58 = vld [vmem:[#allocation4 + $0x98] sm:$0xff] }
 0x353   : > { %4880 = vst [vmem:[#allocation4 + $0x20] sm:$0x80] %v4879_v21  ;;  %4829 = vrot.lane.b32.xlu0 %v10095_v13, %s7202_s14  ;;  %v4515_v54 = vsel %vm9961_vm13, 0, %v4514_v39  ;;  %4223 = vst.msk [vmem:[#allocation4 + $0x60] sm:$0xff] %vm4141_vm0, %v4184_v24  ;;  %v4737_v53 = vld [vmem:[#allocation4 + $0x40] sm:$0xff]  ;;  %v11509_v57 = vld [vmem:[#allocation17_spill] sm:$0xff]  ;;  %v10453_v40 = vsel %vm7904_vm1, %v5637_v31, %v5715_v58 }
 0x354   : > { %5711 = vst [vmem:[#allocation4 + $0x78] sm:$0xff] %v10435_v7  ;;  %4140 = vst [vmem:[#allocation4 + $0xf0] sm:$0xff] %v4139_v46  ;;  %v10449_v32 = vsel %vm7904_vm1, %v11509_v57, %v5712_v44  ;;  %v5718_v38 = vld [vmem:[#allocation4 + $0xa8] sm:$0xff]  ;;  %v5733_v42 = vld [vmem:[#allocation4] sm:$0xff]  ;;  %v11511_v9 = vshrl.u32 %v10142_v63, 16  ;;  %v4738_v16 = vsel %vm10016_vm5, %v10345_v35, %v4737_v53  ;;  %vm11513_vm11 = vcmask 130048  }
 0x355   : > { %4516 = vst [vmem:[#allocation4 + $0x50] sm:$0x1] %v4515_v54  ;;  %v11510_v26 = vld [vmem:[#allocation12_spill] sm:$0xff]  ;;  %5714 = vst [vmem:[#allocation4 + $0x88] sm:$0xff] %v10449_v32  ;;  %v10468_v31 = vsel %vm7904_vm1, %v5644_v25, %v5718_v38  ;;  %v5721_v11 = vld [vmem:[#allocation4 + $0xb8] sm:$0xff]  ;;  %5925 = vmatmul.mubr.bf16.vlgmr.msra.gmra.mrb[36].mxu0 %v5733_v42  ;;  %v4416_v46 = vpop.permute.xlu1 %4415  ;;  %v4403_v54 = vrot.slane %v4401_v50, 1 }
 0x356   : > { %5460 = vrot.lane.b32.xlu1 %v11510_v26, %s7204_s17  ;;  %v4657_v41 = vrot.slane %v11511_v9, 7  ;;  %5717 = vst [vmem:[#allocation4 + $0x98] sm:$0xff] %v10453_v40  ;;  %v5724_v20 = vld [vmem:[#allocation4 + $0xc8] sm:$0xff]  ;;  %4739 = vst [vmem:[#allocation4 + $0x40] sm:$0xff] %v4738_v16  ;;  %v10473_v10 = vsel %vm7904_vm1, %v5651_v36, %v5721_v11  ;;  %v5727_v19 = vld [vmem:[#allocation4 + $0xd8] sm:$0xff]  ;;  %v11520_v50 = vshrl.u32 %v10184_v14, 16  ;;  %v4816_v11 = vpop.permute.xlu0 %4815 }
 0x357   : > { %5720 = vst [vmem:[#allocation4 + $0xa8] sm:$0xff] %v10468_v31  ;;  %v10477_v35 = vsel %vm7904_vm1, %v5658_v48, %v5724_v20  ;;  %v5730_v47 = vld [vmem:[#allocation4 + $0xe8] sm:$0xff]  ;;  %v11512_v4 = vld [vmem:[#allocation25_spill] sm:$0xff]  ;;  %v11514_v25 = vld [vmem:[#allocation15_spill] sm:$0xff]  ;;  %v10489_v36 = vsel %vm7904_vm1, %v5665_v43, %v5727_v19  ;;  %v11515_v48 = vshll.u32 %v10142_v63, 16 }
 0x358   : > { %6664 = vmatprep.mubr.msk.bf16.mxu0 %vm11513_vm11, %v11512_v4  ;;  %5336 = vrot.lane.b32.xlu0 %v11514_v25, %s7200_s20  ;;  %4858 = vst.msk [vmem:[#allocation4 + $0x40] sm:$0xff] %vm4853_vm3, %v10332_v62  ;;  %5723 = vst [vmem:[#allocation4 + $0xb8] sm:$0xff] %v10473_v10  ;;  %v10493_v49 = vsel %vm7904_vm1, %v5672_v34, %v5730_v47  ;;  %v5154_v61 = vld [vmem:[#allocation4 + $0x10] sm:$0x1]  ;;  %v4881_v5 = vld [vmem:[#allocation4 + $0x30] sm:$0x80]  ;;  %v10528_v16 = vor.u32 %v4403_v54, %v11520_v50 }
 0x359   : > { %5726 = vst [vmem:[#allocation4 + $0xc8] sm:$0xff] %v10477_v35  ;;  %5729 = vst [vmem:[#allocation4 + $0xd8] sm:$0xff] %v10489_v36  ;;  %v5155_v62 = vsel %vm10251_vm7, 0, %v5154_v61  ;;  %v4882_v3 = vsel %vm10090_vm14, 0, %v4881_v5  ;;  %v10505_v51 = vor.u32 %v4657_v41, %v11515_v48  ;;  %v11516_v24 = vld [vmem:[#allocation13_spill] sm:$0xff]  ;;  %v11517_v34 = vld [vmem:[#allocation11_spill] sm:$0xff]  ;;  %v4686_v38 = vpop.permute.xlu1 %4685 }
 0x35a   : > { %5732 = vst [vmem:[#allocation4 + $0xe8] sm:$0xff] %v10493_v49  ;;  %4831 = vrot.lane.b32.xlu1 %v10142_v63, %s7202_s14  ;;  %5156 = vst [vmem:[#allocation4 + $0x10] sm:$0x1] %v5155_v62  ;;  %v5104_v21 = vld [vmem:[#allocation4 + $0x20] sm:$0xff]  ;;  %v11518_v53 = vld [vmem:[#allocation22_spill] sm:$0xff] }
 0x35b   : > { %4883 = vst [vmem:[#allocation4 + $0x30] sm:$0x80] %v4882_v3  ;;  %v4255_v39 = vld [vmem:[#allocation4 + $0x60] sm:$0x80]  ;;  %v5105_v33 = vsel %vm10169_vm4, %v11516_v24, %v5104_v21  ;;  %v11519_v41 = vld [vmem:[#allocation14_spill] sm:$0xff]  ;;  %vm11523_vm1 = vmmov %vm11500_vm15 }
 0x35c   : > { %4701 = vrot.lane.b32.xlu0 %v10505_v51, %s7201_s28  ;;  %v4256_v43 = vsel %vm9947_vm9, 0, %v4255_v39  ;;  %5106 = vst [vmem:[#allocation4 + $0x20] sm:$0xff] %v5105_v33  ;;  %v4740_v44 = vld [vmem:[#allocation4 + $0x50] sm:$0xff]  ;;  %v11521_v20 = vld [vmem:[#allocation23_spill] sm:$0xff]  ;;  %v11522_v62 = vld [vmem:[#allocation18_spill] sm:$0xff] }
 0x35d   : > { %4257 = vst [vmem:[#allocation4 + $0x60] sm:$0x80] %v4256_v43  ;;  %v4741_v42 = vsel %vm10016_vm5, %v4686_v38, %v4740_v44  ;;  %v5059_v61 = vpop.permute.xlu1 %5058  ;;  %v11524_v39 = vld [vmem:[#allocation27_spill] sm:$0xff]  ;;  %v5453_v43 = vpop.permute.xlu0 %5452  ;;  %vm11526_vm2 = vmmov %vm11513_vm11 }
 0x35e   : > { %5338 = vrot.lane.b32.xlu1 %v11517_v34, %s7200_s20  ;;  %4742 = vst [vmem:[#allocation4 + $0x50] sm:$0xff] %v4741_v42  ;;  %v10557_v34 = vld [vmem:[#allocation3 + $0x78] sm:$0xff]  ;;  %v11527_v42 = vld [vmem:[#allocation21_spill] sm:$0xff]  ;;  %vm11528_vm15 = vmmov %vm11523_vm1 }
 0x35f   : > { %v4884_v58 = vld [vmem:[#allocation4 + $0x40] sm:$0x80]  ;;  %4859 = vst.msk [vmem:[#allocation4 + $0x50] sm:$0xff] %vm4853_vm3, %v4816_v11  ;;  %vm11530_vm11 = vmmov %vm11523_vm1 }
 0x360   : > { %5070 = vrot.lane.b32.xlu0 %v11518_v53, %s7207_s26  ;;  %v4885_v57 = vsel %vm10090_vm14, 0, %v4884_v58  ;;  %v11525_v53 = vld [vmem:[#allocation24_spill] sm:$0xff] }
 0x361   : > { %4886 = vst [vmem:[#allocation4 + $0x40] sm:$0x80] %v4885_v57  ;;  %v5370_v26 = vld [vmem:[#allocation4 + $0x10] sm:$0xff]  ;;  %v4186_v48 = vpop.permute.xlu1 %4185 }
 0x362   : > { %v5107_v9 = vld [vmem:[#allocation4 + $0x30] sm:$0xff]  ;;  %5462 = vrot.lane.b32.xlu1 %v11519_v41, %s7204_s17  ;;  %v5371_v19 = vsel %vm10326_vm10, %v11521_v20, %v5370_v26  ;;  %4224 = vst.msk [vmem:[#allocation4 + $0x70] sm:$0xff] %vm4141_vm0, %v4186_v48  ;;  %v11529_v26 = vld [vmem:[#allocation19_spill] sm:$0xff] }
 0x363   : > { %v5108_v47 = vsel %vm10169_vm4, %v10280_v0, %v5107_v9  ;;  %v5157_v4 = vld [vmem:[#allocation4 + $0x20] sm:$0x1]  ;;  %5372 = vst [vmem:[#allocation4 + $0x10] sm:$0xff] %v5371_v19 }
 0x364   : > { %5109 = vst [vmem:[#allocation4 + $0x30] sm:$0xff] %v5108_v47  ;;  %4433 = vrot.lane.b32.xlu0 %v10528_v16, %s7206_s27  ;;  %v4467_v25 = vld [vmem:[#allocation4 + $0x60] sm:$0xff]  ;;  %v5158_v5 = vsel %vm10251_vm7, 0, %v5157_v4  ;;  %5490 = vst.msk [vmem:[#allocation4 + $0x10] sm:$0xff] %vm11523_vm1, %v11522_v62  ;;  %s6424_s27 = scalar_lea.sflag [#allocation7], %s7368_s29 }
 0x365   : > { %v4468_v3 = vsel %vm10042_vm8, %v4416_v46, %v4467_v25  ;;  %5159 = vst [vmem:[#allocation4 + $0x20] sm:$0x1] %v5158_v5  ;;  %v4818_v41 = vpop.permute.xlu1 %4817  ;;  %v4672_v25 = vshll.u32 %v10557_v34, 16  ;;  %vm11531_vm1 = vmmov %vm11526_vm2 }
 0x366   : > { %4833 = vrot.lane.b32.xlu1 %v10184_v14, %s7202_s14  ;;  %4469 = vst [vmem:[#allocation4 + $0x60] sm:$0xff] %v4468_v3  ;;  %v4887_v24 = vld [vmem:[#allocation4 + $0x50] sm:$0x80] }
 0x367   : > { %v4888_v46 = vsel %vm10090_vm14, 0, %v4887_v24  ;;  %v5046_v24 = vrot.slane %v4672_v25, 1 }
 0x368   : > { %v5110_v0 = vld [vmem:[#allocation4 + $0x40] sm:$0xff]  ;;  %4703 = vrot.lane.b32.xlu0 %v10387_v30, %s7201_s28  ;;  %4889 = vst [vmem:[#allocation4 + $0x50] sm:$0x80] %v4888_v46 }
 0x369   : > { %v5111_v21 = vsel %vm10169_vm4, %v10383_v52, %v5110_v0  ;;  %v4258_v9 = vld [vmem:[#allocation4 + $0x70] sm:$0x80]  ;;  %v5455_v62 = vpop.permute.xlu1 %5454 }
 0x36a   : > { %5112 = vst [vmem:[#allocation4 + $0x40] sm:$0xff] %v5111_v21  ;;  %5340 = vrot.lane.b32.xlu1 %v11524_v39, %s7200_s20  ;;  %v4259_v11 = vsel %vm9947_vm9, 0, %v4258_v9 }
 0x36b   : > { %v5160_v33 = vld [vmem:[#allocation4 + $0x30] sm:$0x1]  ;;  %4260 = vst [vmem:[#allocation4 + $0x70] sm:$0x80] %v4259_v11 }
 0x36c   : > { %v5161_v54 = vsel %vm10251_vm7, 0, %v5160_v33  ;;  %5072 = vrot.lane.b32.xlu0 %v10193_v12, %s7207_s26  ;;  %v5735_v52 = vld [vmem:[#allocation4 + $0x10] sm:$0xff]  ;;  %v5373_v44 = vld [vmem:[#allocation4 + $0x20] sm:$0xff]  ;;  %v4669_v12 = vshrl.u32 %v10557_v34, 16 }
 0x36d   : > { %5162 = vst [vmem:[#allocation4 + $0x30] sm:$0x1] %v5161_v54  ;;  %v4517_v58 = vld [vmem:[#allocation4 + $0x60] sm:$0x1]  ;;  %5933 = vmatmul.mubr.bf16.gmra.mrb[40].mxu0 %v5735_v52  ;;  %v5374_v57 = vsel %vm10326_vm10, %v11525_v53, %v5373_v44  ;;  %v4418_v39 = vpop.permute.xlu1 %4417 }
 0x36e   : > { %v4518_v38 = vsel %vm9961_vm13, 0, %v4517_v58  ;;  %5074 = vrot.lane.b32.xlu1 %v10302_v45, %s7207_s26  ;;  %6665 = vmatprep.mubr.msk.bf16.mxu0 %vm11526_vm2, %v10245_v59  ;;  %5375 = vst [vmem:[#allocation4 + $0x20] sm:$0xff] %v5374_v57  ;;  %v5329_v45 = vpop.permute.xlu0 %5328  ;;  %v4671_v20 = vrot.slane %v4669_v12, 7  ;;  %vm11532_vm2 = vmmov %vm11530_vm11  ;;  %v5047_v54 = vor.u32 %v5046_v24, %v4669_v12 }
 0x36f   : > { %4519 = vst [vmem:[#allocation4 + $0x60] sm:$0x1] %v4518_v38  ;;  %5491 = vst.msk [vmem:[#allocation4 + $0x20] sm:$0xff] %vm11528_vm15, %v11527_v42  ;;  %v5113_v19 = vld [vmem:[#allocation4 + $0x50] sm:$0xff] }
 0x370   : > { %5464 = vrot.lane.b32.xlu0 %v11529_v26, %s7204_s17  ;;  %v5114_v4 = vsel %vm10169_vm4, %v5059_v61, %v5113_v19  ;;  %vm11533_vm15 = vmmov %vm11531_vm1 }
 0x371   : > { %v5163_v50 = vld [vmem:[#allocation4 + $0x40] sm:$0x1]  ;;  %5115 = vst [vmem:[#allocation4 + $0x50] sm:$0xff] %v5114_v4 }
 0x372   : > { %v5164_v59 = vsel %vm10251_vm7, 0, %v5163_v50  ;;  %5466 = vrot.lane.b32.xlu1 %v10095_v13, %s7204_s17  ;;  %v4674_v13 = vor.u32 %v4672_v25, %v4671_v20  ;;  %v4688_v61 = vpop.permute.xlu0 %4687  ;;  %v4470_v48 = vld [vmem:[#allocation4 + $0x70] sm:$0xff] }
 0x373   : > { %5165 = vst [vmem:[#allocation4 + $0x40] sm:$0x1] %v5164_v59  ;;  %v4471_v33 = vsel %vm10042_vm8, %v4418_v39, %v4470_v48 }
 0x374   : > { %v5376_v47 = vld [vmem:[#allocation4 + $0x30] sm:$0xff]  ;;  %5342 = vrot.lane.b32.xlu0 %v10230_v37, %s7200_s20  ;;  %4472 = vst [vmem:[#allocation4 + $0x70] sm:$0xff] %v4471_v33 }
 0x375   : > { %v5377_v5 = vsel %vm10326_vm10, %v10459_v56, %v5376_v47 }
 0x376   : > { %5378 = vst [vmem:[#allocation4 + $0x30] sm:$0xff] %v5377_v5  ;;  %4835 = vrot.lane.b32.xlu1 %v10557_v34, %s7202_s14  ;;  %v4743_v3 = vld [vmem:[#allocation4 + $0x60] sm:$0xff] }
 0x377   : > { %5492 = vst.msk [vmem:[#allocation4 + $0x30] sm:$0xff] %vm11530_vm11, %v10401_v18  ;;  %v5737_v0 = vld [vmem:[#allocation4 + $0x20] sm:$0xff]  ;;  %v4744_v37 = vsel %vm10016_vm5, %v4688_v61, %v4743_v3  ;;  %vm11534_vm11 = vmmov %vm11532_vm2 }
 0x378   : > { %4705 = vrot.lane.b32.xlu0 %v4674_v13, %s7201_s28  ;;  %5941 = vmatmul.mubr.bf16.gmra.mrb[44].mxu0 %v5737_v0  ;;  %4745 = vst [vmem:[#allocation4 + $0x60] sm:$0xff] %v4744_v37  ;;  %v5166_v21 = vld [vmem:[#allocation4 + $0x50] sm:$0x1]  ;;  %s6689_s28 = sshll.u32 %s7285_s13, 12 }
 0x379   : > { %6666 = vmatprep.mubr.msk.bf16.mxu0 %vm11531_vm1, %v10269_v15  ;;  %4860 = vst.msk [vmem:[#allocation4 + $0x60] sm:$0xff] %vm4853_vm3, %v4818_v41  ;;  %v5167_v15 = vsel %vm10251_vm7, 0, %v5166_v21  ;;  %v5550_v41 = vld [vmem:[#allocation4 + $0xf8] sm:$0x80] }
 0x37a   : > { %v5379_v56 = vld [vmem:[#allocation4 + $0x40] sm:$0xff]  ;;  %5344 = vrot.lane.b32.xlu1 %v10505_v51, %s7200_s20  ;;  %5168 = vst [vmem:[#allocation4 + $0x50] sm:$0x1] %v5167_v15  ;;  %v5061_v51 = vpop.permute.xlu0 %5060  ;;  %v5551_v11 = vsel %vm11420_vm6, 0, %v5550_v41  ;;  %vm11536_vm6 = vmmov %vm11534_vm11 }
 0x37b   : > { %v5380_v18 = vsel %vm10326_vm10, %v5329_v45, %v5379_v56  ;;  %5552 = vst [vmem:[#allocation4 + $0xf8] sm:$0x80] %v5551_v11 }
 0x37c   : > { %5381 = vst [vmem:[#allocation4 + $0x40] sm:$0xff] %v5380_v18  ;;  %5076 = vrot.lane.b32.xlu0 %v10528_v16, %s7207_s26  ;;  %v5331_v16 = vpop.permute.xlu1 %5330 }
 0x37d   : > { %5493 = vst.msk [vmem:[#allocation4 + $0x40] sm:$0xff] %vm11532_vm2, %v5453_v43  ;;  %vm11535_vm2 = vmmov %vm11531_vm1 }
 0x37e   : > { %5346 = vrot.lane.b32.xlu1 %v10387_v30, %s7200_s20  ;;  %v5739_v46 = vld [vmem:[#allocation4 + $0x30] sm:$0xff]  ;;  %v4188_v44 = vpop.permute.xlu0 %4187 }
 0x37f   : > { %4225 = vst.msk [vmem:[#allocation4 + $0x80] sm:$0xff] %vm4141_vm0, %v4188_v44  ;;  %v4520_v30 = vld [vmem:[#allocation4 + $0x70] sm:$0x1] }
 0x380   : > { %5468 = vrot.lane.b32.xlu0 %v10142_v63, %s7204_s17  ;;  %5949 = vmatmul.mubr.bf16.gmra.mrb[48].mxu0 %v5739_v46  ;;  %v4890_v52 = vld [vmem:[#allocation4 + $0x60] sm:$0x80]  ;;  %v4690_v63 = vpop.permute.xlu1 %4689  ;;  %v4521_v57 = vsel %vm9961_vm13, 0, %v4520_v30 }
 0x381   : > { %6667 = vmatprep.mubr.msk.bf16.mxu0 %vm11533_vm15, %v10313_v60  ;;  %v4891_v43 = vsel %vm10090_vm14, 0, %v4890_v52  ;;  %v5382_v58 = vld [vmem:[#allocation4 + $0x50] sm:$0xff]  ;;  %4522 = vst [vmem:[#allocation4 + $0x70] sm:$0x1] %v4521_v57  ;;  %vm11537_vm15 = vmmov %vm11531_vm1 }
 0x382   : > { %5078 = vrot.lane.b32.xlu1 %v5047_v54, %s7207_s26  ;;  %4892 = vst [vmem:[#allocation4 + $0x60] sm:$0x80] %v4891_v43  ;;  %v5383_v60 = vsel %vm10326_vm10, %v5331_v16, %v5382_v58  ;;  %v4820_v38 = vpop.permute.xlu0 %4819  ;;  %s11555_s26 = sshll.u32 %s7368_s29, 8 }
 0x383   : > { %5384 = vst [vmem:[#allocation4 + $0x50] sm:$0xff] %v5383_v60  ;;  %s10855_s19 = scalar_lea.vmem [#allocation8], %s11555_s26 }
 0x384   : > { %5470 = vrot.lane.b32.xlu0 %v10184_v14, %s7204_s17  ;;  %v5741_v53 = vld [vmem:[#allocation4 + $0x40] sm:$0xff]  ;;  %5494 = vst.msk [vmem:[#allocation4 + $0x50] sm:$0xff] %vm11534_vm11, %v5455_v62  ;;  %v5063_v14 = vpop.permute.xlu1 %5062  ;;  %vm11538_vm11 = vmmov %vm11536_vm6  ;;  %s6437_s14 = sshll.u32 %s10855_s19, 4  ;;  %s11214_s14 = int_to_ptr.vmem [resolvable:$true] %s6437_s14 }
 0x385   : > { %s7129_s26 = scalar_lea.vmem %s11214_s14, 4096  ;;  %p7136_p8 = scmp.lt.s32.totalorder %s11214_s14, %s7134_s23 }
 0x386   : > { %5472 = vrot.lane.b32.xlu1 %v10557_v34, %s7204_s17  ;;  %v4261_v42 = vld [vmem:[#allocation4 + $0x80] sm:$0x80]  ;;  %v4420_v26 = vpop.permute.xlu0 %4419  ;;  %s11212_s17 = scalar_lea.hbm %s11295_s9, %s6689_s28  ;;  %p7130_p6 = scmp.ne.s32.totalorder %s11214_s14, %s7129_s26 }
 0x387   : > { %v4262_v34 = vsel %vm9947_vm9, 0, %v4261_v42  ;;  %p7137_p10 = scmp.lt.s32.totalorder %s7135_s24, %s7129_s26 }
 0x388   : > { %5348 = vrot.lane.b32.xlu0 %v4674_v13, %s7200_s20  ;;  %5957 = vmatmul.mubr.bf16.gmra.mrb[52].mxu0 %v5741_v53  ;;  %4263 = vst [vmem:[#allocation4 + $0x80] sm:$0x80] %v4262_v34  ;;  %v4190_v50 = vpop.permute.xlu1 %4189  ;;  %p7131_p12 = pnand %p7130_p6, %p11648_p11 }
 0x389   : > { %6668 = vmatprep.mubr.msk.bf16.mxu0 %vm11531_vm1, %v10350_v2  ;;  %v5116_v12 = vld [vmem:[#allocation4 + $0x60] sm:$0xff]  ;;  %4226 = vst.msk [vmem:[#allocation4 + $0x90] sm:$0xff] %vm4141_vm0, %v4190_v50  ;;  %v4746_v2 = vld [vmem:[#allocation4 + $0x70] sm:$0xff]  ;;  %p7138_p0 = por %p7137_p10, %p7136_p8 }
 0x38a   : > { %v5117_v9 = vsel %vm10169_vm4, %v5061_v51, %v5116_v12  ;;  %v4692_v45 = vpop.permute.xlu0 %4691  ;;  %v4747_v59 = vsel %vm10016_vm5, %v4690_v63, %v4746_v2  ;;  %p7132_p13 = pneg %p7131_p12 }
 0x38b   : > { %5118 = vst [vmem:[#allocation4 + $0x60] sm:$0xff] %v5117_v9  ;;  %v5743_v20 = vld [vmem:[#allocation4 + $0x50] sm:$0xff]  ;;  %4748 = vst [vmem:[#allocation4 + $0x70] sm:$0xff] %v4747_v59 }
 0x38c   : > { %v4822_v19 = vpop.permute.xlu1 %4821  ;;  %4861 = vst.msk [vmem:[#allocation4 + $0x70] sm:$0xff] %vm4853_vm3, %v4820_v38  ;;  %p7139_p2 = pnand %p7138_p0, %p7132_p13 }
 0x38e   : > { %v10646_v47 = vpop.permute.xlu0 %5064 }
 0x38f   : > { %v4473_v4 = vld [vmem:[#allocation4 + $0x80] sm:$0xff] }
 0x390   : > { %5965 = vmatmul.mubr.bf16.gmra.mrb[56].mxu0 %v5743_v20  ;;  %v4474_v5 = vsel %vm10042_vm8, %v4420_v26, %v4473_v4  ;;  %v4264_v13 = vld [vmem:[#allocation4 + $0x90] sm:$0x80]  ;;  %v4422_v62 = vpop.permute.xlu1 %4421 }
 0x391   : > { %6669 = vmatprep.mubr.msk.bf16.mxu0 %vm11535_vm2, %v10406_v17  ;;  %4475 = vst [vmem:[#allocation4 + $0x80] sm:$0xff] %v4474_v5  ;;  %v4265_v3 = vsel %vm9947_vm9, 0, %v4264_v13 }
 0x392   : > { %v5169_v23 = vld [vmem:[#allocation4 + $0x60] sm:$0x1]  ;;  %4266 = vst [vmem:[#allocation4 + $0x90] sm:$0x80] %v4265_v3  ;;  %v4192_v61 = vpop.permute.xlu0 %4191 }
 0x393   : > { %v5170_v25 = vsel %vm10251_vm7, 0, %v5169_v23  ;;  %4227 = vst.msk [vmem:[#allocation4 + $0xa0] sm:$0xff] %vm4141_vm0, %v4192_v61  ;;  %v4893_v17 = vld [vmem:[#allocation4 + $0x70] sm:$0x80] }
 0x394   : > { %5171 = vst [vmem:[#allocation4 + $0x60] sm:$0x1] %v5170_v25  ;;  %v4694_v0 = vpop.permute.xlu1 %4693  ;;  %v4894_v37 = vsel %vm10090_vm14, 0, %v4893_v17 }
 0x395   : > { %4895 = vst [vmem:[#allocation4 + $0x70] sm:$0x80] %v4894_v37 }
 0x396   : > { %v4824_v56 = vpop.permute.xlu0 %4823 }
 0x398   : > { %v4523_v48 = vld [vmem:[#allocation4 + $0x80] sm:$0x1]  ;;  %v4194_v18 = vpop.permute.xlu1 %4193 }
 0x399   : > { %v4524_v21 = vsel %vm9961_vm13, 0, %v4523_v48  ;;  %v4476_v39 = vld [vmem:[#allocation4 + $0x90] sm:$0xff]  ;;  %4228 = vst.msk [vmem:[#allocation4 + $0xb0] sm:$0xff] %vm4141_vm0, %v4194_v18 }
 0x39a   : > { %4525 = vst [vmem:[#allocation4 + $0x80] sm:$0x1] %v4524_v21  ;;  %v4477_v24 = vsel %vm10042_vm8, %v4422_v62, %v4476_v39  ;;  %v4267_v15 = vld [vmem:[#allocation4 + $0xa0] sm:$0x80]  ;;  %v4424_v33 = vpop.permute.xlu0 %4423 }
 0x39b   : > { %v5385_v51 = vld [vmem:[#allocation4 + $0x60] sm:$0xff]  ;;  %4478 = vst [vmem:[#allocation4 + $0x90] sm:$0xff] %v4477_v24  ;;  %v4268_v46 = vsel %vm9947_vm9, 0, %v4267_v15 }
 0x39c   : > { %4269 = vst [vmem:[#allocation4 + $0xa0] sm:$0x80] %v4268_v46  ;;  %v5333_v16 = vpop.permute.xlu1 %5332  ;;  %v5119_v54 = vld [vmem:[#allocation4 + $0x70] sm:$0xff] }
 0x39d   : > { %v5386_v52 = vsel %vm10326_vm10, %v5333_v16, %v5385_v51  ;;  %v5120_v43 = vsel %vm10169_vm4, %v5063_v14, %v5119_v54 }
 0x39e   : > { %5387 = vst [vmem:[#allocation4 + $0x60] sm:$0xff] %v5386_v52  ;;  %v10668_v44 = vpop.permute.xlu0 %4695  ;;  %5121 = vst [vmem:[#allocation4 + $0x70] sm:$0xff] %v5120_v43 }
 0x3a0   : > { %v4270_v63 = vld [vmem:[#allocation4 + $0xb0] sm:$0x80]  ;;  %v10670_v30 = vpop.permute.xlu1 %4825 }
 0x3a1   : > { %v4749_v58 = vld [vmem:[#allocation4 + $0x80] sm:$0xff]  ;;  %v4271_v53 = vsel %vm9947_vm9, 0, %v4270_v63 }
 0x3a2   : > { %v4750_v57 = vsel %vm10016_vm5, %v4692_v45, %v4749_v58  ;;  %v4526_v60 = vld [vmem:[#allocation4 + $0x90] sm:$0x1]  ;;  %4272 = vst [vmem:[#allocation4 + $0xb0] sm:$0x80] %v4271_v53  ;;  %v4196_v38 = vpop.permute.xlu0 %4195 }
 0x3a3   : > { %4751 = vst [vmem:[#allocation4 + $0x80] sm:$0xff] %v4750_v57  ;;  %v4527_v14 = vsel %vm9961_vm13, 0, %v4526_v60  ;;  %v4479_v12 = vld [vmem:[#allocation4 + $0xa0] sm:$0xff]  ;;  %4229 = vst.msk [vmem:[#allocation4 + $0xc0] sm:$0xff] %vm4141_vm0, %v4196_v38 }
 0x3a4   : > { %4862 = vst.msk [vmem:[#allocation4 + $0x80] sm:$0xff] %vm4853_vm3, %v4822_v19  ;;  %4528 = vst [vmem:[#allocation4 + $0x90] sm:$0x1] %v4527_v14  ;;  %v4480_v42 = vsel %vm10042_vm8, %v4424_v33, %v4479_v12  ;;  %v4426_v26 = vpop.permute.xlu1 %4425 }
 0x3a5   : > { %4481 = vst [vmem:[#allocation4 + $0xa0] sm:$0xff] %v4480_v42  ;;  %v5172_v9 = vld [vmem:[#allocation4 + $0x70] sm:$0x1] }
 0x3a6   : > { %v4428_v34 = vpop.permute.xlu0 %4427  ;;  %v5173_v41 = vsel %vm10251_vm7, 0, %v5172_v9 }
 0x3a7   : > { %5174 = vst [vmem:[#allocation4 + $0x70] sm:$0x1] %v5173_v41 }
 0x3a8   : > { %v4198_v50 = vpop.permute.xlu1 %4197 }
 0x3a9   : > { %v4482_v11 = vld [vmem:[#allocation4 + $0xb0] sm:$0xff]  ;;  %4230 = vst.msk [vmem:[#allocation4 + $0xd0] sm:$0xff] %vm4141_vm0, %v4198_v50 }
 0x3aa   : > { %v4273_v2 = vld [vmem:[#allocation4 + $0xc0] sm:$0x80]  ;;  %v4483_v45 = vsel %vm10042_vm8, %v4426_v26, %v4482_v11  ;;  %v4698_v59 = vpop.permute.xlu0 %4697 }
 0x3ab   : > { %v4896_v20 = vld [vmem:[#allocation4 + $0x80] sm:$0x80]  ;;  %v4752_v19 = vld [vmem:[#allocation4 + $0x90] sm:$0xff]  ;;  %v4274_v23 = vsel %vm9947_vm9, 0, %v4273_v2  ;;  %4484 = vst [vmem:[#allocation4 + $0xb0] sm:$0xff] %v4483_v45 }
 0x3ac   : > { %v4897_v4 = vsel %vm10090_vm14, 0, %v4896_v20  ;;  %v4753_v25 = vsel %vm10016_vm5, %v4694_v0, %v4752_v19  ;;  %v4529_v5 = vld [vmem:[#allocation4 + $0xa0] sm:$0x1]  ;;  %4275 = vst [vmem:[#allocation4 + $0xc0] sm:$0x80] %v4274_v23  ;;  %v5457_v13 = vpop.permute.xlu1 %5456 }
 0x3ad   : > { %4898 = vst [vmem:[#allocation4 + $0x80] sm:$0x80] %v4897_v4  ;;  %4754 = vst [vmem:[#allocation4 + $0x90] sm:$0xff] %v4753_v25  ;;  %v4530_v62 = vsel %vm9961_vm13, 0, %v4529_v5 }
 0x3ae   : > { %5495 = vst.msk [vmem:[#allocation4 + $0x60] sm:$0xff] %vm11536_vm6, %v5457_v13  ;;  %4531 = vst [vmem:[#allocation4 + $0xa0] sm:$0x1] %v4530_v62  ;;  %v4430_v3 = vpop.permute.xlu0 %4429  ;;  %v5388_v53 = vld [vmem:[#allocation4 + $0x70] sm:$0xff] }
 0x3af   : > { %4863 = vst.msk [vmem:[#allocation4 + $0x90] sm:$0xff] %vm4853_vm3, %v4824_v56 }
 0x3b0   : > { %v4276_v61 = vld [vmem:[#allocation4 + $0xd0] sm:$0x80]  ;;  %v4828_v17 = vpop.permute.xlu1 %4827 }
 0x3b1   : > { %v4277_v37 = vsel %vm9947_vm9, 0, %v4276_v61 }
 0x3b2   : > { %v4532_v0 = vld [vmem:[#allocation4 + $0xb0] sm:$0x1]  ;;  %4278 = vst [vmem:[#allocation4 + $0xd0] sm:$0x80] %v4277_v37  ;;  %v4200_v48 = vpop.permute.xlu0 %4199 }
 0x3b3   : > { %v4533_v18 = vsel %vm9961_vm13, 0, %v4532_v0  ;;  %v4485_v21 = vld [vmem:[#allocation4 + $0xc0] sm:$0xff]  ;;  %4231 = vst.msk [vmem:[#allocation4 + $0xe0] sm:$0xff] %vm4141_vm0, %v4200_v48 }
 0x3b4   : > { %v5122_v39 = vld [vmem:[#allocation4 + $0x80] sm:$0xff]  ;;  %4534 = vst [vmem:[#allocation4 + $0xb0] sm:$0x1] %v4533_v18  ;;  %v4486_v56 = vsel %vm10042_vm8, %v4428_v34, %v4485_v21  ;;  %v10704_v24 = vpop.permute.xlu1 %4699 }
 0x3b5   : > { %v5745_v15 = vld [vmem:[#allocation4 + $0x60] sm:$0xff]  ;;  %v5123_v33 = vsel %vm10169_vm4, %v10646_v47, %v5122_v39  ;;  %4487 = vst [vmem:[#allocation4 + $0xc0] sm:$0xff] %v4486_v56 }
 0x3b6   : > { %v4899_v51 = vld [vmem:[#allocation4 + $0x90] sm:$0x80]  ;;  %v4755_v46 = vld [vmem:[#allocation4 + $0xa0] sm:$0xff]  ;;  %5973 = vmatmul.mubr.bf16.gmra.mrb[60].mxu0 %v5745_v15  ;;  %5124 = vst [vmem:[#allocation4 + $0x80] sm:$0xff] %v5123_v33  ;;  %v5067_v52 = vpop.permute.xlu0 %5066 }
 0x3b7   : > { %v4900_v16 = vsel %vm10090_vm14, 0, %v4899_v51  ;;  %v4756_v54 = vsel %vm10016_vm5, %v10668_v44, %v4755_v46  ;;  %6670 = vmatprep.mubr.msk.bf16.mxu0 %vm11537_vm15, %v10435_v7 }
 0x3b8   : > { %4901 = vst [vmem:[#allocation4 + $0x90] sm:$0x80] %v4900_v16  ;;  %4757 = vst [vmem:[#allocation4 + $0xa0] sm:$0xff] %v4756_v54  ;;  %v10718_v47 = vpop.permute.xlu1 %5068 }
 0x3b9   : > { %4864 = vst.msk [vmem:[#allocation4 + $0xa0] sm:$0xff] %vm4853_vm3, %v10670_v30  ;;  %v4488_v43 = vld [vmem:[#allocation4 + $0xd0] sm:$0xff] }
 0x3ba   : > { %v4489_v63 = vsel %vm10042_vm8, %v4430_v3, %v4488_v43  ;;  %v4279_v58 = vld [vmem:[#allocation4 + $0xe0] sm:$0x80]  ;;  %v5335_v57 = vpop.permute.xlu0 %5334 }
 0x3bb   : > { %v4758_v60 = vld [vmem:[#allocation4 + $0xb0] sm:$0xff]  ;;  %4490 = vst [vmem:[#allocation4 + $0xd0] sm:$0xff] %v4489_v63  ;;  %v4280_v44 = vsel %vm9947_vm9, 0, %v4279_v58  ;;  %v5389_v7 = vsel %vm10326_vm10, %v5335_v57, %v5388_v53 }
 0x3bc   : > { %v4535_v38 = vld [vmem:[#allocation4 + $0xc0] sm:$0x1]  ;;  %v4759_v30 = vsel %vm10016_vm5, %v4698_v59, %v4758_v60  ;;  %4281 = vst [vmem:[#allocation4 + $0xe0] sm:$0x80] %v4280_v44  ;;  %5390 = vst [vmem:[#allocation4 + $0x70] sm:$0xff] %v5389_v7  ;;  %v4432_v14 = vpop.permute.xlu1 %4431 }
 0x3bd   : > { %v5175_v12 = vld [vmem:[#allocation4 + $0x80] sm:$0x1]  ;;  %v4536_v42 = vsel %vm9961_vm13, 0, %v4535_v38  ;;  %4760 = vst [vmem:[#allocation4 + $0xb0] sm:$0xff] %v4759_v30 }
 0x3be   : > { %v5176_v26 = vsel %vm10251_vm7, 0, %v5175_v12  ;;  %4537 = vst [vmem:[#allocation4 + $0xc0] sm:$0x1] %v4536_v42  ;;  %4865 = vst.msk [vmem:[#allocation4 + $0xb0] sm:$0xff] %vm4853_vm3, %v4828_v17 }
 0x3bf   : > { %v5125_v9 = vld [vmem:[#allocation4 + $0x90] sm:$0xff]  ;;  %5177 = vst [vmem:[#allocation4 + $0x80] sm:$0x1] %v5176_v26 }
 0x3c0   : > { %v5459_v34 = vpop.permute.xlu0 %5458  ;;  %v4902_v41 = vld [vmem:[#allocation4 + $0xa0] sm:$0x80]  ;;  %v5126_v50 = vsel %vm10169_vm4, %v5067_v52, %v5125_v9  ;;  %v4202_v2 = vpop.permute.xlu1 %4201 }
 0x3c1   : > { %5496 = vst.msk [vmem:[#allocation4 + $0x70] sm:$0xff] %vm11538_vm11, %v5459_v34  ;;  %v4903_v11 = vsel %vm10090_vm14, 0, %v4902_v41  ;;  %5127 = vst [vmem:[#allocation4 + $0x90] sm:$0xff] %v5126_v50 }
 0x3c2   : > { %4904 = vst [vmem:[#allocation4 + $0xa0] sm:$0x80] %v4903_v11  ;;  %4232 = vst.msk [vmem:[#allocation4 + $0xf0] sm:$0xff] %vm4141_vm0, %v4202_v2  ;;  %v4538_v45 = vld [vmem:[#allocation4 + $0xd0] sm:$0x1] }
 0x3c3   : > { %v4539_v20 = vsel %vm9961_vm13, 0, %v4538_v45  ;;  %v4491_v19 = vld [vmem:[#allocation4 + $0xe0] sm:$0xff]  ;;  %vm11539_vm0 = vmmov %vm11531_vm1 }
 0x3c4   : > { %4540 = vst [vmem:[#allocation4 + $0xd0] sm:$0x1] %v4539_v20  ;;  %v4492_v23 = vsel %vm10042_vm8, %v4432_v14, %v4491_v19  ;;  %vm11540_vm1 = vmmov %vm11536_vm6 }
 0x3c5   : > { %v4830_v59 = vpop.permute.xlu0 %4829  ;;  %v4905_v25 = vld [vmem:[#allocation4 + $0xb0] sm:$0x80]  ;;  %v4761_v5 = vld [vmem:[#allocation4 + $0xc0] sm:$0xff]  ;;  %4493 = vst [vmem:[#allocation4 + $0xe0] sm:$0xff] %v4492_v23  ;;  %vm11542_vm2 = vmmov %vm11540_vm1 }
 0x3c6   : > { %v4906_v13 = vsel %vm10090_vm14, 0, %v4905_v25  ;;  %v4762_v62 = vsel %vm10016_vm5, %v10704_v24, %v4761_v5  ;;  %v5391_v3 = vld [vmem:[#allocation4 + $0x80] sm:$0xff]  ;;  %vm11544_vm6 = vmmov %vm11540_vm1 }
 0x3c7   : > { %4907 = vst [vmem:[#allocation4 + $0xb0] sm:$0x80] %v4906_v13  ;;  %4763 = vst [vmem:[#allocation4 + $0xc0] sm:$0xff] %v4762_v62 }
 0x3c8   : > { %v5461_v4 = vpop.permute.xlu1 %5460  ;;  %v5747_v17 = vld [vmem:[#allocation4 + $0x70] sm:$0xff]  ;;  %4866 = vst.msk [vmem:[#allocation4 + $0xc0] sm:$0xff] %vm4853_vm3, %v4830_v59  ;;  %vm11546_vm15 = vmmov %vm11539_vm0 }
 0x3c9   : > { %v5178_v37 = vld [vmem:[#allocation4 + $0x90] sm:$0x1]  ;;  %5981 = vmatmul.mubr.bf16.gmra.mrb[64].mxu0 %v5747_v17  ;;  %v5128_v18 = vld [vmem:[#allocation4 + $0xa0] sm:$0xff]  ;;  %v4282_v21 = vld [vmem:[#allocation4 + $0xf0] sm:$0x80] }
 0x3ca   : > { %v5337_v61 = vpop.permute.xlu0 %5336  ;;  %v5179_v48 = vsel %vm10251_vm7, 0, %v5178_v37  ;;  %6671 = vmatprep.mubr.msk.bf16.mxu0 %vm11539_vm0, %v10449_v32  ;;  %v5129_v56 = vsel %vm10169_vm4, %v10718_v47, %v5128_v18  ;;  %v4283_v24 = vsel %vm9947_vm9, 0, %v4282_v21  ;;  %vm11541_vm9 = vmmov %vm11539_vm0 }
 0x3cb   : > { %v5392_v0 = vsel %vm10326_vm10, %v5337_v61, %v5391_v3  ;;  %5180 = vst [vmem:[#allocation4 + $0x90] sm:$0x1] %v5179_v48  ;;  %5130 = vst [vmem:[#allocation4 + $0xa0] sm:$0xff] %v5129_v56  ;;  %v4764_v33 = vld [vmem:[#allocation4 + $0xd0] sm:$0xff] }
 0x3cc   : > { %5393 = vst [vmem:[#allocation4 + $0x80] sm:$0xff] %v5392_v0  ;;  %v4832_v39 = vpop.permute.xlu1 %4831  ;;  %4284 = vst [vmem:[#allocation4 + $0xf0] sm:$0x80] %v4283_v24  ;;  %v4541_v51 = vld [vmem:[#allocation4 + $0xe0] sm:$0x1] }
 0x3cd   : > { %5497 = vst.msk [vmem:[#allocation4 + $0x80] sm:$0xff] %vm11540_vm1, %v5461_v4  ;;  %v4542_v16 = vsel %vm9961_vm13, 0, %v4541_v51  ;;  %vm11549_vm11 = vmmov %vm11540_vm1 }
 0x3ce   : > { %v4702_v15 = vpop.permute.xlu0 %4701  ;;  %4543 = vst [vmem:[#allocation4 + $0xe0] sm:$0x1] %v4542_v16  ;;  %v5131_v1 = vld [vmem:[#allocation4 + $0xb0] sm:$0xff] }
 0x3cf   : > { %v4765_v46 = vsel %vm10016_vm5, %v4702_v15, %v4764_v33  ;;  %v4908_v52 = vld [vmem:[#allocation4 + $0xc0] sm:$0x80] }
 0x3d0   : > { %v5339_v32 = vpop.permute.xlu1 %5338  ;;  %4766 = vst [vmem:[#allocation4 + $0xd0] sm:$0xff] %v4765_v46  ;;  %v4909_v43 = vsel %vm10090_vm14, 0, %v4908_v52 }
 0x3d1   : > { %4867 = vst.msk [vmem:[#allocation4 + $0xd0] sm:$0xff] %vm4853_vm3, %v4832_v39  ;;  %4910 = vst [vmem:[#allocation4 + $0xc0] sm:$0x80] %v4909_v43 }
 0x3d2   : > { %v5071_v54 = vpop.permute.xlu0 %5070  ;;  %v5394_v63 = vld [vmem:[#allocation4 + $0x90] sm:$0xff]  ;;  %v5181_v57 = vld [vmem:[#allocation4 + $0xa0] sm:$0x1] }
 0x3d3   : > { %v5132_v47 = vsel %vm10169_vm4, %v5071_v54, %v5131_v1  ;;  %v5395_v60 = vsel %vm10326_vm10, %v5339_v32, %v5394_v63  ;;  %v4494_v44 = vld [vmem:[#allocation4 + $0xf0] sm:$0xff]  ;;  %v5182_v7 = vsel %vm10251_vm7, 0, %v5181_v57  ;;  %v6188_v1 = vld [vmem:[%s11291_s5] sm:$0xff] }
 0x3d4   : > { %5133 = vst [vmem:[#allocation4 + $0xb0] sm:$0xff] %v5132_v47  ;;  %v5749_v58 = vld [vmem:[#allocation4 + $0x80] sm:$0xff]  ;;  %v5463_v53 = vpop.permute.xlu1 %5462  ;;  %5396 = vst [vmem:[#allocation4 + $0x90] sm:$0xff] %v5395_v60  ;;  %v7208_v47 = vmov 0.0|0.0  }
 0x3d5   : > { %5989 = vmatmul.mubr.bf16.gmra.mrb[68].mxu0 %v5749_v58  ;;  %5183 = vst [vmem:[#allocation4 + $0xa0] sm:$0x1] %v5182_v7  ;;  %5498 = vst.msk [vmem:[#allocation4 + $0x90] sm:$0xff] %vm11542_vm2, %v5463_v53  ;;  %v4767_v12 = vld [vmem:[#allocation4 + $0xe0] sm:$0xff]  ;;  %6831 = vmatprep.subr.bf16.mxu1 %v7208_v47 }
 0x3d6   : > { %v4434_v38 = vpop.permute.xlu0 %4433  ;;  %6672 = vmatprep.mubr.msk.bf16.mxu0 %vm11541_vm9, %v10453_v40 }
 0x3d7   : > { %v4495_v30 = vsel %vm10042_vm8, %v4434_v38, %v4494_v44  ;;  %vm11543_vm8 = vmmov %vm11539_vm0 }
 0x3d8   : > { %4496 = vst [vmem:[#allocation4 + $0xf0] sm:$0xff] %v4495_v30  ;;  %v4834_v14 = vpop.permute.xlu1 %4833  ;;  %v4911_v42 = vld [vmem:[#allocation4 + $0xd0] sm:$0x80]  ;;  %v5134_v11 = vld [vmem:[#allocation4 + $0xc0] sm:$0xff] }
 0x3d9   : > { %v4912_v9 = vsel %vm10090_vm14, 0, %v4911_v42 }
 0x3da   : > { %v4704_v26 = vpop.permute.xlu0 %4703  ;;  %4913 = vst [vmem:[#allocation4 + $0xd0] sm:$0x80] %v4912_v9 }
 0x3db   : > { %v5184_v34 = vld [vmem:[#allocation4 + $0xb0] sm:$0x1]  ;;  %v4768_v41 = vsel %vm10016_vm5, %v4704_v26, %v4767_v12  ;;  %v11550_v12 = vmov 0  }
 0x3dc   : > { %v5185_v40 = vsel %vm10251_vm7, 0, %v5184_v34  ;;  %4769 = vst [vmem:[#allocation4 + $0xe0] sm:$0xff] %v4768_v41  ;;  %v5341_v50 = vpop.permute.xlu1 %5340  ;;  %v5397_v55 = vld [vmem:[#allocation4 + $0xa0] sm:$0xff]  ;;  %v5751_v45 = vld [vmem:[#allocation4 + $0x90] sm:$0xff] }
 0x3dd   : > { %5186 = vst [vmem:[#allocation4 + $0xb0] sm:$0x1] %v5185_v40  ;;  %4868 = vst.msk [vmem:[#allocation4 + $0xe0] sm:$0xff] %vm4853_vm3, %v4834_v14  ;;  %v5398_v20 = vsel %vm10326_vm10, %v5341_v50, %v5397_v55  ;;  %5997 = vmatmul.mubr.bf16.gmra.mrb[72].mxu0 %v5751_v45  ;;  %v5764_v40 = vld [vmem:[#allocation4 + $0xf8] sm:$0xff] }
 0x3de   : > { %v5073_v2 = vpop.permute.xlu0 %5072  ;;  %5399 = vst [vmem:[#allocation4 + $0xa0] sm:$0xff] %v5398_v20  ;;  %6673 = vmatprep.mubr.msk.bf16.mxu0 %vm11543_vm8, %v10468_v31  ;;  %v6190_v20 = vld [vmem:[%s11291_s5 + $0x10] sm:$0xff] }
 0x3df   : > { %v4544_v59 = vld [vmem:[#allocation4 + $0xf0] sm:$0x1]  ;;  %v5135_v19 = vsel %vm10169_vm4, %v5073_v2, %v5134_v11 }
 0x3e0   : > { %v4545_v23 = vsel %vm9961_vm13, 0, %v4544_v59  ;;  %5136 = vst [vmem:[#allocation4 + $0xc0] sm:$0xff] %v5135_v19  ;;  %v5075_v4 = vpop.permute.xlu1 %5074  ;;  %vm11545_vm13 = vmmov %vm11540_vm1  ;;  %v6191_v19 = vld [vmem:[%s11291_s5 + $0x18] sm:$0xff] }
 0x3e1   : > { %4546 = vst [vmem:[#allocation4 + $0xf0] sm:$0x1] %v4545_v23  ;;  %v5137_v25 = vld [vmem:[#allocation4 + $0xd0] sm:$0xff]  ;;  %v6835_v23 = vpack.c.bf16 %v6191_v19, %v6190_v20 }
 0x3e2   : > { %v5465_v5 = vpop.permute.xlu0 %5464  ;;  %v5138_v13 = vsel %vm10169_vm4, %v5075_v4, %v5137_v25 }
 0x3e3   : > { %5499 = vst.msk [vmem:[#allocation4 + $0xa0] sm:$0xff] %vm11544_vm6, %v5465_v5  ;;  %5139 = vst [vmem:[#allocation4 + $0xd0] sm:$0xff] %v5138_v13 }
 0x3e4   : > { %v5467_v62 = vpop.permute.xlu1 %5466  ;;  %v5400_v3 = vld [vmem:[#allocation4 + $0xb0] sm:$0xff]  ;;  %v4914_v61 = vld [vmem:[#allocation4 + $0xe0] sm:$0x80] }
 0x3e5   : > { %v4915_v6 = vsel %vm10090_vm14, 0, %v4914_v61 }
 0x3e6   : > { %v5343_v17 = vpop.permute.xlu0 %5342  ;;  %4916 = vst [vmem:[#allocation4 + $0xe0] sm:$0x80] %v4915_v6 }
 0x3e7   : > { %v5187_v37 = vld [vmem:[#allocation4 + $0xc0] sm:$0x1]  ;;  %v5401_v31 = vsel %vm10326_vm10, %v5343_v17, %v5400_v3 }
 0x3e8   : > { %v5188_v0 = vsel %vm10251_vm7, 0, %v5187_v37  ;;  %5402 = vst [vmem:[#allocation4 + $0xb0] sm:$0xff] %v5401_v31  ;;  %v4836_v48 = vpop.permute.xlu1 %4835  ;;  %v4770_v18 = vld [vmem:[#allocation4 + $0xf0] sm:$0xff] }
 0x3e9   : > { %5189 = vst [vmem:[#allocation4 + $0xc0] sm:$0x1] %v5188_v0  ;;  %5500 = vst.msk [vmem:[#allocation4 + $0xb0] sm:$0xff] %vm11545_vm13, %v5467_v62 }
 0x3ea   : > { %v4706_v21 = vpop.permute.xlu0 %4705  ;;  %v5753_v39 = vld [vmem:[#allocation4 + $0xa0] sm:$0xff]  ;;  %v5190_v56 = vld [vmem:[#allocation4 + $0xd0] sm:$0x1] }
 0x3eb   : > { %v4771_v24 = vsel %vm10016_vm5, %v4706_v21, %v4770_v18  ;;  %6005 = vmatmul.mubr.bf16.gmra.mrb[76].mxu0 %v5753_v39  ;;  %v5191_v15 = vsel %vm10251_vm7, 0, %v5190_v56  ;;  %vm11547_vm5 = vmmov %vm11540_vm1 }
 0x3ec   : > { %4772 = vst [vmem:[#allocation4 + $0xf0] sm:$0xff] %v4771_v24  ;;  %6674 = vmatprep.mubr.msk.bf16.mxu0 %vm11546_vm15, %v10473_v10  ;;  %5192 = vst [vmem:[#allocation4 + $0xd0] sm:$0x1] %v5191_v15  ;;  %v5345_v51 = vpop.permute.xlu1 %5344  ;;  %v6189_v10 = vld [vmem:[%s11291_s5 + $0x8] sm:$0xff] }
 0x3ed   : > { %4869 = vst.msk [vmem:[#allocation4 + $0xf0] sm:$0xff] %vm4853_vm3, %v4836_v48  ;;  %v5140_v33 = vld [vmem:[#allocation4 + $0xe0] sm:$0xff]  ;;  %v6832_v43 = vpack.c.bf16 %v6189_v10, %v6188_v1  ;;  %vm11548_vm3 = vmmov %vm11539_vm0 }
 0x3ee   : > { %v5077_v46 = vpop.permute.xlu0 %5076 }
 0x3ef   : > { %v5141_v32 = vsel %vm10169_vm4, %v5077_v46, %v5140_v33  ;;  %6833 = vmatpush3.bf16.msra.mxu1 %v6832_v43 }
 0x3f0   : > { %v5403_v16 = vld [vmem:[#allocation4 + $0xc0] sm:$0xff]  ;;  %5142 = vst [vmem:[#allocation4 + $0xe0] sm:$0xff] %v5141_v32  ;;  %v5755_v52 = vld [vmem:[#allocation4 + $0xb0] sm:$0xff]  ;;  %v5347_v63 = vpop.permute.xlu1 %5346  ;;  %6834 = vmatprep.subr.bf16.mxu1 %v7208_v47 }
 0x3f1   : > { %v5404_v28 = vsel %vm10326_vm10, %v5345_v51, %v5403_v16 }
 0x3f2   : > { %5405 = vst [vmem:[#allocation4 + $0xc0] sm:$0xff] %v5404_v28  ;;  %v5469_v54 = vpop.permute.xlu0 %5468 }
 0x3f3   : > { %5501 = vst.msk [vmem:[#allocation4 + $0xc0] sm:$0xff] %vm11547_vm5, %v5469_v54  ;;  %6013 = vmatmul.mubr.bf16.gmra.mrb[80].mxu0 %v5755_v52  ;;  %v5406_v58 = vld [vmem:[#allocation4 + $0xd0] sm:$0xff]  ;;  %6836 = vmatpush3.bf16.msra.mxu1 %v6835_v23  ;;  %v6192_v54 = vld [vmem:[%s11291_s5 + $0x20] sm:$0xff]  ;;  %v6193_v52 = vld [vmem:[%s11291_s5 + $0x28] sm:$0xff] }
 0x3f4   : > { %6675 = vmatprep.mubr.msk.bf16.mxu0 %vm11548_vm3, %v10477_v35  ;;  %v4917_v53 = vld [vmem:[#allocation4 + $0xf0] sm:$0x80]  ;;  %v5407_v57 = vsel %vm10326_vm10, %v5347_v63, %v5406_v58  ;;  %v5079_v30 = vpop.permute.xlu1 %5078  ;;  %6837 = vmatprep.subr.bf16.mxu1 %v7208_v47  ;;  %v6838_v43 = vpack.c.bf16 %v6193_v52, %v6192_v54 }
 0x3f5   : > { %v4918_v60 = vsel %vm10090_vm14, 0, %v4917_v53  ;;  %5408 = vst [vmem:[#allocation4 + $0xd0] sm:$0xff] %v5407_v57  ;;  %vm11551_vm14 = vmmov %vm11540_vm1  ;;  %v7210_v53 = vmov 0.0  }
 0x3f6   : > { %4919 = vst [vmem:[#allocation4 + $0xf0] sm:$0x80] %v4918_v60  ;;  %v5471_v44 = vpop.permute.xlu0 %5470  ;;  %vm11552_vm1 = vmmov %vm11539_vm0 }
 0x3f7   : > { %v5193_v7 = vld [vmem:[#allocation4 + $0xe0] sm:$0x1]  ;;  %5502 = vst.msk [vmem:[#allocation4 + $0xd0] sm:$0xff] %vm11549_vm11, %v5471_v44  ;;  %6839 = vmatpush3.bf16.msra.mxu1 %v6838_v43 }
 0x3f8   : > { %v5194_v38 = vsel %vm10251_vm7, 0, %v5193_v7  ;;  %v5473_v34 = vpop.permute.xlu1 %5472  ;;  %6826 = vmatprep.subr.mxu1 %v7210_v53 }
 0x3f9   : > { %5195 = vst [vmem:[#allocation4 + $0xe0] sm:$0x1] %v5194_v38 }
 0x3fa   : > { %v5757_v35 = vld [vmem:[#allocation4 + $0xc0] sm:$0xff]  ;;  %v5349_v26 = vpop.permute.xlu0 %5348 }
 0x3fb   : > { %6021 = vmatmul.mubr.bf16.gmra.mrb[84].mxu0 %v5757_v35 }
 0x3fc   : > { %6676 = vmatprep.mubr.msk.bf16.mxu0 %vm11539_vm0, %v10489_v36 }
 0x3fd   : > { %v5143_v14 = vld [vmem:[#allocation4 + $0xf0] sm:$0xff] }
 0x3fe   : > { %v5144_v27 = vsel %vm10169_vm4, %v5079_v30, %v5143_v14  ;;  %v5759_v41 = vld [vmem:[#allocation4 + $0xd0] sm:$0xff]  ;;  %vm11553_vm4 = vmmov %vm11542_vm2 }
 0x3ff   : > { %5145 = vst [vmem:[#allocation4 + $0xf0] sm:$0xff] %v5144_v27 }
 0x400   : > { %5148 = vst.msk [vmem:[#allocation4 + $0xf0] sm:$0xff] %vm5147_vm12, %v11550_v12  ;;  %v5409_v42 = vld [vmem:[#allocation4 + $0xe0] sm:$0xff]  ;;  %vm11554_vm12 = vmmov %vm11539_vm0 }
 0x401   : > { %v5410_v9 = vsel %vm10326_vm10, %v5349_v26, %v5409_v42 }
 0x402   : > { %5411 = vst [vmem:[#allocation4 + $0xe0] sm:$0xff] %v5410_v9 }
 0x403   : > { %5503 = vst.msk [vmem:[#allocation4 + $0xe0] sm:$0xff] %vm11551_vm14, %v5473_v34  ;;  %6029 = vmatmul.mubr.bf16.gmra.mrb[88].mxu0 %v5759_v41  ;;  %vm7209_vm14 = vmmov 0  }
 0x404   : > { %6677 = vmatprep.mubr.msk.bf16.mxu0 %vm11552_vm1, %v10493_v49  ;;  %v10850_v49 = vld [vmem:[%s11290_s4] ss:$0 sm:$0xff]  ;;  %6823 = vmatprep.mubr.msk.f32.mxu1 %vm7209_vm14, %v7210_v53 }
 0x407   : > { %v5196_v8 = vld [vmem:[#allocation4 + $0xf0] sm:$0x1] }
 0x408   : > { %v5197_v36 = vsel %vm10251_vm7, 0, %v5196_v8  ;;  %vm11556_vm7 = vcmask 392192  }
 0x409   : > { %5198 = vst [vmem:[#allocation4 + $0xf0] sm:$0x1] %v5197_v36  ;;  %vm11557_vm10 = vmmov %vm11556_vm7 }
 0x40a   : > { %5413 = vst.msk [vmem:[#allocation4 + $0xf0] sm:$0xff] %vm11553_vm4, %v11550_v12  ;;  %v5761_v29 = vld [vmem:[#allocation4 + $0xe0] sm:$0xff]  ;;  %vm11558_vm9 = vmmov %vm11556_vm7 }
 0x40b   : > { %6037 = vmatmul.mubr.bf16.gmra.mrb[92].mxu0 %v5761_v29  ;;  %vm11559_vm2 = vmmov %vm11556_vm7 }
 0x40c   : > { %6678 = vmatprep.mubr.msk.bf16.mxu0 %vm11554_vm12, %v5764_v40  ;;  %vm11560_vm8 = vmmov %vm11559_vm2 }
 0x40d   : > { %vm11561_vm6 = vmmov %vm11559_vm2 }
 0x40e   : > { %vm11562_vm13 = vmmov %vm11559_vm2 }
 0x40f   : > { %vm11563_vm15 = vmmov %vm11559_vm2 }
 0x410   : > { %vm11564_vm5 = vmmov %vm11559_vm2 }
 0x411   : > { %v5763_v50 = vld [vmem:[#allocation4 + $0xf0] sm:$0xff]  ;;  %vm11565_vm3 = vmmov %vm11559_vm2 }
 0x412   : > { %vm11566_vm11 = vmmov %vm11559_vm2 }
 0x413   : > { %6045 = vmatmul.mubr.bf16.gmra.mrb[96].mxu0 %v5763_v50  ;;  %vm11567_vm0 = vmmov %vm11559_vm2 }
 0x414   : > { %vm11568_vm1 = vmmov %vm11567_vm0 }
 0x415   : > { %vm11569_vm4 = vmmov %vm11567_vm0 }
 0x416   : > { %vm11570_vm12 = vmmov %vm11567_vm0 }
 0x428   : > { %v5926_v55 = vpop.f32.mrb[36].mxu0 }
 0x429   : > { %v5927_v22 = vadd.f32 %v10850_v49, %v5926_v55  ;;  %v5928_v11 = vpop.f32.mrb[37].mxu0 }
 0x42a   : > { %v5929_v2 = vpop.f32.mrb[38].mxu0 }
 0x42b   : > { %6053 = vst.msk [vmem:[%s10855_s19] sm:$0xff] %vm11556_vm7, %v5927_v22  ;;  %v5930_v45 = vadd.f32 %v10850_v49, %v5929_v2  ;;  %v5931_v59 = vpop.f32.mrb[39].mxu0  ;;  %vm11571_vm7 = vmmov %vm11567_vm0 }
 0x42d   : > { %6054 = vst.msk [vmem:[%s10855_s19 + $0x8] sm:$0xff] %vm11557_vm10, %v5930_v45  ;;  %vm11572_vm10 = vmmov %vm11567_vm0 }
 0x432   : > { %v10917_v14 = vld [vmem:[%s10855_s19] sm:$0xff] }
 0x433   : > { %v6117_v42 = vsel %vm11571_vm7, %v10917_v14, 0.0  ;;  %vm11585_vm7 = vmmov %vm11567_vm0 }
 0x434   : > { %v10914_v30 = vld [vmem:[%s10855_s19 + $0x8] sm:$0xff] }
 0x435   : > { %v6118_v12 = vsel %vm11570_vm12, %v10914_v30, 0.0  ;;  %vm11584_vm12 = vmmov %vm11567_vm0 }
 0x436   : > { %v6119_v9 = vadd.f32 %v6118_v12, %v6117_v42 }
 0x440   : > { %v5934_v4 = vpop.f32.mrb[40].mxu0 }
 0x441   : > { %v5935_v25 = vadd.f32 %v10850_v49, %v5934_v4  ;;  %v5936_v5 = vpop.f32.mrb[41].mxu0 }
 0x442   : > { %v5937_v13 = vpop.f32.mrb[42].mxu0 }
 0x443   : > { %6055 = vst.msk [vmem:[%s10855_s19 + $0x10] sm:$0xff] %vm11558_vm9, %v5935_v25  ;;  %v5938_v62 = vadd.f32 %v10850_v49, %v5937_v13  ;;  %v5939_v3 = vpop.f32.mrb[43].mxu0  ;;  %vm11573_vm9 = vmmov %vm11567_vm0 }
 0x445   : > { %6056 = vst.msk [vmem:[%s10855_s19 + $0x18] sm:$0xff] %vm11559_vm2, %v5938_v62  ;;  %vm11574_vm2 = vmmov %vm11567_vm0 }
 0x44a   : > { %v10920_v27 = vld [vmem:[%s10855_s19 + $0x10] sm:$0xff] }
 0x44b   : > { %v5942_v61 = vpop.f32.mrb[44].mxu0  ;;  %v6120_v26 = vsel %vm11572_vm10, %v10920_v27, 0.0  ;;  %vm11586_vm10 = vmmov %vm11567_vm0 }
 0x44c   : > { %v5943_v6 = vadd.f32 %v10850_v49, %v5942_v61  ;;  %v5944_v17 = vpop.f32.mrb[45].mxu0  ;;  %v10929_v34 = vld [vmem:[%s10855_s19 + $0x18] sm:$0xff]  ;;  %v6121_v41 = vadd.f32 %v6120_v26, %v6119_v9 }
 0x44d   : > { %v5945_v37 = vpop.f32.mrb[46].mxu0  ;;  %v6122_v40 = vsel %vm11573_vm9, %v10929_v34, 0.0  ;;  %vm11587_vm9 = vmmov %vm11567_vm0 }
 0x44e   : > { %6057 = vst.msk [vmem:[%s10855_s19 + $0x20] sm:$0xff] %vm11560_vm8, %v5943_v6  ;;  %v5946_v31 = vadd.f32 %v10850_v49, %v5945_v37  ;;  %v5947_v0 = vpop.f32.mrb[47].mxu0  ;;  %vm11575_vm8 = vmmov %vm11567_vm0  ;;  %v6123_v45 = vadd.f32 %v6122_v40, %v6121_v41 }
 0x450   : > { %6058 = vst.msk [vmem:[%s10855_s19 + $0x28] sm:$0xff] %vm11561_vm6, %v5946_v31  ;;  %vm11576_vm6 = vmmov %vm11567_vm0 }
 0x453   : > { %v5950_v48 = vpop.f32.mrb[48].mxu0 }
 0x454   : > { %v5951_v18 = vadd.f32 %v10850_v49, %v5950_v48  ;;  %v5952_v21 = vpop.f32.mrb[49].mxu0 }
 0x455   : > { %v5953_v39 = vpop.f32.mrb[50].mxu0  ;;  %v10932_v8 = vld [vmem:[%s10855_s19 + $0x20] sm:$0xff] }
 0x456   : > { %6059 = vst.msk [vmem:[%s10855_s19 + $0x30] sm:$0xff] %vm11562_vm13, %v5951_v18  ;;  %v5954_v56 = vadd.f32 %v10850_v49, %v5953_v39  ;;  %v5955_v24 = vpop.f32.mrb[51].mxu0  ;;  %v6124_v22 = vsel %vm11574_vm2, %v10932_v8, 0.0  ;;  %vm11577_vm13 = vmmov %vm11567_vm0 }
 0x457   : > { %v10943_v59 = vld [vmem:[%s10855_s19 + $0x28] sm:$0xff]  ;;  %v6125_v20 = vadd.f32 %v6124_v22, %v6123_v45  ;;  %vm11588_vm2 = vmmov %vm11567_vm0 }
 0x458   : > { %6060 = vst.msk [vmem:[%s10855_s19 + $0x38] sm:$0xff] %vm11563_vm15, %v5954_v56  ;;  %v6126_v23 = vsel %vm11577_vm13, %v10943_v59, 0.0  ;;  %vm11578_vm15 = vmmov %vm11567_vm0 }
 0x459   : > { %v6127_v25 = vadd.f32 %v6126_v23, %v6125_v20  ;;  %vm11591_vm13 = vmmov %vm11567_vm0 }
 0x45b   : > { %v5958_v15 = vpop.f32.mrb[52].mxu0 }
 0x45c   : > { %v5959_v33 = vadd.f32 %v10850_v49, %v5958_v15  ;;  %v5960_v51 = vpop.f32.mrb[53].mxu0 }
 0x45d   : > { %v5961_v46 = vpop.f32.mrb[54].mxu0  ;;  %v10948_v19 = vld [vmem:[%s10855_s19 + $0x30] sm:$0xff] }
 0x45e   : > { %6061 = vst.msk [vmem:[%s10855_s19 + $0x40] sm:$0xff] %vm11564_vm5, %v5959_v33  ;;  %v5962_v32 = vadd.f32 %v10850_v49, %v5961_v46  ;;  %v5963_v16 = vpop.f32.mrb[55].mxu0  ;;  %v6128_v4 = vsel %vm11578_vm15, %v10948_v19, 0.0  ;;  %vm11579_vm5 = vmmov %vm11567_vm0 }
 0x45f   : > { %v10955_v5 = vld [vmem:[%s10855_s19 + $0x38] sm:$0xff]  ;;  %v6129_v61 = vadd.f32 %v6128_v4, %v6127_v25  ;;  %vm11592_vm15 = vmmov %vm11567_vm0 }
 0x460   : > { %6062 = vst.msk [vmem:[%s10855_s19 + $0x48] sm:$0xff] %vm11565_vm3, %v5962_v32  ;;  %v6130_v37 = vsel %vm11579_vm5, %v10955_v5, 0.0  ;;  %vm11580_vm3 = vmmov %vm11567_vm0 }
 0x461   : > { %v6131_v18 = vadd.f32 %v6130_v37, %v6129_v61  ;;  %vm11593_vm5 = vmmov %vm11567_vm0 }
 0x463   : > { %v5966_v28 = vpop.f32.mrb[56].mxu0 }
 0x464   : > { %v5967_v1 = vadd.f32 %v10850_v49, %v5966_v28  ;;  %v5968_v10 = vpop.f32.mrb[57].mxu0 }
 0x465   : > { %v5969_v47 = vpop.f32.mrb[58].mxu0  ;;  %v10959_v6 = vld [vmem:[%s10855_s19 + $0x40] sm:$0xff] }
 0x466   : > { %6063 = vst.msk [vmem:[%s10855_s19 + $0x50] sm:$0xff] %vm11566_vm11, %v5967_v1  ;;  %v5970_v63 = vadd.f32 %v10850_v49, %v5969_v47  ;;  %v5971_v58 = vpop.f32.mrb[59].mxu0  ;;  %vm11581_vm11 = vmmov %vm11567_vm0 }
 0x467   : > { %v6132_v48 = vsel %vm11581_vm11, %v10959_v6, 0.0  ;;  %v10971_v21 = vld [vmem:[%s10855_s19 + $0x48] sm:$0xff]  ;;  %vm11595_vm11 = vmmov %vm11567_vm0 }
 0x468   : > { %6064 = vst.msk [vmem:[%s10855_s19 + $0x58] sm:$0xff] %vm11567_vm0, %v5970_v63  ;;  %v6133_v39 = vadd.f32 %v6132_v48, %v6131_v18 }
 0x46d   : > { %v10974_v56 = vld [vmem:[%s10855_s19 + $0x50] sm:$0xff] }
 0x46f   : > { %v10982_v16 = vld [vmem:[%s10855_s19 + $0x58] sm:$0xff] }
 0x470   : > { %v6138_v47 = vsel %vm11585_vm7, %v10982_v16, 0.0  ;;  %vm11599_vm7 = vmmov %vm11567_vm0 }
 0x489   : > { %v5974_v57 = vpop.f32.mrb[60].mxu0 }
 0x48a   : > { %v5975_v60 = vadd.f32 %v10850_v49, %v5974_v57  ;;  %v5976_v44 = vpop.f32.mrb[61].mxu0 }
 0x48b   : > { %v5977_v7 = vpop.f32.mrb[62].mxu0 }
 0x48c   : > { %6065 = vst.msk [vmem:[%s10855_s19 + $0x60] sm:$0xff] %vm11568_vm1, %v5975_v60  ;;  %v5978_v38 = vadd.f32 %v10850_v49, %v5977_v7  ;;  %v5979_v35 = vpop.f32.mrb[63].mxu0  ;;  %vm11582_vm1 = vmmov %vm11567_vm0 }
 0x48d   : > { %v6134_v24 = vsel %vm11582_vm1, %v10971_v21, 0.0  ;;  %vm11596_vm1 = vmmov %vm11567_vm0 }
 0x48e   : > { %6066 = vst.msk [vmem:[%s10855_s19 + $0x68] sm:$0xff] %vm11569_vm4, %v5978_v38  ;;  %vm11583_vm4 = vmmov %vm11567_vm0  ;;  %v6135_v32 = vadd.f32 %v6134_v24, %v6133_v39 }
 0x48f   : > { %v6136_v33 = vsel %vm11583_vm4, %v10974_v56, 0.0  ;;  %vm11597_vm4 = vmmov %vm11567_vm0 }
 0x490   : > { %v6137_v54 = vadd.f32 %v6136_v33, %v6135_v32 }
 0x492   : > { %v6139_v63 = vadd.f32 %v6138_v47, %v6137_v54 }
 0x493   : > { %v10988_v52 = vld [vmem:[%s10855_s19 + $0x60] sm:$0xff] }
 0x494   : > { %v6140_v43 = vsel %vm11587_vm9, %v10988_v52, 0.0  ;;  %vm11601_vm9 = vmmov %vm11567_vm0 }
 0x495   : > { %v10997_v58 = vld [vmem:[%s10855_s19 + $0x68] sm:$0xff]  ;;  %v6141_v57 = vadd.f32 %v6140_v43, %v6139_v63 }
 0x496   : > { %v6142_v44 = vsel %vm11588_vm2, %v10997_v58, 0.0  ;;  %vm11602_vm2 = vmmov %vm11567_vm0 }
 0x497   : > { %v6143_v42 = vadd.f32 %v6142_v44, %v6141_v57 }
 0x49c   : > { %v5982_v36 = vpop.f32.mrb[64].mxu0 }
 0x49d   : > { %v5983_v29 = vadd.f32 %v10850_v49, %v5982_v36  ;;  %v5984_v50 = vpop.f32.mrb[65].mxu0 }
 0x49e   : > { %v5985_v55 = vpop.f32.mrb[66].mxu0 }
 0x49f   : > { %6067 = vst.msk [vmem:[%s10855_s19 + $0x70] sm:$0xff] %vm11575_vm8, %v5983_v29  ;;  %v5986_v11 = vadd.f32 %v10850_v49, %v5985_v55  ;;  %v5987_v2 = vpop.f32.mrb[67].mxu0  ;;  %vm11589_vm8 = vmmov %vm11567_vm0 }
 0x4a1   : > { %6068 = vst.msk [vmem:[%s10855_s19 + $0x78] sm:$0xff] %vm11576_vm6, %v5986_v11  ;;  %vm11590_vm6 = vmmov %vm11567_vm0 }
 0x4a6   : > { %v11000_v60 = vld [vmem:[%s10855_s19 + $0x70] sm:$0xff] }
 0x4a7   : > { %v6144_v38 = vsel %vm11589_vm8, %v11000_v60, 0.0  ;;  %vm11603_vm8 = vmmov %vm11567_vm0 }
 0x4a8   : > { %v5990_v13 = vpop.f32.mrb[68].mxu0  ;;  %v11008_v26 = vld [vmem:[%s10855_s19 + $0x78] sm:$0xff]  ;;  %v6145_v40 = vadd.f32 %v6144_v38, %v6143_v42 }
 0x4a9   : > { %v5991_v62 = vadd.f32 %v10850_v49, %v5990_v13  ;;  %v5992_v3 = vpop.f32.mrb[69].mxu0  ;;  %v6146_v50 = vsel %vm11591_vm13, %v11008_v26, 0.0  ;;  %vm11605_vm13 = vmmov %vm11567_vm0 }
 0x4aa   : > { %v5993_v17 = vpop.f32.mrb[70].mxu0  ;;  %v6147_v22 = vadd.f32 %v6146_v50, %v6145_v40 }
 0x4ab   : > { %6069 = vst.msk [vmem:[%s10855_s19 + $0x80] sm:$0xff] %vm11580_vm3, %v5991_v62  ;;  %v5994_v31 = vadd.f32 %v10850_v49, %v5993_v17  ;;  %v5995_v0 = vpop.f32.mrb[71].mxu0  ;;  %vm11594_vm3 = vmmov %vm11567_vm0 }
 0x4ad   : > { %6070 = vst.msk [vmem:[%s10855_s19 + $0x88] sm:$0xff] %vm11567_vm0, %v5994_v31 }
 0x4b0   : > { %v5998_v15 = vpop.f32.mrb[72].mxu0 }
 0x4b1   : > { %v5999_v51 = vadd.f32 %v10850_v49, %v5998_v15  ;;  %v6000_v46 = vpop.f32.mrb[73].mxu0 }
 0x4b2   : > { %v6001_v28 = vpop.f32.mrb[74].mxu0  ;;  %v11014_v29 = vld [vmem:[%s10855_s19 + $0x80] sm:$0xff] }
 0x4b3   : > { %6071 = vst.msk [vmem:[%s10855_s19 + $0x90] sm:$0xff] %vm11584_vm12, %v5999_v51  ;;  %v6002_v1 = vadd.f32 %v10850_v49, %v6001_v28  ;;  %v6003_v10 = vpop.f32.mrb[75].mxu0  ;;  %v6148_v55 = vsel %vm11593_vm5, %v11014_v29, 0.0  ;;  %vm11598_vm12 = vmmov %vm11567_vm0 }
 0x4b4   : > { %v11023_v11 = vld [vmem:[%s10855_s19 + $0x88] sm:$0xff]  ;;  %v6149_v23 = vadd.f32 %v6148_v55, %v6147_v22  ;;  %vm11607_vm5 = vmmov %vm11567_vm0 }
 0x4b5   : > { %6072 = vst.msk [vmem:[%s10855_s19 + $0x98] sm:$0xff] %vm11586_vm10, %v6002_v1  ;;  %v6150_v13 = vsel %vm11594_vm3, %v11023_v11, 0.0  ;;  %vm11600_vm10 = vmmov %vm11567_vm0 }
 0x4b6   : > { %v6151_v17 = vadd.f32 %v6150_v13, %v6149_v23  ;;  %vm11608_vm3 = vmmov %vm11567_vm0 }
 0x4ba   : > { %v11027_v4 = vld [vmem:[%s10855_s19 + $0x90] sm:$0xff] }
 0x4bb   : > { %v6152_v61 = vsel %vm11567_vm0, %v11027_v4, 0.0 }
 0x4bc   : > { %v11039_v37 = vld [vmem:[%s10855_s19 + $0x98] sm:$0xff]  ;;  %v6153_v31 = vadd.f32 %v6152_v61, %v6151_v17 }
 0x4bd   : > { %v6154_v18 = vsel %vm11597_vm4, %v11039_v37, 0.0  ;;  %vm11611_vm4 = vmmov %vm11567_vm0 }
 0x4be   : > { %v6006_v7 = vpop.f32.mrb[76].mxu0  ;;  %v6155_v32 = vadd.f32 %v6154_v18, %v6153_v31 }
 0x4bf   : > { %v6007_v35 = vadd.f32 %v10850_v49, %v6006_v7  ;;  %v6008_v12 = vpop.f32.mrb[77].mxu0 }
 0x4c0   : > { %v6009_v9 = vpop.f32.mrb[78].mxu0 }
 0x4c1   : > { %6073 = vst.msk [vmem:[%s10855_s19 + $0xa0] sm:$0xff] %vm11590_vm6, %v6007_v35  ;;  %v6010_v41 = vadd.f32 %v10850_v49, %v6009_v9  ;;  %v6011_v36 = vpop.f32.mrb[79].mxu0  ;;  %vm11604_vm6 = vmmov %vm11567_vm0 }
 0x4c3   : > { %6074 = vst.msk [vmem:[%s10855_s19 + $0xa8] sm:$0xff] %vm11592_vm15, %v6010_v41  ;;  %vm11606_vm15 = vmmov %vm11567_vm0 }
 0x4c6   : > { %v6014_v2 = vpop.f32.mrb[80].mxu0 }
 0x4c7   : > { %v6015_v45 = vadd.f32 %v10850_v49, %v6014_v2  ;;  %v6016_v20 = vpop.f32.mrb[81].mxu0 }
 0x4c8   : > { %v6017_v25 = vpop.f32.mrb[82].mxu0  ;;  %v11042_v0 = vld [vmem:[%s10855_s19 + $0xa0] sm:$0xff] }
 0x4c9   : > { %6075 = vst.msk [vmem:[%s10855_s19 + $0xb0] sm:$0xff] %vm11595_vm11, %v6015_v45  ;;  %v6018_v62 = vadd.f32 %v10850_v49, %v6017_v25  ;;  %v6019_v3 = vpop.f32.mrb[83].mxu0  ;;  %v6156_v33 = vsel %vm11598_vm12, %v11042_v0, 0.0  ;;  %vm11609_vm11 = vmmov %vm11567_vm0 }
 0x4ca   : > { %v11053_v28 = vld [vmem:[%s10855_s19 + $0xa8] sm:$0xff]  ;;  %v6157_v1 = vadd.f32 %v6156_v33, %v6155_v32  ;;  %vm11612_vm12 = vmmov %vm11567_vm0 }
 0x4cb   : > { %6076 = vst.msk [vmem:[%s10855_s19 + $0xb8] sm:$0xff] %vm11596_vm1, %v6018_v62  ;;  %v6158_v54 = vsel %vm11601_vm9, %v11053_v28, 0.0  ;;  %vm11610_vm1 = vmmov %vm11567_vm0 }
 0x4cc   : > { %v6159_v44 = vadd.f32 %v6158_v54, %v6157_v1  ;;  %vm11615_vm9 = vmmov %vm11567_vm0 }
 0x4ce   : > { %v6022_v48 = vpop.f32.mrb[84].mxu0 }
 0x4cf   : > { %v6023_v39 = vadd.f32 %v10850_v49, %v6022_v48  ;;  %v6024_v24 = vpop.f32.mrb[85].mxu0 }
 0x4d0   : > { %v6025_v15 = vpop.f32.mrb[86].mxu0  ;;  %v11058_v10 = vld [vmem:[%s10855_s19 + $0xb0] sm:$0xff] }
 0x4d1   : > { %6077 = vst.msk [vmem:[%s10855_s19 + $0xc0] sm:$0xff] %vm11599_vm7, %v6023_v39  ;;  %v6026_v51 = vadd.f32 %v10850_v49, %v6025_v15  ;;  %v6027_v46 = vpop.f32.mrb[87].mxu0  ;;  %v6160_v43 = vsel %vm11602_vm2, %v11058_v10, 0.0  ;;  %vm11613_vm7 = vmmov %vm11567_vm0 }
 0x4d2   : > { %v11066_v7 = vld [vmem:[%s10855_s19 + $0xb8] sm:$0xff]  ;;  %v6161_v42 = vadd.f32 %v6160_v43, %v6159_v44  ;;  %vm11616_vm2 = vmmov %vm11567_vm0 }
 0x4d3   : > { %6078 = vst.msk [vmem:[%s10855_s19 + $0xc8] sm:$0xff] %vm11600_vm10, %v6026_v51  ;;  %v6162_v41 = vsel %vm11604_vm6, %v11066_v7, 0.0  ;;  %vm11614_vm10 = vmmov %vm11567_vm0  ;;  %vm6275_vm6 = vcmask 1042432  }
 0x4d4   : > { %v6163_v40 = vadd.f32 %v6162_v41, %v6161_v42 }
 0x4d6   : > { %v6030_v47 = vpop.f32.mrb[88].mxu0 }
 0x4d7   : > { %v6031_v63 = vadd.f32 %v10850_v49, %v6030_v47  ;;  %v6032_v57 = vpop.f32.mrb[89].mxu0 }
 0x4d8   : > { %v6033_v38 = vpop.f32.mrb[90].mxu0  ;;  %v11072_v9 = vld [vmem:[%s10855_s19 + $0xc0] sm:$0xff] }
 0x4d9   : > { %6079 = vst.msk [vmem:[%s10855_s19 + $0xd0] sm:$0xff] %vm11603_vm8, %v6031_v63  ;;  %v6034_v35 = vadd.f32 %v10850_v49, %v6033_v38  ;;  %v6035_v12 = vpop.f32.mrb[91].mxu0  ;;  %v6164_v36 = vsel %vm11606_vm15, %v11072_v9, 0.0  ;;  %vm11617_vm8 = vmmov %vm11567_vm0 }
 0x4da   : > { %v11081_v50 = vld [vmem:[%s10855_s19 + $0xc8] sm:$0xff]  ;;  %v6165_v45 = vadd.f32 %v6164_v36, %v6163_v40  ;;  %vm11619_vm15 = vmmov %vm11567_vm0 }
 0x4db   : > { %6080 = vst.msk [vmem:[%s10855_s19 + $0xd8] sm:$0xff] %vm11605_vm13, %v6034_v35  ;;  %v6166_v25 = vsel %vm11607_vm5, %v11081_v50, 0.0  ;;  %vm6271_vm13 = vcmask 23552   ;;  %vm11620_vm5 = vmmov %vm11567_vm0 }
 0x4dc   : > { %v6167_v61 = vadd.f32 %v6166_v25, %v6165_v45  ;;  %v6269_v45 = vld [vmem:[%s11293_s7] sm:$0x7] }
 0x4de   : > { %v6038_v55 = vpop.f32.mrb[92].mxu0 }
 0x4df   : > { %v6039_v22 = vadd.f32 %v10850_v49, %v6038_v55  ;;  %v6040_v2 = vpop.f32.mrb[93].mxu0 }
 0x4e0   : > { %v11085_v20 = vld [vmem:[%s10855_s19 + $0xd0] sm:$0xff]  ;;  %v6041_v23 = vpop.f32.mrb[94].mxu0 }
 0x4e1   : > { %6081 = vst.msk [vmem:[%s10855_s19 + $0xe0] sm:$0xff] %vm11608_vm3, %v6039_v22  ;;  %v6042_v13 = vadd.f32 %v10850_v49, %v6041_v23  ;;  %v6043_v62 = vpop.f32.mrb[95].mxu0  ;;  %v6168_v3 = vsel %vm11609_vm11, %v11085_v20, 0.0  ;;  %v6194_v23 = vld [vmem:[%s11292_s6] sm:$0x1]  ;;  %vm11621_vm3 = vmmov %vm11567_vm0 }
 0x4e2   : > { %v11097_v17 = vld [vmem:[%s10855_s19 + $0xd8] sm:$0xff]  ;;  %v6169_v31 = vadd.f32 %v6168_v3, %v6167_v61  ;;  %vm11622_vm11 = vmmov %vm11567_vm0 }
 0x4e3   : > { %6082 = vst.msk [vmem:[%s10855_s19 + $0xe8] sm:$0xff] %vm11567_vm0, %v6042_v13  ;;  %v6170_v18 = vsel %vm11610_vm1, %v11097_v17, 0.0  ;;  %vm11623_vm1 = vmmov %vm11567_vm0 }
 0x4e4   : > { %v6171_v1 = vadd.f32 %v6170_v18, %v6169_v31 }
 0x4e6   : > { %v6046_v48 = vpop.f32.mrb[96].mxu0 }
 0x4e7   : > { %v6047_v39 = vadd.f32 %v10850_v49, %v6046_v48  ;;  %v6048_v24 = vpop.f32.mrb[97].mxu0 }
 0x4e8   : > { %v11103_v15 = vld [vmem:[%s10855_s19 + $0xe0] sm:$0xff]  ;;  %v6049_v33 = vpop.f32.mrb[98].mxu0 }
 0x4e9   : > { %v6172_v51 = vsel %vm11611_vm4, %v11103_v15, 0.0  ;;  %6083 = vst.msk [vmem:[%s10855_s19 + $0xf0] sm:$0xff] %vm11612_vm12, %v6047_v39  ;;  %v6050_v46 = vadd.f32 %v10850_v49, %v6049_v33  ;;  %v6051_v32 = vpop.f32.mrb[99].mxu0  ;;  %v6355_v33 = vlaneseq  ;;  %vm11624_vm4 = vmmov %vm11567_vm0 }
 0x4ea   : > { %v11111_v54 = vld [vmem:[%s10855_s19 + $0xe8] sm:$0xff]  ;;  %v6173_v47 = vadd.f32 %v6172_v51, %v6171_v1  ;;  %vm11625_vm12 = vmmov %vm11567_vm0 }
 0x4eb   : > { %6084 = vst.msk [vmem:[%s10855_s19 + $0xf8] sm:$0xff] %vm11613_vm7, %v6050_v46  ;;  %v6174_v43 = vsel %vm11614_vm10, %v11111_v54, 0.0  ;;  %v6356_v51 = vshrl.u32 %v6355_v33, 7  ;;  %vm11626_vm7 = vmmov %vm11567_vm0 }
 0x4ec   : > { %v6175_v57 = vadd.f32 %v6174_v43, %v6173_v47  ;;  %vm11627_vm10 = vmmov %vm11567_vm0 }
 0x4ed   : > { %v6357_v46 = vsub.s32 0, %v6356_v51 }
 0x4f0   : > { %v11118_v63 = vld [vmem:[%s10855_s19 + $0xf0] sm:$0xff] }
 0x4f1   : > { %v6176_v44 = vsel %vm11615_vm9, %v11118_v63, 0.0  ;;  %vm11628_vm9 = vmmov %vm11567_vm0 }
 0x4f2   : > { %v11123_v38 = vld [vmem:[%s10855_s19 + $0xf8] sm:$0xff]  ;;  %v6177_v35 = vadd.f32 %v6176_v44, %v6175_v57 }
 0x4f3   : > { %v6178_v49 = vsel %vm11616_vm2, %v11123_v38, 0.0  ;;  %vm11629_vm2 = vmmov %vm11567_vm0 }
 0x4f4   : > { %v6179_v12 = vadd.f32 %v6178_v49, %v6177_v35 }
 0x4f6   : > { %v6180_v42 = vrot.slane %v6179_v12, 4 }
 0x4f8   : > { %v6181_v41 = vadd.f32 %v6180_v42, %v6179_v12 }
 0x4fa   : > { %v6182_v36 = vrot.slane %v6181_v41, 2 }
 0x4fc   : > { %v6183_v40 = vadd.f32 %v6182_v36, %v6181_v41 }
 0x4fe   : > { %v6184_v55 = vrot.slane %v6183_v40, 1 }
 0x500   : > { %v6185_v22 = vadd.f32 %v6184_v55, %v6183_v40 }
 0x502   : > { %v6187_v2 = vmul.f32 0.00390625, %v6185_v22 }
 0x504   : > { %6824 = vmatmul.mubr.msk.f32.vlgmr.msra.gmra.mrb[92].mxu1 %vm11617_vm8, %v6187_v2  ;;  %vm11630_vm8 = vmmov %vm11567_vm0 }
 0x505   : > { %6828 = vmatprep.mubr.msk.f32.mxu1 %vm7209_vm14, %v7210_v53  ;;  %6827 = vmatpush3.msk.msra.mxu1 %vm6275_vm6, %v6269_v45  ;;  %v6270_v53 = vld [vmem:[%s11294_s8] sm:$0x1]  ;;  %vm11618_vm14 = vmmov %vm11567_vm0 }
 0x506   : > { %vm11631_vm6 = vmmov %vm11567_vm0 }
 0x5d7   : > { %v6264_v25 = vpop.f32.mrb[92].mxu1 }
 0x5d8   : > { %v6265_v13 = vadd.f32 %v6264_v25, %v6194_v23  ;;  %v6825_v62 = vpop.f32.mrb[93].mxu1 }
 0x5da   : > { %v6268_v3 = vmax.f32 %v6265_v13, 0.0 }
 0x5dc   : > { %6829 = vmatmul.mubr.msk.f32.vlgmr.msra.gmra.mrb[94].mxu1 %vm6271_vm13, %v6268_v3  ;;  %vm11632_vm13 = vmmov %vm11567_vm0 }
 0x6af   : > { %v6345_v61 = vpop.f32.mrb[94].mxu1 }
 0x6b0   : > { %v6346_v31 = vadd.f32 %v6345_v61, %v6270_v53  ;;  %v6830_v48 = vpop.f32.mrb[95].mxu1 }
 0x6b2   : > { %v6682_v18 = vmul.f32 -1.442695, %v6346_v31 }
 0x6b4   : > { %7081 = vpow2.f32 %v6682_v18 }
 0x6be   : > { %v7082_v39 = vpop.eup %7081 }
 0x6bf   : > { %v6352_v24 = vadd.f32 1.0, %v7082_v39 }
 0x6c1   : > { %7083 = vrcp.f32 %v6352_v24 }
 0x6cb   : > { %v7084_v32 = vpop.eup %7083 }
 0x6cc   : > { %v6358_v1 = vrot.slane %v7084_v32, %v6357_v46 }
 0x6ce   : > { %v6359_v47 = vmul.f32 %v6358_v1, %v10917_v14  ;;  %v6360_v43 = vmul.f32 %v6358_v1, %v10914_v30  ;;  %v6361_v57 = vmul.f32 %v6358_v1, %v10920_v27  ;;  %v6362_v44 = vmul.f32 %v6358_v1, %v10929_v34 }
 0x6cf   : > { %v6363_v35 = vmul.f32 %v6358_v1, %v10932_v8  ;;  %v6364_v49 = vmul.f32 %v6358_v1, %v10943_v59  ;;  %v6365_v12 = vmul.f32 %v6358_v1, %v10948_v19  ;;  %v6366_v42 = vmul.f32 %v6358_v1, %v10955_v5 }
 0x6d0   : > { %v6367_v14 = vmul.f32 %v6358_v1, %v10959_v6  ;;  %v6368_v30 = vmul.f32 %v6358_v1, %v10971_v21  ;;  %v6369_v27 = vmul.f32 %v6358_v1, %v10974_v56  ;;  %v6370_v34 = vmul.f32 %v6358_v1, %v10982_v16  ;;  %6391 = vst.msk [vmem:[%s10855_s19] sm:$0xff] %vm11618_vm14, %v6359_v47  ;;  %vm11633_vm14 = vmmov %vm11567_vm0 }
 0x6d1   : > { %6392 = vst.msk [vmem:[%s10855_s19 + $0x8] sm:$0xff] %vm11619_vm15, %v6360_v43  ;;  %v6371_v8 = vmul.f32 %v6358_v1, %v10988_v52  ;;  %v6372_v59 = vmul.f32 %v6358_v1, %v10997_v58  ;;  %v6373_v19 = vmul.f32 %v6358_v1, %v11000_v60  ;;  %v6374_v5 = vmul.f32 %v6358_v1, %v11008_v26  ;;  %vm11634_vm15 = vmmov %vm11567_vm0 }
 0x6d2   : > { %6393 = vst.msk [vmem:[%s10855_s19 + $0x10] sm:$0xff] %vm11620_vm5, %v6361_v57  ;;  %v6375_v6 = vmul.f32 %v6358_v1, %v11014_v29  ;;  %v6376_v21 = vmul.f32 %v6358_v1, %v11023_v11  ;;  %v6377_v56 = vmul.f32 %v6358_v1, %v11027_v4  ;;  %v6378_v16 = vmul.f32 %v6358_v1, %v11039_v37  ;;  %vm11635_vm5 = vmmov %vm11567_vm0 }
 0x6d3   : > { %6394 = vst.msk [vmem:[%s10855_s19 + $0x18] sm:$0xff] %vm11621_vm3, %v6362_v44  ;;  %v6379_v52 = vmul.f32 %v6358_v1, %v11042_v0  ;;  %v6380_v58 = vmul.f32 %v6358_v1, %v11053_v28  ;;  %v6381_v60 = vmul.f32 %v6358_v1, %v11058_v10  ;;  %v6382_v26 = vmul.f32 %v6358_v1, %v11066_v7  ;;  %vm11636_vm3 = vmmov %vm11567_vm0 }
 0x6d4   : > { %6395 = vst.msk [vmem:[%s10855_s19 + $0x20] sm:$0xff] %vm11622_vm11, %v6363_v35  ;;  %v6383_v29 = vmul.f32 %v6358_v1, %v11072_v9  ;;  %v6384_v11 = vmul.f32 %v6358_v1, %v11081_v50  ;;  %v6385_v4 = vmul.f32 %v6358_v1, %v11085_v20  ;;  %v6386_v37 = vmul.f32 %v6358_v1, %v11097_v17  ;;  %vm11637_vm11 = vmmov %vm11567_vm0 }
 0x6d5   : > { %6396 = vst.msk [vmem:[%s10855_s19 + $0x28] sm:$0xff] %vm11567_vm0, %v6364_v49  ;;  %v6387_v0 = vmul.f32 %v6358_v1, %v11103_v15  ;;  %v6388_v28 = vmul.f32 %v6358_v1, %v11111_v54  ;;  %v6389_v10 = vmul.f32 %v6358_v1, %v11118_v63  ;;  %v6390_v7 = vmul.f32 %v6358_v1, %v11123_v38 }
 0x6d6   : > { %6397 = vst.msk [vmem:[%s10855_s19 + $0x30] sm:$0xff] %vm11623_vm1, %v6365_v12  ;;  %vm11638_vm1 = vmmov %vm11567_vm0 }
 0x6d7   : > { %6398 = vst.msk [vmem:[%s10855_s19 + $0x38] sm:$0xff] %vm11624_vm4, %v6366_v42  ;;  %vm11639_vm4 = vmmov %vm11567_vm0 }
 0x6d8   : > { %6399 = vst.msk [vmem:[%s10855_s19 + $0x40] sm:$0xff] %vm11625_vm12, %v6367_v14  ;;  %vm11640_vm12 = vmmov %vm11567_vm0 }
 0x6d9   : > { %6400 = vst.msk [vmem:[%s10855_s19 + $0x48] sm:$0xff] %vm11626_vm7, %v6368_v30  ;;  %vm11641_vm7 = vmmov %vm11567_vm0 }
 0x6da   : > { %6401 = vst.msk [vmem:[%s10855_s19 + $0x50] sm:$0xff] %vm11627_vm10, %v6369_v27  ;;  %vm11642_vm10 = vmmov %vm11567_vm0 }
 0x6db   : > { %6402 = vst.msk [vmem:[%s10855_s19 + $0x58] sm:$0xff] %vm11628_vm9, %v6370_v34  ;;  %vm11643_vm9 = vmmov %vm11567_vm0 }
 0x6dc   : > { %6403 = vst.msk [vmem:[%s10855_s19 + $0x60] sm:$0xff] %vm11629_vm2, %v6371_v8  ;;  %vm11644_vm2 = vmmov %vm11567_vm0 }
 0x6dd   : > { %6404 = vst.msk [vmem:[%s10855_s19 + $0x68] sm:$0xff] %vm11630_vm8, %v6372_v59  ;;  %vm11645_vm8 = vmmov %vm11567_vm0 }
 0x6de   : > { %6405 = vst.msk [vmem:[%s10855_s19 + $0x70] sm:$0xff] %vm11631_vm6, %v6373_v19  ;;  %vm11646_vm6 = vmmov %vm11567_vm0 }
 0x6df   : > { %6406 = vst.msk [vmem:[%s10855_s19 + $0x78] sm:$0xff] %vm11632_vm13, %v6374_v5  ;;  %vm11647_vm13 = vmmov %vm11567_vm0 }
 0x6e0   : > { %6407 = vst.msk [vmem:[%s10855_s19 + $0x80] sm:$0xff] %vm11633_vm14, %v6375_v6 }
 0x6e1   : > { %6408 = vst.msk [vmem:[%s10855_s19 + $0x88] sm:$0xff] %vm11634_vm15, %v6376_v21 }
 0x6e2   : > { %6409 = vst.msk [vmem:[%s10855_s19 + $0x90] sm:$0xff] %vm11635_vm5, %v6377_v56 }
 0x6e3   : > { %6410 = vst.msk [vmem:[%s10855_s19 + $0x98] sm:$0xff] %vm11636_vm3, %v6378_v16 }
 0x6e4   : > { %6411 = vst.msk [vmem:[%s10855_s19 + $0xa0] sm:$0xff] %vm11637_vm11, %v6379_v52 }
 0x6e5   : > { %6412 = vst.msk [vmem:[%s10855_s19 + $0xa8] sm:$0xff] %vm11567_vm0, %v6380_v58 }
 0x6e6   : > { %6413 = vst.msk [vmem:[%s10855_s19 + $0xb0] sm:$0xff] %vm11638_vm1, %v6381_v60 }
 0x6e7   : > { %6414 = vst.msk [vmem:[%s10855_s19 + $0xb8] sm:$0xff] %vm11639_vm4, %v6382_v26 }
 0x6e8   : > { %6415 = vst.msk [vmem:[%s10855_s19 + $0xc0] sm:$0xff] %vm11640_vm12, %v6383_v29 }
 0x6e9   : > { %6416 = vst.msk [vmem:[%s10855_s19 + $0xc8] sm:$0xff] %vm11641_vm7, %v6384_v11 }
 0x6ea   : > { %6417 = vst.msk [vmem:[%s10855_s19 + $0xd0] sm:$0xff] %vm11642_vm10, %v6385_v4 }
 0x6eb   : > { %6418 = vst.msk [vmem:[%s10855_s19 + $0xd8] sm:$0xff] %vm11643_vm9, %v6386_v37 }
 0x6ec   : > { %6419 = vst.msk [vmem:[%s10855_s19 + $0xe0] sm:$0xff] %vm11644_vm2, %v6387_v0 }
 0x6ed   : > { %6420 = vst.msk [vmem:[%s10855_s19 + $0xe8] sm:$0xff] %vm11645_vm8, %v6388_v28 }
 0x6ee   : > { %6421 = vst.msk [vmem:[%s10855_s19 + $0xf0] sm:$0xff] %vm11646_vm6, %v6389_v10 }
 0x6ef   : > { %6422 = vst.msk [vmem:[%s10855_s19 + $0xf8] sm:$0xff] %vm11647_vm13, %v6390_v7 }
 0x6f0   : > { %7142 = shalt.err (!%p7139_p2)
}
 0x6f1   : > { %s7143_s19 = scalar_lea.hbm %s11212_s17, 4096  ;;  %s7147_s13 = scalar_lea.hbm %s11295_s9, 8192 }
 0x6f2   : > { %p7144_p4 = scmp.ne.s32.totalorder %s11212_s17, %s7143_s19  ;;  %p7148_p9 = scmp.lt.u32.totalorder %s11212_s17, %s11295_s9 }
 0x6f3   : > { %p7149_p1 = scmp.lt.u32.totalorder %s7147_s13, %s7143_s19  ;;  %p7151_p6 = scmp.lt.u32.totalorder %s7143_s19, %s11212_s17 }
 0x6f4   : > { %p7145_p5 = pnand %p7144_p4, %p11648_p11 }
 0x6f5   : > { %p7150_p3 = por %p7149_p1, %p7148_p9 }
 0x6f6   : > { %p7146_p7 = pneg %p7145_p5 }
 0x6f7   : > { %p7152_p12 = por %p7151_p6, %p7150_p3 }
 0x6f9   : > { %p7153_p13 = pnand %p7152_p12, %p7146_p7 }
 0x6fb   : > { %7156 = shalt.err (!%p7153_p13)
}
 0x6fc   : > { %s7212_s26 = smov 128   ;;  %s7213_s23 = smov 8  }
 0x6fd   : > { %6858 = dma.vmem_to_hbm [thread:$0]  (%p11648_p11), %s11214_s14, 4096, %s11212_s17, %s6424_s27, %s7212_s26, %s7212_s26, %s7213_s23  }
 0x6fe PF: > { %s6452_s24 = sand.u32 1, %s7183_s30   ;;  %p11649_p8 = scmp.ne.s32.totalorder %s11332_s22, 0 }
 0x6ff   : > { %p11650_p10 = scmp.ge.s32.totalorder %s7195_s12, 2  ;;  %s6453_s19 = scalar_lea.sflag [#allocation7], %s6452_s24 }
 0x701   : > { %p6865_p0 = pnand %p11650_p10, %p11649_p8 }
 0x703   : > { %7178 = dma.done.wait (!%p6865_p0), %s6453_s19, 4096  }
 0x704   : > { %7180 = vsyncadd (!%p6865_p0), %s6453_s19, 4294963200  ;;  %p22_p2 = scmp.ge.s32.totalorder %s7289_s15, 4   ;;  %s11651_s30 = smov %s7187_s10 }
 0x705   : > { %s11652_s10 = smov %s7191_s11  ;;  %s11653_s11 = smov %s7301_s18 }
 0x706   : > { %s11654_s12 = smov %s7289_s15  ;;  %24 = sbr.rel (!%p22_p2) target bundleno = 5 (0x5), region = 107 }
 0x70d   :  { %6458 = vsyncpa [#allocation6], 1 }
 0x70e   :  { %6460 = vsyncpa [#allocation6 + $0x1], 1 }
 0x70f   :  { %6461 = vsyncpa [#allocation7], 1 }
 0x710   :  { %6463 = vsyncpa [#allocation7 + $0x1], 1 }

</bundles_post_ra>
